<compile_context>
chip_gen: v7x
topology: tpu7x:2x2x1
jax: 0.10.0
libtpu: 0.0.40
codegen_flags: <defaults>
</compile_context>

<pallas_src>
import math

import jax
import jax.numpy as jnp
from jax import lax
from jax.experimental import pallas as pl
from jax.experimental.pallas import tpu as pltpu  # noqa: F401  (TPU backend)

# ------------------------- model hyperparameters -------------------------
D_MODEL = 32
N_HEADS = 4
D_K = D_MODEL // N_HEADS
D_FF = 64
N_LAYERS = 2
SRC_VOCAB = 16
TGT_VOCAB = 16
EPS = 1e-6
MAX_LEN = 64
NEG = -1e9


# ----------------------------- BlockSpec helper -----------------------------
def _full_spec(shape):
    # whole array as a single VMEM block (empty grid)
    n = len(shape)
    return pl.BlockSpec(tuple(shape), lambda *_: (0,) * n)


# --------------------------- in-kernel math helpers ---------------------------
def _layer_norm(x, a, b):
    # Annotated-transformer LayerNorm: unbiased std, divide by (std + eps)
    d = x.shape[-1]
    mean = jnp.mean(x, axis=-1, keepdims=True)
    xc = x - mean
    var = jnp.sum(xc * xc, axis=-1, keepdims=True) * (1.0 / (d - 1))
    std = jnp.sqrt(var)
    return a * xc / (std + EPS) + b


def _attention(q_all, k_all, v_all, bias, wo, bo):
    """Multi-head attention + output projection.

    q_all: [Rq, D], k_all/v_all: [Rk, D], bias: [Rq, Rk] additive
    (block-diagonal over batch, -1e9 on masked / cross-batch entries).
    Per-head results are accumulated straight into the output projection
    (row-sliced wo) -> no lane-dim concatenate.
    """
    scale = 1.0 / math.sqrt(D_K)
    out = None
    for h in range(N_HEADS):                      # static loop, static slices
        lo = h * D_K
        q = q_all[:, lo:lo + D_K]
        k = k_all[:, lo:lo + D_K]
        v = v_all[:, lo:lo + D_K]
        s = lax.dot_general(q, k, (((1,), (1,)), ((), ())),
                            preferred_element_type=jnp.float32) * scale + bias
        s = s - jnp.max(s, axis=-1, keepdims=True)
        e = jnp.exp(s)
        p = e / jnp.sum(e, axis=-1, keepdims=True)
        oh = jnp.dot(p, v, preferred_element_type=jnp.float32)       # [Rq, dk]
        c = jnp.dot(oh, wo[lo:lo + D_K, :],
                    preferred_element_type=jnp.float32)              # [Rq, D]
        out = c if out is None else out + c
    return out + bo


def _ffn(x, w1, b1, w2, b2):
    h = jnp.maximum(
        jnp.dot(x, w1, preferred_element_type=jnp.float32) + b1, 0.0)
    return jnp.dot(h, w2, preferred_element_type=jnp.float32) + b2


def _embed(tok, lut, pe_rows):
    # one-hot matmul embedding gather (in-kernel), * sqrt(d_model), + PE
    n = tok.shape[0]
    vocab = lut.shape[0]
    one_hot = (lax.broadcasted_iota(jnp.int32, (n, vocab), 1)
               == tok).astype(jnp.float32)
    return (jnp.dot(one_hot, lut, preferred_element_type=jnp.float32)
            * math.sqrt(D_MODEL) + pe_rows)


# ----------------------------- fully fused kernel -----------------------------
def _fwd_kernel(
    # tokens / PE / biases / LUTs
    src_tok_ref, tgt_tok_ref, pe_src_ref, pe_tgt_ref,
    enc_bias_ref, dself_bias_ref, dcross_bias_ref,
    src_lut_ref, tgt_lut_ref,
    # encoder layer stacks  [N_LAYERS, ...]
    e_ln0a_ref, e_ln0b_ref, e_wqkv_ref, e_bqkv_ref, e_wo_ref, e_bo_ref,
    e_ln1a_ref, e_ln1b_ref, e_w1_ref, e_b1_ref, e_w2_ref, e_b2_ref,
    # encoder final norm
    enc_na_ref, enc_nb_ref,
    # decoder layer stacks  [N_LAYERS, ...]
    d_ln0a_ref, d_ln0b_ref, d_swqkv_ref, d_sbqkv_ref, d_swo_ref, d_sbo_ref,
    d_ln1a_ref, d_ln1b_ref, d_cwq_ref, d_cbq_ref, d_cwkv_ref, d_cbkv_ref,
    d_cwo_ref, d_cbo_ref, d_ln2a_ref, d_ln2b_ref,
    d_w1_ref, d_b1_ref, d_w2_ref, d_b2_ref,
    # decoder final norm + generator
    dec_na_ref, dec_nb_ref, gen_w_ref, gen_b_ref,
    # output
    o_ref,
):
    # ------------------------------ encoder ------------------------------
    enc_bias = enc_bias_ref[...]                          # [B*Ss, B*Ss]
    x = _embed(src_tok_ref[...], src_lut_ref[...], pe_src_ref[...])
    for l in range(N_LAYERS):                             # static unrolled
        xn = _layer_norm(x, e_ln0a_ref[l], e_ln0b_ref[l])
        qkv = (jnp.dot(xn, e_wqkv_ref[l], preferred_element_type=jnp.float32)
               + e_bqkv_ref[l])                           # [B*Ss, 3D]
        x = x + _attention(qkv[:, :D_MODEL], qkv[:, D_MODEL:2 * D_MODEL],
                           qkv[:, 2 * D_MODEL:], enc_bias,
                           e_wo_ref[l], e_bo_ref[l])
        xn = _layer_norm(x, e_ln1a_ref[l], e_ln1b_ref[l])
        x = x + _ffn(xn, e_w1_ref[l], e_b1_ref[l], e_w2_ref[l], e_b2_ref[l])
    memory = _layer_norm(x, enc_na_ref[...], enc_nb_ref[...])

    # ------------------------------ decoder ------------------------------
    dself_bias = dself_bias_ref[...]                      # [B*St, B*St]
    dcross_bias = dcross_bias_ref[...]                    # [B*St, B*Ss]
    y = _embed(tgt_tok_ref[...], tgt_lut_ref[...], pe_tgt_ref[...])
    for l in range(N_LAYERS):
        # masked self-attention
        yn = _layer_norm(y, d_ln0a_ref[l], d_ln0b_ref[l])
        qkv = (jnp.dot(yn, d_swqkv_ref[l], preferred_element_type=jnp.float32)
               + d_sbqkv_ref[l])
        y = y + _attention(qkv[:, :D_MODEL], qkv[:, D_MODEL:2 * D_MODEL],
                           qkv[:, 2 * D_MODEL:], dself_bias,
                           d_swo_ref[l], d_sbo_ref[l])
        # cross-attention over encoder memory
        yn = _layer_norm(y, d_ln1a_ref[l], d_ln1b_ref[l])
        q = (jnp.dot(yn, d_cwq_ref[l], preferred_element_type=jnp.float32)
             + d_cbq_ref[l])
        kv = (jnp.dot(memory, d_cwkv_ref[l],
                      preferred_element_type=jnp.float32) + d_cbkv_ref[l])
        y = y + _attention(q, kv[:, :D_MODEL], kv[:, D_MODEL:], dcross_bias,
                           d_cwo_ref[l], d_cbo_ref[l])
        # feed-forward
        yn = _layer_norm(y, d_ln2a_ref[l], d_ln2b_ref[l])
        y = y + _ffn(yn, d_w1_ref[l], d_b1_ref[l], d_w2_ref[l], d_b2_ref[l])

    # --------- generator: decoder final LN -> linear -> log_softmax ---------
    yn = _layer_norm(y, dec_na_ref[...], dec_nb_ref[...])
    logits = (jnp.dot(yn, gen_w_ref[...], preferred_element_type=jnp.float32)
              + gen_b_ref[...])
    z = logits - jnp.max(logits, axis=-1, keepdims=True)
    o_ref[...] = z - jnp.log(jnp.sum(jnp.exp(z), axis=-1, keepdims=True))


# --------------------------------- JAX glue ---------------------------------
def _block_bias(mask, s_q):
    """0/1 mask [B, 1 or Sq, Sk] -> block-diagonal additive bias
    [B*Sq, B*Sk] (0 keep / -1e9 drop, cross-batch entries also -1e9)."""
    b = mask.shape[0]
    s_k = mask.shape[-1]
    m = jnp.broadcast_to(mask.astype(jnp.float32), (b, s_q, s_k))
    eye = jnp.eye(b, dtype=jnp.float32)
    keep = jnp.einsum('bqk,bc->bqck', m, eye).reshape(b * s_q, b * s_k)
    return (1.0 - keep) * NEG


def encoder_decoder_forward(params, src, tgt, src_mask, tgt_mask):
    b, s_src = src.shape
    s_tgt = tgt.shape[1]

    enc_bias = _block_bias(src_mask, s_src)      # [B*Ss, B*Ss]
    dself_bias = _block_bias(tgt_mask, s_tgt)    # [B*St, B*St]
    dcross_bias = _block_bias(src_mask, s_tgt)   # [B*St, B*Ss]

    src_tok = src.reshape(b * s_src, 1).astype(jnp.int32)
    tgt_tok = tgt.reshape(b * s_tgt, 1).astype(jnp.int32)
    pe = params["pe"]
    pe_src = jnp.tile(pe[:s_src], (b, 1))        # [B*Ss, D]
    pe_tgt = jnp.tile(pe[:s_tgt], (b, 1))        # [B*St, D]

    enc, dec = params["enc"], params["dec"]
    args = (
        src_tok, tgt_tok, pe_src, pe_tgt,
        enc_bias, dself_bias, dcross_bias,
        params["src_lut"], params["tgt_lut"],
        enc["ln0_a"], enc["ln0_b"], enc["wqkv"], enc["bqkv"],
        enc["wo"], enc["bo"],
        enc["ln1_a"], enc["ln1_b"],
        enc["ff_w1"], enc["ff_b1"], enc["ff_w2"], enc["ff_b2"],
        params["enc_norm_a"], params["enc_norm_b"],
        dec["ln0_a"], dec["ln0_b"], dec["s_wqkv"], dec["s_bqkv"],
        dec["s_wo"], dec["s_bo"],
        dec["ln1_a"], dec["ln1_b"], dec["c_wq"], dec["c_bq"],
        dec["c_wkv"], dec["c_bkv"], dec["c_wo"], dec["c_bo"],
        dec["ln2_a"], dec["ln2_b"],
        dec["ff_w1"], dec["ff_b1"], dec["ff_w2"], dec["ff_b2"],
        params["dec_norm_a"], params["dec_norm_b"],
        params["gen_w"], params["gen_b"],
    )

    out = pl.pallas_call(
        _fwd_kernel,
        out_shape=jax.ShapeDtypeStruct((b * s_tgt, TGT_VOCAB), jnp.float32),
        in_specs=[_full_spec(a.shape) for a in args],
        out_specs=_full_spec((b * s_tgt, TGT_VOCAB)),
    )(*args)
    return out.reshape(b, s_tgt, TGT_VOCAB)


# --------------------------- parameter creation ---------------------------
def _init_linear(key, fan_in, fan_out):
    kw, kb = jax.random.split(key)
    w = jax.random.normal(kw, (fan_in, fan_out), jnp.float32) / math.sqrt(fan_in)
    b = 0.01 * jax.random.normal(kb, (1, fan_out), jnp.float32)
    return w, b


def _ln_pair():
    return (jnp.ones((1, D_MODEL), jnp.float32),
            jnp.zeros((1, D_MODEL), jnp.float32))


def _init_enc_layer(key):
    kq, kk, kv, ko, k1, k2 = jax.random.split(key, 6)
    wq, bq = _init_linear(kq, D_MODEL, D_MODEL)
    wk, bk = _init_linear(kk, D_MODEL, D_MODEL)
    wv, bv = _init_linear(kv, D_MODEL, D_MODEL)
    wo, bo = _init_linear(ko, D_MODEL, D_MODEL)
    w1, b1 = _init_linear(k1, D_MODEL, D_FF)
    w2, b2 = _init_linear(k2, D_FF, D_MODEL)
    a0, bb0 = _ln_pair()
    a1, bb1 = _ln_pair()
    return dict(
        ln0_a=a0, ln0_b=bb0,
        wqkv=jnp.concatenate([wq, wk, wv], axis=1),
        bqkv=jnp.concatenate([bq, bk, bv], axis=1),
        wo=wo, bo=bo,
        ln1_a=a1, ln1_b=bb1,
        ff_w1=w1, ff_b1=b1, ff_w2=w2, ff_b2=b2,
    )


def _init_dec_layer(key):
    (ksq, ksk, ksv, kso, kcq, kck, kcv, kco, k1, k2) = jax.random.split(key, 10)
    wq, bq = _init_linear(ksq, D_MODEL, D_MODEL)
    wk, bk = _init_linear(ksk, D_MODEL, D_MODEL)
    wv, bv = _init_linear(ksv, D_MODEL, D_MODEL)
    wo, bo = _init_linear(kso, D_MODEL, D_MODEL)
    cqw, cqb = _init_linear(kcq, D_MODEL, D_MODEL)
    ckw, ckb = _init_linear(kck, D_MODEL, D_MODEL)
    cvw, cvb = _init_linear(kcv, D_MODEL, D_MODEL)
    cow, cob = _init_linear(kco, D_MODEL, D_MODEL)
    w1, b1 = _init_linear(k1, D_MODEL, D_FF)
    w2, b2 = _init_linear(k2, D_FF, D_MODEL)
    a0, bb0 = _ln_pair()
    a1, bb1 = _ln_pair()
    a2, bb2 = _ln_pair()
    return dict(
        ln0_a=a0, ln0_b=bb0,
        s_wqkv=jnp.concatenate([wq, wk, wv], axis=1),
        s_bqkv=jnp.concatenate([bq, bk, bv], axis=1),
        s_wo=wo, s_bo=bo,
        ln1_a=a1, ln1_b=bb1,
        c_wq=cqw, c_bq=cqb,
        c_wkv=jnp.concatenate([ckw, cvw], axis=1),
        c_bkv=jnp.concatenate([ckb, cvb], axis=1),
        c_wo=cow, c_bo=cob,
        ln2_a=a2, ln2_b=bb2,
        ff_w1=w1, ff_b1=b1, ff_w2=w2, ff_b2=b2,
    )


def _positional_encoding(max_len, d_model):
    pos = jnp.arange(max_len, dtype=jnp.float32)[:, None]
    div = jnp.exp(jnp.arange(0, d_model, 2, dtype=jnp.float32)
                  * (-math.log(10000.0) / d_model))
    pe = jnp.zeros((max_len, d_model), jnp.float32)
    pe = pe.at[:, 0::2].set(jnp.sin(pos * div))
    pe = pe.at[:, 1::2].set(jnp.cos(pos * div))
    return pe


def init_params(seed=42):
    key = jax.random.PRNGKey(seed)
    keys = jax.random.split(key, 3 + 2 * N_LAYERS)
    gen_w, gen_b = _init_linear(keys[0], D_MODEL, TGT_VOCAB)
    enc_layers = [_init_enc_layer(k) for k in keys[3:3 + N_LAYERS]]
    dec_layers = [_init_dec_layer(k) for k in keys[3 + N_LAYERS:3 + 2 * N_LAYERS]]
    # stack per-layer weights -> [N_LAYERS, ...] (indexed statically in-kernel)
    enc = jax.tree_util.tree_map(lambda *xs: jnp.stack(xs, 0), *enc_layers)
    dec = jax.tree_util.tree_map(lambda *xs: jnp.stack(xs, 0), *dec_layers)
    enc_na, enc_nb = _ln_pair()
    dec_na, dec_nb = _ln_pair()
    return dict(
        src_lut=jax.random.normal(keys[1], (SRC_VOCAB, D_MODEL), jnp.float32),
        tgt_lut=jax.random.normal(keys[2], (TGT_VOCAB, D_MODEL), jnp.float32),
        pe=_positional_encoding(MAX_LEN, D_MODEL),
        enc=enc, dec=dec,
        enc_norm_a=enc_na, enc_norm_b=enc_nb,
        dec_norm_a=dec_na, dec_norm_b=dec_nb,
        gen_w=gen_w, gen_b=gen_b,
    )


# --------------------------- pure-JAX reference ---------------------------
def _reference_forward(params, src, tgt, src_mask, tgt_mask):
    def ln(x, a, b):
        mean = x.mean(-1, keepdims=True)
        var = jnp.sum((x - mean) ** 2, -1, keepdims=True) / (x.shape[-1] - 1)
        return a * (x - mean) / (jnp.sqrt(var) + EPS) + b

    def mha(q, k, v, mask, wo, bo):
        bsz, sq, _ = q.shape
        sk = k.shape[1]
        qh = q.reshape(bsz, sq, N_HEADS, D_K).transpose(0, 2, 1, 3)
        kh = k.reshape(bsz, sk, N_HEADS, D_K).transpose(0, 2, 1, 3)
        vh = v.reshape(bsz, sk, N_HEADS, D_K).transpose(0, 2, 1, 3)
        s = jnp.einsum('bhqd,bhkd->bhqk', qh, kh) / math.sqrt(D_K)
        s = s + (1.0 - mask.astype(jnp.float32))[:, None] * NEG
        p = jax.nn.softmax(s, axis=-1)
        o = jnp.einsum('bhqk,bhkd->bhqd', p, vh)
        o = o.transpose(0, 2, 1, 3).reshape(bsz, sq, D_MODEL)
        return o @ wo + bo

    def ffn(x, w1, b1, w2, b2):
        return jnp.maximum(x @ w1 + b1, 0.0) @ w2 + b2

    def embed(tok, lut, pe):
        return jnp.take(lut, tok, axis=0) * math.sqrt(D_MODEL) + pe[None, :tok.shape[1]]

    enc, dec = params["enc"], params["dec"]

    x = embed(src, params["src_lut"], params["pe"])
    for l in range(N_LAYERS):
        xn = ln(x, enc["ln0_a"][l], enc["ln0_b"][l])
        q, k, v = jnp.split(xn @ enc["wqkv"][l] + enc["bqkv"][l], 3, axis=-1)
        x = x + mha(q, k, v, src_mask, enc["wo"][l], enc["bo"][l])
        xn = ln(x, enc["ln1_a"][l], enc["ln1_b"][l])
        x = x + ffn(xn, enc["ff_w1"][l], enc["ff_b1"][l],
                    enc["ff_w2"][l], enc["ff_b2"][l])
    memory = ln(x, params["enc_norm_a"], params["enc_norm_b"])

    y = embed(tgt, params["tgt_lut"], params["pe"])
    for l in range(N_LAYERS):
        yn = ln(y, dec["ln0_a"][l], dec["ln0_b"][l])
        q, k, v = jnp.split(yn @ dec["s_wqkv"][l] + dec["s_bqkv"][l], 3, axis=-1)
        y = y + mha(q, k, v, tgt_mask, dec["s_wo"][l], dec["s_bo"][l])
        yn = ln(y, dec["ln1_a"][l], dec["ln1_b"][l])
        q = yn @ dec["c_wq"][l] + dec["c_bq"][l]
        k, v = jnp.split(memory @ dec["c_wkv"][l] + dec["c_bkv"][l], 2, axis=-1)
        y = y + mha(q, k, v, src_mask, dec["c_wo"][l], dec["c_bo"][l])
        yn = ln(y, dec["ln2_a"][l], dec["ln2_b"][l])
        y = y + ffn(yn, dec["ff_w1"][l], dec["ff_b1"][l],
                    dec["ff_w2"][l], dec["ff_b2"][l])

    yn = ln(y, params["dec_norm_a"], params["dec_norm_b"])
    return jax.nn.log_softmax(yn @ params["gen_w"] + params["gen_b"], axis=-1)


# ---------------------------------- main -----------------------------------
if __name__ == "__main__":
    B, S_SRC, S_TGT = 2, 8, 8

    params = init_params(seed=42)

    key = jax.random.PRNGKey(0)
    k_src, k_tgt = jax.random.split(key)
    src = jax.random.randint(k_src, (B, S_SRC), 1, SRC_VOCAB, dtype=jnp.int32)
    tgt = jax.random.randint(k_tgt, (B, S_TGT), 1, TGT_VOCAB, dtype=jnp.int32)

    # src_mask: (B, 1, S_src) all-valid; tgt_mask: (B, S_tgt, S_tgt) causal
    src_mask = jnp.ones((B, 1, S_SRC), jnp.float32)
    tgt_mask = jnp.broadcast_to(
        jnp.tril(jnp.ones((S_TGT, S_TGT), jnp.float32))[None], (B, S_TGT, S_TGT))

    fwd = jax.jit(encoder_decoder_forward)
    out = jax.block_until_ready(fwd(params, src, tgt, src_mask, tgt_mask))

    assert out.shape == (B, S_TGT, TGT_VOCAB), out.shape
    # log_softmax rows should sum to ~1 in prob space
    assert jnp.allclose(jnp.exp(out).sum(-1), 1.0, atol=1e-4)
    # tolerance check against a pure-JAX reference of the same forward
    with jax.default_matmul_precision("highest"):
        ref = _reference_forward(params, src, tgt, src_mask, tgt_mask)
    ref = jax.block_until_ready(ref)
    assert jnp.allclose(out, ref, atol=2e-2, rtol=2e-2), \
        float(jnp.max(jnp.abs(out - ref)))
    print("KERNEL_OK")
</pallas_src>

<mosaic_0001>
module attributes {stable_mosaic.version = 11 : i64} {
  func.func @_fwd_kernel(%arg0: memref<16x1xi32, #tpu.memory_space<vmem>>, %arg1: memref<16x1xi32, #tpu.memory_space<vmem>>, %arg2: memref<16x32xf32, #tpu.memory_space<vmem>>, %arg3: memref<16x32xf32, #tpu.memory_space<vmem>>, %arg4: memref<16x16xf32, #tpu.memory_space<vmem>>, %arg5: memref<16x16xf32, #tpu.memory_space<vmem>>, %arg6: memref<16x16xf32, #tpu.memory_space<vmem>>, %arg7: memref<16x32xf32, #tpu.memory_space<vmem>>, %arg8: memref<16x32xf32, #tpu.memory_space<vmem>>, %arg9: memref<2x1x32xf32, #tpu.memory_space<vmem>>, %arg10: memref<2x1x32xf32, #tpu.memory_space<vmem>>, %arg11: memref<2x32x96xf32, #tpu.memory_space<vmem>>, %arg12: memref<2x1x96xf32, #tpu.memory_space<vmem>>, %arg13: memref<2x32x32xf32, #tpu.memory_space<vmem>>, %arg14: memref<2x1x32xf32, #tpu.memory_space<vmem>>, %arg15: memref<2x1x32xf32, #tpu.memory_space<vmem>>, %arg16: memref<2x1x32xf32, #tpu.memory_space<vmem>>, %arg17: memref<2x32x64xf32, #tpu.memory_space<vmem>>, %arg18: memref<2x1x64xf32, #tpu.memory_space<vmem>>, %arg19: memref<2x64x32xf32, #tpu.memory_space<vmem>>, %arg20: memref<2x1x32xf32, #tpu.memory_space<vmem>>, %arg21: memref<1x32xf32, #tpu.memory_space<vmem>>, %arg22: memref<1x32xf32, #tpu.memory_space<vmem>>, %arg23: memref<2x1x32xf32, #tpu.memory_space<vmem>>, %arg24: memref<2x1x32xf32, #tpu.memory_space<vmem>>, %arg25: memref<2x32x96xf32, #tpu.memory_space<vmem>>, %arg26: memref<2x1x96xf32, #tpu.memory_space<vmem>>, %arg27: memref<2x32x32xf32, #tpu.memory_space<vmem>>, %arg28: memref<2x1x32xf32, #tpu.memory_space<vmem>>, %arg29: memref<2x1x32xf32, #tpu.memory_space<vmem>>, %arg30: memref<2x1x32xf32, #tpu.memory_space<vmem>>, %arg31: memref<2x32x32xf32, #tpu.memory_space<vmem>>, %arg32: memref<2x1x32xf32, #tpu.memory_space<vmem>>, %arg33: memref<2x32x64xf32, #tpu.memory_space<vmem>>, %arg34: memref<2x1x64xf32, #tpu.memory_space<vmem>>, %arg35: memref<2x32x32xf32, #tpu.memory_space<vmem>>, %arg36: memref<2x1x32xf32, #tpu.memory_space<vmem>>, %arg37: memref<2x1x32xf32, #tpu.memory_space<vmem>>, %arg38: memref<2x1x32xf32, #tpu.memory_space<vmem>>, %arg39: memref<2x32x64xf32, #tpu.memory_space<vmem>>, %arg40: memref<2x1x64xf32, #tpu.memory_space<vmem>>, %arg41: memref<2x64x32xf32, #tpu.memory_space<vmem>>, %arg42: memref<2x1x32xf32, #tpu.memory_space<vmem>>, %arg43: memref<1x32xf32, #tpu.memory_space<vmem>>, %arg44: memref<1x32xf32, #tpu.memory_space<vmem>>, %arg45: memref<32x16xf32, #tpu.memory_space<vmem>>, %arg46: memref<1x16xf32, #tpu.memory_space<vmem>>, %arg47: memref<16x16xf32, #tpu.memory_space<vmem>>) attributes {dimension_semantics = [], scalar_prefetch = 0 : i64, scratch_operands = 0 : i64, tpu.core_type = #tpu.core_type<tc>} {
    %c0 = arith.constant 0 : index
    %c0_0 = arith.constant 0 : index
    %0 = vector.load %arg4[%c0, %c0_0] : memref<16x16xf32, #tpu.memory_space<vmem>>, vector<16x16xf32>
    %c0_1 = arith.constant 0 : index
    %c0_2 = arith.constant 0 : index
    %1 = vector.load %arg0[%c0_1, %c0_2] : memref<16x1xi32, #tpu.memory_space<vmem>>, vector<16x1xi32>
    %c0_3 = arith.constant 0 : index
    %c0_4 = arith.constant 0 : index
    %2 = vector.load %arg7[%c0_3, %c0_4] : memref<16x32xf32, #tpu.memory_space<vmem>>, vector<16x32xf32>
    %c0_5 = arith.constant 0 : index
    %c0_6 = arith.constant 0 : index
    %3 = vector.load %arg2[%c0_5, %c0_6] : memref<16x32xf32, #tpu.memory_space<vmem>>, vector<16x32xf32>
    %4 = tpu.iota {dimensions = array<i32: 1>} : vector<16x16xi32>
    %5 = vector.broadcast %1 : vector<16x1xi32> to vector<16x16xi32>
    %6 = arith.cmpi eq, %4, %5 : vector<16x16xi32>
    %7 = arith.extui %6 : vector<16x16xi1> to vector<16x16xi32>
    %8 = arith.sitofp %7 : vector<16x16xi32> to vector<16x16xf32>
    %cst = arith.constant dense<0.000000e+00> : vector<16x32xf32>
    %9 = tpu.matmul %8, %2, %cst {dimension_numbers = #tpu.dot_dimension_numbers<[1], [0], [0], [1], [0, 0, 1, 1], [], []>} : vector<16x16xf32>, vector<16x32xf32>, vector<16x32xf32> -> vector<16x32xf32>
    %cst_7 = arith.constant 5.65685415 : f32
    %10 = vector.broadcast %cst_7 : f32 to vector<16x32xf32>
    %11 = arith.mulf %9, %10 : vector<16x32xf32>
    %12 = arith.addf %11, %3 : vector<16x32xf32>
    %c0_8 = arith.constant 0 : index
    %c0_9 = arith.constant 0 : index
    %c0_10 = arith.constant 0 : index
    %13 = vector.load %arg9[%c0_8, %c0_9, %c0_10] : memref<2x1x32xf32, #tpu.memory_space<vmem>>, vector<1x1x32xf32>
    %14 = vector.shape_cast %13 : vector<1x1x32xf32> to vector<1x32xf32>
    %c0_11 = arith.constant 0 : index
    %c0_12 = arith.constant 0 : index
    %c0_13 = arith.constant 0 : index
    %15 = vector.load %arg10[%c0_11, %c0_12, %c0_13] : memref<2x1x32xf32, #tpu.memory_space<vmem>>, vector<1x1x32xf32>
    %16 = vector.shape_cast %15 : vector<1x1x32xf32> to vector<1x32xf32>
    %cst_14 = arith.constant dense<0.000000e+00> : vector<16xf32>
    %17 = vector.multi_reduction <add>, %12, %cst_14 [1] : vector<16x32xf32> to vector<16xf32>
    %18 = vector.shape_cast %17 : vector<16xf32> to vector<16x1xf32>
    %cst_15 = arith.constant 3.200000e+01 : f32
    %19 = vector.broadcast %cst_15 : f32 to vector<16x1xf32>
    %20 = arith.divf %18, %19 : vector<16x1xf32>
    %21 = vector.broadcast %20 : vector<16x1xf32> to vector<16x32xf32>
    %22 = arith.subf %12, %21 : vector<16x32xf32>
    %23 = arith.mulf %22, %22 : vector<16x32xf32>
    %cst_16 = arith.constant dense<0.000000e+00> : vector<16xf32>
    %24 = vector.multi_reduction <add>, %23, %cst_16 [1] : vector<16x32xf32> to vector<16xf32>
    %25 = vector.shape_cast %24 : vector<16xf32> to vector<16x1xf32>
    %cst_17 = arith.constant 0.0322580636 : f32
    %26 = vector.broadcast %cst_17 : f32 to vector<16x1xf32>
    %27 = arith.mulf %25, %26 : vector<16x1xf32>
    %28 = math.sqrt %27 : vector<16x1xf32>
    %29 = vector.broadcast %14 : vector<1x32xf32> to vector<16x32xf32>
    %30 = arith.mulf %29, %22 : vector<16x32xf32>
    %cst_18 = arith.constant 9.99999997E-7 : f32
    %31 = vector.broadcast %cst_18 : f32 to vector<16x1xf32>
    %32 = arith.addf %28, %31 : vector<16x1xf32>
    %33 = vector.broadcast %32 : vector<16x1xf32> to vector<16x32xf32>
    %34 = arith.divf %30, %33 : vector<16x32xf32>
    %35 = vector.broadcast %16 : vector<1x32xf32> to vector<16x32xf32>
    %36 = arith.addf %34, %35 : vector<16x32xf32>
    %c0_19 = arith.constant 0 : index
    %c0_20 = arith.constant 0 : index
    %c0_21 = arith.constant 0 : index
    %37 = vector.load %arg11[%c0_19, %c0_20, %c0_21] : memref<2x32x96xf32, #tpu.memory_space<vmem>>, vector<1x32x96xf32>
    %38 = vector.shape_cast %37 : vector<1x32x96xf32> to vector<32x96xf32>
    %cst_22 = arith.constant dense<0.000000e+00> : vector<16x96xf32>
    %39 = tpu.matmul %36, %38, %cst_22 {dimension_numbers = #tpu.dot_dimension_numbers<[1], [0], [0], [1], [0, 0, 1, 1], [], []>} : vector<16x32xf32>, vector<32x96xf32>, vector<16x96xf32> -> vector<16x96xf32>
    %c0_23 = arith.constant 0 : index
    %c0_24 = arith.constant 0 : index
    %c0_25 = arith.constant 0 : index
    %40 = vector.load %arg12[%c0_23, %c0_24, %c0_25] : memref<2x1x96xf32, #tpu.memory_space<vmem>>, vector<1x1x96xf32>
    %41 = vector.shape_cast %40 : vector<1x1x96xf32> to vector<1x96xf32>
    %42 = vector.broadcast %41 : vector<1x96xf32> to vector<16x96xf32>
    %43 = arith.addf %39, %42 : vector<16x96xf32>
    %44 = vector.extract_strided_slice %43 {offsets = [0, 0], sizes = [16, 32], strides = [1, 1]} : vector<16x96xf32> to vector<16x32xf32>
    %45 = vector.extract_strided_slice %43 {offsets = [0, 32], sizes = [16, 32], strides = [1, 1]} : vector<16x96xf32> to vector<16x32xf32>
    %46 = vector.extract_strided_slice %43 {offsets = [0, 64], sizes = [16, 32], strides = [1, 1]} : vector<16x96xf32> to vector<16x32xf32>
    %c0_26 = arith.constant 0 : index
    %c0_27 = arith.constant 0 : index
    %c0_28 = arith.constant 0 : index
    %47 = vector.load %arg13[%c0_26, %c0_27, %c0_28] : memref<2x32x32xf32, #tpu.memory_space<vmem>>, vector<1x32x32xf32>
    %48 = vector.shape_cast %47 : vector<1x32x32xf32> to vector<32x32xf32>
    %c0_29 = arith.constant 0 : index
    %c0_30 = arith.constant 0 : index
    %c0_31 = arith.constant 0 : index
    %49 = vector.load %arg14[%c0_29, %c0_30, %c0_31] : memref<2x1x32xf32, #tpu.memory_space<vmem>>, vector<1x1x32xf32>
    %50 = vector.shape_cast %49 : vector<1x1x32xf32> to vector<1x32xf32>
    %51 = vector.extract_strided_slice %44 {offsets = [0, 0], sizes = [16, 8], strides = [1, 1]} : vector<16x32xf32> to vector<16x8xf32>
    %52 = vector.extract_strided_slice %45 {offsets = [0, 0], sizes = [16, 8], strides = [1, 1]} : vector<16x32xf32> to vector<16x8xf32>
    %53 = vector.extract_strided_slice %46 {offsets = [0, 0], sizes = [16, 8], strides = [1, 1]} : vector<16x32xf32> to vector<16x8xf32>
    %cst_32 = arith.constant dense<0.000000e+00> : vector<16x16xf32>
    %54 = tpu.matmul %51, %52, %cst_32 {dimension_numbers = #tpu.dot_dimension_numbers<[1], [1], [0], [0], [0, 0, 1, 0], [], []>} : vector<16x8xf32>, vector<16x8xf32>, vector<16x16xf32> -> vector<16x16xf32>
    %cst_33 = arith.constant 0.353553385 : f32
    %55 = vector.broadcast %cst_33 : f32 to vector<16x16xf32>
    %56 = arith.mulf %54, %55 : vector<16x16xf32>
    %57 = arith.addf %56, %0 : vector<16x16xf32>
    %cst_34 = arith.constant dense<0xFF800000> : vector<16xf32>
    %58 = vector.multi_reduction <maximumf>, %57, %cst_34 [1] : vector<16x16xf32> to vector<16xf32>
    %59 = vector.shape_cast %58 : vector<16xf32> to vector<16x1xf32>
    %60 = vector.broadcast %59 : vector<16x1xf32> to vector<16x16xf32>
    %61 = arith.subf %57, %60 : vector<16x16xf32>
    %62 = math.exp %61 : vector<16x16xf32>
    %cst_35 = arith.constant dense<0.000000e+00> : vector<16xf32>
    %63 = vector.multi_reduction <add>, %62, %cst_35 [1] : vector<16x16xf32> to vector<16xf32>
    %64 = vector.shape_cast %63 : vector<16xf32> to vector<16x1xf32>
    %65 = vector.broadcast %64 : vector<16x1xf32> to vector<16x16xf32>
    %66 = arith.divf %62, %65 : vector<16x16xf32>
    %cst_36 = arith.constant dense<0.000000e+00> : vector<16x8xf32>
    %67 = tpu.matmul %66, %53, %cst_36 {dimension_numbers = #tpu.dot_dimension_numbers<[1], [0], [0], [1], [0, 0, 1, 1], [], []>} : vector<16x16xf32>, vector<16x8xf32>, vector<16x8xf32> -> vector<16x8xf32>
    %68 = vector.extract_strided_slice %48 {offsets = [0, 0], sizes = [8, 32], strides = [1, 1]} : vector<32x32xf32> to vector<8x32xf32>
    %cst_37 = arith.constant dense<0.000000e+00> : vector<16x32xf32>
    %69 = tpu.matmul %67, %68, %cst_37 {dimension_numbers = #tpu.dot_dimension_numbers<[1], [0], [0], [1], [0, 0, 1, 1], [], []>} : vector<16x8xf32>, vector<8x32xf32>, vector<16x32xf32> -> vector<16x32xf32>
    %70 = vector.extract_strided_slice %44 {offsets = [0, 8], sizes = [16, 8], strides = [1, 1]} : vector<16x32xf32> to vector<16x8xf32>
    %71 = vector.extract_strided_slice %45 {offsets = [0, 8], sizes = [16, 8], strides = [1, 1]} : vector<16x32xf32> to vector<16x8xf32>
    %72 = vector.extract_strided_slice %46 {offsets = [0, 8], sizes = [16, 8], strides = [1, 1]} : vector<16x32xf32> to vector<16x8xf32>
    %cst_38 = arith.constant dense<0.000000e+00> : vector<16x16xf32>
    %73 = tpu.matmul %70, %71, %cst_38 {dimension_numbers = #tpu.dot_dimension_numbers<[1], [1], [0], [0], [0, 0, 1, 0], [], []>} : vector<16x8xf32>, vector<16x8xf32>, vector<16x16xf32> -> vector<16x16xf32>
    %cst_39 = arith.constant 0.353553385 : f32
    %74 = vector.broadcast %cst_39 : f32 to vector<16x16xf32>
    %75 = arith.mulf %73, %74 : vector<16x16xf32>
    %76 = arith.addf %75, %0 : vector<16x16xf32>
    %cst_40 = arith.constant dense<0xFF800000> : vector<16xf32>
    %77 = vector.multi_reduction <maximumf>, %76, %cst_40 [1] : vector<16x16xf32> to vector<16xf32>
    %78 = vector.shape_cast %77 : vector<16xf32> to vector<16x1xf32>
    %79 = vector.broadcast %78 : vector<16x1xf32> to vector<16x16xf32>
    %80 = arith.subf %76, %79 : vector<16x16xf32>
    %81 = math.exp %80 : vector<16x16xf32>
    %cst_41 = arith.constant dense<0.000000e+00> : vector<16xf32>
    %82 = vector.multi_reduction <add>, %81, %cst_41 [1] : vector<16x16xf32> to vector<16xf32>
    %83 = vector.shape_cast %82 : vector<16xf32> to vector<16x1xf32>
    %84 = vector.broadcast %83 : vector<16x1xf32> to vector<16x16xf32>
    %85 = arith.divf %81, %84 : vector<16x16xf32>
    %cst_42 = arith.constant dense<0.000000e+00> : vector<16x8xf32>
    %86 = tpu.matmul %85, %72, %cst_42 {dimension_numbers = #tpu.dot_dimension_numbers<[1], [0], [0], [1], [0, 0, 1, 1], [], []>} : vector<16x16xf32>, vector<16x8xf32>, vector<16x8xf32> -> vector<16x8xf32>
    %87 = vector.extract_strided_slice %48 {offsets = [8, 0], sizes = [8, 32], strides = [1, 1]} : vector<32x32xf32> to vector<8x32xf32>
    %cst_43 = arith.constant dense<0.000000e+00> : vector<16x32xf32>
    %88 = tpu.matmul %86, %87, %cst_43 {dimension_numbers = #tpu.dot_dimension_numbers<[1], [0], [0], [1], [0, 0, 1, 1], [], []>} : vector<16x8xf32>, vector<8x32xf32>, vector<16x32xf32> -> vector<16x32xf32>
    %89 = arith.addf %69, %88 : vector<16x32xf32>
    %90 = vector.extract_strided_slice %44 {offsets = [0, 16], sizes = [16, 8], strides = [1, 1]} : vector<16x32xf32> to vector<16x8xf32>
    %91 = vector.extract_strided_slice %45 {offsets = [0, 16], sizes = [16, 8], strides = [1, 1]} : vector<16x32xf32> to vector<16x8xf32>
    %92 = vector.extract_strided_slice %46 {offsets = [0, 16], sizes = [16, 8], strides = [1, 1]} : vector<16x32xf32> to vector<16x8xf32>
    %cst_44 = arith.constant dense<0.000000e+00> : vector<16x16xf32>
    %93 = tpu.matmul %90, %91, %cst_44 {dimension_numbers = #tpu.dot_dimension_numbers<[1], [1], [0], [0], [0, 0, 1, 0], [], []>} : vector<16x8xf32>, vector<16x8xf32>, vector<16x16xf32> -> vector<16x16xf32>
    %cst_45 = arith.constant 0.353553385 : f32
    %94 = vector.broadcast %cst_45 : f32 to vector<16x16xf32>
    %95 = arith.mulf %93, %94 : vector<16x16xf32>
    %96 = arith.addf %95, %0 : vector<16x16xf32>
    %cst_46 = arith.constant dense<0xFF800000> : vector<16xf32>
    %97 = vector.multi_reduction <maximumf>, %96, %cst_46 [1] : vector<16x16xf32> to vector<16xf32>
    %98 = vector.shape_cast %97 : vector<16xf32> to vector<16x1xf32>
    %99 = vector.broadcast %98 : vector<16x1xf32> to vector<16x16xf32>
    %100 = arith.subf %96, %99 : vector<16x16xf32>
    %101 = math.exp %100 : vector<16x16xf32>
    %cst_47 = arith.constant dense<0.000000e+00> : vector<16xf32>
    %102 = vector.multi_reduction <add>, %101, %cst_47 [1] : vector<16x16xf32> to vector<16xf32>
    %103 = vector.shape_cast %102 : vector<16xf32> to vector<16x1xf32>
    %104 = vector.broadcast %103 : vector<16x1xf32> to vector<16x16xf32>
    %105 = arith.divf %101, %104 : vector<16x16xf32>
    %cst_48 = arith.constant dense<0.000000e+00> : vector<16x8xf32>
    %106 = tpu.matmul %105, %92, %cst_48 {dimension_numbers = #tpu.dot_dimension_numbers<[1], [0], [0], [1], [0, 0, 1, 1], [], []>} : vector<16x16xf32>, vector<16x8xf32>, vector<16x8xf32> -> vector<16x8xf32>
    %107 = vector.extract_strided_slice %48 {offsets = [16, 0], sizes = [8, 32], strides = [1, 1]} : vector<32x32xf32> to vector<8x32xf32>
    %cst_49 = arith.constant dense<0.000000e+00> : vector<16x32xf32>
    %108 = tpu.matmul %106, %107, %cst_49 {dimension_numbers = #tpu.dot_dimension_numbers<[1], [0], [0], [1], [0, 0, 1, 1], [], []>} : vector<16x8xf32>, vector<8x32xf32>, vector<16x32xf32> -> vector<16x32xf32>
    %109 = arith.addf %89, %108 : vector<16x32xf32>
    %110 = vector.extract_strided_slice %44 {offsets = [0, 24], sizes = [16, 8], strides = [1, 1]} : vector<16x32xf32> to vector<16x8xf32>
    %111 = vector.extract_strided_slice %45 {offsets = [0, 24], sizes = [16, 8], strides = [1, 1]} : vector<16x32xf32> to vector<16x8xf32>
    %112 = vector.extract_strided_slice %46 {offsets = [0, 24], sizes = [16, 8], strides = [1, 1]} : vector<16x32xf32> to vector<16x8xf32>
    %cst_50 = arith.constant dense<0.000000e+00> : vector<16x16xf32>
    %113 = tpu.matmul %110, %111, %cst_50 {dimension_numbers = #tpu.dot_dimension_numbers<[1], [1], [0], [0], [0, 0, 1, 0], [], []>} : vector<16x8xf32>, vector<16x8xf32>, vector<16x16xf32> -> vector<16x16xf32>
    %cst_51 = arith.constant 0.353553385 : f32
    %114 = vector.broadcast %cst_51 : f32 to vector<16x16xf32>
    %115 = arith.mulf %113, %114 : vector<16x16xf32>
    %116 = arith.addf %115, %0 : vector<16x16xf32>
    %cst_52 = arith.constant dense<0xFF800000> : vector<16xf32>
    %117 = vector.multi_reduction <maximumf>, %116, %cst_52 [1] : vector<16x16xf32> to vector<16xf32>
    %118 = vector.shape_cast %117 : vector<16xf32> to vector<16x1xf32>
    %119 = vector.broadcast %118 : vector<16x1xf32> to vector<16x16xf32>
    %120 = arith.subf %116, %119 : vector<16x16xf32>
    %121 = math.exp %120 : vector<16x16xf32>
    %cst_53 = arith.constant dense<0.000000e+00> : vector<16xf32>
    %122 = vector.multi_reduction <add>, %121, %cst_53 [1] : vector<16x16xf32> to vector<16xf32>
    %123 = vector.shape_cast %122 : vector<16xf32> to vector<16x1xf32>
    %124 = vector.broadcast %123 : vector<16x1xf32> to vector<16x16xf32>
    %125 = arith.divf %121, %124 : vector<16x16xf32>
    %cst_54 = arith.constant dense<0.000000e+00> : vector<16x8xf32>
    %126 = tpu.matmul %125, %112, %cst_54 {dimension_numbers = #tpu.dot_dimension_numbers<[1], [0], [0], [1], [0, 0, 1, 1], [], []>} : vector<16x16xf32>, vector<16x8xf32>, vector<16x8xf32> -> vector<16x8xf32>
    %127 = vector.extract_strided_slice %48 {offsets = [24, 0], sizes = [8, 32], strides = [1, 1]} : vector<32x32xf32> to vector<8x32xf32>
    %cst_55 = arith.constant dense<0.000000e+00> : vector<16x32xf32>
    %128 = tpu.matmul %126, %127, %cst_55 {dimension_numbers = #tpu.dot_dimension_numbers<[1], [0], [0], [1], [0, 0, 1, 1], [], []>} : vector<16x8xf32>, vector<8x32xf32>, vector<16x32xf32> -> vector<16x32xf32>
    %129 = arith.addf %109, %128 : vector<16x32xf32>
    %130 = vector.broadcast %50 : vector<1x32xf32> to vector<16x32xf32>
    %131 = arith.addf %129, %130 : vector<16x32xf32>
    %132 = arith.addf %12, %131 : vector<16x32xf32>
    %c0_56 = arith.constant 0 : index
    %c0_57 = arith.constant 0 : index
    %c0_58 = arith.constant 0 : index
    %133 = vector.load %arg15[%c0_56, %c0_57, %c0_58] : memref<2x1x32xf32, #tpu.memory_space<vmem>>, vector<1x1x32xf32>
    %134 = vector.shape_cast %133 : vector<1x1x32xf32> to vector<1x32xf32>
    %c0_59 = arith.constant 0 : index
    %c0_60 = arith.constant 0 : index
    %c0_61 = arith.constant 0 : index
    %135 = vector.load %arg16[%c0_59, %c0_60, %c0_61] : memref<2x1x32xf32, #tpu.memory_space<vmem>>, vector<1x1x32xf32>
    %136 = vector.shape_cast %135 : vector<1x1x32xf32> to vector<1x32xf32>
    %cst_62 = arith.constant dense<0.000000e+00> : vector<16xf32>
    %137 = vector.multi_reduction <add>, %132, %cst_62 [1] : vector<16x32xf32> to vector<16xf32>
    %138 = vector.shape_cast %137 : vector<16xf32> to vector<16x1xf32>
    %cst_63 = arith.constant 3.200000e+01 : f32
    %139 = vector.broadcast %cst_63 : f32 to vector<16x1xf32>
    %140 = arith.divf %138, %139 : vector<16x1xf32>
    %141 = vector.broadcast %140 : vector<16x1xf32> to vector<16x32xf32>
    %142 = arith.subf %132, %141 : vector<16x32xf32>
    %143 = arith.mulf %142, %142 : vector<16x32xf32>
    %cst_64 = arith.constant dense<0.000000e+00> : vector<16xf32>
    %144 = vector.multi_reduction <add>, %143, %cst_64 [1] : vector<16x32xf32> to vector<16xf32>
    %145 = vector.shape_cast %144 : vector<16xf32> to vector<16x1xf32>
    %cst_65 = arith.constant 0.0322580636 : f32
    %146 = vector.broadcast %cst_65 : f32 to vector<16x1xf32>
    %147 = arith.mulf %145, %146 : vector<16x1xf32>
    %148 = math.sqrt %147 : vector<16x1xf32>
    %149 = vector.broadcast %134 : vector<1x32xf32> to vector<16x32xf32>
    %150 = arith.mulf %149, %142 : vector<16x32xf32>
    %cst_66 = arith.constant 9.99999997E-7 : f32
    %151 = vector.broadcast %cst_66 : f32 to vector<16x1xf32>
    %152 = arith.addf %148, %151 : vector<16x1xf32>
    %153 = vector.broadcast %152 : vector<16x1xf32> to vector<16x32xf32>
    %154 = arith.divf %150, %153 : vector<16x32xf32>
    %155 = vector.broadcast %136 : vector<1x32xf32> to vector<16x32xf32>
    %156 = arith.addf %154, %155 : vector<16x32xf32>
    %c0_67 = arith.constant 0 : index
    %c0_68 = arith.constant 0 : index
    %c0_69 = arith.constant 0 : index
    %157 = vector.load %arg17[%c0_67, %c0_68, %c0_69] : memref<2x32x64xf32, #tpu.memory_space<vmem>>, vector<1x32x64xf32>
    %158 = vector.shape_cast %157 : vector<1x32x64xf32> to vector<32x64xf32>
    %c0_70 = arith.constant 0 : index
    %c0_71 = arith.constant 0 : index
    %c0_72 = arith.constant 0 : index
    %159 = vector.load %arg18[%c0_70, %c0_71, %c0_72] : memref<2x1x64xf32, #tpu.memory_space<vmem>>, vector<1x1x64xf32>
    %160 = vector.shape_cast %159 : vector<1x1x64xf32> to vector<1x64xf32>
    %c0_73 = arith.constant 0 : index
    %c0_74 = arith.constant 0 : index
    %c0_75 = arith.constant 0 : index
    %161 = vector.load %arg19[%c0_73, %c0_74, %c0_75] : memref<2x64x32xf32, #tpu.memory_space<vmem>>, vector<1x64x32xf32>
    %162 = vector.shape_cast %161 : vector<1x64x32xf32> to vector<64x32xf32>
    %c0_76 = arith.constant 0 : index
    %c0_77 = arith.constant 0 : index
    %c0_78 = arith.constant 0 : index
    %163 = vector.load %arg20[%c0_76, %c0_77, %c0_78] : memref<2x1x32xf32, #tpu.memory_space<vmem>>, vector<1x1x32xf32>
    %164 = vector.shape_cast %163 : vector<1x1x32xf32> to vector<1x32xf32>
    %cst_79 = arith.constant dense<0.000000e+00> : vector<16x64xf32>
    %165 = tpu.matmul %156, %158, %cst_79 {dimension_numbers = #tpu.dot_dimension_numbers<[1], [0], [0], [1], [0, 0, 1, 1], [], []>} : vector<16x32xf32>, vector<32x64xf32>, vector<16x64xf32> -> vector<16x64xf32>
    %166 = vector.broadcast %160 : vector<1x64xf32> to vector<16x64xf32>
    %167 = arith.addf %165, %166 : vector<16x64xf32>
    %cst_80 = arith.constant 0.000000e+00 : f32
    %168 = vector.broadcast %cst_80 : f32 to vector<16x64xf32>
    %169 = arith.maximumf %167, %168 : vector<16x64xf32>
    %cst_81 = arith.constant dense<0.000000e+00> : vector<16x32xf32>
    %170 = tpu.matmul %169, %162, %cst_81 {dimension_numbers = #tpu.dot_dimension_numbers<[1], [0], [0], [1], [0, 0, 1, 1], [], []>} : vector<16x64xf32>, vector<64x32xf32>, vector<16x32xf32> -> vector<16x32xf32>
    %171 = vector.broadcast %164 : vector<1x32xf32> to vector<16x32xf32>
    %172 = arith.addf %170, %171 : vector<16x32xf32>
    %173 = arith.addf %132, %172 : vector<16x32xf32>
    %c1 = arith.constant 1 : index
    %c0_82 = arith.constant 0 : index
    %c0_83 = arith.constant 0 : index
    %174 = vector.load %arg9[%c1, %c0_82, %c0_83] : memref<2x1x32xf32, #tpu.memory_space<vmem>>, vector<1x1x32xf32>
    %175 = vector.shape_cast %174 : vector<1x1x32xf32> to vector<1x32xf32>
    %c1_84 = arith.constant 1 : index
    %c0_85 = arith.constant 0 : index
    %c0_86 = arith.constant 0 : index
    %176 = vector.load %arg10[%c1_84, %c0_85, %c0_86] : memref<2x1x32xf32, #tpu.memory_space<vmem>>, vector<1x1x32xf32>
    %177 = vector.shape_cast %176 : vector<1x1x32xf32> to vector<1x32xf32>
    %cst_87 = arith.constant dense<0.000000e+00> : vector<16xf32>
    %178 = vector.multi_reduction <add>, %173, %cst_87 [1] : vector<16x32xf32> to vector<16xf32>
    %179 = vector.shape_cast %178 : vector<16xf32> to vector<16x1xf32>
    %cst_88 = arith.constant 3.200000e+01 : f32
    %180 = vector.broadcast %cst_88 : f32 to vector<16x1xf32>
    %181 = arith.divf %179, %180 : vector<16x1xf32>
    %182 = vector.broadcast %181 : vector<16x1xf32> to vector<16x32xf32>
    %183 = arith.subf %173, %182 : vector<16x32xf32>
    %184 = arith.mulf %183, %183 : vector<16x32xf32>
    %cst_89 = arith.constant dense<0.000000e+00> : vector<16xf32>
    %185 = vector.multi_reduction <add>, %184, %cst_89 [1] : vector<16x32xf32> to vector<16xf32>
    %186 = vector.shape_cast %185 : vector<16xf32> to vector<16x1xf32>
    %cst_90 = arith.constant 0.0322580636 : f32
    %187 = vector.broadcast %cst_90 : f32 to vector<16x1xf32>
    %188 = arith.mulf %186, %187 : vector<16x1xf32>
    %189 = math.sqrt %188 : vector<16x1xf32>
    %190 = vector.broadcast %175 : vector<1x32xf32> to vector<16x32xf32>
    %191 = arith.mulf %190, %183 : vector<16x32xf32>
    %cst_91 = arith.constant 9.99999997E-7 : f32
    %192 = vector.broadcast %cst_91 : f32 to vector<16x1xf32>
    %193 = arith.addf %189, %192 : vector<16x1xf32>
    %194 = vector.broadcast %193 : vector<16x1xf32> to vector<16x32xf32>
    %195 = arith.divf %191, %194 : vector<16x32xf32>
    %196 = vector.broadcast %177 : vector<1x32xf32> to vector<16x32xf32>
    %197 = arith.addf %195, %196 : vector<16x32xf32>
    %c1_92 = arith.constant 1 : index
    %c0_93 = arith.constant 0 : index
    %c0_94 = arith.constant 0 : index
    %198 = vector.load %arg11[%c1_92, %c0_93, %c0_94] : memref<2x32x96xf32, #tpu.memory_space<vmem>>, vector<1x32x96xf32>
    %199 = vector.shape_cast %198 : vector<1x32x96xf32> to vector<32x96xf32>
    %cst_95 = arith.constant dense<0.000000e+00> : vector<16x96xf32>
    %200 = tpu.matmul %197, %199, %cst_95 {dimension_numbers = #tpu.dot_dimension_numbers<[1], [0], [0], [1], [0, 0, 1, 1], [], []>} : vector<16x32xf32>, vector<32x96xf32>, vector<16x96xf32> -> vector<16x96xf32>
    %c1_96 = arith.constant 1 : index
    %c0_97 = arith.constant 0 : index
    %c0_98 = arith.constant 0 : index
    %201 = vector.load %arg12[%c1_96, %c0_97, %c0_98] : memref<2x1x96xf32, #tpu.memory_space<vmem>>, vector<1x1x96xf32>
    %202 = vector.shape_cast %201 : vector<1x1x96xf32> to vector<1x96xf32>
    %203 = vector.broadcast %202 : vector<1x96xf32> to vector<16x96xf32>
    %204 = arith.addf %200, %203 : vector<16x96xf32>
    %205 = vector.extract_strided_slice %204 {offsets = [0, 0], sizes = [16, 32], strides = [1, 1]} : vector<16x96xf32> to vector<16x32xf32>
    %206 = vector.extract_strided_slice %204 {offsets = [0, 32], sizes = [16, 32], strides = [1, 1]} : vector<16x96xf32> to vector<16x32xf32>
    %207 = vector.extract_strided_slice %204 {offsets = [0, 64], sizes = [16, 32], strides = [1, 1]} : vector<16x96xf32> to vector<16x32xf32>
    %c1_99 = arith.constant 1 : index
    %c0_100 = arith.constant 0 : index
    %c0_101 = arith.constant 0 : index
    %208 = vector.load %arg13[%c1_99, %c0_100, %c0_101] : memref<2x32x32xf32, #tpu.memory_space<vmem>>, vector<1x32x32xf32>
    %209 = vector.shape_cast %208 : vector<1x32x32xf32> to vector<32x32xf32>
    %c1_102 = arith.constant 1 : index
    %c0_103 = arith.constant 0 : index
    %c0_104 = arith.constant 0 : index
    %210 = vector.load %arg14[%c1_102, %c0_103, %c0_104] : memref<2x1x32xf32, #tpu.memory_space<vmem>>, vector<1x1x32xf32>
    %211 = vector.shape_cast %210 : vector<1x1x32xf32> to vector<1x32xf32>
    %212 = vector.extract_strided_slice %205 {offsets = [0, 0], sizes = [16, 8], strides = [1, 1]} : vector<16x32xf32> to vector<16x8xf32>
    %213 = vector.extract_strided_slice %206 {offsets = [0, 0], sizes = [16, 8], strides = [1, 1]} : vector<16x32xf32> to vector<16x8xf32>
    %214 = vector.extract_strided_slice %207 {offsets = [0, 0], sizes = [16, 8], strides = [1, 1]} : vector<16x32xf32> to vector<16x8xf32>
    %cst_105 = arith.constant dense<0.000000e+00> : vector<16x16xf32>
    %215 = tpu.matmul %212, %213, %cst_105 {dimension_numbers = #tpu.dot_dimension_numbers<[1], [1], [0], [0], [0, 0, 1, 0], [], []>} : vector<16x8xf32>, vector<16x8xf32>, vector<16x16xf32> -> vector<16x16xf32>
    %cst_106 = arith.constant 0.353553385 : f32
    %216 = vector.broadcast %cst_106 : f32 to vector<16x16xf32>
    %217 = arith.mulf %215, %216 : vector<16x16xf32>
    %218 = arith.addf %217, %0 : vector<16x16xf32>
    %cst_107 = arith.constant dense<0xFF800000> : vector<16xf32>
    %219 = vector.multi_reduction <maximumf>, %218, %cst_107 [1] : vector<16x16xf32> to vector<16xf32>
    %220 = vector.shape_cast %219 : vector<16xf32> to vector<16x1xf32>
    %221 = vector.broadcast %220 : vector<16x1xf32> to vector<16x16xf32>
    %222 = arith.subf %218, %221 : vector<16x16xf32>
    %223 = math.exp %222 : vector<16x16xf32>
    %cst_108 = arith.constant dense<0.000000e+00> : vector<16xf32>
    %224 = vector.multi_reduction <add>, %223, %cst_108 [1] : vector<16x16xf32> to vector<16xf32>
    %225 = vector.shape_cast %224 : vector<16xf32> to vector<16x1xf32>
    %226 = vector.broadcast %225 : vector<16x1xf32> to vector<16x16xf32>
    %227 = arith.divf %223, %226 : vector<16x16xf32>
    %cst_109 = arith.constant dense<0.000000e+00> : vector<16x8xf32>
    %228 = tpu.matmul %227, %214, %cst_109 {dimension_numbers = #tpu.dot_dimension_numbers<[1], [0], [0], [1], [0, 0, 1, 1], [], []>} : vector<16x16xf32>, vector<16x8xf32>, vector<16x8xf32> -> vector<16x8xf32>
    %229 = vector.extract_strided_slice %209 {offsets = [0, 0], sizes = [8, 32], strides = [1, 1]} : vector<32x32xf32> to vector<8x32xf32>
    %cst_110 = arith.constant dense<0.000000e+00> : vector<16x32xf32>
    %230 = tpu.matmul %228, %229, %cst_110 {dimension_numbers = #tpu.dot_dimension_numbers<[1], [0], [0], [1], [0, 0, 1, 1], [], []>} : vector<16x8xf32>, vector<8x32xf32>, vector<16x32xf32> -> vector<16x32xf32>
    %231 = vector.extract_strided_slice %205 {offsets = [0, 8], sizes = [16, 8], strides = [1, 1]} : vector<16x32xf32> to vector<16x8xf32>
    %232 = vector.extract_strided_slice %206 {offsets = [0, 8], sizes = [16, 8], strides = [1, 1]} : vector<16x32xf32> to vector<16x8xf32>
    %233 = vector.extract_strided_slice %207 {offsets = [0, 8], sizes = [16, 8], strides = [1, 1]} : vector<16x32xf32> to vector<16x8xf32>
    %cst_111 = arith.constant dense<0.000000e+00> : vector<16x16xf32>
    %234 = tpu.matmul %231, %232, %cst_111 {dimension_numbers = #tpu.dot_dimension_numbers<[1], [1], [0], [0], [0, 0, 1, 0], [], []>} : vector<16x8xf32>, vector<16x8xf32>, vector<16x16xf32> -> vector<16x16xf32>
    %cst_112 = arith.constant 0.353553385 : f32
    %235 = vector.broadcast %cst_112 : f32 to vector<16x16xf32>
    %236 = arith.mulf %234, %235 : vector<16x16xf32>
    %237 = arith.addf %236, %0 : vector<16x16xf32>
    %cst_113 = arith.constant dense<0xFF800000> : vector<16xf32>
    %238 = vector.multi_reduction <maximumf>, %237, %cst_113 [1] : vector<16x16xf32> to vector<16xf32>
    %239 = vector.shape_cast %238 : vector<16xf32> to vector<16x1xf32>
    %240 = vector.broadcast %239 : vector<16x1xf32> to vector<16x16xf32>
    %241 = arith.subf %237, %240 : vector<16x16xf32>
    %242 = math.exp %241 : vector<16x16xf32>
    %cst_114 = arith.constant dense<0.000000e+00> : vector<16xf32>
    %243 = vector.multi_reduction <add>, %242, %cst_114 [1] : vector<16x16xf32> to vector<16xf32>
    %244 = vector.shape_cast %243 : vector<16xf32> to vector<16x1xf32>
    %245 = vector.broadcast %244 : vector<16x1xf32> to vector<16x16xf32>
    %246 = arith.divf %242, %245 : vector<16x16xf32>
    %cst_115 = arith.constant dense<0.000000e+00> : vector<16x8xf32>
    %247 = tpu.matmul %246, %233, %cst_115 {dimension_numbers = #tpu.dot_dimension_numbers<[1], [0], [0], [1], [0, 0, 1, 1], [], []>} : vector<16x16xf32>, vector<16x8xf32>, vector<16x8xf32> -> vector<16x8xf32>
    %248 = vector.extract_strided_slice %209 {offsets = [8, 0], sizes = [8, 32], strides = [1, 1]} : vector<32x32xf32> to vector<8x32xf32>
    %cst_116 = arith.constant dense<0.000000e+00> : vector<16x32xf32>
    %249 = tpu.matmul %247, %248, %cst_116 {dimension_numbers = #tpu.dot_dimension_numbers<[1], [0], [0], [1], [0, 0, 1, 1], [], []>} : vector<16x8xf32>, vector<8x32xf32>, vector<16x32xf32> -> vector<16x32xf32>
    %250 = arith.addf %230, %249 : vector<16x32xf32>
    %251 = vector.extract_strided_slice %205 {offsets = [0, 16], sizes = [16, 8], strides = [1, 1]} : vector<16x32xf32> to vector<16x8xf32>
    %252 = vector.extract_strided_slice %206 {offsets = [0, 16], sizes = [16, 8], strides = [1, 1]} : vector<16x32xf32> to vector<16x8xf32>
    %253 = vector.extract_strided_slice %207 {offsets = [0, 16], sizes = [16, 8], strides = [1, 1]} : vector<16x32xf32> to vector<16x8xf32>
    %cst_117 = arith.constant dense<0.000000e+00> : vector<16x16xf32>
    %254 = tpu.matmul %251, %252, %cst_117 {dimension_numbers = #tpu.dot_dimension_numbers<[1], [1], [0], [0], [0, 0, 1, 0], [], []>} : vector<16x8xf32>, vector<16x8xf32>, vector<16x16xf32> -> vector<16x16xf32>
    %cst_118 = arith.constant 0.353553385 : f32
    %255 = vector.broadcast %cst_118 : f32 to vector<16x16xf32>
    %256 = arith.mulf %254, %255 : vector<16x16xf32>
    %257 = arith.addf %256, %0 : vector<16x16xf32>
    %cst_119 = arith.constant dense<0xFF800000> : vector<16xf32>
    %258 = vector.multi_reduction <maximumf>, %257, %cst_119 [1] : vector<16x16xf32> to vector<16xf32>
    %259 = vector.shape_cast %258 : vector<16xf32> to vector<16x1xf32>
    %260 = vector.broadcast %259 : vector<16x1xf32> to vector<16x16xf32>
    %261 = arith.subf %257, %260 : vector<16x16xf32>
    %262 = math.exp %261 : vector<16x16xf32>
    %cst_120 = arith.constant dense<0.000000e+00> : vector<16xf32>
    %263 = vector.multi_reduction <add>, %262, %cst_120 [1] : vector<16x16xf32> to vector<16xf32>
    %264 = vector.shape_cast %263 : vector<16xf32> to vector<16x1xf32>
    %265 = vector.broadcast %264 : vector<16x1xf32> to vector<16x16xf32>
    %266 = arith.divf %262, %265 : vector<16x16xf32>
    %cst_121 = arith.constant dense<0.000000e+00> : vector<16x8xf32>
    %267 = tpu.matmul %266, %253, %cst_121 {dimension_numbers = #tpu.dot_dimension_numbers<[1], [0], [0], [1], [0, 0, 1, 1], [], []>} : vector<16x16xf32>, vector<16x8xf32>, vector<16x8xf32> -> vector<16x8xf32>
    %268 = vector.extract_strided_slice %209 {offsets = [16, 0], sizes = [8, 32], strides = [1, 1]} : vector<32x32xf32> to vector<8x32xf32>
    %cst_122 = arith.constant dense<0.000000e+00> : vector<16x32xf32>
    %269 = tpu.matmul %267, %268, %cst_122 {dimension_numbers = #tpu.dot_dimension_numbers<[1], [0], [0], [1], [0, 0, 1, 1], [], []>} : vector<16x8xf32>, vector<8x32xf32>, vector<16x32xf32> -> vector<16x32xf32>
    %270 = arith.addf %250, %269 : vector<16x32xf32>
    %271 = vector.extract_strided_slice %205 {offsets = [0, 24], sizes = [16, 8], strides = [1, 1]} : vector<16x32xf32> to vector<16x8xf32>
    %272 = vector.extract_strided_slice %206 {offsets = [0, 24], sizes = [16, 8], strides = [1, 1]} : vector<16x32xf32> to vector<16x8xf32>
    %273 = vector.extract_strided_slice %207 {offsets = [0, 24], sizes = [16, 8], strides = [1, 1]} : vector<16x32xf32> to vector<16x8xf32>
    %cst_123 = arith.constant dense<0.000000e+00> : vector<16x16xf32>
    %274 = tpu.matmul %271, %272, %cst_123 {dimension_numbers = #tpu.dot_dimension_numbers<[1], [1], [0], [0], [0, 0, 1, 0], [], []>} : vector<16x8xf32>, vector<16x8xf32>, vector<16x16xf32> -> vector<16x16xf32>
    %cst_124 = arith.constant 0.353553385 : f32
    %275 = vector.broadcast %cst_124 : f32 to vector<16x16xf32>
    %276 = arith.mulf %274, %275 : vector<16x16xf32>
    %277 = arith.addf %276, %0 : vector<16x16xf32>
    %cst_125 = arith.constant dense<0xFF800000> : vector<16xf32>
    %278 = vector.multi_reduction <maximumf>, %277, %cst_125 [1] : vector<16x16xf32> to vector<16xf32>
    %279 = vector.shape_cast %278 : vector<16xf32> to vector<16x1xf32>
    %280 = vector.broadcast %279 : vector<16x1xf32> to vector<16x16xf32>
    %281 = arith.subf %277, %280 : vector<16x16xf32>
    %282 = math.exp %281 : vector<16x16xf32>
    %cst_126 = arith.constant dense<0.000000e+00> : vector<16xf32>
    %283 = vector.multi_reduction <add>, %282, %cst_126 [1] : vector<16x16xf32> to vector<16xf32>
    %284 = vector.shape_cast %283 : vector<16xf32> to vector<16x1xf32>
    %285 = vector.broadcast %284 : vector<16x1xf32> to vector<16x16xf32>
    %286 = arith.divf %282, %285 : vector<16x16xf32>
    %cst_127 = arith.constant dense<0.000000e+00> : vector<16x8xf32>
    %287 = tpu.matmul %286, %273, %cst_127 {dimension_numbers = #tpu.dot_dimension_numbers<[1], [0], [0], [1], [0, 0, 1, 1], [], []>} : vector<16x16xf32>, vector<16x8xf32>, vector<16x8xf32> -> vector<16x8xf32>
    %288 = vector.extract_strided_slice %209 {offsets = [24, 0], sizes = [8, 32], strides = [1, 1]} : vector<32x32xf32> to vector<8x32xf32>
    %cst_128 = arith.constant dense<0.000000e+00> : vector<16x32xf32>
    %289 = tpu.matmul %287, %288, %cst_128 {dimension_numbers = #tpu.dot_dimension_numbers<[1], [0], [0], [1], [0, 0, 1, 1], [], []>} : vector<16x8xf32>, vector<8x32xf32>, vector<16x32xf32> -> vector<16x32xf32>
    %290 = arith.addf %270, %289 : vector<16x32xf32>
    %291 = vector.broadcast %211 : vector<1x32xf32> to vector<16x32xf32>
    %292 = arith.addf %290, %291 : vector<16x32xf32>
    %293 = arith.addf %173, %292 : vector<16x32xf32>
    %c1_129 = arith.constant 1 : index
    %c0_130 = arith.constant 0 : index
    %c0_131 = arith.constant 0 : index
    %294 = vector.load %arg15[%c1_129, %c0_130, %c0_131] : memref<2x1x32xf32, #tpu.memory_space<vmem>>, vector<1x1x32xf32>
    %295 = vector.shape_cast %294 : vector<1x1x32xf32> to vector<1x32xf32>
    %c1_132 = arith.constant 1 : index
    %c0_133 = arith.constant 0 : index
    %c0_134 = arith.constant 0 : index
    %296 = vector.load %arg16[%c1_132, %c0_133, %c0_134] : memref<2x1x32xf32, #tpu.memory_space<vmem>>, vector<1x1x32xf32>
    %297 = vector.shape_cast %296 : vector<1x1x32xf32> to vector<1x32xf32>
    %cst_135 = arith.constant dense<0.000000e+00> : vector<16xf32>
    %298 = vector.multi_reduction <add>, %293, %cst_135 [1] : vector<16x32xf32> to vector<16xf32>
    %299 = vector.shape_cast %298 : vector<16xf32> to vector<16x1xf32>
    %cst_136 = arith.constant 3.200000e+01 : f32
    %300 = vector.broadcast %cst_136 : f32 to vector<16x1xf32>
    %301 = arith.divf %299, %300 : vector<16x1xf32>
    %302 = vector.broadcast %301 : vector<16x1xf32> to vector<16x32xf32>
    %303 = arith.subf %293, %302 : vector<16x32xf32>
    %304 = arith.mulf %303, %303 : vector<16x32xf32>
    %cst_137 = arith.constant dense<0.000000e+00> : vector<16xf32>
    %305 = vector.multi_reduction <add>, %304, %cst_137 [1] : vector<16x32xf32> to vector<16xf32>
    %306 = vector.shape_cast %305 : vector<16xf32> to vector<16x1xf32>
    %cst_138 = arith.constant 0.0322580636 : f32
    %307 = vector.broadcast %cst_138 : f32 to vector<16x1xf32>
    %308 = arith.mulf %306, %307 : vector<16x1xf32>
    %309 = math.sqrt %308 : vector<16x1xf32>
    %310 = vector.broadcast %295 : vector<1x32xf32> to vector<16x32xf32>
    %311 = arith.mulf %310, %303 : vector<16x32xf32>
    %cst_139 = arith.constant 9.99999997E-7 : f32
    %312 = vector.broadcast %cst_139 : f32 to vector<16x1xf32>
    %313 = arith.addf %309, %312 : vector<16x1xf32>
    %314 = vector.broadcast %313 : vector<16x1xf32> to vector<16x32xf32>
    %315 = arith.divf %311, %314 : vector<16x32xf32>
    %316 = vector.broadcast %297 : vector<1x32xf32> to vector<16x32xf32>
    %317 = arith.addf %315, %316 : vector<16x32xf32>
    %c1_140 = arith.constant 1 : index
    %c0_141 = arith.constant 0 : index
    %c0_142 = arith.constant 0 : index
    %318 = vector.load %arg17[%c1_140, %c0_141, %c0_142] : memref<2x32x64xf32, #tpu.memory_space<vmem>>, vector<1x32x64xf32>
    %319 = vector.shape_cast %318 : vector<1x32x64xf32> to vector<32x64xf32>
    %c1_143 = arith.constant 1 : index
    %c0_144 = arith.constant 0 : index
    %c0_145 = arith.constant 0 : index
    %320 = vector.load %arg18[%c1_143, %c0_144, %c0_145] : memref<2x1x64xf32, #tpu.memory_space<vmem>>, vector<1x1x64xf32>
    %321 = vector.shape_cast %320 : vector<1x1x64xf32> to vector<1x64xf32>
    %c1_146 = arith.constant 1 : index
    %c0_147 = arith.constant 0 : index
    %c0_148 = arith.constant 0 : index
    %322 = vector.load %arg19[%c1_146, %c0_147, %c0_148] : memref<2x64x32xf32, #tpu.memory_space<vmem>>, vector<1x64x32xf32>
    %323 = vector.shape_cast %322 : vector<1x64x32xf32> to vector<64x32xf32>
    %c1_149 = arith.constant 1 : index
    %c0_150 = arith.constant 0 : index
    %c0_151 = arith.constant 0 : index
    %324 = vector.load %arg20[%c1_149, %c0_150, %c0_151] : memref<2x1x32xf32, #tpu.memory_space<vmem>>, vector<1x1x32xf32>
    %325 = vector.shape_cast %324 : vector<1x1x32xf32> to vector<1x32xf32>
    %cst_152 = arith.constant dense<0.000000e+00> : vector<16x64xf32>
    %326 = tpu.matmul %317, %319, %cst_152 {dimension_numbers = #tpu.dot_dimension_numbers<[1], [0], [0], [1], [0, 0, 1, 1], [], []>} : vector<16x32xf32>, vector<32x64xf32>, vector<16x64xf32> -> vector<16x64xf32>
    %327 = vector.broadcast %321 : vector<1x64xf32> to vector<16x64xf32>
    %328 = arith.addf %326, %327 : vector<16x64xf32>
    %cst_153 = arith.constant 0.000000e+00 : f32
    %329 = vector.broadcast %cst_153 : f32 to vector<16x64xf32>
    %330 = arith.maximumf %328, %329 : vector<16x64xf32>
    %cst_154 = arith.constant dense<0.000000e+00> : vector<16x32xf32>
    %331 = tpu.matmul %330, %323, %cst_154 {dimension_numbers = #tpu.dot_dimension_numbers<[1], [0], [0], [1], [0, 0, 1, 1], [], []>} : vector<16x64xf32>, vector<64x32xf32>, vector<16x32xf32> -> vector<16x32xf32>
    %332 = vector.broadcast %325 : vector<1x32xf32> to vector<16x32xf32>
    %333 = arith.addf %331, %332 : vector<16x32xf32>
    %334 = arith.addf %293, %333 : vector<16x32xf32>
    %c0_155 = arith.constant 0 : index
    %c0_156 = arith.constant 0 : index
    %335 = vector.load %arg21[%c0_155, %c0_156] : memref<1x32xf32, #tpu.memory_space<vmem>>, vector<1x32xf32>
    %c0_157 = arith.constant 0 : index
    %c0_158 = arith.constant 0 : index
    %336 = vector.load %arg22[%c0_157, %c0_158] : memref<1x32xf32, #tpu.memory_space<vmem>>, vector<1x32xf32>
    %cst_159 = arith.constant dense<0.000000e+00> : vector<16xf32>
    %337 = vector.multi_reduction <add>, %334, %cst_159 [1] : vector<16x32xf32> to vector<16xf32>
    %338 = vector.shape_cast %337 : vector<16xf32> to vector<16x1xf32>
    %cst_160 = arith.constant 3.200000e+01 : f32
    %339 = vector.broadcast %cst_160 : f32 to vector<16x1xf32>
    %340 = arith.divf %338, %339 : vector<16x1xf32>
    %341 = vector.broadcast %340 : vector<16x1xf32> to vector<16x32xf32>
    %342 = arith.subf %334, %341 : vector<16x32xf32>
    %343 = arith.mulf %342, %342 : vector<16x32xf32>
    %cst_161 = arith.constant dense<0.000000e+00> : vector<16xf32>
    %344 = vector.multi_reduction <add>, %343, %cst_161 [1] : vector<16x32xf32> to vector<16xf32>
    %345 = vector.shape_cast %344 : vector<16xf32> to vector<16x1xf32>
    %cst_162 = arith.constant 0.0322580636 : f32
    %346 = vector.broadcast %cst_162 : f32 to vector<16x1xf32>
    %347 = arith.mulf %345, %346 : vector<16x1xf32>
    %348 = math.sqrt %347 : vector<16x1xf32>
    %349 = vector.broadcast %335 : vector<1x32xf32> to vector<16x32xf32>
    %350 = arith.mulf %349, %342 : vector<16x32xf32>
    %cst_163 = arith.constant 9.99999997E-7 : f32
    %351 = vector.broadcast %cst_163 : f32 to vector<16x1xf32>
    %352 = arith.addf %348, %351 : vector<16x1xf32>
    %353 = vector.broadcast %352 : vector<16x1xf32> to vector<16x32xf32>
    %354 = arith.divf %350, %353 : vector<16x32xf32>
    %355 = vector.broadcast %336 : vector<1x32xf32> to vector<16x32xf32>
    %356 = arith.addf %354, %355 : vector<16x32xf32>
    %c0_164 = arith.constant 0 : index
    %c0_165 = arith.constant 0 : index
    %357 = vector.load %arg5[%c0_164, %c0_165] : memref<16x16xf32, #tpu.memory_space<vmem>>, vector<16x16xf32>
    %c0_166 = arith.constant 0 : index
    %c0_167 = arith.constant 0 : index
    %358 = vector.load %arg6[%c0_166, %c0_167] : memref<16x16xf32, #tpu.memory_space<vmem>>, vector<16x16xf32>
    %c0_168 = arith.constant 0 : index
    %c0_169 = arith.constant 0 : index
    %359 = vector.load %arg1[%c0_168, %c0_169] : memref<16x1xi32, #tpu.memory_space<vmem>>, vector<16x1xi32>
    %c0_170 = arith.constant 0 : index
    %c0_171 = arith.constant 0 : index
    %360 = vector.load %arg8[%c0_170, %c0_171] : memref<16x32xf32, #tpu.memory_space<vmem>>, vector<16x32xf32>
    %c0_172 = arith.constant 0 : index
    %c0_173 = arith.constant 0 : index
    %361 = vector.load %arg3[%c0_172, %c0_173] : memref<16x32xf32, #tpu.memory_space<vmem>>, vector<16x32xf32>
    %362 = tpu.iota {dimensions = array<i32: 1>} : vector<16x16xi32>
    %363 = vector.broadcast %359 : vector<16x1xi32> to vector<16x16xi32>
    %364 = arith.cmpi eq, %362, %363 : vector<16x16xi32>
    %365 = arith.extui %364 : vector<16x16xi1> to vector<16x16xi32>
    %366 = arith.sitofp %365 : vector<16x16xi32> to vector<16x16xf32>
    %cst_174 = arith.constant dense<0.000000e+00> : vector<16x32xf32>
    %367 = tpu.matmul %366, %360, %cst_174 {dimension_numbers = #tpu.dot_dimension_numbers<[1], [0], [0], [1], [0, 0, 1, 1], [], []>} : vector<16x16xf32>, vector<16x32xf32>, vector<16x32xf32> -> vector<16x32xf32>
    %cst_175 = arith.constant 5.65685415 : f32
    %368 = vector.broadcast %cst_175 : f32 to vector<16x32xf32>
    %369 = arith.mulf %367, %368 : vector<16x32xf32>
    %370 = arith.addf %369, %361 : vector<16x32xf32>
    %c0_176 = arith.constant 0 : index
    %c0_177 = arith.constant 0 : index
    %c0_178 = arith.constant 0 : index
    %371 = vector.load %arg23[%c0_176, %c0_177, %c0_178] : memref<2x1x32xf32, #tpu.memory_space<vmem>>, vector<1x1x32xf32>
    %372 = vector.shape_cast %371 : vector<1x1x32xf32> to vector<1x32xf32>
    %c0_179 = arith.constant 0 : index
    %c0_180 = arith.constant 0 : index
    %c0_181 = arith.constant 0 : index
    %373 = vector.load %arg24[%c0_179, %c0_180, %c0_181] : memref<2x1x32xf32, #tpu.memory_space<vmem>>, vector<1x1x32xf32>
    %374 = vector.shape_cast %373 : vector<1x1x32xf32> to vector<1x32xf32>
    %cst_182 = arith.constant dense<0.000000e+00> : vector<16xf32>
    %375 = vector.multi_reduction <add>, %370, %cst_182 [1] : vector<16x32xf32> to vector<16xf32>
    %376 = vector.shape_cast %375 : vector<16xf32> to vector<16x1xf32>
    %cst_183 = arith.constant 3.200000e+01 : f32
    %377 = vector.broadcast %cst_183 : f32 to vector<16x1xf32>
    %378 = arith.divf %376, %377 : vector<16x1xf32>
    %379 = vector.broadcast %378 : vector<16x1xf32> to vector<16x32xf32>
    %380 = arith.subf %370, %379 : vector<16x32xf32>
    %381 = arith.mulf %380, %380 : vector<16x32xf32>
    %cst_184 = arith.constant dense<0.000000e+00> : vector<16xf32>
    %382 = vector.multi_reduction <add>, %381, %cst_184 [1] : vector<16x32xf32> to vector<16xf32>
    %383 = vector.shape_cast %382 : vector<16xf32> to vector<16x1xf32>
    %cst_185 = arith.constant 0.0322580636 : f32
    %384 = vector.broadcast %cst_185 : f32 to vector<16x1xf32>
    %385 = arith.mulf %383, %384 : vector<16x1xf32>
    %386 = math.sqrt %385 : vector<16x1xf32>
    %387 = vector.broadcast %372 : vector<1x32xf32> to vector<16x32xf32>
    %388 = arith.mulf %387, %380 : vector<16x32xf32>
    %cst_186 = arith.constant 9.99999997E-7 : f32
    %389 = vector.broadcast %cst_186 : f32 to vector<16x1xf32>
    %390 = arith.addf %386, %389 : vector<16x1xf32>
    %391 = vector.broadcast %390 : vector<16x1xf32> to vector<16x32xf32>
    %392 = arith.divf %388, %391 : vector<16x32xf32>
    %393 = vector.broadcast %374 : vector<1x32xf32> to vector<16x32xf32>
    %394 = arith.addf %392, %393 : vector<16x32xf32>
    %c0_187 = arith.constant 0 : index
    %c0_188 = arith.constant 0 : index
    %c0_189 = arith.constant 0 : index
    %395 = vector.load %arg25[%c0_187, %c0_188, %c0_189] : memref<2x32x96xf32, #tpu.memory_space<vmem>>, vector<1x32x96xf32>
    %396 = vector.shape_cast %395 : vector<1x32x96xf32> to vector<32x96xf32>
    %cst_190 = arith.constant dense<0.000000e+00> : vector<16x96xf32>
    %397 = tpu.matmul %394, %396, %cst_190 {dimension_numbers = #tpu.dot_dimension_numbers<[1], [0], [0], [1], [0, 0, 1, 1], [], []>} : vector<16x32xf32>, vector<32x96xf32>, vector<16x96xf32> -> vector<16x96xf32>
    %c0_191 = arith.constant 0 : index
    %c0_192 = arith.constant 0 : index
    %c0_193 = arith.constant 0 : index
    %398 = vector.load %arg26[%c0_191, %c0_192, %c0_193] : memref<2x1x96xf32, #tpu.memory_space<vmem>>, vector<1x1x96xf32>
    %399 = vector.shape_cast %398 : vector<1x1x96xf32> to vector<1x96xf32>
    %400 = vector.broadcast %399 : vector<1x96xf32> to vector<16x96xf32>
    %401 = arith.addf %397, %400 : vector<16x96xf32>
    %402 = vector.extract_strided_slice %401 {offsets = [0, 0], sizes = [16, 32], strides = [1, 1]} : vector<16x96xf32> to vector<16x32xf32>
    %403 = vector.extract_strided_slice %401 {offsets = [0, 32], sizes = [16, 32], strides = [1, 1]} : vector<16x96xf32> to vector<16x32xf32>
    %404 = vector.extract_strided_slice %401 {offsets = [0, 64], sizes = [16, 32], strides = [1, 1]} : vector<16x96xf32> to vector<16x32xf32>
    %c0_194 = arith.constant 0 : index
    %c0_195 = arith.constant 0 : index
    %c0_196 = arith.constant 0 : index
    %405 = vector.load %arg27[%c0_194, %c0_195, %c0_196] : memref<2x32x32xf32, #tpu.memory_space<vmem>>, vector<1x32x32xf32>
    %406 = vector.shape_cast %405 : vector<1x32x32xf32> to vector<32x32xf32>
    %c0_197 = arith.constant 0 : index
    %c0_198 = arith.constant 0 : index
    %c0_199 = arith.constant 0 : index
    %407 = vector.load %arg28[%c0_197, %c0_198, %c0_199] : memref<2x1x32xf32, #tpu.memory_space<vmem>>, vector<1x1x32xf32>
    %408 = vector.shape_cast %407 : vector<1x1x32xf32> to vector<1x32xf32>
    %409 = vector.extract_strided_slice %402 {offsets = [0, 0], sizes = [16, 8], strides = [1, 1]} : vector<16x32xf32> to vector<16x8xf32>
    %410 = vector.extract_strided_slice %403 {offsets = [0, 0], sizes = [16, 8], strides = [1, 1]} : vector<16x32xf32> to vector<16x8xf32>
    %411 = vector.extract_strided_slice %404 {offsets = [0, 0], sizes = [16, 8], strides = [1, 1]} : vector<16x32xf32> to vector<16x8xf32>
    %cst_200 = arith.constant dense<0.000000e+00> : vector<16x16xf32>
    %412 = tpu.matmul %409, %410, %cst_200 {dimension_numbers = #tpu.dot_dimension_numbers<[1], [1], [0], [0], [0, 0, 1, 0], [], []>} : vector<16x8xf32>, vector<16x8xf32>, vector<16x16xf32> -> vector<16x16xf32>
    %cst_201 = arith.constant 0.353553385 : f32
    %413 = vector.broadcast %cst_201 : f32 to vector<16x16xf32>
    %414 = arith.mulf %412, %413 : vector<16x16xf32>
    %415 = arith.addf %414, %357 : vector<16x16xf32>
    %cst_202 = arith.constant dense<0xFF800000> : vector<16xf32>
    %416 = vector.multi_reduction <maximumf>, %415, %cst_202 [1] : vector<16x16xf32> to vector<16xf32>
    %417 = vector.shape_cast %416 : vector<16xf32> to vector<16x1xf32>
    %418 = vector.broadcast %417 : vector<16x1xf32> to vector<16x16xf32>
    %419 = arith.subf %415, %418 : vector<16x16xf32>
    %420 = math.exp %419 : vector<16x16xf32>
    %cst_203 = arith.constant dense<0.000000e+00> : vector<16xf32>
    %421 = vector.multi_reduction <add>, %420, %cst_203 [1] : vector<16x16xf32> to vector<16xf32>
    %422 = vector.shape_cast %421 : vector<16xf32> to vector<16x1xf32>
    %423 = vector.broadcast %422 : vector<16x1xf32> to vector<16x16xf32>
    %424 = arith.divf %420, %423 : vector<16x16xf32>
    %cst_204 = arith.constant dense<0.000000e+00> : vector<16x8xf32>
    %425 = tpu.matmul %424, %411, %cst_204 {dimension_numbers = #tpu.dot_dimension_numbers<[1], [0], [0], [1], [0, 0, 1, 1], [], []>} : vector<16x16xf32>, vector<16x8xf32>, vector<16x8xf32> -> vector<16x8xf32>
    %426 = vector.extract_strided_slice %406 {offsets = [0, 0], sizes = [8, 32], strides = [1, 1]} : vector<32x32xf32> to vector<8x32xf32>
    %cst_205 = arith.constant dense<0.000000e+00> : vector<16x32xf32>
    %427 = tpu.matmul %425, %426, %cst_205 {dimension_numbers = #tpu.dot_dimension_numbers<[1], [0], [0], [1], [0, 0, 1, 1], [], []>} : vector<16x8xf32>, vector<8x32xf32>, vector<16x32xf32> -> vector<16x32xf32>
    %428 = vector.extract_strided_slice %402 {offsets = [0, 8], sizes = [16, 8], strides = [1, 1]} : vector<16x32xf32> to vector<16x8xf32>
    %429 = vector.extract_strided_slice %403 {offsets = [0, 8], sizes = [16, 8], strides = [1, 1]} : vector<16x32xf32> to vector<16x8xf32>
    %430 = vector.extract_strided_slice %404 {offsets = [0, 8], sizes = [16, 8], strides = [1, 1]} : vector<16x32xf32> to vector<16x8xf32>
    %cst_206 = arith.constant dense<0.000000e+00> : vector<16x16xf32>
    %431 = tpu.matmul %428, %429, %cst_206 {dimension_numbers = #tpu.dot_dimension_numbers<[1], [1], [0], [0], [0, 0, 1, 0], [], []>} : vector<16x8xf32>, vector<16x8xf32>, vector<16x16xf32> -> vector<16x16xf32>
    %cst_207 = arith.constant 0.353553385 : f32
    %432 = vector.broadcast %cst_207 : f32 to vector<16x16xf32>
    %433 = arith.mulf %431, %432 : vector<16x16xf32>
    %434 = arith.addf %433, %357 : vector<16x16xf32>
    %cst_208 = arith.constant dense<0xFF800000> : vector<16xf32>
    %435 = vector.multi_reduction <maximumf>, %434, %cst_208 [1] : vector<16x16xf32> to vector<16xf32>
    %436 = vector.shape_cast %435 : vector<16xf32> to vector<16x1xf32>
    %437 = vector.broadcast %436 : vector<16x1xf32> to vector<16x16xf32>
    %438 = arith.subf %434, %437 : vector<16x16xf32>
    %439 = math.exp %438 : vector<16x16xf32>
    %cst_209 = arith.constant dense<0.000000e+00> : vector<16xf32>
    %440 = vector.multi_reduction <add>, %439, %cst_209 [1] : vector<16x16xf32> to vector<16xf32>
    %441 = vector.shape_cast %440 : vector<16xf32> to vector<16x1xf32>
    %442 = vector.broadcast %441 : vector<16x1xf32> to vector<16x16xf32>
    %443 = arith.divf %439, %442 : vector<16x16xf32>
    %cst_210 = arith.constant dense<0.000000e+00> : vector<16x8xf32>
    %444 = tpu.matmul %443, %430, %cst_210 {dimension_numbers = #tpu.dot_dimension_numbers<[1], [0], [0], [1], [0, 0, 1, 1], [], []>} : vector<16x16xf32>, vector<16x8xf32>, vector<16x8xf32> -> vector<16x8xf32>
    %445 = vector.extract_strided_slice %406 {offsets = [8, 0], sizes = [8, 32], strides = [1, 1]} : vector<32x32xf32> to vector<8x32xf32>
    %cst_211 = arith.constant dense<0.000000e+00> : vector<16x32xf32>
    %446 = tpu.matmul %444, %445, %cst_211 {dimension_numbers = #tpu.dot_dimension_numbers<[1], [0], [0], [1], [0, 0, 1, 1], [], []>} : vector<16x8xf32>, vector<8x32xf32>, vector<16x32xf32> -> vector<16x32xf32>
    %447 = arith.addf %427, %446 : vector<16x32xf32>
    %448 = vector.extract_strided_slice %402 {offsets = [0, 16], sizes = [16, 8], strides = [1, 1]} : vector<16x32xf32> to vector<16x8xf32>
    %449 = vector.extract_strided_slice %403 {offsets = [0, 16], sizes = [16, 8], strides = [1, 1]} : vector<16x32xf32> to vector<16x8xf32>
    %450 = vector.extract_strided_slice %404 {offsets = [0, 16], sizes = [16, 8], strides = [1, 1]} : vector<16x32xf32> to vector<16x8xf32>
    %cst_212 = arith.constant dense<0.000000e+00> : vector<16x16xf32>
    %451 = tpu.matmul %448, %449, %cst_212 {dimension_numbers = #tpu.dot_dimension_numbers<[1], [1], [0], [0], [0, 0, 1, 0], [], []>} : vector<16x8xf32>, vector<16x8xf32>, vector<16x16xf32> -> vector<16x16xf32>
    %cst_213 = arith.constant 0.353553385 : f32
    %452 = vector.broadcast %cst_213 : f32 to vector<16x16xf32>
    %453 = arith.mulf %451, %452 : vector<16x16xf32>
    %454 = arith.addf %453, %357 : vector<16x16xf32>
    %cst_214 = arith.constant dense<0xFF800000> : vector<16xf32>
    %455 = vector.multi_reduction <maximumf>, %454, %cst_214 [1] : vector<16x16xf32> to vector<16xf32>
    %456 = vector.shape_cast %455 : vector<16xf32> to vector<16x1xf32>
    %457 = vector.broadcast %456 : vector<16x1xf32> to vector<16x16xf32>
    %458 = arith.subf %454, %457 : vector<16x16xf32>
    %459 = math.exp %458 : vector<16x16xf32>
    %cst_215 = arith.constant dense<0.000000e+00> : vector<16xf32>
    %460 = vector.multi_reduction <add>, %459, %cst_215 [1] : vector<16x16xf32> to vector<16xf32>
    %461 = vector.shape_cast %460 : vector<16xf32> to vector<16x1xf32>
    %462 = vector.broadcast %461 : vector<16x1xf32> to vector<16x16xf32>
    %463 = arith.divf %459, %462 : vector<16x16xf32>
    %cst_216 = arith.constant dense<0.000000e+00> : vector<16x8xf32>
    %464 = tpu.matmul %463, %450, %cst_216 {dimension_numbers = #tpu.dot_dimension_numbers<[1], [0], [0], [1], [0, 0, 1, 1], [], []>} : vector<16x16xf32>, vector<16x8xf32>, vector<16x8xf32> -> vector<16x8xf32>
    %465 = vector.extract_strided_slice %406 {offsets = [16, 0], sizes = [8, 32], strides = [1, 1]} : vector<32x32xf32> to vector<8x32xf32>
    %cst_217 = arith.constant dense<0.000000e+00> : vector<16x32xf32>
    %466 = tpu.matmul %464, %465, %cst_217 {dimension_numbers = #tpu.dot_dimension_numbers<[1], [0], [0], [1], [0, 0, 1, 1], [], []>} : vector<16x8xf32>, vector<8x32xf32>, vector<16x32xf32> -> vector<16x32xf32>
    %467 = arith.addf %447, %466 : vector<16x32xf32>
    %468 = vector.extract_strided_slice %402 {offsets = [0, 24], sizes = [16, 8], strides = [1, 1]} : vector<16x32xf32> to vector<16x8xf32>
    %469 = vector.extract_strided_slice %403 {offsets = [0, 24], sizes = [16, 8], strides = [1, 1]} : vector<16x32xf32> to vector<16x8xf32>
    %470 = vector.extract_strided_slice %404 {offsets = [0, 24], sizes = [16, 8], strides = [1, 1]} : vector<16x32xf32> to vector<16x8xf32>
    %cst_218 = arith.constant dense<0.000000e+00> : vector<16x16xf32>
    %471 = tpu.matmul %468, %469, %cst_218 {dimension_numbers = #tpu.dot_dimension_numbers<[1], [1], [0], [0], [0, 0, 1, 0], [], []>} : vector<16x8xf32>, vector<16x8xf32>, vector<16x16xf32> -> vector<16x16xf32>
    %cst_219 = arith.constant 0.353553385 : f32
    %472 = vector.broadcast %cst_219 : f32 to vector<16x16xf32>
    %473 = arith.mulf %471, %472 : vector<16x16xf32>
    %474 = arith.addf %473, %357 : vector<16x16xf32>
    %cst_220 = arith.constant dense<0xFF800000> : vector<16xf32>
    %475 = vector.multi_reduction <maximumf>, %474, %cst_220 [1] : vector<16x16xf32> to vector<16xf32>
    %476 = vector.shape_cast %475 : vector<16xf32> to vector<16x1xf32>
    %477 = vector.broadcast %476 : vector<16x1xf32> to vector<16x16xf32>
    %478 = arith.subf %474, %477 : vector<16x16xf32>
    %479 = math.exp %478 : vector<16x16xf32>
    %cst_221 = arith.constant dense<0.000000e+00> : vector<16xf32>
    %480 = vector.multi_reduction <add>, %479, %cst_221 [1] : vector<16x16xf32> to vector<16xf32>
    %481 = vector.shape_cast %480 : vector<16xf32> to vector<16x1xf32>
    %482 = vector.broadcast %481 : vector<16x1xf32> to vector<16x16xf32>
    %483 = arith.divf %479, %482 : vector<16x16xf32>
    %cst_222 = arith.constant dense<0.000000e+00> : vector<16x8xf32>
    %484 = tpu.matmul %483, %470, %cst_222 {dimension_numbers = #tpu.dot_dimension_numbers<[1], [0], [0], [1], [0, 0, 1, 1], [], []>} : vector<16x16xf32>, vector<16x8xf32>, vector<16x8xf32> -> vector<16x8xf32>
    %485 = vector.extract_strided_slice %406 {offsets = [24, 0], sizes = [8, 32], strides = [1, 1]} : vector<32x32xf32> to vector<8x32xf32>
    %cst_223 = arith.constant dense<0.000000e+00> : vector<16x32xf32>
    %486 = tpu.matmul %484, %485, %cst_223 {dimension_numbers = #tpu.dot_dimension_numbers<[1], [0], [0], [1], [0, 0, 1, 1], [], []>} : vector<16x8xf32>, vector<8x32xf32>, vector<16x32xf32> -> vector<16x32xf32>
    %487 = arith.addf %467, %486 : vector<16x32xf32>
    %488 = vector.broadcast %408 : vector<1x32xf32> to vector<16x32xf32>
    %489 = arith.addf %487, %488 : vector<16x32xf32>
    %490 = arith.addf %370, %489 : vector<16x32xf32>
    %c0_224 = arith.constant 0 : index
    %c0_225 = arith.constant 0 : index
    %c0_226 = arith.constant 0 : index
    %491 = vector.load %arg29[%c0_224, %c0_225, %c0_226] : memref<2x1x32xf32, #tpu.memory_space<vmem>>, vector<1x1x32xf32>
    %492 = vector.shape_cast %491 : vector<1x1x32xf32> to vector<1x32xf32>
    %c0_227 = arith.constant 0 : index
    %c0_228 = arith.constant 0 : index
    %c0_229 = arith.constant 0 : index
    %493 = vector.load %arg30[%c0_227, %c0_228, %c0_229] : memref<2x1x32xf32, #tpu.memory_space<vmem>>, vector<1x1x32xf32>
    %494 = vector.shape_cast %493 : vector<1x1x32xf32> to vector<1x32xf32>
    %cst_230 = arith.constant dense<0.000000e+00> : vector<16xf32>
    %495 = vector.multi_reduction <add>, %490, %cst_230 [1] : vector<16x32xf32> to vector<16xf32>
    %496 = vector.shape_cast %495 : vector<16xf32> to vector<16x1xf32>
    %cst_231 = arith.constant 3.200000e+01 : f32
    %497 = vector.broadcast %cst_231 : f32 to vector<16x1xf32>
    %498 = arith.divf %496, %497 : vector<16x1xf32>
    %499 = vector.broadcast %498 : vector<16x1xf32> to vector<16x32xf32>
    %500 = arith.subf %490, %499 : vector<16x32xf32>
    %501 = arith.mulf %500, %500 : vector<16x32xf32>
    %cst_232 = arith.constant dense<0.000000e+00> : vector<16xf32>
    %502 = vector.multi_reduction <add>, %501, %cst_232 [1] : vector<16x32xf32> to vector<16xf32>
    %503 = vector.shape_cast %502 : vector<16xf32> to vector<16x1xf32>
    %cst_233 = arith.constant 0.0322580636 : f32
    %504 = vector.broadcast %cst_233 : f32 to vector<16x1xf32>
    %505 = arith.mulf %503, %504 : vector<16x1xf32>
    %506 = math.sqrt %505 : vector<16x1xf32>
    %507 = vector.broadcast %492 : vector<1x32xf32> to vector<16x32xf32>
    %508 = arith.mulf %507, %500 : vector<16x32xf32>
    %cst_234 = arith.constant 9.99999997E-7 : f32
    %509 = vector.broadcast %cst_234 : f32 to vector<16x1xf32>
    %510 = arith.addf %506, %509 : vector<16x1xf32>
    %511 = vector.broadcast %510 : vector<16x1xf32> to vector<16x32xf32>
    %512 = arith.divf %508, %511 : vector<16x32xf32>
    %513 = vector.broadcast %494 : vector<1x32xf32> to vector<16x32xf32>
    %514 = arith.addf %512, %513 : vector<16x32xf32>
    %c0_235 = arith.constant 0 : index
    %c0_236 = arith.constant 0 : index
    %c0_237 = arith.constant 0 : index
    %515 = vector.load %arg31[%c0_235, %c0_236, %c0_237] : memref<2x32x32xf32, #tpu.memory_space<vmem>>, vector<1x32x32xf32>
    %516 = vector.shape_cast %515 : vector<1x32x32xf32> to vector<32x32xf32>
    %cst_238 = arith.constant dense<0.000000e+00> : vector<16x32xf32>
    %517 = tpu.matmul %514, %516, %cst_238 {dimension_numbers = #tpu.dot_dimension_numbers<[1], [0], [0], [1], [0, 0, 1, 1], [], []>} : vector<16x32xf32>, vector<32x32xf32>, vector<16x32xf32> -> vector<16x32xf32>
    %c0_239 = arith.constant 0 : index
    %c0_240 = arith.constant 0 : index
    %c0_241 = arith.constant 0 : index
    %518 = vector.load %arg32[%c0_239, %c0_240, %c0_241] : memref<2x1x32xf32, #tpu.memory_space<vmem>>, vector<1x1x32xf32>
    %519 = vector.shape_cast %518 : vector<1x1x32xf32> to vector<1x32xf32>
    %520 = vector.broadcast %519 : vector<1x32xf32> to vector<16x32xf32>
    %521 = arith.addf %517, %520 : vector<16x32xf32>
    %c0_242 = arith.constant 0 : index
    %c0_243 = arith.constant 0 : index
    %c0_244 = arith.constant 0 : index
    %522 = vector.load %arg33[%c0_242, %c0_243, %c0_244] : memref<2x32x64xf32, #tpu.memory_space<vmem>>, vector<1x32x64xf32>
    %523 = vector.shape_cast %522 : vector<1x32x64xf32> to vector<32x64xf32>
    %cst_245 = arith.constant dense<0.000000e+00> : vector<16x64xf32>
    %524 = tpu.matmul %356, %523, %cst_245 {dimension_numbers = #tpu.dot_dimension_numbers<[1], [0], [0], [1], [0, 0, 1, 1], [], []>} : vector<16x32xf32>, vector<32x64xf32>, vector<16x64xf32> -> vector<16x64xf32>
    %c0_246 = arith.constant 0 : index
    %c0_247 = arith.constant 0 : index
    %c0_248 = arith.constant 0 : index
    %525 = vector.load %arg34[%c0_246, %c0_247, %c0_248] : memref<2x1x64xf32, #tpu.memory_space<vmem>>, vector<1x1x64xf32>
    %526 = vector.shape_cast %525 : vector<1x1x64xf32> to vector<1x64xf32>
    %527 = vector.broadcast %526 : vector<1x64xf32> to vector<16x64xf32>
    %528 = arith.addf %524, %527 : vector<16x64xf32>
    %529 = vector.extract_strided_slice %528 {offsets = [0, 0], sizes = [16, 32], strides = [1, 1]} : vector<16x64xf32> to vector<16x32xf32>
    %530 = vector.extract_strided_slice %528 {offsets = [0, 32], sizes = [16, 32], strides = [1, 1]} : vector<16x64xf32> to vector<16x32xf32>
    %c0_249 = arith.constant 0 : index
    %c0_250 = arith.constant 0 : index
    %c0_251 = arith.constant 0 : index
    %531 = vector.load %arg35[%c0_249, %c0_250, %c0_251] : memref<2x32x32xf32, #tpu.memory_space<vmem>>, vector<1x32x32xf32>
    %532 = vector.shape_cast %531 : vector<1x32x32xf32> to vector<32x32xf32>
    %c0_252 = arith.constant 0 : index
    %c0_253 = arith.constant 0 : index
    %c0_254 = arith.constant 0 : index
    %533 = vector.load %arg36[%c0_252, %c0_253, %c0_254] : memref<2x1x32xf32, #tpu.memory_space<vmem>>, vector<1x1x32xf32>
    %534 = vector.shape_cast %533 : vector<1x1x32xf32> to vector<1x32xf32>
    %535 = vector.extract_strided_slice %521 {offsets = [0, 0], sizes = [16, 8], strides = [1, 1]} : vector<16x32xf32> to vector<16x8xf32>
    %536 = vector.extract_strided_slice %529 {offsets = [0, 0], sizes = [16, 8], strides = [1, 1]} : vector<16x32xf32> to vector<16x8xf32>
    %537 = vector.extract_strided_slice %530 {offsets = [0, 0], sizes = [16, 8], strides = [1, 1]} : vector<16x32xf32> to vector<16x8xf32>
    %cst_255 = arith.constant dense<0.000000e+00> : vector<16x16xf32>
    %538 = tpu.matmul %535, %536, %cst_255 {dimension_numbers = #tpu.dot_dimension_numbers<[1], [1], [0], [0], [0, 0, 1, 0], [], []>} : vector<16x8xf32>, vector<16x8xf32>, vector<16x16xf32> -> vector<16x16xf32>
    %cst_256 = arith.constant 0.353553385 : f32
    %539 = vector.broadcast %cst_256 : f32 to vector<16x16xf32>
    %540 = arith.mulf %538, %539 : vector<16x16xf32>
    %541 = arith.addf %540, %358 : vector<16x16xf32>
    %cst_257 = arith.constant dense<0xFF800000> : vector<16xf32>
    %542 = vector.multi_reduction <maximumf>, %541, %cst_257 [1] : vector<16x16xf32> to vector<16xf32>
    %543 = vector.shape_cast %542 : vector<16xf32> to vector<16x1xf32>
    %544 = vector.broadcast %543 : vector<16x1xf32> to vector<16x16xf32>
    %545 = arith.subf %541, %544 : vector<16x16xf32>
    %546 = math.exp %545 : vector<16x16xf32>
    %cst_258 = arith.constant dense<0.000000e+00> : vector<16xf32>
    %547 = vector.multi_reduction <add>, %546, %cst_258 [1] : vector<16x16xf32> to vector<16xf32>
    %548 = vector.shape_cast %547 : vector<16xf32> to vector<16x1xf32>
    %549 = vector.broadcast %548 : vector<16x1xf32> to vector<16x16xf32>
    %550 = arith.divf %546, %549 : vector<16x16xf32>
    %cst_259 = arith.constant dense<0.000000e+00> : vector<16x8xf32>
    %551 = tpu.matmul %550, %537, %cst_259 {dimension_numbers = #tpu.dot_dimension_numbers<[1], [0], [0], [1], [0, 0, 1, 1], [], []>} : vector<16x16xf32>, vector<16x8xf32>, vector<16x8xf32> -> vector<16x8xf32>
    %552 = vector.extract_strided_slice %532 {offsets = [0, 0], sizes = [8, 32], strides = [1, 1]} : vector<32x32xf32> to vector<8x32xf32>
    %cst_260 = arith.constant dense<0.000000e+00> : vector<16x32xf32>
    %553 = tpu.matmul %551, %552, %cst_260 {dimension_numbers = #tpu.dot_dimension_numbers<[1], [0], [0], [1], [0, 0, 1, 1], [], []>} : vector<16x8xf32>, vector<8x32xf32>, vector<16x32xf32> -> vector<16x32xf32>
    %554 = vector.extract_strided_slice %521 {offsets = [0, 8], sizes = [16, 8], strides = [1, 1]} : vector<16x32xf32> to vector<16x8xf32>
    %555 = vector.extract_strided_slice %529 {offsets = [0, 8], sizes = [16, 8], strides = [1, 1]} : vector<16x32xf32> to vector<16x8xf32>
    %556 = vector.extract_strided_slice %530 {offsets = [0, 8], sizes = [16, 8], strides = [1, 1]} : vector<16x32xf32> to vector<16x8xf32>
    %cst_261 = arith.constant dense<0.000000e+00> : vector<16x16xf32>
    %557 = tpu.matmul %554, %555, %cst_261 {dimension_numbers = #tpu.dot_dimension_numbers<[1], [1], [0], [0], [0, 0, 1, 0], [], []>} : vector<16x8xf32>, vector<16x8xf32>, vector<16x16xf32> -> vector<16x16xf32>
    %cst_262 = arith.constant 0.353553385 : f32
    %558 = vector.broadcast %cst_262 : f32 to vector<16x16xf32>
    %559 = arith.mulf %557, %558 : vector<16x16xf32>
    %560 = arith.addf %559, %358 : vector<16x16xf32>
    %cst_263 = arith.constant dense<0xFF800000> : vector<16xf32>
    %561 = vector.multi_reduction <maximumf>, %560, %cst_263 [1] : vector<16x16xf32> to vector<16xf32>
    %562 = vector.shape_cast %561 : vector<16xf32> to vector<16x1xf32>
    %563 = vector.broadcast %562 : vector<16x1xf32> to vector<16x16xf32>
    %564 = arith.subf %560, %563 : vector<16x16xf32>
    %565 = math.exp %564 : vector<16x16xf32>
    %cst_264 = arith.constant dense<0.000000e+00> : vector<16xf32>
    %566 = vector.multi_reduction <add>, %565, %cst_264 [1] : vector<16x16xf32> to vector<16xf32>
    %567 = vector.shape_cast %566 : vector<16xf32> to vector<16x1xf32>
    %568 = vector.broadcast %567 : vector<16x1xf32> to vector<16x16xf32>
    %569 = arith.divf %565, %568 : vector<16x16xf32>
    %cst_265 = arith.constant dense<0.000000e+00> : vector<16x8xf32>
    %570 = tpu.matmul %569, %556, %cst_265 {dimension_numbers = #tpu.dot_dimension_numbers<[1], [0], [0], [1], [0, 0, 1, 1], [], []>} : vector<16x16xf32>, vector<16x8xf32>, vector<16x8xf32> -> vector<16x8xf32>
    %571 = vector.extract_strided_slice %532 {offsets = [8, 0], sizes = [8, 32], strides = [1, 1]} : vector<32x32xf32> to vector<8x32xf32>
    %cst_266 = arith.constant dense<0.000000e+00> : vector<16x32xf32>
    %572 = tpu.matmul %570, %571, %cst_266 {dimension_numbers = #tpu.dot_dimension_numbers<[1], [0], [0], [1], [0, 0, 1, 1], [], []>} : vector<16x8xf32>, vector<8x32xf32>, vector<16x32xf32> -> vector<16x32xf32>
    %573 = arith.addf %553, %572 : vector<16x32xf32>
    %574 = vector.extract_strided_slice %521 {offsets = [0, 16], sizes = [16, 8], strides = [1, 1]} : vector<16x32xf32> to vector<16x8xf32>
    %575 = vector.extract_strided_slice %529 {offsets = [0, 16], sizes = [16, 8], strides = [1, 1]} : vector<16x32xf32> to vector<16x8xf32>
    %576 = vector.extract_strided_slice %530 {offsets = [0, 16], sizes = [16, 8], strides = [1, 1]} : vector<16x32xf32> to vector<16x8xf32>
    %cst_267 = arith.constant dense<0.000000e+00> : vector<16x16xf32>
    %577 = tpu.matmul %574, %575, %cst_267 {dimension_numbers = #tpu.dot_dimension_numbers<[1], [1], [0], [0], [0, 0, 1, 0], [], []>} : vector<16x8xf32>, vector<16x8xf32>, vector<16x16xf32> -> vector<16x16xf32>
    %cst_268 = arith.constant 0.353553385 : f32
    %578 = vector.broadcast %cst_268 : f32 to vector<16x16xf32>
    %579 = arith.mulf %577, %578 : vector<16x16xf32>
    %580 = arith.addf %579, %358 : vector<16x16xf32>
    %cst_269 = arith.constant dense<0xFF800000> : vector<16xf32>
    %581 = vector.multi_reduction <maximumf>, %580, %cst_269 [1] : vector<16x16xf32> to vector<16xf32>
    %582 = vector.shape_cast %581 : vector<16xf32> to vector<16x1xf32>
    %583 = vector.broadcast %582 : vector<16x1xf32> to vector<16x16xf32>
    %584 = arith.subf %580, %583 : vector<16x16xf32>
    %585 = math.exp %584 : vector<16x16xf32>
    %cst_270 = arith.constant dense<0.000000e+00> : vector<16xf32>
    %586 = vector.multi_reduction <add>, %585, %cst_270 [1] : vector<16x16xf32> to vector<16xf32>
    %587 = vector.shape_cast %586 : vector<16xf32> to vector<16x1xf32>
    %588 = vector.broadcast %587 : vector<16x1xf32> to vector<16x16xf32>
    %589 = arith.divf %585, %588 : vector<16x16xf32>
    %cst_271 = arith.constant dense<0.000000e+00> : vector<16x8xf32>
    %590 = tpu.matmul %589, %576, %cst_271 {dimension_numbers = #tpu.dot_dimension_numbers<[1], [0], [0], [1], [0, 0, 1, 1], [], []>} : vector<16x16xf32>, vector<16x8xf32>, vector<16x8xf32> -> vector<16x8xf32>
    %591 = vector.extract_strided_slice %532 {offsets = [16, 0], sizes = [8, 32], strides = [1, 1]} : vector<32x32xf32> to vector<8x32xf32>
    %cst_272 = arith.constant dense<0.000000e+00> : vector<16x32xf32>
    %592 = tpu.matmul %590, %591, %cst_272 {dimension_numbers = #tpu.dot_dimension_numbers<[1], [0], [0], [1], [0, 0, 1, 1], [], []>} : vector<16x8xf32>, vector<8x32xf32>, vector<16x32xf32> -> vector<16x32xf32>
    %593 = arith.addf %573, %592 : vector<16x32xf32>
    %594 = vector.extract_strided_slice %521 {offsets = [0, 24], sizes = [16, 8], strides = [1, 1]} : vector<16x32xf32> to vector<16x8xf32>
    %595 = vector.extract_strided_slice %529 {offsets = [0, 24], sizes = [16, 8], strides = [1, 1]} : vector<16x32xf32> to vector<16x8xf32>
    %596 = vector.extract_strided_slice %530 {offsets = [0, 24], sizes = [16, 8], strides = [1, 1]} : vector<16x32xf32> to vector<16x8xf32>
    %cst_273 = arith.constant dense<0.000000e+00> : vector<16x16xf32>
    %597 = tpu.matmul %594, %595, %cst_273 {dimension_numbers = #tpu.dot_dimension_numbers<[1], [1], [0], [0], [0, 0, 1, 0], [], []>} : vector<16x8xf32>, vector<16x8xf32>, vector<16x16xf32> -> vector<16x16xf32>
    %cst_274 = arith.constant 0.353553385 : f32
    %598 = vector.broadcast %cst_274 : f32 to vector<16x16xf32>
    %599 = arith.mulf %597, %598 : vector<16x16xf32>
    %600 = arith.addf %599, %358 : vector<16x16xf32>
    %cst_275 = arith.constant dense<0xFF800000> : vector<16xf32>
    %601 = vector.multi_reduction <maximumf>, %600, %cst_275 [1] : vector<16x16xf32> to vector<16xf32>
    %602 = vector.shape_cast %601 : vector<16xf32> to vector<16x1xf32>
    %603 = vector.broadcast %602 : vector<16x1xf32> to vector<16x16xf32>
    %604 = arith.subf %600, %603 : vector<16x16xf32>
    %605 = math.exp %604 : vector<16x16xf32>
    %cst_276 = arith.constant dense<0.000000e+00> : vector<16xf32>
    %606 = vector.multi_reduction <add>, %605, %cst_276 [1] : vector<16x16xf32> to vector<16xf32>
    %607 = vector.shape_cast %606 : vector<16xf32> to vector<16x1xf32>
    %608 = vector.broadcast %607 : vector<16x1xf32> to vector<16x16xf32>
    %609 = arith.divf %605, %608 : vector<16x16xf32>
    %cst_277 = arith.constant dense<0.000000e+00> : vector<16x8xf32>
    %610 = tpu.matmul %609, %596, %cst_277 {dimension_numbers = #tpu.dot_dimension_numbers<[1], [0], [0], [1], [0, 0, 1, 1], [], []>} : vector<16x16xf32>, vector<16x8xf32>, vector<16x8xf32> -> vector<16x8xf32>
    %611 = vector.extract_strided_slice %532 {offsets = [24, 0], sizes = [8, 32], strides = [1, 1]} : vector<32x32xf32> to vector<8x32xf32>
    %cst_278 = arith.constant dense<0.000000e+00> : vector<16x32xf32>
    %612 = tpu.matmul %610, %611, %cst_278 {dimension_numbers = #tpu.dot_dimension_numbers<[1], [0], [0], [1], [0, 0, 1, 1], [], []>} : vector<16x8xf32>, vector<8x32xf32>, vector<16x32xf32> -> vector<16x32xf32>
    %613 = arith.addf %593, %612 : vector<16x32xf32>
    %614 = vector.broadcast %534 : vector<1x32xf32> to vector<16x32xf32>
    %615 = arith.addf %613, %614 : vector<16x32xf32>
    %616 = arith.addf %490, %615 : vector<16x32xf32>
    %c0_279 = arith.constant 0 : index
    %c0_280 = arith.constant 0 : index
    %c0_281 = arith.constant 0 : index
    %617 = vector.load %arg37[%c0_279, %c0_280, %c0_281] : memref<2x1x32xf32, #tpu.memory_space<vmem>>, vector<1x1x32xf32>
    %618 = vector.shape_cast %617 : vector<1x1x32xf32> to vector<1x32xf32>
    %c0_282 = arith.constant 0 : index
    %c0_283 = arith.constant 0 : index
    %c0_284 = arith.constant 0 : index
    %619 = vector.load %arg38[%c0_282, %c0_283, %c0_284] : memref<2x1x32xf32, #tpu.memory_space<vmem>>, vector<1x1x32xf32>
    %620 = vector.shape_cast %619 : vector<1x1x32xf32> to vector<1x32xf32>
    %cst_285 = arith.constant dense<0.000000e+00> : vector<16xf32>
    %621 = vector.multi_reduction <add>, %616, %cst_285 [1] : vector<16x32xf32> to vector<16xf32>
    %622 = vector.shape_cast %621 : vector<16xf32> to vector<16x1xf32>
    %cst_286 = arith.constant 3.200000e+01 : f32
    %623 = vector.broadcast %cst_286 : f32 to vector<16x1xf32>
    %624 = arith.divf %622, %623 : vector<16x1xf32>
    %625 = vector.broadcast %624 : vector<16x1xf32> to vector<16x32xf32>
    %626 = arith.subf %616, %625 : vector<16x32xf32>
    %627 = arith.mulf %626, %626 : vector<16x32xf32>
    %cst_287 = arith.constant dense<0.000000e+00> : vector<16xf32>
    %628 = vector.multi_reduction <add>, %627, %cst_287 [1] : vector<16x32xf32> to vector<16xf32>
    %629 = vector.shape_cast %628 : vector<16xf32> to vector<16x1xf32>
    %cst_288 = arith.constant 0.0322580636 : f32
    %630 = vector.broadcast %cst_288 : f32 to vector<16x1xf32>
    %631 = arith.mulf %629, %630 : vector<16x1xf32>
    %632 = math.sqrt %631 : vector<16x1xf32>
    %633 = vector.broadcast %618 : vector<1x32xf32> to vector<16x32xf32>
    %634 = arith.mulf %633, %626 : vector<16x32xf32>
    %cst_289 = arith.constant 9.99999997E-7 : f32
    %635 = vector.broadcast %cst_289 : f32 to vector<16x1xf32>
    %636 = arith.addf %632, %635 : vector<16x1xf32>
    %637 = vector.broadcast %636 : vector<16x1xf32> to vector<16x32xf32>
    %638 = arith.divf %634, %637 : vector<16x32xf32>
    %639 = vector.broadcast %620 : vector<1x32xf32> to vector<16x32xf32>
    %640 = arith.addf %638, %639 : vector<16x32xf32>
    %c0_290 = arith.constant 0 : index
    %c0_291 = arith.constant 0 : index
    %c0_292 = arith.constant 0 : index
    %641 = vector.load %arg39[%c0_290, %c0_291, %c0_292] : memref<2x32x64xf32, #tpu.memory_space<vmem>>, vector<1x32x64xf32>
    %642 = vector.shape_cast %641 : vector<1x32x64xf32> to vector<32x64xf32>
    %c0_293 = arith.constant 0 : index
    %c0_294 = arith.constant 0 : index
    %c0_295 = arith.constant 0 : index
    %643 = vector.load %arg40[%c0_293, %c0_294, %c0_295] : memref<2x1x64xf32, #tpu.memory_space<vmem>>, vector<1x1x64xf32>
    %644 = vector.shape_cast %643 : vector<1x1x64xf32> to vector<1x64xf32>
    %c0_296 = arith.constant 0 : index
    %c0_297 = arith.constant 0 : index
    %c0_298 = arith.constant 0 : index
    %645 = vector.load %arg41[%c0_296, %c0_297, %c0_298] : memref<2x64x32xf32, #tpu.memory_space<vmem>>, vector<1x64x32xf32>
    %646 = vector.shape_cast %645 : vector<1x64x32xf32> to vector<64x32xf32>
    %c0_299 = arith.constant 0 : index
    %c0_300 = arith.constant 0 : index
    %c0_301 = arith.constant 0 : index
    %647 = vector.load %arg42[%c0_299, %c0_300, %c0_301] : memref<2x1x32xf32, #tpu.memory_space<vmem>>, vector<1x1x32xf32>
    %648 = vector.shape_cast %647 : vector<1x1x32xf32> to vector<1x32xf32>
    %cst_302 = arith.constant dense<0.000000e+00> : vector<16x64xf32>
    %649 = tpu.matmul %640, %642, %cst_302 {dimension_numbers = #tpu.dot_dimension_numbers<[1], [0], [0], [1], [0, 0, 1, 1], [], []>} : vector<16x32xf32>, vector<32x64xf32>, vector<16x64xf32> -> vector<16x64xf32>
    %650 = vector.broadcast %644 : vector<1x64xf32> to vector<16x64xf32>
    %651 = arith.addf %649, %650 : vector<16x64xf32>
    %cst_303 = arith.constant 0.000000e+00 : f32
    %652 = vector.broadcast %cst_303 : f32 to vector<16x64xf32>
    %653 = arith.maximumf %651, %652 : vector<16x64xf32>
    %cst_304 = arith.constant dense<0.000000e+00> : vector<16x32xf32>
    %654 = tpu.matmul %653, %646, %cst_304 {dimension_numbers = #tpu.dot_dimension_numbers<[1], [0], [0], [1], [0, 0, 1, 1], [], []>} : vector<16x64xf32>, vector<64x32xf32>, vector<16x32xf32> -> vector<16x32xf32>
    %655 = vector.broadcast %648 : vector<1x32xf32> to vector<16x32xf32>
    %656 = arith.addf %654, %655 : vector<16x32xf32>
    %657 = arith.addf %616, %656 : vector<16x32xf32>
    %c1_305 = arith.constant 1 : index
    %c0_306 = arith.constant 0 : index
    %c0_307 = arith.constant 0 : index
    %658 = vector.load %arg23[%c1_305, %c0_306, %c0_307] : memref<2x1x32xf32, #tpu.memory_space<vmem>>, vector<1x1x32xf32>
    %659 = vector.shape_cast %658 : vector<1x1x32xf32> to vector<1x32xf32>
    %c1_308 = arith.constant 1 : index
    %c0_309 = arith.constant 0 : index
    %c0_310 = arith.constant 0 : index
    %660 = vector.load %arg24[%c1_308, %c0_309, %c0_310] : memref<2x1x32xf32, #tpu.memory_space<vmem>>, vector<1x1x32xf32>
    %661 = vector.shape_cast %660 : vector<1x1x32xf32> to vector<1x32xf32>
    %cst_311 = arith.constant dense<0.000000e+00> : vector<16xf32>
    %662 = vector.multi_reduction <add>, %657, %cst_311 [1] : vector<16x32xf32> to vector<16xf32>
    %663 = vector.shape_cast %662 : vector<16xf32> to vector<16x1xf32>
    %cst_312 = arith.constant 3.200000e+01 : f32
    %664 = vector.broadcast %cst_312 : f32 to vector<16x1xf32>
    %665 = arith.divf %663, %664 : vector<16x1xf32>
    %666 = vector.broadcast %665 : vector<16x1xf32> to vector<16x32xf32>
    %667 = arith.subf %657, %666 : vector<16x32xf32>
    %668 = arith.mulf %667, %667 : vector<16x32xf32>
    %cst_313 = arith.constant dense<0.000000e+00> : vector<16xf32>
    %669 = vector.multi_reduction <add>, %668, %cst_313 [1] : vector<16x32xf32> to vector<16xf32>
    %670 = vector.shape_cast %669 : vector<16xf32> to vector<16x1xf32>
    %cst_314 = arith.constant 0.0322580636 : f32
    %671 = vector.broadcast %cst_314 : f32 to vector<16x1xf32>
    %672 = arith.mulf %670, %671 : vector<16x1xf32>
    %673 = math.sqrt %672 : vector<16x1xf32>
    %674 = vector.broadcast %659 : vector<1x32xf32> to vector<16x32xf32>
    %675 = arith.mulf %674, %667 : vector<16x32xf32>
    %cst_315 = arith.constant 9.99999997E-7 : f32
    %676 = vector.broadcast %cst_315 : f32 to vector<16x1xf32>
    %677 = arith.addf %673, %676 : vector<16x1xf32>
    %678 = vector.broadcast %677 : vector<16x1xf32> to vector<16x32xf32>
    %679 = arith.divf %675, %678 : vector<16x32xf32>
    %680 = vector.broadcast %661 : vector<1x32xf32> to vector<16x32xf32>
    %681 = arith.addf %679, %680 : vector<16x32xf32>
    %c1_316 = arith.constant 1 : index
    %c0_317 = arith.constant 0 : index
    %c0_318 = arith.constant 0 : index
    %682 = vector.load %arg25[%c1_316, %c0_317, %c0_318] : memref<2x32x96xf32, #tpu.memory_space<vmem>>, vector<1x32x96xf32>
    %683 = vector.shape_cast %682 : vector<1x32x96xf32> to vector<32x96xf32>
    %cst_319 = arith.constant dense<0.000000e+00> : vector<16x96xf32>
    %684 = tpu.matmul %681, %683, %cst_319 {dimension_numbers = #tpu.dot_dimension_numbers<[1], [0], [0], [1], [0, 0, 1, 1], [], []>} : vector<16x32xf32>, vector<32x96xf32>, vector<16x96xf32> -> vector<16x96xf32>
    %c1_320 = arith.constant 1 : index
    %c0_321 = arith.constant 0 : index
    %c0_322 = arith.constant 0 : index
    %685 = vector.load %arg26[%c1_320, %c0_321, %c0_322] : memref<2x1x96xf32, #tpu.memory_space<vmem>>, vector<1x1x96xf32>
    %686 = vector.shape_cast %685 : vector<1x1x96xf32> to vector<1x96xf32>
    %687 = vector.broadcast %686 : vector<1x96xf32> to vector<16x96xf32>
    %688 = arith.addf %684, %687 : vector<16x96xf32>
    %689 = vector.extract_strided_slice %688 {offsets = [0, 0], sizes = [16, 32], strides = [1, 1]} : vector<16x96xf32> to vector<16x32xf32>
    %690 = vector.extract_strided_slice %688 {offsets = [0, 32], sizes = [16, 32], strides = [1, 1]} : vector<16x96xf32> to vector<16x32xf32>
    %691 = vector.extract_strided_slice %688 {offsets = [0, 64], sizes = [16, 32], strides = [1, 1]} : vector<16x96xf32> to vector<16x32xf32>
    %c1_323 = arith.constant 1 : index
    %c0_324 = arith.constant 0 : index
    %c0_325 = arith.constant 0 : index
    %692 = vector.load %arg27[%c1_323, %c0_324, %c0_325] : memref<2x32x32xf32, #tpu.memory_space<vmem>>, vector<1x32x32xf32>
    %693 = vector.shape_cast %692 : vector<1x32x32xf32> to vector<32x32xf32>
    %c1_326 = arith.constant 1 : index
    %c0_327 = arith.constant 0 : index
    %c0_328 = arith.constant 0 : index
    %694 = vector.load %arg28[%c1_326, %c0_327, %c0_328] : memref<2x1x32xf32, #tpu.memory_space<vmem>>, vector<1x1x32xf32>
    %695 = vector.shape_cast %694 : vector<1x1x32xf32> to vector<1x32xf32>
    %696 = vector.extract_strided_slice %689 {offsets = [0, 0], sizes = [16, 8], strides = [1, 1]} : vector<16x32xf32> to vector<16x8xf32>
    %697 = vector.extract_strided_slice %690 {offsets = [0, 0], sizes = [16, 8], strides = [1, 1]} : vector<16x32xf32> to vector<16x8xf32>
    %698 = vector.extract_strided_slice %691 {offsets = [0, 0], sizes = [16, 8], strides = [1, 1]} : vector<16x32xf32> to vector<16x8xf32>
    %cst_329 = arith.constant dense<0.000000e+00> : vector<16x16xf32>
    %699 = tpu.matmul %696, %697, %cst_329 {dimension_numbers = #tpu.dot_dimension_numbers<[1], [1], [0], [0], [0, 0, 1, 0], [], []>} : vector<16x8xf32>, vector<16x8xf32>, vector<16x16xf32> -> vector<16x16xf32>
    %cst_330 = arith.constant 0.353553385 : f32
    %700 = vector.broadcast %cst_330 : f32 to vector<16x16xf32>
    %701 = arith.mulf %699, %700 : vector<16x16xf32>
    %702 = arith.addf %701, %357 : vector<16x16xf32>
    %cst_331 = arith.constant dense<0xFF800000> : vector<16xf32>
    %703 = vector.multi_reduction <maximumf>, %702, %cst_331 [1] : vector<16x16xf32> to vector<16xf32>
    %704 = vector.shape_cast %703 : vector<16xf32> to vector<16x1xf32>
    %705 = vector.broadcast %704 : vector<16x1xf32> to vector<16x16xf32>
    %706 = arith.subf %702, %705 : vector<16x16xf32>
    %707 = math.exp %706 : vector<16x16xf32>
    %cst_332 = arith.constant dense<0.000000e+00> : vector<16xf32>
    %708 = vector.multi_reduction <add>, %707, %cst_332 [1] : vector<16x16xf32> to vector<16xf32>
    %709 = vector.shape_cast %708 : vector<16xf32> to vector<16x1xf32>
    %710 = vector.broadcast %709 : vector<16x1xf32> to vector<16x16xf32>
    %711 = arith.divf %707, %710 : vector<16x16xf32>
    %cst_333 = arith.constant dense<0.000000e+00> : vector<16x8xf32>
    %712 = tpu.matmul %711, %698, %cst_333 {dimension_numbers = #tpu.dot_dimension_numbers<[1], [0], [0], [1], [0, 0, 1, 1], [], []>} : vector<16x16xf32>, vector<16x8xf32>, vector<16x8xf32> -> vector<16x8xf32>
    %713 = vector.extract_strided_slice %693 {offsets = [0, 0], sizes = [8, 32], strides = [1, 1]} : vector<32x32xf32> to vector<8x32xf32>
    %cst_334 = arith.constant dense<0.000000e+00> : vector<16x32xf32>
    %714 = tpu.matmul %712, %713, %cst_334 {dimension_numbers = #tpu.dot_dimension_numbers<[1], [0], [0], [1], [0, 0, 1, 1], [], []>} : vector<16x8xf32>, vector<8x32xf32>, vector<16x32xf32> -> vector<16x32xf32>
    %715 = vector.extract_strided_slice %689 {offsets = [0, 8], sizes = [16, 8], strides = [1, 1]} : vector<16x32xf32> to vector<16x8xf32>
    %716 = vector.extract_strided_slice %690 {offsets = [0, 8], sizes = [16, 8], strides = [1, 1]} : vector<16x32xf32> to vector<16x8xf32>
    %717 = vector.extract_strided_slice %691 {offsets = [0, 8], sizes = [16, 8], strides = [1, 1]} : vector<16x32xf32> to vector<16x8xf32>
    %cst_335 = arith.constant dense<0.000000e+00> : vector<16x16xf32>
    %718 = tpu.matmul %715, %716, %cst_335 {dimension_numbers = #tpu.dot_dimension_numbers<[1], [1], [0], [0], [0, 0, 1, 0], [], []>} : vector<16x8xf32>, vector<16x8xf32>, vector<16x16xf32> -> vector<16x16xf32>
    %cst_336 = arith.constant 0.353553385 : f32
    %719 = vector.broadcast %cst_336 : f32 to vector<16x16xf32>
    %720 = arith.mulf %718, %719 : vector<16x16xf32>
    %721 = arith.addf %720, %357 : vector<16x16xf32>
    %cst_337 = arith.constant dense<0xFF800000> : vector<16xf32>
    %722 = vector.multi_reduction <maximumf>, %721, %cst_337 [1] : vector<16x16xf32> to vector<16xf32>
    %723 = vector.shape_cast %722 : vector<16xf32> to vector<16x1xf32>
    %724 = vector.broadcast %723 : vector<16x1xf32> to vector<16x16xf32>
    %725 = arith.subf %721, %724 : vector<16x16xf32>
    %726 = math.exp %725 : vector<16x16xf32>
    %cst_338 = arith.constant dense<0.000000e+00> : vector<16xf32>
    %727 = vector.multi_reduction <add>, %726, %cst_338 [1] : vector<16x16xf32> to vector<16xf32>
    %728 = vector.shape_cast %727 : vector<16xf32> to vector<16x1xf32>
    %729 = vector.broadcast %728 : vector<16x1xf32> to vector<16x16xf32>
    %730 = arith.divf %726, %729 : vector<16x16xf32>
    %cst_339 = arith.constant dense<0.000000e+00> : vector<16x8xf32>
    %731 = tpu.matmul %730, %717, %cst_339 {dimension_numbers = #tpu.dot_dimension_numbers<[1], [0], [0], [1], [0, 0, 1, 1], [], []>} : vector<16x16xf32>, vector<16x8xf32>, vector<16x8xf32> -> vector<16x8xf32>
    %732 = vector.extract_strided_slice %693 {offsets = [8, 0], sizes = [8, 32], strides = [1, 1]} : vector<32x32xf32> to vector<8x32xf32>
    %cst_340 = arith.constant dense<0.000000e+00> : vector<16x32xf32>
    %733 = tpu.matmul %731, %732, %cst_340 {dimension_numbers = #tpu.dot_dimension_numbers<[1], [0], [0], [1], [0, 0, 1, 1], [], []>} : vector<16x8xf32>, vector<8x32xf32>, vector<16x32xf32> -> vector<16x32xf32>
    %734 = arith.addf %714, %733 : vector<16x32xf32>
    %735 = vector.extract_strided_slice %689 {offsets = [0, 16], sizes = [16, 8], strides = [1, 1]} : vector<16x32xf32> to vector<16x8xf32>
    %736 = vector.extract_strided_slice %690 {offsets = [0, 16], sizes = [16, 8], strides = [1, 1]} : vector<16x32xf32> to vector<16x8xf32>
    %737 = vector.extract_strided_slice %691 {offsets = [0, 16], sizes = [16, 8], strides = [1, 1]} : vector<16x32xf32> to vector<16x8xf32>
    %cst_341 = arith.constant dense<0.000000e+00> : vector<16x16xf32>
    %738 = tpu.matmul %735, %736, %cst_341 {dimension_numbers = #tpu.dot_dimension_numbers<[1], [1], [0], [0], [0, 0, 1, 0], [], []>} : vector<16x8xf32>, vector<16x8xf32>, vector<16x16xf32> -> vector<16x16xf32>
    %cst_342 = arith.constant 0.353553385 : f32
    %739 = vector.broadcast %cst_342 : f32 to vector<16x16xf32>
    %740 = arith.mulf %738, %739 : vector<16x16xf32>
    %741 = arith.addf %740, %357 : vector<16x16xf32>
    %cst_343 = arith.constant dense<0xFF800000> : vector<16xf32>
    %742 = vector.multi_reduction <maximumf>, %741, %cst_343 [1] : vector<16x16xf32> to vector<16xf32>
    %743 = vector.shape_cast %742 : vector<16xf32> to vector<16x1xf32>
    %744 = vector.broadcast %743 : vector<16x1xf32> to vector<16x16xf32>
    %745 = arith.subf %741, %744 : vector<16x16xf32>
    %746 = math.exp %745 : vector<16x16xf32>
    %cst_344 = arith.constant dense<0.000000e+00> : vector<16xf32>
    %747 = vector.multi_reduction <add>, %746, %cst_344 [1] : vector<16x16xf32> to vector<16xf32>
    %748 = vector.shape_cast %747 : vector<16xf32> to vector<16x1xf32>
    %749 = vector.broadcast %748 : vector<16x1xf32> to vector<16x16xf32>
    %750 = arith.divf %746, %749 : vector<16x16xf32>
    %cst_345 = arith.constant dense<0.000000e+00> : vector<16x8xf32>
    %751 = tpu.matmul %750, %737, %cst_345 {dimension_numbers = #tpu.dot_dimension_numbers<[1], [0], [0], [1], [0, 0, 1, 1], [], []>} : vector<16x16xf32>, vector<16x8xf32>, vector<16x8xf32> -> vector<16x8xf32>
    %752 = vector.extract_strided_slice %693 {offsets = [16, 0], sizes = [8, 32], strides = [1, 1]} : vector<32x32xf32> to vector<8x32xf32>
    %cst_346 = arith.constant dense<0.000000e+00> : vector<16x32xf32>
    %753 = tpu.matmul %751, %752, %cst_346 {dimension_numbers = #tpu.dot_dimension_numbers<[1], [0], [0], [1], [0, 0, 1, 1], [], []>} : vector<16x8xf32>, vector<8x32xf32>, vector<16x32xf32> -> vector<16x32xf32>
    %754 = arith.addf %734, %753 : vector<16x32xf32>
    %755 = vector.extract_strided_slice %689 {offsets = [0, 24], sizes = [16, 8], strides = [1, 1]} : vector<16x32xf32> to vector<16x8xf32>
    %756 = vector.extract_strided_slice %690 {offsets = [0, 24], sizes = [16, 8], strides = [1, 1]} : vector<16x32xf32> to vector<16x8xf32>
    %757 = vector.extract_strided_slice %691 {offsets = [0, 24], sizes = [16, 8], strides = [1, 1]} : vector<16x32xf32> to vector<16x8xf32>
    %cst_347 = arith.constant dense<0.000000e+00> : vector<16x16xf32>
    %758 = tpu.matmul %755, %756, %cst_347 {dimension_numbers = #tpu.dot_dimension_numbers<[1], [1], [0], [0], [0, 0, 1, 0], [], []>} : vector<16x8xf32>, vector<16x8xf32>, vector<16x16xf32> -> vector<16x16xf32>
    %cst_348 = arith.constant 0.353553385 : f32
    %759 = vector.broadcast %cst_348 : f32 to vector<16x16xf32>
    %760 = arith.mulf %758, %759 : vector<16x16xf32>
    %761 = arith.addf %760, %357 : vector<16x16xf32>
    %cst_349 = arith.constant dense<0xFF800000> : vector<16xf32>
    %762 = vector.multi_reduction <maximumf>, %761, %cst_349 [1] : vector<16x16xf32> to vector<16xf32>
    %763 = vector.shape_cast %762 : vector<16xf32> to vector<16x1xf32>
    %764 = vector.broadcast %763 : vector<16x1xf32> to vector<16x16xf32>
    %765 = arith.subf %761, %764 : vector<16x16xf32>
    %766 = math.exp %765 : vector<16x16xf32>
    %cst_350 = arith.constant dense<0.000000e+00> : vector<16xf32>
    %767 = vector.multi_reduction <add>, %766, %cst_350 [1] : vector<16x16xf32> to vector<16xf32>
    %768 = vector.shape_cast %767 : vector<16xf32> to vector<16x1xf32>
    %769 = vector.broadcast %768 : vector<16x1xf32> to vector<16x16xf32>
    %770 = arith.divf %766, %769 : vector<16x16xf32>
    %cst_351 = arith.constant dense<0.000000e+00> : vector<16x8xf32>
    %771 = tpu.matmul %770, %757, %cst_351 {dimension_numbers = #tpu.dot_dimension_numbers<[1], [0], [0], [1], [0, 0, 1, 1], [], []>} : vector<16x16xf32>, vector<16x8xf32>, vector<16x8xf32> -> vector<16x8xf32>
    %772 = vector.extract_strided_slice %693 {offsets = [24, 0], sizes = [8, 32], strides = [1, 1]} : vector<32x32xf32> to vector<8x32xf32>
    %cst_352 = arith.constant dense<0.000000e+00> : vector<16x32xf32>
    %773 = tpu.matmul %771, %772, %cst_352 {dimension_numbers = #tpu.dot_dimension_numbers<[1], [0], [0], [1], [0, 0, 1, 1], [], []>} : vector<16x8xf32>, vector<8x32xf32>, vector<16x32xf32> -> vector<16x32xf32>
    %774 = arith.addf %754, %773 : vector<16x32xf32>
    %775 = vector.broadcast %695 : vector<1x32xf32> to vector<16x32xf32>
    %776 = arith.addf %774, %775 : vector<16x32xf32>
    %777 = arith.addf %657, %776 : vector<16x32xf32>
    %c1_353 = arith.constant 1 : index
    %c0_354 = arith.constant 0 : index
    %c0_355 = arith.constant 0 : index
    %778 = vector.load %arg29[%c1_353, %c0_354, %c0_355] : memref<2x1x32xf32, #tpu.memory_space<vmem>>, vector<1x1x32xf32>
    %779 = vector.shape_cast %778 : vector<1x1x32xf32> to vector<1x32xf32>
    %c1_356 = arith.constant 1 : index
    %c0_357 = arith.constant 0 : index
    %c0_358 = arith.constant 0 : index
    %780 = vector.load %arg30[%c1_356, %c0_357, %c0_358] : memref<2x1x32xf32, #tpu.memory_space<vmem>>, vector<1x1x32xf32>
    %781 = vector.shape_cast %780 : vector<1x1x32xf32> to vector<1x32xf32>
    %cst_359 = arith.constant dense<0.000000e+00> : vector<16xf32>
    %782 = vector.multi_reduction <add>, %777, %cst_359 [1] : vector<16x32xf32> to vector<16xf32>
    %783 = vector.shape_cast %782 : vector<16xf32> to vector<16x1xf32>
    %cst_360 = arith.constant 3.200000e+01 : f32
    %784 = vector.broadcast %cst_360 : f32 to vector<16x1xf32>
    %785 = arith.divf %783, %784 : vector<16x1xf32>
    %786 = vector.broadcast %785 : vector<16x1xf32> to vector<16x32xf32>
    %787 = arith.subf %777, %786 : vector<16x32xf32>
    %788 = arith.mulf %787, %787 : vector<16x32xf32>
    %cst_361 = arith.constant dense<0.000000e+00> : vector<16xf32>
    %789 = vector.multi_reduction <add>, %788, %cst_361 [1] : vector<16x32xf32> to vector<16xf32>
    %790 = vector.shape_cast %789 : vector<16xf32> to vector<16x1xf32>
    %cst_362 = arith.constant 0.0322580636 : f32
    %791 = vector.broadcast %cst_362 : f32 to vector<16x1xf32>
    %792 = arith.mulf %790, %791 : vector<16x1xf32>
    %793 = math.sqrt %792 : vector<16x1xf32>
    %794 = vector.broadcast %779 : vector<1x32xf32> to vector<16x32xf32>
    %795 = arith.mulf %794, %787 : vector<16x32xf32>
    %cst_363 = arith.constant 9.99999997E-7 : f32
    %796 = vector.broadcast %cst_363 : f32 to vector<16x1xf32>
    %797 = arith.addf %793, %796 : vector<16x1xf32>
    %798 = vector.broadcast %797 : vector<16x1xf32> to vector<16x32xf32>
    %799 = arith.divf %795, %798 : vector<16x32xf32>
    %800 = vector.broadcast %781 : vector<1x32xf32> to vector<16x32xf32>
    %801 = arith.addf %799, %800 : vector<16x32xf32>
    %c1_364 = arith.constant 1 : index
    %c0_365 = arith.constant 0 : index
    %c0_366 = arith.constant 0 : index
    %802 = vector.load %arg31[%c1_364, %c0_365, %c0_366] : memref<2x32x32xf32, #tpu.memory_space<vmem>>, vector<1x32x32xf32>
    %803 = vector.shape_cast %802 : vector<1x32x32xf32> to vector<32x32xf32>
    %cst_367 = arith.constant dense<0.000000e+00> : vector<16x32xf32>
    %804 = tpu.matmul %801, %803, %cst_367 {dimension_numbers = #tpu.dot_dimension_numbers<[1], [0], [0], [1], [0, 0, 1, 1], [], []>} : vector<16x32xf32>, vector<32x32xf32>, vector<16x32xf32> -> vector<16x32xf32>
    %c1_368 = arith.constant 1 : index
    %c0_369 = arith.constant 0 : index
    %c0_370 = arith.constant 0 : index
    %805 = vector.load %arg32[%c1_368, %c0_369, %c0_370] : memref<2x1x32xf32, #tpu.memory_space<vmem>>, vector<1x1x32xf32>
    %806 = vector.shape_cast %805 : vector<1x1x32xf32> to vector<1x32xf32>
    %807 = vector.broadcast %806 : vector<1x32xf32> to vector<16x32xf32>
    %808 = arith.addf %804, %807 : vector<16x32xf32>
    %c1_371 = arith.constant 1 : index
    %c0_372 = arith.constant 0 : index
    %c0_373 = arith.constant 0 : index
    %809 = vector.load %arg33[%c1_371, %c0_372, %c0_373] : memref<2x32x64xf32, #tpu.memory_space<vmem>>, vector<1x32x64xf32>
    %810 = vector.shape_cast %809 : vector<1x32x64xf32> to vector<32x64xf32>
    %cst_374 = arith.constant dense<0.000000e+00> : vector<16x64xf32>
    %811 = tpu.matmul %356, %810, %cst_374 {dimension_numbers = #tpu.dot_dimension_numbers<[1], [0], [0], [1], [0, 0, 1, 1], [], []>} : vector<16x32xf32>, vector<32x64xf32>, vector<16x64xf32> -> vector<16x64xf32>
    %c1_375 = arith.constant 1 : index
    %c0_376 = arith.constant 0 : index
    %c0_377 = arith.constant 0 : index
    %812 = vector.load %arg34[%c1_375, %c0_376, %c0_377] : memref<2x1x64xf32, #tpu.memory_space<vmem>>, vector<1x1x64xf32>
    %813 = vector.shape_cast %812 : vector<1x1x64xf32> to vector<1x64xf32>
    %814 = vector.broadcast %813 : vector<1x64xf32> to vector<16x64xf32>
    %815 = arith.addf %811, %814 : vector<16x64xf32>
    %816 = vector.extract_strided_slice %815 {offsets = [0, 0], sizes = [16, 32], strides = [1, 1]} : vector<16x64xf32> to vector<16x32xf32>
    %817 = vector.extract_strided_slice %815 {offsets = [0, 32], sizes = [16, 32], strides = [1, 1]} : vector<16x64xf32> to vector<16x32xf32>
    %c1_378 = arith.constant 1 : index
    %c0_379 = arith.constant 0 : index
    %c0_380 = arith.constant 0 : index
    %818 = vector.load %arg35[%c1_378, %c0_379, %c0_380] : memref<2x32x32xf32, #tpu.memory_space<vmem>>, vector<1x32x32xf32>
    %819 = vector.shape_cast %818 : vector<1x32x32xf32> to vector<32x32xf32>
    %c1_381 = arith.constant 1 : index
    %c0_382 = arith.constant 0 : index
    %c0_383 = arith.constant 0 : index
    %820 = vector.load %arg36[%c1_381, %c0_382, %c0_383] : memref<2x1x32xf32, #tpu.memory_space<vmem>>, vector<1x1x32xf32>
    %821 = vector.shape_cast %820 : vector<1x1x32xf32> to vector<1x32xf32>
    %822 = vector.extract_strided_slice %808 {offsets = [0, 0], sizes = [16, 8], strides = [1, 1]} : vector<16x32xf32> to vector<16x8xf32>
    %823 = vector.extract_strided_slice %816 {offsets = [0, 0], sizes = [16, 8], strides = [1, 1]} : vector<16x32xf32> to vector<16x8xf32>
    %824 = vector.extract_strided_slice %817 {offsets = [0, 0], sizes = [16, 8], strides = [1, 1]} : vector<16x32xf32> to vector<16x8xf32>
    %cst_384 = arith.constant dense<0.000000e+00> : vector<16x16xf32>
    %825 = tpu.matmul %822, %823, %cst_384 {dimension_numbers = #tpu.dot_dimension_numbers<[1], [1], [0], [0], [0, 0, 1, 0], [], []>} : vector<16x8xf32>, vector<16x8xf32>, vector<16x16xf32> -> vector<16x16xf32>
    %cst_385 = arith.constant 0.353553385 : f32
    %826 = vector.broadcast %cst_385 : f32 to vector<16x16xf32>
    %827 = arith.mulf %825, %826 : vector<16x16xf32>
    %828 = arith.addf %827, %358 : vector<16x16xf32>
    %cst_386 = arith.constant dense<0xFF800000> : vector<16xf32>
    %829 = vector.multi_reduction <maximumf>, %828, %cst_386 [1] : vector<16x16xf32> to vector<16xf32>
    %830 = vector.shape_cast %829 : vector<16xf32> to vector<16x1xf32>
    %831 = vector.broadcast %830 : vector<16x1xf32> to vector<16x16xf32>
    %832 = arith.subf %828, %831 : vector<16x16xf32>
    %833 = math.exp %832 : vector<16x16xf32>
    %cst_387 = arith.constant dense<0.000000e+00> : vector<16xf32>
    %834 = vector.multi_reduction <add>, %833, %cst_387 [1] : vector<16x16xf32> to vector<16xf32>
    %835 = vector.shape_cast %834 : vector<16xf32> to vector<16x1xf32>
    %836 = vector.broadcast %835 : vector<16x1xf32> to vector<16x16xf32>
    %837 = arith.divf %833, %836 : vector<16x16xf32>
    %cst_388 = arith.constant dense<0.000000e+00> : vector<16x8xf32>
    %838 = tpu.matmul %837, %824, %cst_388 {dimension_numbers = #tpu.dot_dimension_numbers<[1], [0], [0], [1], [0, 0, 1, 1], [], []>} : vector<16x16xf32>, vector<16x8xf32>, vector<16x8xf32> -> vector<16x8xf32>
    %839 = vector.extract_strided_slice %819 {offsets = [0, 0], sizes = [8, 32], strides = [1, 1]} : vector<32x32xf32> to vector<8x32xf32>
    %cst_389 = arith.constant dense<0.000000e+00> : vector<16x32xf32>
    %840 = tpu.matmul %838, %839, %cst_389 {dimension_numbers = #tpu.dot_dimension_numbers<[1], [0], [0], [1], [0, 0, 1, 1], [], []>} : vector<16x8xf32>, vector<8x32xf32>, vector<16x32xf32> -> vector<16x32xf32>
    %841 = vector.extract_strided_slice %808 {offsets = [0, 8], sizes = [16, 8], strides = [1, 1]} : vector<16x32xf32> to vector<16x8xf32>
    %842 = vector.extract_strided_slice %816 {offsets = [0, 8], sizes = [16, 8], strides = [1, 1]} : vector<16x32xf32> to vector<16x8xf32>
    %843 = vector.extract_strided_slice %817 {offsets = [0, 8], sizes = [16, 8], strides = [1, 1]} : vector<16x32xf32> to vector<16x8xf32>
    %cst_390 = arith.constant dense<0.000000e+00> : vector<16x16xf32>
    %844 = tpu.matmul %841, %842, %cst_390 {dimension_numbers = #tpu.dot_dimension_numbers<[1], [1], [0], [0], [0, 0, 1, 0], [], []>} : vector<16x8xf32>, vector<16x8xf32>, vector<16x16xf32> -> vector<16x16xf32>
    %cst_391 = arith.constant 0.353553385 : f32
    %845 = vector.broadcast %cst_391 : f32 to vector<16x16xf32>
    %846 = arith.mulf %844, %845 : vector<16x16xf32>
    %847 = arith.addf %846, %358 : vector<16x16xf32>
    %cst_392 = arith.constant dense<0xFF800000> : vector<16xf32>
    %848 = vector.multi_reduction <maximumf>, %847, %cst_392 [1] : vector<16x16xf32> to vector<16xf32>
    %849 = vector.shape_cast %848 : vector<16xf32> to vector<16x1xf32>
    %850 = vector.broadcast %849 : vector<16x1xf32> to vector<16x16xf32>
    %851 = arith.subf %847, %850 : vector<16x16xf32>
    %852 = math.exp %851 : vector<16x16xf32>
    %cst_393 = arith.constant dense<0.000000e+00> : vector<16xf32>
    %853 = vector.multi_reduction <add>, %852, %cst_393 [1] : vector<16x16xf32> to vector<16xf32>
    %854 = vector.shape_cast %853 : vector<16xf32> to vector<16x1xf32>
    %855 = vector.broadcast %854 : vector<16x1xf32> to vector<16x16xf32>
    %856 = arith.divf %852, %855 : vector<16x16xf32>
    %cst_394 = arith.constant dense<0.000000e+00> : vector<16x8xf32>
    %857 = tpu.matmul %856, %843, %cst_394 {dimension_numbers = #tpu.dot_dimension_numbers<[1], [0], [0], [1], [0, 0, 1, 1], [], []>} : vector<16x16xf32>, vector<16x8xf32>, vector<16x8xf32> -> vector<16x8xf32>
    %858 = vector.extract_strided_slice %819 {offsets = [8, 0], sizes = [8, 32], strides = [1, 1]} : vector<32x32xf32> to vector<8x32xf32>
    %cst_395 = arith.constant dense<0.000000e+00> : vector<16x32xf32>
    %859 = tpu.matmul %857, %858, %cst_395 {dimension_numbers = #tpu.dot_dimension_numbers<[1], [0], [0], [1], [0, 0, 1, 1], [], []>} : vector<16x8xf32>, vector<8x32xf32>, vector<16x32xf32> -> vector<16x32xf32>
    %860 = arith.addf %840, %859 : vector<16x32xf32>
    %861 = vector.extract_strided_slice %808 {offsets = [0, 16], sizes = [16, 8], strides = [1, 1]} : vector<16x32xf32> to vector<16x8xf32>
    %862 = vector.extract_strided_slice %816 {offsets = [0, 16], sizes = [16, 8], strides = [1, 1]} : vector<16x32xf32> to vector<16x8xf32>
    %863 = vector.extract_strided_slice %817 {offsets = [0, 16], sizes = [16, 8], strides = [1, 1]} : vector<16x32xf32> to vector<16x8xf32>
    %cst_396 = arith.constant dense<0.000000e+00> : vector<16x16xf32>
    %864 = tpu.matmul %861, %862, %cst_396 {dimension_numbers = #tpu.dot_dimension_numbers<[1], [1], [0], [0], [0, 0, 1, 0], [], []>} : vector<16x8xf32>, vector<16x8xf32>, vector<16x16xf32> -> vector<16x16xf32>
    %cst_397 = arith.constant 0.353553385 : f32
    %865 = vector.broadcast %cst_397 : f32 to vector<16x16xf32>
    %866 = arith.mulf %864, %865 : vector<16x16xf32>
    %867 = arith.addf %866, %358 : vector<16x16xf32>
    %cst_398 = arith.constant dense<0xFF800000> : vector<16xf32>
    %868 = vector.multi_reduction <maximumf>, %867, %cst_398 [1] : vector<16x16xf32> to vector<16xf32>
    %869 = vector.shape_cast %868 : vector<16xf32> to vector<16x1xf32>
    %870 = vector.broadcast %869 : vector<16x1xf32> to vector<16x16xf32>
    %871 = arith.subf %867, %870 : vector<16x16xf32>
    %872 = math.exp %871 : vector<16x16xf32>
    %cst_399 = arith.constant dense<0.000000e+00> : vector<16xf32>
    %873 = vector.multi_reduction <add>, %872, %cst_399 [1] : vector<16x16xf32> to vector<16xf32>
    %874 = vector.shape_cast %873 : vector<16xf32> to vector<16x1xf32>
    %875 = vector.broadcast %874 : vector<16x1xf32> to vector<16x16xf32>
    %876 = arith.divf %872, %875 : vector<16x16xf32>
    %cst_400 = arith.constant dense<0.000000e+00> : vector<16x8xf32>
    %877 = tpu.matmul %876, %863, %cst_400 {dimension_numbers = #tpu.dot_dimension_numbers<[1], [0], [0], [1], [0, 0, 1, 1], [], []>} : vector<16x16xf32>, vector<16x8xf32>, vector<16x8xf32> -> vector<16x8xf32>
    %878 = vector.extract_strided_slice %819 {offsets = [16, 0], sizes = [8, 32], strides = [1, 1]} : vector<32x32xf32> to vector<8x32xf32>
    %cst_401 = arith.constant dense<0.000000e+00> : vector<16x32xf32>
    %879 = tpu.matmul %877, %878, %cst_401 {dimension_numbers = #tpu.dot_dimension_numbers<[1], [0], [0], [1], [0, 0, 1, 1], [], []>} : vector<16x8xf32>, vector<8x32xf32>, vector<16x32xf32> -> vector<16x32xf32>
    %880 = arith.addf %860, %879 : vector<16x32xf32>
    %881 = vector.extract_strided_slice %808 {offsets = [0, 24], sizes = [16, 8], strides = [1, 1]} : vector<16x32xf32> to vector<16x8xf32>
    %882 = vector.extract_strided_slice %816 {offsets = [0, 24], sizes = [16, 8], strides = [1, 1]} : vector<16x32xf32> to vector<16x8xf32>
    %883 = vector.extract_strided_slice %817 {offsets = [0, 24], sizes = [16, 8], strides = [1, 1]} : vector<16x32xf32> to vector<16x8xf32>
    %cst_402 = arith.constant dense<0.000000e+00> : vector<16x16xf32>
    %884 = tpu.matmul %881, %882, %cst_402 {dimension_numbers = #tpu.dot_dimension_numbers<[1], [1], [0], [0], [0, 0, 1, 0], [], []>} : vector<16x8xf32>, vector<16x8xf32>, vector<16x16xf32> -> vector<16x16xf32>
    %cst_403 = arith.constant 0.353553385 : f32
    %885 = vector.broadcast %cst_403 : f32 to vector<16x16xf32>
    %886 = arith.mulf %884, %885 : vector<16x16xf32>
    %887 = arith.addf %886, %358 : vector<16x16xf32>
    %cst_404 = arith.constant dense<0xFF800000> : vector<16xf32>
    %888 = vector.multi_reduction <maximumf>, %887, %cst_404 [1] : vector<16x16xf32> to vector<16xf32>
    %889 = vector.shape_cast %888 : vector<16xf32> to vector<16x1xf32>
    %890 = vector.broadcast %889 : vector<16x1xf32> to vector<16x16xf32>
    %891 = arith.subf %887, %890 : vector<16x16xf32>
    %892 = math.exp %891 : vector<16x16xf32>
    %cst_405 = arith.constant dense<0.000000e+00> : vector<16xf32>
    %893 = vector.multi_reduction <add>, %892, %cst_405 [1] : vector<16x16xf32> to vector<16xf32>
    %894 = vector.shape_cast %893 : vector<16xf32> to vector<16x1xf32>
    %895 = vector.broadcast %894 : vector<16x1xf32> to vector<16x16xf32>
    %896 = arith.divf %892, %895 : vector<16x16xf32>
    %cst_406 = arith.constant dense<0.000000e+00> : vector<16x8xf32>
    %897 = tpu.matmul %896, %883, %cst_406 {dimension_numbers = #tpu.dot_dimension_numbers<[1], [0], [0], [1], [0, 0, 1, 1], [], []>} : vector<16x16xf32>, vector<16x8xf32>, vector<16x8xf32> -> vector<16x8xf32>
    %898 = vector.extract_strided_slice %819 {offsets = [24, 0], sizes = [8, 32], strides = [1, 1]} : vector<32x32xf32> to vector<8x32xf32>
    %cst_407 = arith.constant dense<0.000000e+00> : vector<16x32xf32>
    %899 = tpu.matmul %897, %898, %cst_407 {dimension_numbers = #tpu.dot_dimension_numbers<[1], [0], [0], [1], [0, 0, 1, 1], [], []>} : vector<16x8xf32>, vector<8x32xf32>, vector<16x32xf32> -> vector<16x32xf32>
    %900 = arith.addf %880, %899 : vector<16x32xf32>
    %901 = vector.broadcast %821 : vector<1x32xf32> to vector<16x32xf32>
    %902 = arith.addf %900, %901 : vector<16x32xf32>
    %903 = arith.addf %777, %902 : vector<16x32xf32>
    %c1_408 = arith.constant 1 : index
    %c0_409 = arith.constant 0 : index
    %c0_410 = arith.constant 0 : index
    %904 = vector.load %arg37[%c1_408, %c0_409, %c0_410] : memref<2x1x32xf32, #tpu.memory_space<vmem>>, vector<1x1x32xf32>
    %905 = vector.shape_cast %904 : vector<1x1x32xf32> to vector<1x32xf32>
    %c1_411 = arith.constant 1 : index
    %c0_412 = arith.constant 0 : index
    %c0_413 = arith.constant 0 : index
    %906 = vector.load %arg38[%c1_411, %c0_412, %c0_413] : memref<2x1x32xf32, #tpu.memory_space<vmem>>, vector<1x1x32xf32>
    %907 = vector.shape_cast %906 : vector<1x1x32xf32> to vector<1x32xf32>
    %cst_414 = arith.constant dense<0.000000e+00> : vector<16xf32>
    %908 = vector.multi_reduction <add>, %903, %cst_414 [1] : vector<16x32xf32> to vector<16xf32>
    %909 = vector.shape_cast %908 : vector<16xf32> to vector<16x1xf32>
    %cst_415 = arith.constant 3.200000e+01 : f32
    %910 = vector.broadcast %cst_415 : f32 to vector<16x1xf32>
    %911 = arith.divf %909, %910 : vector<16x1xf32>
    %912 = vector.broadcast %911 : vector<16x1xf32> to vector<16x32xf32>
    %913 = arith.subf %903, %912 : vector<16x32xf32>
    %914 = arith.mulf %913, %913 : vector<16x32xf32>
    %cst_416 = arith.constant dense<0.000000e+00> : vector<16xf32>
    %915 = vector.multi_reduction <add>, %914, %cst_416 [1] : vector<16x32xf32> to vector<16xf32>
    %916 = vector.shape_cast %915 : vector<16xf32> to vector<16x1xf32>
    %cst_417 = arith.constant 0.0322580636 : f32
    %917 = vector.broadcast %cst_417 : f32 to vector<16x1xf32>
    %918 = arith.mulf %916, %917 : vector<16x1xf32>
    %919 = math.sqrt %918 : vector<16x1xf32>
    %920 = vector.broadcast %905 : vector<1x32xf32> to vector<16x32xf32>
    %921 = arith.mulf %920, %913 : vector<16x32xf32>
    %cst_418 = arith.constant 9.99999997E-7 : f32
    %922 = vector.broadcast %cst_418 : f32 to vector<16x1xf32>
    %923 = arith.addf %919, %922 : vector<16x1xf32>
    %924 = vector.broadcast %923 : vector<16x1xf32> to vector<16x32xf32>
    %925 = arith.divf %921, %924 : vector<16x32xf32>
    %926 = vector.broadcast %907 : vector<1x32xf32> to vector<16x32xf32>
    %927 = arith.addf %925, %926 : vector<16x32xf32>
    %c1_419 = arith.constant 1 : index
    %c0_420 = arith.constant 0 : index
    %c0_421 = arith.constant 0 : index
    %928 = vector.load %arg39[%c1_419, %c0_420, %c0_421] : memref<2x32x64xf32, #tpu.memory_space<vmem>>, vector<1x32x64xf32>
    %929 = vector.shape_cast %928 : vector<1x32x64xf32> to vector<32x64xf32>
    %c1_422 = arith.constant 1 : index
    %c0_423 = arith.constant 0 : index
    %c0_424 = arith.constant 0 : index
    %930 = vector.load %arg40[%c1_422, %c0_423, %c0_424] : memref<2x1x64xf32, #tpu.memory_space<vmem>>, vector<1x1x64xf32>
    %931 = vector.shape_cast %930 : vector<1x1x64xf32> to vector<1x64xf32>
    %c1_425 = arith.constant 1 : index
    %c0_426 = arith.constant 0 : index
    %c0_427 = arith.constant 0 : index
    %932 = vector.load %arg41[%c1_425, %c0_426, %c0_427] : memref<2x64x32xf32, #tpu.memory_space<vmem>>, vector<1x64x32xf32>
    %933 = vector.shape_cast %932 : vector<1x64x32xf32> to vector<64x32xf32>
    %c1_428 = arith.constant 1 : index
    %c0_429 = arith.constant 0 : index
    %c0_430 = arith.constant 0 : index
    %934 = vector.load %arg42[%c1_428, %c0_429, %c0_430] : memref<2x1x32xf32, #tpu.memory_space<vmem>>, vector<1x1x32xf32>
    %935 = vector.shape_cast %934 : vector<1x1x32xf32> to vector<1x32xf32>
    %cst_431 = arith.constant dense<0.000000e+00> : vector<16x64xf32>
    %936 = tpu.matmul %927, %929, %cst_431 {dimension_numbers = #tpu.dot_dimension_numbers<[1], [0], [0], [1], [0, 0, 1, 1], [], []>} : vector<16x32xf32>, vector<32x64xf32>, vector<16x64xf32> -> vector<16x64xf32>
    %937 = vector.broadcast %931 : vector<1x64xf32> to vector<16x64xf32>
    %938 = arith.addf %936, %937 : vector<16x64xf32>
    %cst_432 = arith.constant 0.000000e+00 : f32
    %939 = vector.broadcast %cst_432 : f32 to vector<16x64xf32>
    %940 = arith.maximumf %938, %939 : vector<16x64xf32>
    %cst_433 = arith.constant dense<0.000000e+00> : vector<16x32xf32>
    %941 = tpu.matmul %940, %933, %cst_433 {dimension_numbers = #tpu.dot_dimension_numbers<[1], [0], [0], [1], [0, 0, 1, 1], [], []>} : vector<16x64xf32>, vector<64x32xf32>, vector<16x32xf32> -> vector<16x32xf32>
    %942 = vector.broadcast %935 : vector<1x32xf32> to vector<16x32xf32>
    %943 = arith.addf %941, %942 : vector<16x32xf32>
    %944 = arith.addf %903, %943 : vector<16x32xf32>
    %c0_434 = arith.constant 0 : index
    %c0_435 = arith.constant 0 : index
    %945 = vector.load %arg43[%c0_434, %c0_435] : memref<1x32xf32, #tpu.memory_space<vmem>>, vector<1x32xf32>
    %c0_436 = arith.constant 0 : index
    %c0_437 = arith.constant 0 : index
    %946 = vector.load %arg44[%c0_436, %c0_437] : memref<1x32xf32, #tpu.memory_space<vmem>>, vector<1x32xf32>
    %cst_438 = arith.constant dense<0.000000e+00> : vector<16xf32>
    %947 = vector.multi_reduction <add>, %944, %cst_438 [1] : vector<16x32xf32> to vector<16xf32>
    %948 = vector.shape_cast %947 : vector<16xf32> to vector<16x1xf32>
    %cst_439 = arith.constant 3.200000e+01 : f32
    %949 = vector.broadcast %cst_439 : f32 to vector<16x1xf32>
    %950 = arith.divf %948, %949 : vector<16x1xf32>
    %951 = vector.broadcast %950 : vector<16x1xf32> to vector<16x32xf32>
    %952 = arith.subf %944, %951 : vector<16x32xf32>
    %953 = arith.mulf %952, %952 : vector<16x32xf32>
    %cst_440 = arith.constant dense<0.000000e+00> : vector<16xf32>
    %954 = vector.multi_reduction <add>, %953, %cst_440 [1] : vector<16x32xf32> to vector<16xf32>
    %955 = vector.shape_cast %954 : vector<16xf32> to vector<16x1xf32>
    %cst_441 = arith.constant 0.0322580636 : f32
    %956 = vector.broadcast %cst_441 : f32 to vector<16x1xf32>
    %957 = arith.mulf %955, %956 : vector<16x1xf32>
    %958 = math.sqrt %957 : vector<16x1xf32>
    %959 = vector.broadcast %945 : vector<1x32xf32> to vector<16x32xf32>
    %960 = arith.mulf %959, %952 : vector<16x32xf32>
    %cst_442 = arith.constant 9.99999997E-7 : f32
    %961 = vector.broadcast %cst_442 : f32 to vector<16x1xf32>
    %962 = arith.addf %958, %961 : vector<16x1xf32>
    %963 = vector.broadcast %962 : vector<16x1xf32> to vector<16x32xf32>
    %964 = arith.divf %960, %963 : vector<16x32xf32>
    %965 = vector.broadcast %946 : vector<1x32xf32> to vector<16x32xf32>
    %966 = arith.addf %964, %965 : vector<16x32xf32>
    %c0_443 = arith.constant 0 : index
    %c0_444 = arith.constant 0 : index
    %967 = vector.load %arg45[%c0_443, %c0_444] : memref<32x16xf32, #tpu.memory_space<vmem>>, vector<32x16xf32>
    %cst_445 = arith.constant dense<0.000000e+00> : vector<16x16xf32>
    %968 = tpu.matmul %966, %967, %cst_445 {dimension_numbers = #tpu.dot_dimension_numbers<[1], [0], [0], [1], [0, 0, 1, 1], [], []>} : vector<16x32xf32>, vector<32x16xf32>, vector<16x16xf32> -> vector<16x16xf32>
    %c0_446 = arith.constant 0 : index
    %c0_447 = arith.constant 0 : index
    %969 = vector.load %arg46[%c0_446, %c0_447] : memref<1x16xf32, #tpu.memory_space<vmem>>, vector<1x16xf32>
    %970 = vector.broadcast %969 : vector<1x16xf32> to vector<16x16xf32>
    %971 = arith.addf %968, %970 : vector<16x16xf32>
    %cst_448 = arith.constant dense<0xFF800000> : vector<16xf32>
    %972 = vector.multi_reduction <maximumf>, %971, %cst_448 [1] : vector<16x16xf32> to vector<16xf32>
    %973 = vector.shape_cast %972 : vector<16xf32> to vector<16x1xf32>
    %974 = vector.broadcast %973 : vector<16x1xf32> to vector<16x16xf32>
    %975 = arith.subf %971, %974 : vector<16x16xf32>
    %976 = math.exp %975 : vector<16x16xf32>
    %cst_449 = arith.constant dense<0.000000e+00> : vector<16xf32>
    %977 = vector.multi_reduction <add>, %976, %cst_449 [1] : vector<16x16xf32> to vector<16xf32>
    %978 = vector.shape_cast %977 : vector<16xf32> to vector<16x1xf32>
    %979 = math.log %978 : vector<16x1xf32>
    %980 = vector.broadcast %979 : vector<16x1xf32> to vector<16x16xf32>
    %981 = arith.subf %975, %980 : vector<16x16xf32>
    %c0_450 = arith.constant 0 : index
    %c0_451 = arith.constant 0 : index
    %982 = vector.load %arg47[%c0_450, %c0_451] : memref<16x16xf32, #tpu.memory_space<vmem>>, vector<16x16xf32>
    tpu.vector_store %arg47[%c0_450, %c0_451], %981 {strides = array<i32>} : memref<16x16xf32, #tpu.memory_space<vmem>>, vector<16x16xf32>,
    return
  }
}

</mosaic_0001>

<bundles_post_ra>
// kernel: encoder_decoder_forward.1
= control target key start
LH: loop header
LB: loop body
LE: loop exit
PB: predicated region body
PF: predicated region fallthrough
CT: control target
= control target key end

     0   :  { %s12822_s6 = smov 1   ;;  %s12823_s10 = smov 2   ;;  %s14336_s0 = inlined_call_operand.smem [shape: u32[48], index: -1, kind: input, shape index: {}] }
   0x1   :  { %s12910_s5 = sld [smem:[%s14336_s0]]   ;;  %s12824_s14 = smov 3  }
   0x2   :  { %s12915_s9 = sld [smem:[%s14336_s0 + %s12822_s6]]   ;;  %s12825_s18 = smov 4  }
   0x3   :  { %s12920_s13 = sld [smem:[%s14336_s0 + %s12823_s10]]   ;;  %s12826_s22 = smov 5  }
   0x4   :  { %s12925_s17 = sld [smem:[%s14336_s0 + %s12824_s14]]   ;;  %s12827_s26 = smov 6  }
   0x5   :  { %s12930_s21 = sld [smem:[%s14336_s0 + %s12825_s18]]   ;;  %s12828_s30 = smov 7  }
   0x6   :  { %s12935_s25 = sld [smem:[%s14336_s0 + %s12826_s22]]   ;;  %s12829_s4 = smov 8  }
   0x7   :  { %14365 = sst [smem:[#allocation36_spill]] %s12910_s5  ;;  %s12830_s10 = smov 9  }
   0x8   :  { %14366 = sst [smem:[#allocation37_spill]] %s12915_s9  ;;  %s12831_s15 = smov 10  }
   0x9   :  { %14367 = sst [smem:[#allocation38_spill]] %s12920_s13  ;;  %s12832_s20 = smov 11  }
   0xa   :  { %14368 = sst [smem:[#allocation39_spill]] %s12925_s17  ;;  %s12834_s1 = smov 13  }
   0xb   :  { %14369 = sst [smem:[#allocation40_spill]] %s12930_s21  ;;  %s12835_s7 = smov 14  }
   0xc   :  { %14370 = sst [smem:[#allocation41_spill]] %s12935_s25  ;;  %s12837_s22 = smov 16  }
   0xd   :  { %s12940_s29 = sld [smem:[%s14336_s0 + %s12827_s26]]   ;;  %s12833_s26 = smov 12  }
   0xe   :  { %s12945_s3 = sld [smem:[%s14336_s0 + %s12828_s30]]   ;;  %s12838_s28 = smov 17  }
   0xf   :  { %s12950_s8 = sld [smem:[%s14336_s0 + %s12829_s4]]  }
  0x10   :  { %s12955_s14 = sld [smem:[%s14336_s0 + %s12830_s10]]  }
  0x11   :  { %s12960_s19 = sld [smem:[%s14336_s0 + %s12831_s15]]   ;;  %s12836_s15 = smov 15  }
  0x12   :  { %s12965_s24 = sld [smem:[%s14336_s0 + %s12832_s20]]  }
  0x13   :  { %14371 = sst [smem:[#allocation42_spill]] %s12940_s29 }
  0x14   :  { %14372 = sst [smem:[#allocation43_spill]] %s12945_s3 }
  0x15   :  { %14373 = sst [smem:[#allocation44_spill]] %s12950_s8 }
  0x16   :  { %14374 = sst [smem:[#allocation45_spill]] %s12955_s14 }
  0x17   :  { %14375 = sst [smem:[#allocation46_spill]] %s12960_s19 }
  0x18   :  { %14376 = sst [smem:[#allocation47_spill]] %s12965_s24 }
  0x19   :  { %s12970_s30 = sld [smem:[%s14336_s0 + %s12833_s26]]  }
  0x1a   :  { %s12975_s6 = sld [smem:[%s14336_s0 + %s12834_s1]]  }
  0x1b   :  { %s12980_s12 = sld [smem:[%s14336_s0 + %s12835_s7]]   ;;  %s12839_s7 = smov 18  }
  0x1c   :  { %s12985_s20 = sld [smem:[%s14336_s0 + %s12836_s15]]   ;;  %s12840_s15 = smov 19  }
  0x1d   :  { %s12990_s27 = sld [smem:[%s14336_s0 + %s12837_s22]]   ;;  %s12841_s22 = smov 20  }
  0x1e   :  { %s12995_s4 = sld [smem:[%s14336_s0 + %s12838_s28]]   ;;  %s12842_s28 = smov 21  }
  0x1f   :  { %14377 = sst [smem:[#allocation48_spill]] %s12970_s30 }
  0x20   :  { %14378 = sst [smem:[#allocation49_spill]] %s12975_s6 }
  0x21   :  { %14379 = sst [smem:[#allocation50_spill]] %s12980_s12 }
  0x22   :  { %14380 = sst [smem:[#allocation51_spill]] %s12985_s20 }
  0x23   :  { %14381 = sst [smem:[#allocation52_spill]] %s12990_s27 }
  0x24   :  { %14382 = sst [smem:[#allocation53_spill]] %s12995_s4 }
  0x25   :  { %s13000_s29 = sld [smem:[%s14336_s0 + %s12839_s7]]   ;;  %s12843_s7 = smov 22  }
  0x26   :  { %s13005_s25 = sld [smem:[%s14336_s0 + %s12840_s15]]   ;;  %s12844_s15 = smov 23  }
  0x27   :  { %s13010_s17 = sld [smem:[%s14336_s0 + %s12841_s22]]   ;;  %s12845_s22 = smov 24  }
  0x28   :  { %s13015_s8 = sld [smem:[%s14336_s0 + %s12842_s28]]   ;;  %s12846_s28 = smov 25  }
  0x29   :  { %s13020_s9 = sld [smem:[%s14336_s0 + %s12843_s7]]   ;;  %s12847_s7 = smov 26  }
  0x2b   :  { %14383 = sst [smem:[#allocation54_spill]] %s13000_s29 }
  0x2c   :  { %14384 = sst [smem:[#allocation55_spill]] %s13005_s25 }
  0x2d   :  { %14385 = sst [smem:[#allocation56_spill]] %s13010_s17 }
  0x2e   :  { %14386 = sst [smem:[#allocation57_spill]] %s13015_s8 }
  0x2f   :  { %14387 = sst [smem:[#allocation58_spill]] %s13020_s9 }
  0x30   :  { %s13025_s29 = sld [smem:[%s14336_s0 + %s12844_s15]]   ;;  %s12848_s15 = smov 27  }
  0x31   :  { %s13030_s17 = sld [smem:[%s14336_s0 + %s12845_s22]]   ;;  %s12849_s22 = smov 28  }
  0x32   :  { %s13035_s8 = sld [smem:[%s14336_s0 + %s12846_s28]]   ;;  %s12850_s28 = smov 29  }
  0x33   :  { %s13040_s9 = sld [smem:[%s14336_s0 + %s12847_s7]]   ;;  %s12851_s7 = smov 30  }
  0x34   :  { %s13045_s27 = sld [smem:[%s14336_s0 + %s12848_s15]]   ;;  %s12852_s15 = smov 31  }
  0x35   :  { %s13050_s20 = sld [smem:[%s14336_s0 + %s12849_s22]]   ;;  %s12853_s22 = smov 32  }
  0x36   :  { %s13060_s25 = sld [smem:[%s14336_s0 + %s12851_s7]]   ;;  %s12855_s7 = smov 34  }
  0x37   :  { %s13070_s4 = sld [smem:[%s14336_s0 + %s12853_s22]]   ;;  %s12857_s22 = smov 36  }
  0x38   :  { %14388 = sst [smem:[#allocation59_spill]] %s13035_s8 }
  0x39   :  { %s13055_s8 = sld [smem:[%s14336_s0 + %s12850_s28]]   ;;  %s12854_s28 = smov 33  }
  0x3a   :  { %14389 = sst [smem:[#allocation60_spill]] %s13045_s27 }
  0x3b   :  { %s13065_s27 = sld [smem:[%s14336_s0 + %s12852_s15]]   ;;  %s12856_s15 = smov 35  }
  0x3c   :  { %s13075_s12 = sld [smem:[%s14336_s0 + %s12854_s28]]   ;;  %s12858_s28 = smov 37  }
  0x3d   :  { %s13080_s6 = sld [smem:[%s14336_s0 + %s12855_s7]]   ;;  %s12859_s7 = smov 38  }
  0x3e   :  { %s13090_s21 = sld [smem:[%s14336_s0 + %s12857_s22]]   ;;  %s12861_s22 = smov 40  }
  0x3f   :  { %s13100_s30 = sld [smem:[%s14336_s0 + %s12859_s7]]   ;;  %s12863_s7 = smov 42  }
  0x40   :  { %s13110_s19 = sld [smem:[%s14336_s0 + %s12861_s22]]   ;;  %s12865_s22 = smov 44  }
  0x41   :  { %14390 = sst [smem:[#allocation61_spill]] %s13065_s27 }
  0x42   :  { %14391 = sst [smem:[#allocation62_spill]] %s13075_s12 }
  0x43   :  { %s13085_s27 = sld [smem:[%s14336_s0 + %s12856_s15]]   ;;  %s12860_s15 = smov 39  }
  0x44   :  { %s13095_s12 = sld [smem:[%s14336_s0 + %s12858_s28]]   ;;  %s12862_s28 = smov 41  }
  0x45   :  { %s13115_s14 = sld [smem:[%s14336_s0 + %s12862_s28]]   ;;  %s12866_s28 = smov 45  }
  0x46   :  { %s13120_s24 = sld [smem:[%s14336_s0 + %s12863_s7]]   ;;  %s12867_s7 = smov 46  }
  0x47   :  { %s13130_s13 = sld [smem:[%s14336_s0 + %s12865_s22]]  }
  0x48   :  { %s13140_s3 = sld [smem:[%s14336_s0 + %s12867_s7]]  }
  0x49   :  { %14392 = sst [smem:[#allocation63_spill]] %s13085_s27 }
  0x4a   :  { %s13105_s27 = sld [smem:[%s14336_s0 + %s12860_s15]]   ;;  %s12864_s15 = smov 43  }
  0x4b   :  { %14394 = sst [smem:[#allocation65_spill]] %s13115_s14 }
  0x4c   :  { %s13135_s14 = sld [smem:[%s14336_s0 + %s12866_s28]]  }
  0x50   :  { %14393 = sst [smem:[#allocation64_spill]] %s13105_s27 }
  0x51   :  { %s13125_s27 = sld [smem:[%s14336_s0 + %s12864_s15]]   ;;  %s12868_s15 = smov 47  }
  0x52   :  { %s13145_s5 = sld [smem:[%s14336_s0 + %s12868_s15]]  }
  0x53   :  { %100 = vsyncpa [#allocation3], 0 }
  0x54   :  { %101 = vsyncpa [#allocation6], 0 }
  0x55   :  { %102 = vsyncpa [#allocation9], 0 }
  0x56   :  { %103 = vsyncpa [#allocation12], 0 }
  0x57   :  { %104 = vsyncpa [#allocation15], 0 }
  0x58   :  { %105 = vsyncpa [#allocation18], 0 }
  0x59   :  { %106 = vsyncpa [#allocation21], 0 }
  0x5a   :  { %107 = vsyncpa [#allocation24], 0 }
  0x5b   :  { %108 = vsyncpa [#allocation4], 0  ;;  %s12869_s22 = smov [#allocation5]   ;;  %s12870_s26 = smov [#allocation8]  }
  0x5c   :  { %s172_s23 = sshll.u32 %s12869_s22, 4  ;;  %s200_s28 = sshll.u32 %s12870_s26, 4  ;;  %s173_s23 = int_to_ptr.vmem [resolvable:$true] %s172_s23  ;;  %s13147_s28 = int_to_ptr.vmem [resolvable:$true] %s200_s28 }
  0x5d   :  { %s12452_s0 = scalar_lea.hbm %s13030_s17, 32 }
  0x5e   :  { %p12453_p0 = scmp.ne.s32.totalorder %s13030_s17, %s12452_s0  ;;  %p12456_p1 = scmp.lt.u32.totalorder %s12452_s0, %s13030_s17 }
  0x60   :  { %p12458_p2 = pnand %p12456_p1, %p12453_p0 }
  0x62   :  { %12461 = shalt.err (!%p12458_p2)
}
  0x63   :  { %s12462_s1 = scalar_lea.vmem %s173_s23, 32  ;;  %p12467_p4 = scmp.lt.s32.totalorder %s173_s23, %s173_s23 }
  0x64   :  { %p12463_p3 = scmp.ne.s32.totalorder %s173_s23, %s12462_s1  ;;  %p12468_p5 = scmp.lt.s32.totalorder %s12462_s1, %s12462_s1 }
  0x66   :  { %p12469_p6 = por %p12468_p5, %p12467_p4 }
  0x68   :  { %p12470_p7 = pnand %p12469_p6, %p12463_p3 }
  0x6a   :  { %12473 = shalt.err (!%p12470_p7)
}
  0x6b   :  { %s12871_s2 = smov 16   ;;  %s12872_s7 = smov 1  }
  0x6c   :  { %178 = dma.hbm_to_vmem [thread:$0]  %s13030_s17, 32, %s173_s23, [#allocation6], %s12871_s2, %s12871_s2, %s12872_s7  }
  0x6d   :  { %s12474_s10 = scalar_lea.hbm %s13050_s20, 32 }
  0x6e   :  { %p12475_p8 = scmp.ne.s32.totalorder %s13050_s20, %s12474_s10  ;;  %p12478_p9 = scmp.lt.u32.totalorder %s12474_s10, %s13050_s20 }
  0x70   :  { %p12480_p10 = pnand %p12478_p9, %p12475_p8 }
  0x72   :  { %12483 = shalt.err (!%p12480_p10)
}
  0x73   :  { %s12484_s11 = scalar_lea.vmem %s13147_s28, 32  ;;  %p12489_p12 = scmp.lt.s32.totalorder %s13147_s28, %s13147_s28 }
  0x74   :  { %p12485_p11 = scmp.ne.s32.totalorder %s13147_s28, %s12484_s11  ;;  %p12490_p13 = scmp.lt.s32.totalorder %s12484_s11, %s12484_s11 }
  0x76   :  { %p12491_p0 = por %p12490_p13, %p12489_p12 }
  0x78   :  { %p12492_p1 = pnand %p12491_p0, %p12485_p11 }
  0x7a   :  { %12495 = shalt.err (!%p12492_p1)
}
  0x7b   :  { %206 = dma.hbm_to_vmem [thread:$0]  %s13050_s20, 32, %s13147_s28, [#allocation9], %s12871_s2, %s12871_s2, %s12872_s7  }
  0x7c   :  { %s12873_s17 = smov [#allocation11]   ;;  %s12874_s16 = smov [#allocation14]  }
  0x7d   :  { %s224_s15 = sshll.u32 %s12873_s17, 4  ;;  %s252_s18 = sshll.u32 %s12874_s16, 4  ;;  %s225_s15 = int_to_ptr.vmem [resolvable:$true] %s224_s15  ;;  %s13168_s18 = int_to_ptr.vmem [resolvable:$true] %s252_s18 }
  0x7e   :  { %s12496_s22 = scalar_lea.hbm %s13060_s25, 32 }
  0x7f   :  { %p12497_p2 = scmp.ne.s32.totalorder %s13060_s25, %s12496_s22  ;;  %p12500_p3 = scmp.lt.u32.totalorder %s12496_s22, %s13060_s25 }
  0x81   :  { %p12502_p4 = pnand %p12500_p3, %p12497_p2 }
  0x83   :  { %12505 = shalt.err (!%p12502_p4)
}
  0x84   :  { %s12506_s23 = scalar_lea.vmem %s225_s15, 32  ;;  %p12511_p6 = scmp.lt.s32.totalorder %s225_s15, %s225_s15 }
  0x85   :  { %p12507_p5 = scmp.ne.s32.totalorder %s225_s15, %s12506_s23  ;;  %p12512_p7 = scmp.lt.s32.totalorder %s12506_s23, %s12506_s23 }
  0x87   :  { %p12513_p8 = por %p12512_p7, %p12511_p6 }
  0x89   :  { %p12514_p9 = pnand %p12513_p8, %p12507_p5 }
  0x8b   :  { %12517 = shalt.err (!%p12514_p9)
}
  0x8c   :  { %230 = dma.hbm_to_vmem [thread:$0]  %s13060_s25, 32, %s225_s15, [#allocation12], %s12871_s2, %s12871_s2, %s12872_s7  }
  0x8d   :  { %s12518_s20 = scalar_lea.hbm %s13080_s6, 32 }
  0x8e   :  { %p12519_p10 = scmp.ne.s32.totalorder %s13080_s6, %s12518_s20  ;;  %p12522_p11 = scmp.lt.u32.totalorder %s12518_s20, %s13080_s6 }
  0x90   :  { %p12524_p12 = pnand %p12522_p11, %p12519_p10 }
  0x92   :  { %12527 = shalt.err (!%p12524_p12)
}
  0x93   :  { %s12528_s26 = scalar_lea.vmem %s13168_s18, 32  ;;  %p12533_p0 = scmp.lt.s32.totalorder %s13168_s18, %s13168_s18 }
  0x94   :  { %p12529_p13 = scmp.ne.s32.totalorder %s13168_s18, %s12528_s26  ;;  %p12534_p1 = scmp.lt.s32.totalorder %s12528_s26, %s12528_s26 }
  0x96   :  { %p12535_p2 = por %p12534_p1, %p12533_p0 }
  0x98   :  { %p12536_p3 = pnand %p12535_p2, %p12529_p13 }
  0x9a   :  { %12539 = shalt.err (!%p12536_p3)
}
  0x9b   :  { %258 = dma.hbm_to_vmem [thread:$0]  %s13080_s6, 32, %s13168_s18, [#allocation15], %s12871_s2, %s12871_s2, %s12872_s7  }
  0x9c   :  { %s12875_s25 = smov [#allocation17]   ;;  %s12876_s0 = smov [#allocation20]  }
  0x9d   :  { %s278_s28 = sshll.u32 %s12875_s25, 4  ;;  %s304_s1 = sshll.u32 %s12876_s0, 4  ;;  %s279_s28 = int_to_ptr.vmem [resolvable:$true] %s278_s28  ;;  %s13189_s1 = int_to_ptr.vmem [resolvable:$true] %s304_s1 }
  0x9e   :  { %s12540_s10 = scalar_lea.hbm %s13095_s12, 32 }
  0x9f   :  { %p12541_p4 = scmp.ne.s32.totalorder %s13095_s12, %s12540_s10  ;;  %p12544_p5 = scmp.lt.u32.totalorder %s12540_s10, %s13095_s12 }
  0xa1   :  { %p12546_p6 = pnand %p12544_p5, %p12541_p4 }
  0xa3   :  { %12549 = shalt.err (!%p12546_p6)
}
  0xa4   :  { %s12550_s11 = scalar_lea.vmem %s279_s28, 32  ;;  %p12555_p8 = scmp.lt.s32.totalorder %s279_s28, %s279_s28 }
  0xa5   :  { %p12551_p7 = scmp.ne.s32.totalorder %s279_s28, %s12550_s11  ;;  %p12556_p9 = scmp.lt.s32.totalorder %s12550_s11, %s12550_s11 }
  0xa7   :  { %p12557_p10 = por %p12556_p9, %p12555_p8 }
  0xa9   :  { %p12558_p11 = pnand %p12557_p10, %p12551_p7 }
  0xab   :  { %12561 = shalt.err (!%p12558_p11)
}
  0xac   :  { %284 = dma.hbm_to_vmem [thread:$0]  %s13095_s12, 32, %s279_s28, [#allocation18], %s12871_s2, %s12871_s2, %s12872_s7  }
  0xad   :  { %s12562_s6 = scalar_lea.hbm %s13110_s19, 32 }
  0xae   :  { %p12563_p12 = scmp.ne.s32.totalorder %s13110_s19, %s12562_s6  ;;  %p12566_p13 = scmp.lt.u32.totalorder %s12562_s6, %s13110_s19 }
  0xb0   :  { %p12568_p0 = pnand %p12566_p13, %p12563_p12 }
  0xb2   :  { %12571 = shalt.err (!%p12568_p0)
}
  0xb3   :  { %s12572_s17 = scalar_lea.vmem %s13189_s1, 32  ;;  %p12577_p2 = scmp.lt.s32.totalorder %s13189_s1, %s13189_s1 }
  0xb4   :  { %p12573_p1 = scmp.ne.s32.totalorder %s13189_s1, %s12572_s17  ;;  %p12578_p3 = scmp.lt.s32.totalorder %s12572_s17, %s12572_s17 }
  0xb6   :  { %p12579_p4 = por %p12578_p3, %p12577_p2 }
  0xb8   :  { %p12580_p5 = pnand %p12579_p4, %p12573_p1 }
  0xba   :  { %12583 = shalt.err (!%p12580_p5)
}
  0xbb   :  { %310 = dma.hbm_to_vmem [thread:$0]  %s13110_s19, 32, %s13189_s1, [#allocation21], %s12871_s2, %s12871_s2, %s12872_s7  }
  0xbc   :  { %s12877_s12 = smov [#allocation23]   ;;  %s12878_s16 = smov [#allocation2]  }
  0xbd   :  { %s331_s15 = sshll.u32 %s12877_s12, 4  ;;  %s160_s18 = sshll.u32 %s12878_s16, 4  ;;  %s332_s15 = int_to_ptr.vmem [resolvable:$true] %s331_s15  ;;  %s13210_s18 = int_to_ptr.vmem [resolvable:$true] %s160_s18 }
  0xbe   :  { %s12584_s22 = scalar_lea.hbm %s13125_s27, 16 }
  0xbf   :  { %p12585_p6 = scmp.ne.s32.totalorder %s13125_s27, %s12584_s22  ;;  %p12588_p7 = scmp.lt.u32.totalorder %s12584_s22, %s13125_s27 }
  0xc1   :  { %p12590_p8 = pnand %p12588_p7, %p12585_p6 }
  0xc3   :  { %12593 = shalt.err (!%p12590_p8)
}
  0xc4   :  { %s12594_s23 = scalar_lea.vmem %s332_s15, 16  ;;  %s12598_s20 = scalar_lea.vmem %s332_s15, 32 }
  0xc5   :  { %p12595_p9 = scmp.ne.s32.totalorder %s332_s15, %s12594_s23  ;;  %p12599_p10 = scmp.lt.s32.totalorder %s332_s15, %s332_s15 }
  0xc6   :  { %p12600_p11 = scmp.lt.s32.totalorder %s12598_s20, %s12594_s23 }
  0xc8   :  { %p12601_p12 = por %p12600_p11, %p12599_p10 }
  0xca   :  { %p12602_p13 = pnand %p12601_p12, %p12595_p9 }
  0xcc   :  { %12605 = shalt.err (!%p12602_p13)
}
  0xcd   :  { %334 = dma.hbm_to_vmem [thread:$0]  %s13125_s27, 16, %s332_s15, [#allocation24]  }
  0xce   :  { %s12606_s19 = scalar_lea.hbm %s13025_s29, 32 }
  0xcf   :  { %p12607_p0 = scmp.ne.s32.totalorder %s13025_s29, %s12606_s19  ;;  %p12610_p1 = scmp.lt.u32.totalorder %s12606_s19, %s13025_s29 }
  0xd1   :  { %p12612_p2 = pnand %p12610_p1, %p12607_p0 }
  0xd3   :  { %12615 = shalt.err (!%p12612_p2)
}
  0xd4   :  { %s12616_s26 = scalar_lea.vmem %s13210_s18, 32  ;;  %p12621_p4 = scmp.lt.s32.totalorder %s13210_s18, %s13210_s18 }
  0xd5   :  { %p12617_p3 = scmp.ne.s32.totalorder %s13210_s18, %s12616_s26  ;;  %p12622_p5 = scmp.lt.s32.totalorder %s12616_s26, %s12616_s26 }
  0xd7   :  { %p12623_p6 = por %p12622_p5, %p12621_p4 }
  0xd9   :  { %p12624_p7 = pnand %p12623_p6, %p12617_p3 }
  0xdb   :  { %12627 = shalt.err (!%p12624_p7)
}
  0xdc   :  { %166 = dma.hbm_to_vmem [thread:$0]  %s13025_s29, 32, %s13210_s18, [#allocation3], %s12871_s2, %s12871_s2, %s12872_s7  }
  0xdd   :  { %s12879_s27 = smov [#allocation7]   ;;  %s12880_s28 = smov [#allocation10]  }
  0xde   :  { %s186_s25 = sshll.u32 %s12879_s27, 4  ;;  %s212_s0 = sshll.u32 %s12880_s28, 4  ;;  %s187_s25 = int_to_ptr.vmem [resolvable:$true] %s186_s25  ;;  %s13228_s0 = int_to_ptr.vmem [resolvable:$true] %s212_s0 }
  0xdf   :  { %s12628_s1 = scalar_lea.hbm %s13040_s9, 32 }
  0xe0   :  { %p12629_p8 = scmp.ne.s32.totalorder %s13040_s9, %s12628_s1  ;;  %p12632_p9 = scmp.lt.u32.totalorder %s12628_s1, %s13040_s9 }
  0xe2   :  { %p12634_p10 = pnand %p12632_p9, %p12629_p8 }
  0xe4   :  { %12637 = shalt.err (!%p12634_p10)
}
  0xe5   :  { %s12638_s10 = scalar_lea.vmem %s187_s25, 32  ;;  %p12643_p12 = scmp.lt.s32.totalorder %s187_s25, %s187_s25 }
  0xe6   :  { %p12639_p11 = scmp.ne.s32.totalorder %s187_s25, %s12638_s10  ;;  %p12644_p13 = scmp.lt.s32.totalorder %s12638_s10, %s12638_s10 }
  0xe8   :  { %p12645_p0 = por %p12644_p13, %p12643_p12 }
  0xea   :  { %p12646_p1 = pnand %p12645_p0, %p12639_p11 }
  0xec   :  { %12649 = shalt.err (!%p12646_p1)
}
  0xed   :  { %192 = dma.hbm_to_vmem [thread:$0]  %s13040_s9, 32, %s187_s25, [#allocation6], %s12871_s2, %s12871_s2, %s12872_s7  }
  0xee   :  { %s12650_s29 = scalar_lea.hbm %s13055_s8, 32 }
  0xef   :  { %p12651_p2 = scmp.ne.s32.totalorder %s13055_s8, %s12650_s29  ;;  %p12654_p3 = scmp.lt.u32.totalorder %s12650_s29, %s13055_s8 }
  0xf1   :  { %p12656_p4 = pnand %p12654_p3, %p12651_p2 }
  0xf3   :  { %12659 = shalt.err (!%p12656_p4)
}
  0xf4   :  { %s12660_s11 = scalar_lea.vmem %s13228_s0, 32  ;;  %p12665_p6 = scmp.lt.s32.totalorder %s13228_s0, %s13228_s0 }
  0xf5   :  { %p12661_p5 = scmp.ne.s32.totalorder %s13228_s0, %s12660_s11  ;;  %p12666_p7 = scmp.lt.s32.totalorder %s12660_s11, %s12660_s11 }
  0xf7   :  { %p12667_p8 = por %p12666_p7, %p12665_p6 }
  0xf9   :  { %p12668_p9 = pnand %p12667_p8, %p12661_p5 }
  0xfb   :  { %12671 = shalt.err (!%p12668_p9)
}
  0xfc   :  { %218 = dma.hbm_to_vmem [thread:$0]  %s13055_s8, 32, %s13228_s0, [#allocation9], %s12871_s2, %s12871_s2, %s12872_s7  }
  0xfd   :  { %s12881_s9 = smov [#allocation13]   ;;  %s12882_s17 = smov [#allocation16]  }
  0xfe   :  { %s238_s6 = sshll.u32 %s12881_s9, 4  ;;  %s266_s12 = sshll.u32 %s12882_s17, 4  ;;  %s239_s6 = int_to_ptr.vmem [resolvable:$true] %s238_s6  ;;  %s13249_s12 = int_to_ptr.vmem [resolvable:$true] %s266_s12 }
  0xff   :  { %s12672_s15 = scalar_lea.hbm %s13070_s4, 32 }
 0x100   :  { %p12673_p10 = scmp.ne.s32.totalorder %s13070_s4, %s12672_s15  ;;  %p12676_p11 = scmp.lt.u32.totalorder %s12672_s15, %s13070_s4 }
 0x102   :  { %p12678_p12 = pnand %p12676_p11, %p12673_p10 }
 0x104   :  { %12681 = shalt.err (!%p12678_p12)
}
 0x105   :  { %s12682_s16 = scalar_lea.vmem %s239_s6, 32  ;;  %p12687_p0 = scmp.lt.s32.totalorder %s239_s6, %s239_s6 }
 0x106   :  { %p12683_p13 = scmp.ne.s32.totalorder %s239_s6, %s12682_s16  ;;  %p12688_p1 = scmp.lt.s32.totalorder %s12682_s16, %s12682_s16 }
 0x108   :  { %p12689_p2 = por %p12688_p1, %p12687_p0 }
 0x10a   :  { %p12690_p3 = pnand %p12689_p2, %p12683_p13 }
 0x10c   :  { %12693 = shalt.err (!%p12690_p3)
}
 0x10d   :  { %244 = dma.hbm_to_vmem [thread:$0]  %s13070_s4, 32, %s239_s6, [#allocation12], %s12871_s2, %s12871_s2, %s12872_s7  }
 0x10e   :  { %s12694_s8 = scalar_lea.hbm %s13090_s21, 32 }
 0x10f   :  { %p12695_p4 = scmp.ne.s32.totalorder %s13090_s21, %s12694_s8  ;;  %p12698_p5 = scmp.lt.u32.totalorder %s12694_s8, %s13090_s21 }
 0x111   :  { %p12700_p6 = pnand %p12698_p5, %p12695_p4 }
 0x113   :  { %12703 = shalt.err (!%p12700_p6)
}
 0x114   :  { %s12704_s18 = scalar_lea.vmem %s13249_s12, 32  ;;  %p12709_p8 = scmp.lt.s32.totalorder %s13249_s12, %s13249_s12 }
 0x115   :  { %p12705_p7 = scmp.ne.s32.totalorder %s13249_s12, %s12704_s18  ;;  %p12710_p9 = scmp.lt.s32.totalorder %s12704_s18, %s12704_s18 }
 0x117   :  { %p12711_p10 = por %p12710_p9, %p12709_p8 }
 0x119   :  { %p12712_p11 = pnand %p12711_p10, %p12705_p7 }
 0x11b   :  { %12715 = shalt.err (!%p12712_p11)
}
 0x11c   :  { %272 = dma.hbm_to_vmem [thread:$0]  %s13090_s21, 32, %s13249_s12, [#allocation15], %s12871_s2, %s12871_s2, %s12872_s7  }
 0x11d   :  { %s12883_s4 = smov [#allocation19]   ;;  %s12884_s23 = smov [#allocation22]  }
 0x11e   :  { %s290_s22 = sshll.u32 %s12883_s4, 4  ;;  %s318_s20 = sshll.u32 %s12884_s23, 4  ;;  %s291_s22 = int_to_ptr.vmem [resolvable:$true] %s290_s22  ;;  %s13270_s20 = int_to_ptr.vmem [resolvable:$true] %s318_s20 }
 0x11f   :  { %s12716_s19 = scalar_lea.hbm %s13100_s30, 32 }
 0x120   :  { %p12717_p12 = scmp.ne.s32.totalorder %s13100_s30, %s12716_s19  ;;  %p12720_p13 = scmp.lt.u32.totalorder %s12716_s19, %s13100_s30 }
 0x122   :  { %p12722_p0 = pnand %p12720_p13, %p12717_p12 }
 0x124   :  { %12725 = shalt.err (!%p12722_p0)
}
 0x125   :  { %s12726_s26 = scalar_lea.vmem %s291_s22, 32  ;;  %p12731_p2 = scmp.lt.s32.totalorder %s291_s22, %s291_s22 }
 0x126   :  { %p12727_p1 = scmp.ne.s32.totalorder %s291_s22, %s12726_s26  ;;  %p12732_p3 = scmp.lt.s32.totalorder %s12726_s26, %s12726_s26 }
 0x128   :  { %p12733_p4 = por %p12732_p3, %p12731_p2 }
 0x12a   :  { %p12734_p5 = pnand %p12733_p4, %p12727_p1 }
 0x12c   :  { %12737 = shalt.err (!%p12734_p5)
}
 0x12d   :  { %296 = dma.hbm_to_vmem [thread:$0]  %s13100_s30, 32, %s291_s22, [#allocation18], %s12871_s2, %s12871_s2, %s12872_s7  }
 0x12e   :  { %s12738_s21 = scalar_lea.hbm %s13120_s24, 32 }
 0x12f   :  { %p12739_p6 = scmp.ne.s32.totalorder %s13120_s24, %s12738_s21  ;;  %p12742_p7 = scmp.lt.u32.totalorder %s12738_s21, %s13120_s24 }
 0x131   :  { %p12744_p8 = pnand %p12742_p7, %p12739_p6 }
 0x133   :  { %12747 = shalt.err (!%p12744_p8)
}
 0x134   :  { %s12748_s27 = scalar_lea.vmem %s13270_s20, 32  ;;  %p12753_p10 = scmp.lt.s32.totalorder %s13270_s20, %s13270_s20 }
 0x135   :  { %p12749_p9 = scmp.ne.s32.totalorder %s13270_s20, %s12748_s27  ;;  %p12754_p11 = scmp.lt.s32.totalorder %s12748_s27, %s12748_s27 }
 0x137   :  { %p12755_p12 = por %p12754_p11, %p12753_p10 }
 0x139   :  { %p12756_p13 = pnand %p12755_p12, %p12749_p9 }
 0x13b   :  { %12759 = shalt.err (!%p12756_p13)
}
 0x13c   :  { %324 = dma.hbm_to_vmem [thread:$0]  %s13120_s24, 32, %s13270_s20, [#allocation21], %s12871_s2, %s12871_s2, %s12872_s7  }
 0x13d   :  { %s12885_s30 = smov [#allocation25]   ;;  %s12760_s28 = scalar_lea.hbm %s13130_s13, 16 }
 0x13e   :  { %s341_s25 = sshll.u32 %s12885_s30, 4  ;;  %p12761_p0 = scmp.ne.s32.totalorder %s13130_s13, %s12760_s28  ;;  %s342_s25 = int_to_ptr.vmem [resolvable:$true] %s341_s25 }
 0x13f   :  { %p12764_p1 = scmp.lt.u32.totalorder %s12760_s28, %s13130_s13 }
 0x141   :  { %p12766_p2 = pnand %p12764_p1, %p12761_p0 }
 0x143   :  { %12769 = shalt.err (!%p12766_p2)
}
 0x144   :  { %s12770_s0 = scalar_lea.vmem %s342_s25, 16  ;;  %s12774_s1 = scalar_lea.vmem %s342_s25, 32 }
 0x145   :  { %p12771_p3 = scmp.ne.s32.totalorder %s342_s25, %s12770_s0  ;;  %p12775_p4 = scmp.lt.s32.totalorder %s342_s25, %s342_s25 }
 0x146   :  { %p12776_p5 = scmp.lt.s32.totalorder %s12774_s1, %s12770_s0 }
 0x148   :  { %p12777_p6 = por %p12776_p5, %p12775_p4 }
 0x14a   :  { %p12778_p7 = pnand %p12777_p6, %p12771_p3 }
 0x14c   :  { %12781 = shalt.err (!%p12778_p7)
}
 0x14d   :  { %344 = dma.hbm_to_vmem [thread:$0]  %s13130_s13, 16, %s342_s25, [#allocation24]  }
 0x14e   :  { %12804 = dma.done.wait [#allocation3], 32  }
 0x14f   :  { %12805 = vsyncadd [#allocation3], 4294967264 }
 0x150   :  { %12806 = dma.done.wait [#allocation6], 64  }
 0x151   :  { %12807 = vsyncadd [#allocation6], 4294967232 }
 0x152   :  { %12808 = dma.done.wait [#allocation9], 64  }
 0x153   :  { %12809 = vsyncadd [#allocation9], 4294967232 }
 0x154   :  { %12810 = dma.done.wait [#allocation12], 64  }
 0x155   :  { %12811 = vsyncadd [#allocation12], 4294967232 }
 0x156   :  { %12812 = dma.done.wait [#allocation15], 64  }
 0x157   :  { %12813 = vsyncadd [#allocation15], 4294967232 }
 0x158   :  { %12814 = dma.done.wait [#allocation18], 64  }
 0x159   :  { %12815 = vsyncadd [#allocation18], 4294967232 }
 0x15a   :  { %12816 = dma.done.wait [#allocation21], 64  }
 0x15b   :  { %12817 = vsyncadd [#allocation21], 4294967232 }
 0x15c   :  { %12818 = dma.done.wait [#allocation24], 32  }
 0x15d   :  { %12819 = vsyncadd [#allocation24], 4294967264  ;;  %s14395_s24 = sld [smem:[#allocation36_spill]]  ;;  %s14396_s2 = sld [smem:[#allocation43_spill]]  ;;  %v12886_v0 = vmov 0   ;;  %v402_v6 = vlaneseq  ;;  %vm416_vm0 = vcmask 130048  }
 0x15e   :  { %11918 = vset.pattern.permute.xlu0 %v12886_v0  ;;  %11999 = vset.pattern.permute.xlu1 %v12886_v0  ;;  %s14397_s13 = sld [smem:[#allocation38_spill]]  ;;  %v12887_v9 = vmov 0.0   ;;  %vm504_vm3 = vcmask 261120   ;;  %s14398_s7 = sld [smem:[#allocation47_spill]]  ;;  %vm665_vm8 = vcmask 64512   ;;  %vm1979_vm14 = vcmask 523264  }
 0x15f   :  { %v13299_v7 = vand.u32 127, %v402_v6  ;;  %s14399_s10 = sld [smem:[#allocation45_spill]]  ;;  %s14400_s29 = sld [smem:[#allocation46_spill]]  ;;  %vm13356_vm9 = vmpackc.low %vm665_vm8, %vm665_vm8 }
 0x160   :  { %s14401_s11 = sld [smem:[#allocation48_spill]]  ;;  %s12888_s9 = smov 80  }
 0x161   :  { %s12889_s6 = smov 96   ;;  %s12890_s17 = smov 88  }
 0x162   :  { %s12891_s12 = smov 120   ;;  %s12892_s15 = smov 112  }
 0x163   :  { %v396_v1 = vld [vmem:[%s14395_s24] sm:$0xff]  ;;  %v399_v3 = vld [vmem:[%s14396_s2 + $0x8] sm:$0xff]  ;;  %s14404_s16 = sld [smem:[#allocation40_spill]]  ;;  %s12893_s8 = smov 56  }
 0x164   :  { %v398_v2 = vld [vmem:[%s14396_s2] sm:$0xff]  ;;  %405 = vperm.xlu0 %11918, %v396_v1   ;;  %v397_v4 = vld [vmem:[%s14395_s24 + $0x8] sm:$0xff]  ;;  %v564_v35 = vld [vmem:[%s14398_s7 + $0x10] sm:$0xff]  ;;  %s12894_s18 = smov 64   ;;  %s12895_s4 = smov 72  }
 0x165   :  { %v11386_v5 = vpack.c.bf16 %v399_v3, %v398_v2  ;;  %v400_v14 = vld [vmem:[%s14397_s13] sm:$0xff]  ;;  %v401_v18 = vld [vmem:[%s14397_s13 + $0x8] sm:$0xff]  ;;  %v565_v37 = vld [vmem:[%s14398_s7 + $0x18] sm:$0xff]  ;;  %s12896_s22 = smov 104   ;;  %s12897_s23 = smov 48  }
 0x166   :  { %v562_v33 = vld [vmem:[%s14398_s7] sm:$0xff]  ;;  %v563_v34 = vld [vmem:[%s14398_s7 + $0x8] sm:$0xff]  ;;  %v11394_v38 = vpack.c.bf16 %v565_v37, %v564_v35  ;;  %s12898_s20 = smov 40   ;;  %s14405_s19 = sld [smem:[#allocation49_spill]] }
 0x167   :  { %11387 = vmatprep.subr.bf16.mxu1 %v11386_v5  ;;  %v11390_v36 = vpack.c.bf16 %v563_v34, %v562_v33  ;;  %v9970_v55 = vld [vmem:[%s14399_s10] ss:$0 sm:$0xff]  ;;  %s14406_s26 = sld [smem:[#allocation50_spill]]  ;;  %s14407_s21 = sld [smem:[#allocation53_spill]] }
 0x168   :  { %408 = vperm.xlu0 %11918, %v397_v4   ;;  %11389 = vmatpush3.bf16.msra.mxu1 %v11386_v5  ;;  %v9971_v58 = vld [vmem:[%s14400_s29] ss:$0 sm:$0xff]  ;;  %s14408_s27 = sld [smem:[#allocation55_spill]]  ;;  %s14409_s30 = sld [smem:[#allocation51_spill]] }
 0x169   :  { %11391 = vmatprep.subr.bf16.mxu1 %v11390_v36  ;;  %v9972_v1 = vld [vmem:[%s14401_s11] ss:$0 sm:$0xff]  ;;  %s14410_s25 = sld [smem:[#allocation52_spill]]  ;;  %s14411_s28 = sld [smem:[#allocation54_spill]] }
 0x16a   :  { %s14412_s0 = sld [smem:[#allocation56_spill]]  ;;  %s14413_s1 = sld [smem:[#allocation37_spill]] }
 0x16b   :  { %s14414_s24 = sld [smem:[#allocation44_spill]]  ;;  %s14415_s2 = sld [smem:[#allocation39_spill]] }
 0x16c   :  { %s14416_s13 = sld [smem:[#allocation59_spill]] }
 0x1e3   :  { %v406_v8 = vpop.permute.xlu0 %405 }
 0x1e4   :  { %vm410_vm1 = vcmp.eq.s32.totalorder %v13299_v7, %v406_v8 }
 0x1e5   :  { %v9966_v10 = vsel %vm410_vm1, 1.0, %v12887_v9 }
 0x1e6   :  { %10701 = vmatprep.mubr.msk.f32.mxu1 %vm416_vm0, %v9966_v10 }
 0x1e7   :  { %v409_v11 = vpop.permute.xlu0 %408 }
 0x1e8   :  { %vm411_vm2 = vcmp.eq.s32.totalorder %v13299_v7, %v409_v11 }
 0x1e9   :  { %v9967_v12 = vsel %vm411_vm2, 1.0, %v12887_v9 }
 0x1ea   :  { %10702 = vmatmul.mubr.msk.f32.vlgmr.msra.gmra.mrb[0].mxu1 %vm416_vm0, %v9967_v12 }
 0x1eb   :  { %11393 = vmatpush3.bf16.msra.mxu1 %v11390_v36 }
 0x1ec   :  { %11395 = vmatprep.subr.bf16.mxu1 %v11394_v38 }
 0x1ef   :  { %11397 = vmatpush3.bf16.msra.mxu1 %v11394_v38 }
 0x2bd   :  { %v10703_v13 = vpop.f32.mrb[0].mxu1 }
 0x2be   :  { %v489_v15 = vpop.f32.mrb[1].mxu1  ;;  %v499_v16 = vmul.f32 5.656854, %v10703_v13 }
 0x2bf   :  { %v498_v17 = vmul.f32 5.656854, %v489_v15 }
 0x2c0   :  { %v13311_v20 = vadd.f32 %v499_v16, %v401_v18 }
 0x2c1   :  { %v13309_v19 = vadd.f32 %v498_v17, %v400_v14 }
 0x2c2   :  { %v508_v22 = vsel %vm504_vm3, %v13311_v20, 0.0 }
 0x2c3   :  { %v505_v21 = vsel %vm504_vm3, %v13309_v19, 0.0 }
 0x2c4   :  { %506 = vadd.xlane.f32.xlu1 %v505_v21 }
 0x2c8   :  { %509 = vadd.xlane.f32.xlu1 %v508_v22 }
 0x351   :  { %v507_v23 = vpop.xlane.xlu1 %506 }
 0x352   :  { %v512_v24 = vmul.f32 0.03125, %v507_v23 }
 0x354   :  { %v514_v25 = vsub.f32 %v13309_v19, %v512_v24 }
 0x355   :  { %v510_v26 = vpop.xlane.xlu1 %509 }
 0x356   :  { %v513_v27 = vmul.f32 0.03125, %v510_v26  ;;  %v516_v28 = vmul.f32 %v514_v25, %v514_v25  ;;  %v546_v56 = vmul.f32 %v9970_v55, %v514_v25 }
 0x358   :  { %v515_v29 = vsub.f32 %v13311_v20, %v513_v27  ;;  %v518_v30 = vsel %vm504_vm3, %v516_v28, 0.0 }
 0x359   :  { %519 = vadd.xlane.f32.xlu0 %v518_v30 }
 0x35a   :  { %v517_v31 = vmul.f32 %v515_v29, %v515_v29  ;;  %v547_v60 = vmul.f32 %v9970_v55, %v515_v29  ;;  %v13379_v29 = vld [vmem:[%s14404_s16 + $0x8] sm:$0xff] }
 0x35c   :  { %v521_v32 = vsel %vm504_vm3, %v517_v31, 0.0 }
 0x35d   :  { %522 = vadd.xlane.f32.xlu1 %v521_v32  ;;  %v13382_v32 = vld [vmem:[%s14404_s16] sm:$0xff] }
 0x3e6   :  { %v520_v39 = vpop.xlane.xlu0 %519 }
 0x3e7   :  { %v524_v40 = vmul.f32 0.032258064, %v520_v39 }
 0x3e9   :  { %12150 = vrsqrt.f32 %v524_v40  ;;  %vm528_vm4 = vcmp.eq.f32.partialorder %v524_v40, inf  ;;  %v531_v45 = vand.u32 2147483648, %v524_v40  ;;  %vm530_vm5 = vcmp.eq.f32.partialorder %v524_v40, 0.0 }
 0x3ea   :  { %v523_v41 = vpop.xlane.xlu1 %522 }
 0x3eb   :  { %v525_v42 = vmul.f32 0.032258064, %v523_v41 }
 0x3ed   :  { %12152 = vrsqrt.f32 %v525_v42  ;;  %vm535_vm6 = vcmp.eq.f32.partialorder %v525_v42, inf  ;;  %v538_v51 = vand.u32 2147483648, %v525_v42  ;;  %vm537_vm7 = vcmp.eq.f32.partialorder %v525_v42, 0.0 }
 0x3f3   :  { %v12151_v43 = vpop.eup %12150 }
 0x3f4   :  { %v527_v44 = vmul.f32 %v12151_v43, %v524_v40 }
 0x3f6   :  { %v529_v46 = vsel %vm528_vm4, %v524_v40, %v527_v44 }
 0x3f7   :  { %v12153_v47 = vpop.eup %12152  ;;  %v532_v48 = vsel %vm530_vm5, %v531_v45, %v529_v46 }
 0x3f8   :  { %v534_v49 = vmul.f32 %v12153_v47, %v525_v42  ;;  %v548_v50 = vadd.f32 1e-06, %v532_v48 }
 0x3fa   :  { %v536_v52 = vsel %vm535_vm6, %v525_v42, %v534_v49  ;;  %12154 = vrcp.f32 %v548_v50 }
 0x3fb   :  { %v539_v53 = vsel %vm537_vm7, %v538_v51, %v536_v52 }
 0x3fc   :  { %v549_v54 = vadd.f32 1e-06, %v539_v53 }
 0x3fe   :  { %12156 = vrcp.f32 %v549_v54 }
 0x404   :  { %v12155_v57 = vpop.eup %12154 }
 0x405   :  { %v551_v59 = vmul.f32 %v12155_v57, %v546_v56 }
 0x407   :  { %v560_v61 = vadd.f32 %v9971_v58, %v551_v59 }
 0x408   :  { %v12157_v62 = vpop.eup %12156 }
 0x409   :  { %v553_v63 = vmul.f32 %v12157_v62, %v547_v60  ;;  %10712 = vmatprep.mubr.msk.f32.mxu1 %vm504_vm3, %v560_v61 }
 0x40b   :  { %v561_v0 = vadd.f32 %v9971_v58, %v553_v63 }
 0x40d   :  { %10713 = vmatmul.mubr.msk.f32.vlgmr.msra.gmra.mrb[2].mxu1 %vm504_vm3, %v561_v0 }
 0x4e0   :  { %v10714_v2 = vpop.f32.mrb[2].mxu1 }
 0x4e1   :  { %v13330_v3 = vadd.f32 %v10714_v2, %v9972_v1  ;;  %v645_v4 = vpop.f32.mrb[3].mxu1 }
 0x4e2   :  { %v13332_v5 = vadd.f32 %v9972_v1, %v645_v4 }
 0x4e4   :  { %10719 = vmatprep.mubr.msk.f32.mxu0 %vm665_vm8, %v13332_v5  ;;  %v13338_v6 = vpack.i.bf16 %v13330_v3, %v13332_v5 }
 0x4e6   :  { %11930 = vrot.lane.b32.xlu0 %v13338_v6, %s12888_s9  ;;  %11920 = vrot.lane.b32.xlu1 %v13338_v6, %s12889_s6 }
 0x4ea   :  { %11925 = vrot.lane.b32.xlu1 %v13338_v6, %s12890_s17 }
 0x4ee   :  { %862 = vrot.lane.b32.xlu1 %v13332_v5, %s12891_s12 }
 0x4f2   :  { %864 = vrot.lane.b32.xlu1 %v13330_v3, %s12891_s12 }
 0x4f6   :  { %1228 = vrot.lane.b32.xlu1 %v13332_v5, %s12892_s15 }
 0x4fa   :  { %1230 = vrot.lane.b32.xlu1 %v13330_v3, %s12892_s15 }
 0x558   :  { %v11921_v8 = vpop.permute.xlu1 %11920  ;;  %v11931_v17 = vpop.permute.xlu0 %11930 }
 0x559   :  { %v11923_v10 = vunpack.i.h.bf16 %v11921_v8  ;;  %v11922_v11 = vunpack.i.l.bf16 %v11921_v8  ;;  %v11933_v21 = vunpack.i.h.bf16 %v11931_v17  ;;  %v11932_v22 = vunpack.i.l.bf16 %v11931_v17 }
 0x55b   :  { %v11398_v13 = vpack.c.bf16 %v11923_v10, %v11922_v11  ;;  %v11418_v24 = vpack.c.bf16 %v11933_v21, %v11932_v22 }
 0x55c   :  { %v11926_v14 = vpop.permute.xlu1 %11925 }
 0x55d   :  { %v11928_v15 = vunpack.i.h.bf16 %v11926_v14  ;;  %v11927_v16 = vunpack.i.l.bf16 %v11926_v14  ;;  %11400 = vmatprep.subr.msk.bf16.mxu0 %vm13356_vm9, %v11398_v13 }
 0x55e   :  { %11403 = vmatpush3.bf16.xpose.msk.msra.mxu0 %vm13356_vm9, %v11398_v13 }
 0x55f   :  { %v11408_v18 = vpack.c.bf16 %v11928_v15, %v11927_v16 }
 0x560   :  { %v863_v23 = vpop.permute.xlu1 %862 }
 0x561   :  { %11410 = vmatprep.subr.msk.bf16.mxu0 %vm13356_vm9, %v11408_v18 }
 0x564   :  { %v865_v25 = vpop.permute.xlu1 %864 }
 0x565   :  { %10720 = vmatmul.mubr.msk.f32.vlgmr.msra.gmra.mrb[0].mxu0 %vm665_vm8, %v13330_v3 }
 0x566   :  { %11413 = vmatpush3.bf16.xpose.msk.msra.mxu0 %vm13356_vm9, %v11408_v18  ;;  %10733 = vmatprep.mubr.msk.f32.mxu0 %vm665_vm8, %v863_v23 }
 0x567   :  { %11420 = vmatprep.subr.msk.bf16.mxu0 %vm13356_vm9, %v11418_v24 }
 0x568   :  { %v1229_v26 = vpop.permute.xlu1 %1228 }
 0x56c   :  { %v1231_v27 = vpop.permute.xlu1 %1230 }
 0x56d   :  { %10734 = vmatmul.mubr.msk.f32.vlgmr.msra.gmra.mrb[2].mxu0 %vm665_vm8, %v865_v25 }
 0x56e   :  { %11423 = vmatpush3.bf16.xpose.msk.msra.mxu0 %vm13356_vm9, %v11418_v24  ;;  %10757 = vmatprep.mubr.msk.f32.mxu0 %vm665_vm8, %v1229_v26 }
 0x575   :  { %10758 = vmatmul.mubr.msk.f32.vlgmr.msra.gmra.mrb[4].mxu0 %vm665_vm8, %v1231_v27 }
 0x638   :  { %v10721_v28 = vpop.f32.mrb[0].mxu0 }
 0x639   :  { %v750_v30 = vmul.f32 0.35355338, %v10721_v28  ;;  %v740_v31 = vpop.f32.mrb[1].mxu0 }
 0x63a   :  { %v749_v33 = vmul.f32 0.35355338, %v740_v31 }
 0x63b   :  { %v752_v34 = vadd.f32 %v750_v30, %v13379_v29 }
 0x63c   :  { %v751_v35 = vadd.f32 %v749_v33, %v13382_v32 }
 0x63d   :  { %v756_v36 = vsel %vm416_vm0, %v752_v34, -inf }
 0x63e   :  { %757 = vmax.xlane.f32.xlu0 %v756_v36  ;;  %v753_v37 = vsel %vm416_vm0, %v751_v35, -inf }
 0x63f   :  { %754 = vmax.xlane.f32.xlu1 %v753_v37 }
 0x640   :  { %v10735_v38 = vpop.f32.mrb[2].mxu0 }
 0x641   :  { %v944_v39 = vpop.f32.mrb[3].mxu0  ;;  %v954_v40 = vmul.f32 0.35355338, %v10735_v38 }
 0x642   :  { %v953_v41 = vmul.f32 0.35355338, %v944_v39 }
 0x643   :  { %v956_v44 = vadd.f32 %v954_v40, %v13379_v29 }
 0x644   :  { %v955_v42 = vadd.f32 %v953_v41, %v13382_v32 }
 0x645   :  { %v960_v47 = vsel %vm416_vm0, %v956_v44, -inf }
 0x646   :  { %v957_v43 = vsel %vm416_vm0, %v955_v42, -inf }
 0x647   :  { %958 = vmax.xlane.f32.xlu1 %v957_v43 }
 0x648   :  { %v10759_v45 = vpop.f32.mrb[4].mxu0 }
 0x649   :  { %v1310_v46 = vpop.f32.mrb[5].mxu0  ;;  %v1320_v11 = vmul.f32 0.35355338, %v10759_v45 }
 0x64a   :  { %v1319_v8 = vmul.f32 0.35355338, %v1310_v46 }
 0x64b   :  { %961 = vmax.xlane.f32.xlu1 %v960_v47  ;;  %v1322_v14 = vadd.f32 %v1320_v11, %v13379_v29 }
 0x64c   :  { %v1321_v10 = vadd.f32 %v1319_v8, %v13382_v32 }
 0x64d   :  { %v1326_v15 = vsel %vm416_vm0, %v1322_v14, -inf }
 0x64e   :  { %v1323_v13 = vsel %vm416_vm0, %v1321_v10, -inf }
 0x6cb   :  { %v758_v48 = vpop.xlane.xlu0 %757 }
 0x6cc   :  { %v760_v49 = vsub.f32 %v752_v34, %v758_v48  ;;  %v755_v50 = vpop.xlane.xlu1 %754 }
 0x6cd   :  { %v759_v51 = vsub.f32 %v751_v35, %v755_v50 }
 0x6ce   :  { %v763_v52 = vmul.f32 1.442695, %v760_v49 }
 0x6cf   :  { %v761_v53 = vmul.f32 1.442695, %v759_v51 }
 0x6d0   :  { %12158 = vpow2.f32 %v763_v52 }
 0x6d1   :  { %12160 = vpow2.f32 %v761_v53  ;;  %v655_v53 = vld [vmem:[%s14405_s19 + $0x8] sm:$0xff] }
 0x6d4   :  { %v959_v54 = vpop.xlane.xlu1 %958 }
 0x6d5   :  { %v963_v55 = vsub.f32 %v955_v42, %v959_v54  ;;  %v654_v54 = vld [vmem:[%s14405_s19] sm:$0xff] }
 0x6d7   :  { %v965_v56 = vmul.f32 1.442695, %v963_v55 }
 0x6d8   :  { %v962_v57 = vpop.xlane.xlu1 %961 }
 0x6d9   :  { %12162 = vpow2.f32 %v965_v56  ;;  %v964_v58 = vsub.f32 %v956_v44, %v962_v57 }
 0x6da   :  { %v12159_v59 = vpop.eup %12158 }
 0x6db   :  { %v12161_v60 = vpop.eup %12160  ;;  %v967_v61 = vmul.f32 1.442695, %v964_v58  ;;  %v768_v62 = vsel %vm416_vm0, %v12159_v59, 0.0 }
 0x6dc   :  { %769 = vadd.xlane.f32.xlu1 %v768_v62  ;;  %v765_v63 = vsel %vm416_vm0, %v12161_v60, 0.0 }
 0x6dd   :  { %12164 = vpow2.f32 %v967_v61  ;;  %766 = vadd.xlane.f32.xlu0 %v765_v63 }
 0x6e3   :  { %v12163_v0 = vpop.eup %12162 }
 0x6e4   :  { %v969_v1 = vsel %vm416_vm0, %v12163_v0, 0.0 }
 0x6e5   :  { %970 = vadd.xlane.f32.xlu0 %v969_v1 }
 0x6e7   :  { %v12165_v2 = vpop.eup %12164 }
 0x6e8   :  { %v972_v4 = vsel %vm416_vm0, %v12165_v2, 0.0 }
 0x6e9   :  { %973 = vadd.xlane.f32.xlu1 %v972_v4 }
 0x6fa   :  { %11940 = vrot.lane.b32.xlu1 %v13338_v6, %s12893_s8 }
 0x6fb   :  { %11935 = vrot.lane.b32.xlu0 %v13338_v6, %s12894_s18 }
 0x6fe   :  { %11945 = vrot.lane.b32.xlu1 %v13338_v6, %s12895_s4 }
 0x6ff   :  { %1515 = vrot.lane.b32.xlu0 %v13332_v5, %s12896_s22 }
 0x702   :  { %1517 = vrot.lane.b32.xlu1 %v13330_v3, %s12896_s22 }
 0x71e   :  { %1324 = vmax.xlane.f32.xlu0 %v1323_v13 }
 0x726   :  { %1327 = vmax.xlane.f32.xlu1 %v1326_v15  ;;  %v656_v15 = vld [vmem:[%s14405_s19 + $0x10] sm:$0xff] }
 0x737   :  { %11950 = vrot.lane.b32.xlu1 %v13338_v6, %s12897_s23 }
 0x73b   :  { %11955 = vrot.lane.b32.xlu1 %v13338_v6, %s12898_s20 }
 0x769   :  { %v770_v5 = vpop.xlane.xlu1 %769 }
 0x76a   :  { %v767_v3 = vpop.xlane.xlu0 %766 }
 0x76b   :  { %12166 = vrcp.f32 %v767_v3 }
 0x76c   :  { %12168 = vrcp.f32 %v770_v5 }
 0x772   :  { %v971_v16 = vpop.xlane.xlu0 %970 }
 0x773   :  { %12170 = vrcp.f32 %v971_v16 }
 0x775   :  { %v12167_v17 = vpop.eup %12166 }
 0x776   :  { %v11936_v18 = vpop.permute.xlu0 %11935  ;;  %v974_v21 = vpop.xlane.xlu1 %973  ;;  %v772_v22 = vmul.f32 %v12167_v17, %v12161_v60 }
 0x777   :  { %v11938_v23 = vunpack.i.h.bf16 %v11936_v18  ;;  %v11937_v24 = vunpack.i.l.bf16 %v11936_v18  ;;  %12172 = vrcp.f32 %v974_v21  ;;  %v12169_v26 = vpop.eup %12168 }
 0x778   :  { %10726 = vmatprep.mubr.msk.f32.mxu1 %vm416_vm0, %v772_v22  ;;  %v774_v33 = vmul.f32 %v12169_v26, %v12159_v59 }
 0x779   :  { %v11404_v25 = vpack.c.bf16 %v11938_v23, %v11937_v24 }
 0x77a   :  { %v1516_v27 = vpop.permute.xlu0 %1515  ;;  %v11941_v28 = vpop.permute.xlu1 %11940 }
 0x77b   :  { %v11943_v6 = vunpack.i.h.bf16 %v11941_v28  ;;  %v11942_v30 = vunpack.i.l.bf16 %v11941_v28  ;;  %11405 = vmatprep.subr.bf16.mxu1 %v11404_v25  ;;  %10776 = vmatprep.mubr.msk.f32.mxu0 %vm665_vm8, %v1516_v27 }
 0x77c   :  { %11407 = vmatpush3.bf16.msra.mxu1 %v11404_v25 }
 0x77d   :  { %v12171_v31 = vpop.eup %12170  ;;  %v11414_v34 = vpack.c.bf16 %v11943_v6, %v11942_v30 }
 0x77e   :  { %v11946_v35 = vpop.permute.xlu1 %11945  ;;  %v976_v36 = vmul.f32 %v12171_v31, %v12163_v0 }
 0x77f   :  { %v11948_v37 = vunpack.i.h.bf16 %v11946_v35  ;;  %v11947_v38 = vunpack.i.l.bf16 %v11946_v35  ;;  %10727 = vmatmul.mubr.msk.f32.vlgmr.msra.gmra.mrb[4].mxu1 %vm416_vm0, %v774_v33  ;;  %11415 = vmatprep.subr.bf16.mxu1 %v11414_v34 }
 0x780   :  { %11417 = vmatpush3.bf16.msra.mxu1 %v11414_v34  ;;  %10740 = vmatprep.mubr.msk.f32.mxu1 %vm416_vm0, %v976_v36 }
 0x781   :  { %v12173_v39 = vpop.eup %12172  ;;  %v11428_v40 = vpack.c.bf16 %v11948_v37, %v11947_v38  ;;  %10743 = vmatprep.subr.mxu1 %v655_v53  ;;  %v657_v37 = vld [vmem:[%s14405_s19 + $0x18] sm:$0xff] }
 0x782   :  { %v978_v41 = vmul.f32 %v12173_v39, %v12165_v2  ;;  %v1518_v42 = vpop.permute.xlu1 %1517 }
 0x783   :  { %11430 = vmatprep.subr.msk.bf16.mxu0 %vm13356_vm9, %v11428_v40 }
 0x784   :  { %10741 = vmatmul.mubr.msk.f32.vlgmr.msra.gmra.mrb[6].mxu1 %vm416_vm0, %v978_v41  ;;  %11433 = vmatpush3.bf16.xpose.msk.msra.mxu0 %vm13356_vm9, %v11428_v40 }
 0x785   :  { %10744 = vmatpush3.msra.mxu1 %v655_v53 }
 0x786   :  { %10748 = vmatprep.subr.mxu1 %v654_v54 }
 0x78b   :  { %10777 = vmatmul.mubr.msk.f32.vlgmr.msra.gmra.mrb[6].mxu0 %vm665_vm8, %v1518_v42 }
 0x7ab   :  { %v1325_v43 = vpop.xlane.xlu0 %1324 }
 0x7ac   :  { %v1329_v44 = vsub.f32 %v1321_v10, %v1325_v43 }
 0x7ae   :  { %v1331_v45 = vmul.f32 1.442695, %v1329_v44 }
 0x7b0   :  { %12174 = vpow2.f32 %v1331_v45 }
 0x7b3   :  { %v1328_v46 = vpop.xlane.xlu1 %1327 }
 0x7b4   :  { %v1330_v47 = vsub.f32 %v1322_v14, %v1328_v46  ;;  %v10007_v46 = vld [vmem:[%s14406_s26] ss:$0 sm:$0xff] }
 0x7b6   :  { %v1333_v48 = vmul.f32 1.442695, %v1330_v47 }
 0x7b7   :  { %v11951_v57 = vpop.permute.xlu1 %11950 }
 0x7b8   :  { %12176 = vpow2.f32 %v1333_v48  ;;  %v11953_v60 = vunpack.i.h.bf16 %v11951_v57  ;;  %v11952_v61 = vunpack.i.l.bf16 %v11951_v57 }
 0x7ba   :  { %v12175_v49 = vpop.eup %12174  ;;  %v11424_v0 = vpack.c.bf16 %v11953_v60, %v11952_v61 }
 0x7bb   :  { %v1335_v50 = vsel %vm416_vm0, %v12175_v49, 0.0  ;;  %v11956_v4 = vpop.permute.xlu1 %11955 }
 0x7bc   :  { %1336 = vadd.xlane.f32.xlu0 %v1335_v50  ;;  %v11958_v3 = vunpack.i.h.bf16 %v11956_v4  ;;  %v11957_v5 = vunpack.i.l.bf16 %v11956_v4  ;;  %v1873_v4 = vld [vmem:[%s14407_s21 + $0x18] sm:$0xff] }
 0x7be   :  { %v11434_v22 = vpack.c.bf16 %v11958_v3, %v11957_v5  ;;  %v1879_v5 = vld [vmem:[%s14408_s27 + $0x20] sm:$0xff] }
 0x7c2   :  { %v12177_v51 = vpop.eup %12176 }
 0x7c3   :  { %v1338_v52 = vsel %vm416_vm0, %v12177_v51, 0.0 }
 0x7c4   :  { %1339 = vadd.xlane.f32.xlu0 %v1338_v52 }
 0x849   :  { %v1337_v55 = vpop.xlane.xlu0 %1336 }
 0x84a   :  { %12178 = vrcp.f32 %v1337_v55 }
 0x851   :  { %v1340_v59 = vpop.xlane.xlu0 %1339 }
 0x852   :  { %v10728_v56 = vpop.f32.mrb[4].mxu1  ;;  %12180 = vrcp.f32 %v1340_v59 }
 0x853   :  { %v853_v58 = vpop.f32.mrb[5].mxu1 }
 0x854   :  { %v12179_v1 = vpop.eup %12178 }
 0x855   :  { %v1342_v14 = vmul.f32 %v12179_v1, %v12175_v49  ;;  %v1872_v1 = vld [vmem:[%s14407_s21 + $0x10] sm:$0xff] }
 0x857   :  { %v10742_v62 = vpop.f32.mrb[6].mxu1 }
 0x858   :  { %v1057_v63 = vpop.f32.mrb[7].mxu1 }
 0x859   :  { %10745 = vmatprep.mubr.msk.f32.mxu1 %vm665_vm8, %v1057_v63  ;;  %v1870_v63 = vld [vmem:[%s14407_s21] sm:$0xff] }
 0x85a   :  { %10746 = vmatmul.mubr.msk.f32.vlgmr.msra.gmra.mrb[8].mxu1 %vm665_vm8, %v10742_v62 }
 0x85b   :  { %10749 = vmatpush3.msra.mxu1 %v654_v54  ;;  %10750 = vmatprep.mubr.msk.f32.mxu1 %vm665_vm8, %v853_v58 }
 0x85c   :  { %11425 = vmatprep.subr.bf16.mxu1 %v11424_v0  ;;  %v12181_v13 = vpop.eup %12180 }
 0x85d   :  { %v1344_v18 = vmul.f32 %v12181_v13, %v12177_v51  ;;  %v1877_v13 = vld [vmem:[%s14408_s27 + $0x10] sm:$0xff] }
 0x85e   :  { %v10778_v2 = vpop.f32.mrb[6].mxu0 }
 0x85f   :  { %v1597_v8 = vpop.f32.mrb[7].mxu0  ;;  %v1607_v10 = vmul.f32 0.35355338, %v10778_v2 }
 0x860   :  { %v1606_v11 = vmul.f32 0.35355338, %v1597_v8  ;;  %v11442_v8 = vpack.c.bf16 %v1873_v4, %v1872_v1 }
 0x861   :  { %v1609_v21 = vadd.f32 %v1607_v10, %v13379_v29  ;;  %v1875_v10 = vld [vmem:[%s14408_s27] sm:$0xff] }
 0x862   :  { %10751 = vmatmul.mubr.msk.f32.vlgmr.msra.gmra.mrb[8].mxu1 %vm665_vm8, %v10728_v56  ;;  %v1608_v16 = vadd.f32 %v1606_v11, %v13382_v32  ;;  %v1876_v11 = vld [vmem:[%s14408_s27 + $0x8] sm:$0xff] }
 0x863   :  { %11427 = vmatpush3.bf16.msra.mxu1 %v11424_v0  ;;  %10764 = vmatprep.mubr.msk.f32.mxu1 %vm416_vm0, %v1342_v14  ;;  %v1613_v23 = vsel %vm416_vm0, %v1609_v21, -inf  ;;  %v1871_v0 = vld [vmem:[%s14407_s21 + $0x8] sm:$0xff]  ;;  %v11446_v14 = vpack.c.bf16 %v1876_v11, %v1875_v10 }
 0x864   :  { %v1610_v17 = vsel %vm416_vm0, %v1608_v16, -inf  ;;  %10767 = vmatprep.subr.mxu1 %v656_v15  ;;  %v11438_v2 = vpack.c.bf16 %v1871_v0, %v1870_v63 }
 0x865   :  { %1611 = vmax.xlane.f32.xlu0 %v1610_v17 }
 0x866   :  { %10765 = vmatmul.mubr.msk.f32.vlgmr.msra.gmra.mrb[10].mxu1 %vm416_vm0, %v1344_v18  ;;  %11439 = vmatprep.subr.bf16.mxu0 %v11438_v2 }
 0x867   :  { %10768 = vmatpush3.msra.mxu1 %v656_v15  ;;  %11441 = vmatpush3.bf16.msra.mxu0 %v11438_v2  ;;  %v1878_v15 = vld [vmem:[%s14408_s27 + $0x18] sm:$0xff] }
 0x868   :  { %11435 = vmatprep.subr.bf16.mxu1 %v11434_v22  ;;  %11443 = vmatprep.subr.bf16.mxu0 %v11442_v8  ;;  %v11450_v3 = vpack.c.bf16 %v1878_v15, %v1877_v13 }
 0x869   :  { %1614 = vmax.xlane.f32.xlu0 %v1613_v23 }
 0x86b   :  { %11445 = vmatpush3.bf16.msra.mxu0 %v11442_v8 }
 0x8f2   :  { %v1612_v24 = vpop.xlane.xlu0 %1611 }
 0x8f3   :  { %v1616_v25 = vsub.f32 %v1608_v16, %v1612_v24  ;;  %v1880_v16 = vld [vmem:[%s14408_s27 + $0x28] sm:$0xff] }
 0x8f4   :  { %v11454_v17 = vpack.c.bf16 %v1880_v16, %v1879_v5  ;;  %v10021_v5 = vld [vmem:[%s14398_s7 + $0x28] sm:$0xff]  ;;  %v10022_v16 = vld [vmem:[%s14398_s7 + $0x30] sm:$0xff] }
 0x8f5   :  { %v1618_v26 = vmul.f32 1.442695, %v1616_v25 }
 0x8f6   :  { %v1615_v27 = vpop.xlane.xlu0 %1614 }
 0x8f7   :  { %12182 = vpow2.f32 %v1618_v26  ;;  %v1617_v28 = vsub.f32 %v1609_v21, %v1615_v27 }
 0x8f9   :  { %v1620_v6 = vmul.f32 1.442695, %v1617_v28 }
 0x8fb   :  { %12184 = vpow2.f32 %v1620_v6 }
 0x901   :  { %v12183_v30 = vpop.eup %12182 }
 0x902   :  { %v1622_v31 = vsel %vm416_vm0, %v12183_v30, 0.0 }
 0x903   :  { %1623 = vadd.xlane.f32.xlu0 %v1622_v31 }
 0x905   :  { %v12185_v33 = vpop.eup %12184 }
 0x906   :  { %v1625_v34 = vsel %vm416_vm0, %v12185_v33, 0.0 }
 0x907   :  { %1626 = vadd.xlane.f32.xlu0 %v1625_v34 }
 0x939   :  { %v10766_v35 = vpop.f32.mrb[10].mxu1 }
 0x93a   :  { %v1423_v36 = vpop.f32.mrb[11].mxu1 }
 0x93b   :  { %10769 = vmatprep.mubr.msk.f32.mxu1 %vm665_vm8, %v1423_v36 }
 0x93c   :  { %10770 = vmatmul.mubr.msk.f32.vlgmr.msra.gmra.mrb[8].mxu1 %vm665_vm8, %v10766_v35 }
 0x93d   :  { %11437 = vmatpush3.bf16.msra.mxu1 %v11434_v22 }
 0x93e   :  { %10786 = vmatprep.subr.mxu1 %v657_v37 }
 0x990   :  { %v1624_v38 = vpop.xlane.xlu0 %1623 }
 0x991   :  { %12186 = vrcp.f32 %v1624_v38 }
 0x994   :  { %v1627_v39 = vpop.xlane.xlu0 %1626 }
 0x995   :  { %12188 = vrcp.f32 %v1627_v39 }
 0x99b   :  { %v12187_v40 = vpop.eup %12186 }
 0x99c   :  { %v1629_v41 = vmul.f32 %v12187_v40, %v12183_v30  ;;  %v10009_v40 = vld [vmem:[%s14410_s25] ss:$0 sm:$0xff] }
 0x99e   :  { %10783 = vmatprep.mubr.msk.f32.mxu1 %vm416_vm0, %v1629_v41 }
 0x99f   :  { %v12189_v42 = vpop.eup %12188 }
 0x9a0   :  { %v1631_v43 = vmul.f32 %v12189_v42, %v12185_v33 }
 0x9a2   :  { %10784 = vmatmul.mubr.msk.f32.vlgmr.msra.gmra.mrb[12].mxu1 %vm416_vm0, %v1631_v43 }
 0x9a3   :  { %10787 = vmatpush3.msra.mxu1 %v657_v37  ;;  %v10008_v37 = vld [vmem:[%s14409_s30] ss:$0 sm:$0xff] }
 0x9a4   :  { %11447 = vmatprep.subr.bf16.mxu1 %v11446_v14 }
 0xa75   :  { %v10785_v44 = vpop.f32.mrb[12].mxu1 }
 0xa76   :  { %v1710_v45 = vpop.f32.mrb[13].mxu1 }
 0xa77   :  { %10788 = vmatprep.mubr.msk.f32.mxu1 %vm665_vm8, %v1710_v45 }
 0xa78   :  { %10789 = vmatmul.mubr.msk.f32.vlgmr.msra.gmra.mrb[8].mxu1 %vm665_vm8, %v10785_v44 }
 0xa79   :  { %11449 = vmatpush3.bf16.msra.mxu1 %v11446_v14 }
 0xa7a   :  { %11451 = vmatprep.subr.bf16.mxu1 %v11450_v3 }
 0xa7d   :  { %11453 = vmatpush3.bf16.msra.mxu1 %v11450_v3  ;;  %v10020_v3 = vld [vmem:[%s14398_s7 + $0x20] sm:$0xff] }
 0xa7e   :  { %11455 = vmatprep.subr.bf16.mxu1 %v11454_v17 }
 0xa81   :  { %11457 = vmatpush3.bf16.msra.mxu1 %v11454_v17  ;;  %v11462_v17 = vpack.c.bf16 %v10021_v5, %v10020_v3 }
 0xa83   :  { %11463 = vmatprep.subr.bf16.mxu0 %v11462_v17 }
 0xb4b   :  { %v10790_v47 = vpop.f32.mrb[8].mxu1 }
 0xb4c   :  { %v1809_v48 = vadd.f32 %v10790_v47, %v10007_v46  ;;  %v1791_v49 = vpop.f32.mrb[9].mxu1  ;;  %v1881_v47 = vld [vmem:[%s14408_s27 + $0x30] sm:$0xff] }
 0xb4d   :  { %v1808_v50 = vadd.f32 %v10007_v46, %v1791_v49 }
 0xb4e   :  { %v13450_v51 = vadd.f32 %v1809_v48, %v13311_v20  ;;  %v1882_v48 = vld [vmem:[%s14408_s27 + $0x38] sm:$0xff] }
 0xb4f   :  { %v13453_v52 = vadd.f32 %v1808_v50, %v13309_v19  ;;  %v11458_v49 = vpack.c.bf16 %v1882_v48, %v1881_v47  ;;  %v10010_v50 = vld [vmem:[%s14411_s28] ss:$0 sm:$0xff] }
 0xb50   :  { %v1817_v53 = vsel %vm504_vm3, %v13450_v51, 0.0 }
 0xb51   :  { %1818 = vadd.xlane.f32.xlu1 %v1817_v53  ;;  %v1814_v54 = vsel %vm504_vm3, %v13453_v52, 0.0  ;;  %11459 = vmatprep.subr.bf16.mxu1 %v11458_v49 }
 0xb52   :  { %1815 = vadd.xlane.f32.xlu0 %v1814_v54  ;;  %11461 = vmatpush3.bf16.msra.mxu1 %v11458_v49  ;;  %v10025_v49 = vld [vmem:[%s14401_s11 + $0x1] ss:$0 sm:$0xff]  ;;  %s14420_s11 = sld [smem:[#allocation57_spill]] }
 0xbde   :  { %v1819_v55 = vpop.xlane.xlu1 %1818 }
 0xbdf   :  { %v1821_v56 = vmul.f32 0.03125, %v1819_v55  ;;  %v1816_v57 = vpop.xlane.xlu0 %1815 }
 0xbe0   :  { %v1820_v20 = vmul.f32 0.03125, %v1816_v57 }
 0xbe1   :  { %v1823_v58 = vsub.f32 %v13450_v51, %v1821_v56 }
 0xbe2   :  { %v1822_v19 = vsub.f32 %v13453_v52, %v1820_v20 }
 0xbe3   :  { %v1825_v61 = vmul.f32 %v1823_v58, %v1823_v58  ;;  %v1855_v42 = vmul.f32 %v10008_v37, %v1823_v58  ;;  %v10013_v58 = vld [vmem:[%s14412_s0] ss:$0 sm:$0xff] }
 0xbe4   :  { %v1824_v59 = vmul.f32 %v1822_v19, %v1822_v19  ;;  %v1854_v38 = vmul.f32 %v10008_v37, %v1822_v19 }
 0xbe5   :  { %v1829_v62 = vsel %vm504_vm3, %v1825_v61, 0.0 }
 0xbe6   :  { %v1826_v60 = vsel %vm504_vm3, %v1824_v59, 0.0 }
 0xbe7   :  { %1827 = vadd.xlane.f32.xlu0 %v1826_v60 }
 0xbeb   :  { %1830 = vadd.xlane.f32.xlu0 %v1829_v62 }
 0xc74   :  { %v1828_v18 = vpop.xlane.xlu0 %1827 }
 0xc75   :  { %v1832_v21 = vmul.f32 0.032258064, %v1828_v18  ;;  %v10023_v18 = vld [vmem:[%s14398_s7 + $0x38] sm:$0xff]  ;;  %s14417_s7 = sld [smem:[#allocation41_spill]] }
 0xc77   :  { %12190 = vrsqrt.f32 %v1832_v21  ;;  %vm1836_vm10 = vcmp.eq.f32.partialorder %v1832_v21, inf  ;;  %v1839_v26 = vand.u32 2147483648, %v1832_v21  ;;  %vm1838_vm11 = vcmp.eq.f32.partialorder %v1832_v21, 0.0 }
 0xc78   :  { %v1831_v22 = vpop.xlane.xlu0 %1830 }
 0xc79   :  { %v1833_v23 = vmul.f32 0.032258064, %v1831_v22 }
 0xc7b   :  { %12192 = vrsqrt.f32 %v1833_v23  ;;  %vm1843_vm12 = vcmp.eq.f32.partialorder %v1833_v23, inf  ;;  %v1846_v33 = vand.u32 2147483648, %v1833_v23  ;;  %vm1845_vm13 = vcmp.eq.f32.partialorder %v1833_v23, 0.0 }
 0xc81   :  { %v12191_v24 = vpop.eup %12190 }
 0xc82   :  { %v1835_v25 = vmul.f32 %v12191_v24, %v1832_v21 }
 0xc84   :  { %v1837_v27 = vsel %vm1836_vm10, %v1832_v21, %v1835_v25  ;;  %v11466_v21 = vpack.c.bf16 %v10023_v18, %v10022_v16 }
 0xc85   :  { %v12193_v28 = vpop.eup %12192  ;;  %v1840_v6 = vsel %vm1838_vm11, %v1839_v26, %v1837_v27 }
 0xc86   :  { %v1842_v30 = vmul.f32 %v12193_v28, %v1833_v23  ;;  %v1856_v31 = vadd.f32 1e-06, %v1840_v6 }
 0xc88   :  { %v1844_v34 = vsel %vm1843_vm12, %v1833_v23, %v1842_v30  ;;  %12194 = vrcp.f32 %v1856_v31 }
 0xc89   :  { %v1847_v35 = vsel %vm1845_vm13, %v1846_v33, %v1844_v34 }
 0xc8a   :  { %v1857_v36 = vadd.f32 1e-06, %v1847_v35 }
 0xc8c   :  { %12196 = vrcp.f32 %v1857_v36 }
 0xc92   :  { %v12195_v39 = vpop.eup %12194 }
 0xc93   :  { %v1859_v41 = vmul.f32 %v12195_v39, %v1854_v38  ;;  %v10018_v39 = vld [vmem:[%s14399_s10 + $0x1] ss:$0 sm:$0xff]  ;;  %s14418_s10 = sld [smem:[#allocation60_spill]] }
 0xc95   :  { %v1868_v43 = vadd.f32 %v10009_v40, %v1859_v41 }
 0xc96   :  { %v12197_v44 = vpop.eup %12196 }
 0xc97   :  { %v1861_v45 = vmul.f32 %v12197_v44, %v1855_v42  ;;  %10799 = vmatprep.mubr.msk.f32.mxu0 %vm504_vm3, %v1868_v43  ;;  %v10019_v42 = vld [vmem:[%s14400_s29 + $0x1] ss:$0 sm:$0xff]  ;;  %s14419_s29 = sld [smem:[#allocation62_spill]] }
 0xc99   :  { %v1869_v46 = vadd.f32 %v10009_v40, %v1861_v45 }
 0xc9b   :  { %10800 = vmatmul.mubr.msk.f32.vlgmr.msra.gmra.mrb[8].mxu0 %vm504_vm3, %v1869_v46 }
 0xc9c   :  { %11465 = vmatpush3.bf16.msra.mxu0 %v11462_v17 }
 0xc9d   :  { %11467 = vmatprep.subr.bf16.mxu0 %v11466_v21 }
 0xca0   :  { %11469 = vmatpush3.bf16.msra.mxu0 %v11466_v21 }
 0xd6e   :  { %v10801_v53 = vpop.f32.mrb[8].mxu0 }
 0xd6f   :  { %v1968_v54 = vadd.f32 %v10801_v53, %v10010_v50  ;;  %v1962_v55 = vpop.f32.mrb[9].mxu0 }
 0xd70   :  { %v1963_v56 = vadd.f32 %v10010_v50, %v1962_v55 }
 0xd71   :  { %v1972_v20 = vmax.f32 %v1968_v54, 0.0 }
 0xd72   :  { %v1971_v57 = vmax.f32 %v1963_v56, 0.0 }
 0xd74   :  { %10818 = vmatprep.mubr.msk.f32.mxu1 %vm1979_vm14, %v1971_v57 }
 0xd75   :  { %10819 = vmatmul.mubr.msk.f32.vlgmr.msra.gmra.mrb[14].mxu1 %vm1979_vm14, %v1972_v20 }
 0xe48   :  { %v10820_v19 = vpop.f32.mrb[14].mxu1 }
 0xe49   :  { %v2052_v59 = vpop.f32.mrb[15].mxu1  ;;  %v2058_v60 = vadd.f32 %v10820_v19, %v10013_v58 }
 0xe4a   :  { %v2053_v61 = vadd.f32 %v10013_v58, %v2052_v59 }
 0xe4b   :  { %v13487_v63 = vadd.f32 %v2058_v60, %v13450_v51 }
 0xe4c   :  { %v13484_v62 = vadd.f32 %v2053_v61, %v13453_v52 }
 0xe4d   :  { %v2070_v1 = vsel %vm504_vm3, %v13487_v63, 0.0 }
 0xe4e   :  { %v2067_v0 = vsel %vm504_vm3, %v13484_v62, 0.0 }
 0xe4f   :  { %2068 = vadd.xlane.f32.xlu0 %v2067_v0 }
 0xe53   :  { %2071 = vadd.xlane.f32.xlu0 %v2070_v1 }
 0xedc   :  { %v2069_v2 = vpop.xlane.xlu0 %2068 }
 0xedd   :  { %v2073_v4 = vmul.f32 0.03125, %v2069_v2 }
 0xedf   :  { %v2075_v52 = vsub.f32 %v13484_v62, %v2073_v4 }
 0xee0   :  { %v2072_v8 = vpop.xlane.xlu0 %2071 }
 0xee1   :  { %v2074_v10 = vmul.f32 0.03125, %v2072_v8  ;;  %v2077_v51 = vmul.f32 %v2075_v52, %v2075_v52  ;;  %v2107_v40 = vmul.f32 %v10018_v39, %v2075_v52 }
 0xee3   :  { %v2076_v11 = vsub.f32 %v13487_v63, %v2074_v10  ;;  %v2079_v13 = vsel %vm504_vm3, %v2077_v51, 0.0 }
 0xee4   :  { %2080 = vadd.xlane.f32.xlu0 %v2079_v13 }
 0xee5   :  { %v2078_v14 = vmul.f32 %v2076_v11, %v2076_v11  ;;  %v2108_v44 = vmul.f32 %v10018_v39, %v2076_v11 }
 0xee7   :  { %v2082_v15 = vsel %vm504_vm3, %v2078_v14, 0.0 }
 0xee8   :  { %2083 = vadd.xlane.f32.xlu0 %v2082_v15 }
 0xf71   :  { %v2081_v22 = vpop.xlane.xlu0 %2080 }
 0xf72   :  { %v2085_v23 = vmul.f32 0.032258064, %v2081_v22 }
 0xf74   :  { %12198 = vrsqrt.f32 %v2085_v23  ;;  %vm2089_vm15 = vcmp.eq.f32.partialorder %v2085_v23, inf  ;;  %v2092_v28 = vand.u32 2147483648, %v2085_v23  ;;  %vm2091_vm1 = vcmp.eq.f32.partialorder %v2085_v23, 0.0 }
 0xf75   :  { %v2084_v24 = vpop.xlane.xlu0 %2083 }
 0xf76   :  { %v2086_v25 = vmul.f32 0.032258064, %v2084_v24 }
 0xf78   :  { %12200 = vrsqrt.f32 %v2086_v25  ;;  %vm2096_vm2 = vcmp.eq.f32.partialorder %v2086_v25, inf  ;;  %v2099_v35 = vand.u32 2147483648, %v2086_v25  ;;  %vm2098_vm4 = vcmp.eq.f32.partialorder %v2086_v25, 0.0 }
 0xf7e   :  { %v12199_v26 = vpop.eup %12198 }
 0xf7f   :  { %v2088_v27 = vmul.f32 %v12199_v26, %v2085_v23 }
 0xf81   :  { %v2090_v6 = vsel %vm2089_vm15, %v2085_v23, %v2088_v27 }
 0xf82   :  { %v12201_v30 = vpop.eup %12200  ;;  %v2093_v31 = vsel %vm2091_vm1, %v2092_v28, %v2090_v6 }
 0xf83   :  { %v2095_v33 = vmul.f32 %v12201_v30, %v2086_v25  ;;  %v2109_v34 = vadd.f32 1e-06, %v2093_v31 }
 0xf85   :  { %v2097_v36 = vsel %vm2096_vm2, %v2086_v25, %v2095_v33  ;;  %12202 = vrcp.f32 %v2109_v34 }
 0xf86   :  { %v2100_v37 = vsel %vm2098_vm4, %v2099_v35, %v2097_v36 }
 0xf87   :  { %v2110_v38 = vadd.f32 1e-06, %v2100_v37 }
 0xf89   :  { %12204 = vrcp.f32 %v2110_v38 }
 0xf8f   :  { %v12203_v41 = vpop.eup %12202 }
 0xf90   :  { %v2112_v43 = vmul.f32 %v12203_v41, %v2107_v40 }
 0xf92   :  { %v2121_v45 = vadd.f32 %v10019_v42, %v2112_v43 }
 0xf93   :  { %v12205_v46 = vpop.eup %12204 }
 0xf94   :  { %v2114_v47 = vmul.f32 %v12205_v46, %v2108_v44  ;;  %10829 = vmatprep.mubr.msk.f32.mxu0 %vm504_vm3, %v2121_v45 }
 0xf96   :  { %v2122_v48 = vadd.f32 %v10019_v42, %v2114_v47 }
 0xf98   :  { %10830 = vmatmul.mubr.msk.f32.vlgmr.msra.gmra.mrb[10].mxu0 %vm504_vm3, %v2122_v48 }
0x106b   :  { %v10831_v50 = vpop.f32.mrb[10].mxu0 }
0x106c   :  { %v13506_v53 = vadd.f32 %v10831_v50, %v10025_v49  ;;  %v2208_v54 = vpop.f32.mrb[11].mxu0 }
0x106d   :  { %v13508_v55 = vadd.f32 %v10025_v49, %v2208_v54 }
0x106f   :  { %10836 = vmatprep.mubr.msk.f32.mxu0 %vm665_vm8, %v13508_v55  ;;  %v13514_v56 = vpack.i.bf16 %v13506_v53, %v13508_v55 }
0x1071   :  { %11965 = vrot.lane.b32.xlu1 %v13514_v56, %s12890_s17  ;;  %11960 = vrot.lane.b32.xlu0 %v13514_v56, %s12889_s6 }
0x1075   :  { %11970 = vrot.lane.b32.xlu1 %v13514_v56, %s12888_s9  ;;  %2426 = vrot.lane.b32.xlu0 %v13508_v55, %s12891_s12 }
0x1079   :  { %2794 = vrot.lane.b32.xlu1 %v13506_v53, %s12892_s15  ;;  %2428 = vrot.lane.b32.xlu0 %v13506_v53, %s12891_s12 }
0x107d   :  { %2792 = vrot.lane.b32.xlu0 %v13508_v55, %s12892_s15 }
0x10e3   :  { %v11966_v57 = vpop.permute.xlu1 %11965  ;;  %v11961_v20 = vpop.permute.xlu0 %11960 }
0x10e4   :  { %v11968_v58 = vunpack.i.h.bf16 %v11966_v57  ;;  %v11967_v19 = vunpack.i.l.bf16 %v11966_v57  ;;  %v11963_v59 = vunpack.i.h.bf16 %v11961_v20  ;;  %v11962_v60 = vunpack.i.l.bf16 %v11961_v20 }
0x10e6   :  { %v11470_v61 = vpack.c.bf16 %v11963_v59, %v11962_v60  ;;  %v11480_v0 = vpack.c.bf16 %v11968_v58, %v11967_v19 }
0x10e7   :  { %v11971_v1 = vpop.permute.xlu1 %11970  ;;  %v2427_v52 = vpop.permute.xlu0 %2426 }
0x10e8   :  { %11472 = vmatprep.subr.msk.bf16.mxu0 %vm13356_vm9, %v11470_v61  ;;  %v11973_v2 = vunpack.i.h.bf16 %v11971_v1  ;;  %v11972_v4 = vunpack.i.l.bf16 %v11971_v1 }
0x10e9   :  { %11475 = vmatpush3.bf16.xpose.msk.msra.mxu0 %vm13356_vm9, %v11470_v61 }
0x10ea   :  { %11482 = vmatprep.subr.msk.bf16.mxu0 %vm13356_vm9, %v11480_v0  ;;  %v11490_v8 = vpack.c.bf16 %v11973_v2, %v11972_v4 }
0x10eb   :  { %v2429_v10 = vpop.permute.xlu0 %2428  ;;  %v2795_v11 = vpop.permute.xlu1 %2794 }
0x10ef   :  { %v2793_v51 = vpop.permute.xlu0 %2792 }
0x10f0   :  { %10837 = vmatmul.mubr.msk.f32.vlgmr.msra.gmra.mrb[12].mxu0 %vm665_vm8, %v13506_v53 }
0x10f1   :  { %11485 = vmatpush3.bf16.xpose.msk.msra.mxu0 %vm13356_vm9, %v11480_v0  ;;  %10850 = vmatprep.mubr.msk.f32.mxu0 %vm665_vm8, %v2427_v52 }
0x10f2   :  { %11492 = vmatprep.subr.msk.bf16.mxu0 %vm13356_vm9, %v11490_v8 }
0x10f8   :  { %10851 = vmatmul.mubr.msk.f32.vlgmr.msra.gmra.mrb[14].mxu0 %vm665_vm8, %v2429_v10 }
0x10f9   :  { %11495 = vmatpush3.bf16.xpose.msk.msra.mxu0 %vm13356_vm9, %v11490_v8  ;;  %10874 = vmatprep.mubr.msk.f32.mxu0 %vm665_vm8, %v2793_v51 }
0x1100   :  { %10875 = vmatmul.mubr.msk.f32.vlgmr.msra.gmra.mrb[16].mxu0 %vm665_vm8, %v2795_v11 }
0x11c3   :  { %v10838_v13 = vpop.f32.mrb[12].mxu0 }
0x11c4   :  { %v2314_v14 = vmul.f32 0.35355338, %v10838_v13  ;;  %v2304_v15 = vpop.f32.mrb[13].mxu0 }
0x11c5   :  { %v2313_v3 = vmul.f32 0.35355338, %v2304_v15 }
0x11c6   :  { %v2316_v5 = vadd.f32 %v2314_v14, %v13379_v29 }
0x11c7   :  { %v2315_v16 = vadd.f32 %v2313_v3, %v13382_v32 }
0x11c8   :  { %v2320_v17 = vsel %vm416_vm0, %v2316_v5, -inf }
0x11c9   :  { %2321 = vmax.xlane.f32.xlu1 %v2320_v17  ;;  %v2317_v18 = vsel %vm416_vm0, %v2315_v16, -inf }
0x11ca   :  { %2318 = vmax.xlane.f32.xlu0 %v2317_v18 }
0x11cb   :  { %v10852_v21 = vpop.f32.mrb[14].mxu0 }
0x11cc   :  { %v2508_v22 = vpop.f32.mrb[15].mxu0  ;;  %v2518_v23 = vmul.f32 0.35355338, %v10852_v21 }
0x11cd   :  { %v2517_v24 = vmul.f32 0.35355338, %v2508_v22 }
0x11ce   :  { %v2520_v27 = vadd.f32 %v2518_v23, %v13379_v29 }
0x11cf   :  { %v2519_v25 = vadd.f32 %v2517_v24, %v13382_v32 }
0x11d0   :  { %v2524_v30 = vsel %vm416_vm0, %v2520_v27, -inf }
0x11d1   :  { %v2521_v26 = vsel %vm416_vm0, %v2519_v25, -inf }
0x11d2   :  { %2522 = vmax.xlane.f32.xlu0 %v2521_v26 }
0x11d3   :  { %v10876_v28 = vpop.f32.mrb[16].mxu0 }
0x11d4   :  { %v2874_v6 = vpop.f32.mrb[17].mxu0  ;;  %v2884_v57 = vmul.f32 0.35355338, %v10876_v28 }
0x11d5   :  { %v2883_v20 = vmul.f32 0.35355338, %v2874_v6 }
0x11d6   :  { %2525 = vmax.xlane.f32.xlu0 %v2524_v30  ;;  %v2886_v19 = vadd.f32 %v2884_v57, %v13379_v29 }
0x11d7   :  { %v2885_v58 = vadd.f32 %v2883_v20, %v13382_v32  ;;  %v12446_v20 = vld [vmem:[%s14404_s16] sm:$0xff] }
0x11d8   :  { %v2890_v60 = vsel %vm416_vm0, %v2886_v19, -inf }
0x11d9   :  { %v2887_v59 = vsel %vm416_vm0, %v2885_v58, -inf }
0x1256   :  { %v2322_v31 = vpop.xlane.xlu1 %2321 }
0x1257   :  { %v2324_v33 = vsub.f32 %v2316_v5, %v2322_v31  ;;  %v2319_v34 = vpop.xlane.xlu0 %2318 }
0x1258   :  { %v2323_v35 = vsub.f32 %v2315_v16, %v2319_v34 }
0x1259   :  { %v2327_v36 = vmul.f32 1.442695, %v2324_v33 }
0x125a   :  { %v2325_v37 = vmul.f32 1.442695, %v2323_v35 }
0x125b   :  { %12206 = vpow2.f32 %v2327_v36  ;;  %v10029_v36 = vld [vmem:[%s14405_s19 + $0x28] sm:$0xff] }
0x125c   :  { %12208 = vpow2.f32 %v2325_v37  ;;  %v10028_v37 = vld [vmem:[%s14405_s19 + $0x20] sm:$0xff] }
0x125f   :  { %v2523_v38 = vpop.xlane.xlu0 %2522 }
0x1260   :  { %v2527_v39 = vsub.f32 %v2519_v25, %v2523_v38 }
0x1262   :  { %v2529_v40 = vmul.f32 1.442695, %v2527_v39 }
0x1263   :  { %v2526_v41 = vpop.xlane.xlu0 %2525 }
0x1264   :  { %12210 = vpow2.f32 %v2529_v40  ;;  %v2528_v42 = vsub.f32 %v2520_v27, %v2526_v41 }
0x1265   :  { %v12207_v43 = vpop.eup %12206 }
0x1266   :  { %v12209_v44 = vpop.eup %12208  ;;  %v2531_v45 = vmul.f32 1.442695, %v2528_v42  ;;  %v2332_v46 = vsel %vm416_vm0, %v12207_v43, 0.0 }
0x1267   :  { %2333 = vadd.xlane.f32.xlu0 %v2332_v46  ;;  %v2329_v47 = vsel %vm416_vm0, %v12209_v44, 0.0 }
0x1268   :  { %12212 = vpow2.f32 %v2531_v45  ;;  %2330 = vadd.xlane.f32.xlu1 %v2329_v47 }
0x126e   :  { %v12211_v48 = vpop.eup %12210 }
0x126f   :  { %v2533_v49 = vsel %vm416_vm0, %v12211_v48, 0.0 }
0x1270   :  { %2534 = vadd.xlane.f32.xlu1 %v2533_v49 }
0x1272   :  { %v12213_v50 = vpop.eup %12212 }
0x1273   :  { %v2536_v54 = vsel %vm416_vm0, %v12213_v50, 0.0 }
0x1274   :  { %2537 = vadd.xlane.f32.xlu0 %v2536_v54 }
0x1281   :  { %11975 = vrot.lane.b32.xlu1 %v13514_v56, %s12894_s18 }
0x1285   :  { %11985 = vrot.lane.b32.xlu1 %v13514_v56, %s12895_s4 }
0x1289   :  { %3079 = vrot.lane.b32.xlu1 %v13508_v55, %s12896_s22 }
0x128a   :  { %11980 = vrot.lane.b32.xlu0 %v13514_v56, %s12893_s8 }
0x128e   :  { %3081 = vrot.lane.b32.xlu0 %v13506_v53, %s12896_s22 }
0x12ad   :  { %2888 = vmax.xlane.f32.xlu1 %v2887_v59  ;;  %2891 = vmax.xlane.f32.xlu0 %v2890_v60 }
0x12f4   :  { %v2334_v55 = vpop.xlane.xlu0 %2333 }
0x12f5   :  { %v2331_v61 = vpop.xlane.xlu1 %2330 }
0x12f6   :  { %12214 = vrcp.f32 %v2331_v61  ;;  %v12447_v61 = vld [vmem:[%s14404_s16 + $0x8] sm:$0xff]  ;;  %s14421_s16 = sld [smem:[#allocation58_spill]] }
0x12f7   :  { %12216 = vrcp.f32 %v2334_v55 }
0x12fd   :  { %v2535_v0 = vpop.xlane.xlu1 %2534 }
0x12fe   :  { %12218 = vrcp.f32 %v2535_v0 }
0x1300   :  { %v12215_v1 = vpop.eup %12214 }
0x1301   :  { %v11976_v53 = vpop.permute.xlu1 %11975  ;;  %v2538_v2 = vpop.xlane.xlu0 %2537  ;;  %v2336_v4 = vmul.f32 %v12215_v1, %v12209_v44 }
0x1302   :  { %v11978_v52 = vunpack.i.h.bf16 %v11976_v53  ;;  %v11977_v32 = vunpack.i.l.bf16 %v11976_v53  ;;  %12220 = vrcp.f32 %v2538_v2  ;;  %v12217_v8 = vpop.eup %12216  ;;  %v10030_v53 = vld [vmem:[%s14405_s19 + $0x30] sm:$0xff] }
0x1303   :  { %10843 = vmatprep.mubr.msk.f32.mxu1 %vm416_vm0, %v2336_v4  ;;  %v2338_v16 = vmul.f32 %v12217_v8, %v12207_v43 }
0x1304   :  { %v11476_v29 = vpack.c.bf16 %v11978_v52, %v11977_v32 }
0x1305   :  { %v11986_v10 = vpop.permute.xlu1 %11985  ;;  %v11981_v51 = vpop.permute.xlu0 %11980 }
0x1306   :  { %v11988_v11 = vunpack.i.h.bf16 %v11986_v10  ;;  %v11987_v13 = vunpack.i.l.bf16 %v11986_v10  ;;  %v11983_v14 = vunpack.i.h.bf16 %v11981_v51  ;;  %v11982_v15 = vunpack.i.l.bf16 %v11981_v51  ;;  %11477 = vmatprep.subr.bf16.mxu1 %v11476_v29 }
0x1307   :  { %11479 = vmatpush3.bf16.msra.mxu1 %v11476_v29 }
0x1308   :  { %v12219_v3 = vpop.eup %12218  ;;  %v11500_v5 = vpack.c.bf16 %v11988_v11, %v11987_v13  ;;  %v11486_v17 = vpack.c.bf16 %v11983_v14, %v11982_v15 }
0x1309   :  { %v3080_v18 = vpop.permute.xlu1 %3079  ;;  %v2540_v21 = vmul.f32 %v12219_v3, %v12211_v48  ;;  %v3082_v24 = vpop.permute.xlu0 %3081 }
0x130a   :  { %10844 = vmatmul.mubr.msk.f32.vlgmr.msra.gmra.mrb[16].mxu1 %vm416_vm0, %v2338_v16  ;;  %11487 = vmatprep.subr.bf16.mxu1 %v11486_v17 }
0x130b   :  { %11502 = vmatprep.subr.msk.bf16.mxu0 %vm13356_vm9, %v11500_v5  ;;  %10893 = vmatprep.mubr.msk.f32.mxu0 %vm665_vm8, %v3080_v18 }
0x130c   :  { %v12221_v22 = vpop.eup %12220  ;;  %11489 = vmatpush3.bf16.msra.mxu1 %v11486_v17  ;;  %10857 = vmatprep.mubr.msk.f32.mxu1 %vm416_vm0, %v2540_v21 }
0x130d   :  { %11505 = vmatpush3.bf16.xpose.msk.msra.mxu0 %vm13356_vm9, %v11500_v5  ;;  %v2542_v23 = vmul.f32 %v12221_v22, %v12213_v50  ;;  %10860 = vmatprep.subr.mxu1 %v10029_v36  ;;  %v10031_v22 = vld [vmem:[%s14405_s19 + $0x38] sm:$0xff]  ;;  %s14422_s19 = sld [smem:[#allocation61_spill]] }
0x130f   :  { %10858 = vmatmul.mubr.msk.f32.vlgmr.msra.gmra.mrb[18].mxu1 %vm416_vm0, %v2542_v23 }
0x1310   :  { %10861 = vmatpush3.msra.mxu1 %v10029_v36 }
0x1311   :  { %10865 = vmatprep.subr.mxu1 %v10028_v37 }
0x1314   :  { %10894 = vmatmul.mubr.msk.f32.vlgmr.msra.gmra.mrb[18].mxu0 %vm665_vm8, %v3082_v24 }
0x133a   :  { %v2889_v25 = vpop.xlane.xlu1 %2888  ;;  %v2892_v26 = vpop.xlane.xlu0 %2891 }
0x133b   :  { %v2893_v27 = vsub.f32 %v2885_v58, %v2889_v25  ;;  %v2894_v28 = vsub.f32 %v2886_v19, %v2892_v26 }
0x133d   :  { %v2895_v6 = vmul.f32 1.442695, %v2893_v27  ;;  %v2897_v30 = vmul.f32 1.442695, %v2894_v28  ;;  %v10065_v28 = vld [vmem:[%s14406_s26 + $0x1] ss:$0 sm:$0xff] }
0x133e   :  { %s14423_s26 = sld [smem:[#allocation42_spill]] }
0x133f   :  { %12222 = vpow2.f32 %v2895_v6 }
0x1340   :  { %12224 = vpow2.f32 %v2897_v30 }
0x1349   :  { %v12223_v31 = vpop.eup %12222 }
0x134a   :  { %v12225_v33 = vpop.eup %12224  ;;  %v2899_v34 = vsel %vm416_vm0, %v12223_v31, 0.0 }
0x134b   :  { %2900 = vadd.xlane.f32.xlu0 %v2899_v34  ;;  %v2902_v35 = vsel %vm416_vm0, %v12225_v33, 0.0 }
0x134c   :  { %2903 = vadd.xlane.f32.xlu1 %v2902_v35 }
0x1361   :  { %11990 = vrot.lane.b32.xlu0 %v13514_v56, %s12897_s23 }
0x13d8   :  { %v2901_v38 = vpop.xlane.xlu0 %2900 }
0x13d9   :  { %v2904_v42 = vpop.xlane.xlu1 %2903  ;;  %12226 = vrcp.f32 %v2901_v38  ;;  %v3695_v38 = vld [vmem:[%s14413_s1 + $0x8] sm:$0xff] }
0x13da   :  { %12228 = vrcp.f32 %v2904_v42 }
0x13dc   :  { %v11991_v40 = vpop.permute.xlu0 %11990 }
0x13dd   :  { %v10845_v39 = vpop.f32.mrb[16].mxu1  ;;  %v11993_v43 = vunpack.i.h.bf16 %v11991_v40  ;;  %v11992_v44 = vunpack.i.l.bf16 %v11991_v40 }
0x13de   :  { %v2417_v41 = vpop.f32.mrb[17].mxu1 }
0x13df   :  { %v11496_v47 = vpack.c.bf16 %v11993_v43, %v11992_v44 }
0x13e2   :  { %v10859_v45 = vpop.f32.mrb[18].mxu1 }
0x13e3   :  { %v2621_v46 = vpop.f32.mrb[19].mxu1  ;;  %v12227_v57 = vpop.eup %12226 }
0x13e4   :  { %10862 = vmatprep.mubr.msk.f32.mxu1 %vm665_vm8, %v2621_v46  ;;  %v12229_v19 = vpop.eup %12228  ;;  %v2906_v60 = vmul.f32 %v12227_v57, %v12223_v31  ;;  %v10073_v57 = vld [vmem:[%s14407_s21 + $0x38] sm:$0xff] }
0x13e5   :  { %10863 = vmatmul.mubr.msk.f32.vlgmr.msra.gmra.mrb[20].mxu1 %vm665_vm8, %v10859_v45  ;;  %v2908_v0 = vmul.f32 %v12229_v19, %v12225_v33  ;;  %v3697_v19 = vld [vmem:[%s14414_s24 + $0x8] sm:$0xff] }
0x13e6   :  { %10866 = vmatpush3.msra.mxu1 %v10028_v37  ;;  %10867 = vmatprep.mubr.msk.f32.mxu1 %vm665_vm8, %v2417_v41 }
0x13e7   :  { %v10895_v48 = vpop.f32.mrb[18].mxu0  ;;  %11497 = vmatprep.subr.bf16.mxu1 %v11496_v47 }
0x13e8   :  { %v3161_v49 = vpop.f32.mrb[19].mxu0  ;;  %v3171_v50 = vmul.f32 0.35355338, %v10895_v48  ;;  %v10070_v48 = vld [vmem:[%s14407_s21 + $0x20] sm:$0xff] }
0x13e9   :  { %v3170_v54 = vmul.f32 0.35355338, %v3161_v49  ;;  %v10071_v49 = vld [vmem:[%s14407_s21 + $0x28] sm:$0xff] }
0x13ea   :  { %v3173_v55 = vadd.f32 %v12447_v61, %v3171_v50  ;;  %v10072_v50 = vld [vmem:[%s14407_s21 + $0x30] sm:$0xff]  ;;  %v10076_v61 = vld [vmem:[%s14408_s27 + $0x48] sm:$0xff]  ;;  %s14424_s21 = sld [smem:[#allocation63_spill]] }
0x13eb   :  { %v3172_v58 = vadd.f32 %v12446_v20, %v3170_v54  ;;  %v11510_v54 = vpack.c.bf16 %v10071_v49, %v10070_v48  ;;  %v11514_v20 = vpack.c.bf16 %v10073_v57, %v10072_v50  ;;  %v3698_v48 = vld [vmem:[%s14415_s2] sm:$0xff] }
0x13ec   :  { %v3177_v1 = vsel %vm416_vm0, %v3173_v55, -inf }
0x13ed   :  { %v3174_v59 = vsel %vm416_vm0, %v3172_v58, -inf  ;;  %10868 = vmatmul.mubr.msk.f32.vlgmr.msra.gmra.mrb[20].mxu1 %vm665_vm8, %v10845_v39  ;;  %11511 = vmatprep.subr.bf16.mxu0 %v11510_v54 }
0x13ee   :  { %3175 = vmax.xlane.f32.xlu1 %v3174_v59  ;;  %11499 = vmatpush3.bf16.msra.mxu1 %v11496_v47  ;;  %v3694_v47 = vld [vmem:[%s14413_s1] sm:$0xff] }
0x13ef   :  { %10881 = vmatprep.mubr.msk.f32.mxu1 %vm416_vm0, %v2906_v60  ;;  %10884 = vmatprep.subr.mxu1 %v10030_v53  ;;  %v10075_v60 = vld [vmem:[%s14408_s27 + $0x40] sm:$0xff] }
0x13f0   :  { %11513 = vmatpush3.bf16.msra.mxu0 %v11510_v54 }
0x13f1   :  { %10882 = vmatmul.mubr.msk.f32.vlgmr.msra.gmra.mrb[22].mxu1 %vm416_vm0, %v2908_v0  ;;  %11515 = vmatprep.subr.bf16.mxu0 %v11514_v20  ;;  %v11518_v0 = vpack.c.bf16 %v10076_v61, %v10075_v60 }
0x13f2   :  { %3178 = vmax.xlane.f32.xlu1 %v3177_v1  ;;  %10885 = vmatpush3.msra.mxu1 %v10030_v53  ;;  %v10078_v1 = vld [vmem:[%s14408_s27 + $0x58] sm:$0xff] }
0x13f4   :  { %11517 = vmatpush3.bf16.msra.mxu0 %v11514_v20 }
0x147b   :  { %v3176_v2 = vpop.xlane.xlu1 %3175 }
0x147c   :  { %v3180_v4 = vsub.f32 %v3172_v58, %v3176_v2  ;;  %v3696_v58 = vld [vmem:[%s14414_s24] sm:$0xff] }
0x147d   :  { %v11534_v59 = vpack.c.bf16 %v3697_v19, %v3696_v58  ;;  %v10079_v2 = vld [vmem:[%s14408_s27 + $0x60] sm:$0xff] }
0x147e   :  { %v3182_v29 = vmul.f32 1.442695, %v3180_v4  ;;  %v10080_v4 = vld [vmem:[%s14408_s27 + $0x68] sm:$0xff] }
0x147f   :  { %v3179_v52 = vpop.xlane.xlu1 %3178  ;;  %11535 = vmatprep.subr.bf16.mxu0 %v11534_v59 }
0x1480   :  { %v3181_v32 = vsub.f32 %v3173_v55, %v3179_v52  ;;  %v10077_v55 = vld [vmem:[%s14408_s27 + $0x50] sm:$0xff]  ;;  %v11526_v52 = vpack.c.bf16 %v10080_v4, %v10079_v2 }
0x1481   :  { %v11522_v53 = vpack.c.bf16 %v10078_v1, %v10077_v55 }
0x1482   :  { %v3184_v8 = vmul.f32 1.442695, %v3181_v32 }
0x1484   :  { %12230 = vpow2.f32 %v3184_v8 }
0x1485   :  { %12232 = vpow2.f32 %v3182_v29 }
0x148e   :  { %v12231_v10 = vpop.eup %12230 }
0x148f   :  { %v3189_v51 = vsel %vm416_vm0, %v12231_v10, 0.0  ;;  %v12233_v11 = vpop.eup %12232 }
0x1490   :  { %3190 = vadd.xlane.f32.xlu1 %v3189_v51  ;;  %v3186_v13 = vsel %vm416_vm0, %v12233_v11, 0.0 }
0x1494   :  { %3187 = vadd.xlane.f32.xlu1 %v3186_v13 }
0x14a5   :  { %11995 = vrot.lane.b32.xlu1 %v13514_v56, %s12898_s20 }
0x14c4   :  { %v10883_v14 = vpop.f32.mrb[22].mxu1 }
0x14c5   :  { %v2987_v15 = vpop.f32.mrb[23].mxu1 }
0x14c6   :  { %10886 = vmatprep.mubr.msk.f32.mxu1 %vm665_vm8, %v2987_v15 }
0x14c7   :  { %10887 = vmatmul.mubr.msk.f32.vlgmr.msra.gmra.mrb[20].mxu1 %vm665_vm8, %v10883_v14 }
0x151d   :  { %v3191_v3 = vpop.xlane.xlu1 %3190 }
0x151e   :  { %12234 = vrcp.f32 %v3191_v3 }
0x1521   :  { %v3188_v5 = vpop.xlane.xlu1 %3187 }
0x1522   :  { %12236 = vrcp.f32 %v3188_v5 }
0x1525   :  { %v11996_v16 = vpop.permute.xlu1 %11995 }
0x1526   :  { %v11998_v17 = vunpack.i.h.bf16 %v11996_v16  ;;  %v11997_v18 = vunpack.i.l.bf16 %v11996_v16 }
0x1528   :  { %v11506_v21 = vpack.c.bf16 %v11998_v17, %v11997_v18  ;;  %v12235_v23 = vpop.eup %12234 }
0x1529   :  { %v3195_v25 = vmul.f32 %v12235_v23, %v12231_v10  ;;  %v10068_v23 = vld [vmem:[%s14409_s30 + $0x1] ss:$0 sm:$0xff]  ;;  %s14426_s30 = sld [smem:[#allocation65_spill]] }
0x152a   :  { %11507 = vmatprep.subr.bf16.mxu1 %v11506_v21 }
0x152b   :  { %11509 = vmatpush3.bf16.msra.mxu1 %v11506_v21 }
0x152c   :  { %v12237_v56 = vpop.eup %12236  ;;  %10903 = vmatprep.subr.mxu1 %v10031_v22 }
0x152d   :  { %v3193_v24 = vmul.f32 %v12237_v56, %v12233_v11 }
0x152f   :  { %10900 = vmatprep.mubr.msk.f32.mxu1 %vm416_vm0, %v3193_v24 }
0x1530   :  { %10901 = vmatmul.mubr.msk.f32.vlgmr.msra.gmra.mrb[24].mxu1 %vm416_vm0, %v3195_v25  ;;  %v10069_v25 = vld [vmem:[%s14410_s25 + $0x1] ss:$0 sm:$0xff] }
0x1531   :  { %10904 = vmatpush3.msra.mxu1 %v10031_v22 }
0x1532   :  { %11519 = vmatprep.subr.bf16.mxu1 %v11518_v0 }
0x1603   :  { %v10902_v26 = vpop.f32.mrb[24].mxu1 }
0x1604   :  { %v3274_v27 = vpop.f32.mrb[25].mxu1 }
0x1605   :  { %10905 = vmatprep.mubr.msk.f32.mxu1 %vm665_vm8, %v3274_v27 }
0x1606   :  { %10906 = vmatmul.mubr.msk.f32.vlgmr.msra.gmra.mrb[20].mxu1 %vm665_vm8, %v10902_v26 }
0x1607   :  { %11521 = vmatpush3.bf16.msra.mxu1 %v11518_v0 }
0x1608   :  { %11523 = vmatprep.subr.bf16.mxu1 %v11522_v53 }
0x160b   :  { %11525 = vmatpush3.bf16.msra.mxu1 %v11522_v53 }
0x160c   :  { %11527 = vmatprep.subr.bf16.mxu1 %v11526_v52 }
0x160f   :  { %11529 = vmatpush3.bf16.msra.mxu1 %v11526_v52  ;;  %v3855_v52 = vld [vmem:[%s14416_s13] sm:$0xff] }
0x16d9   :  { %v10907_v6 = vpop.f32.mrb[20].mxu1 }
0x16da   :  { %v3373_v30 = vadd.f32 %v10907_v6, %v10065_v28  ;;  %v3355_v31 = vpop.f32.mrb[21].mxu1 }
0x16db   :  { %v3372_v33 = vadd.f32 %v10065_v28, %v3355_v31 }
0x16dc   :  { %v13614_v34 = vadd.f32 %v3373_v30, %v13487_v63 }
0x16dd   :  { %v13617_v35 = vadd.f32 %v3372_v33, %v13484_v62 }
0x16de   :  { %v3383_v36 = vsel %vm504_vm3, %v13614_v34, 0.0 }
0x16df   :  { %3384 = vadd.xlane.f32.xlu1 %v3383_v36  ;;  %v3380_v37 = vsel %vm504_vm3, %v13617_v35, 0.0 }
0x16e0   :  { %3381 = vadd.xlane.f32.xlu0 %v3380_v37 }
0x16f0   :  { %3704 = vperm.xlu1 %11999, %v3695_v38  }
0x176c   :  { %v3385_v39 = vpop.xlane.xlu1 %3384 }
0x176d   :  { %v3387_v63 = vmul.f32 0.03125, %v3385_v39  ;;  %v3382_v40 = vpop.xlane.xlu0 %3381  ;;  %v10081_v39 = vld [vmem:[%s14408_s27 + $0x70] sm:$0xff] }
0x176e   :  { %v3386_v62 = vmul.f32 0.03125, %v3382_v40 }
0x176f   :  { %v13625_v41 = vsub.f32 %v13614_v34, %v3387_v63  ;;  %v10082_v63 = vld [vmem:[%s14408_s27 + $0x78] sm:$0xff]  ;;  %s14425_s27 = sld [smem:[#allocation64_spill]] }
0x1770   :  { %v13628_v42 = vsub.f32 %v13617_v35, %v3386_v62  ;;  %v3705_v31 = vpop.permute.xlu1 %3704  ;;  %v11530_v40 = vpack.c.bf16 %v10082_v63, %v10081_v39  ;;  %v10084_v62 = vld [vmem:[%s14411_s28 + $0x1] ss:$0 sm:$0xff] }
0x1771   :  { %v3391_v45 = vmul.f32 %v13625_v41, %v13625_v41  ;;  %v3421_v27 = vmul.f32 %v10068_v23, %v13625_v41  ;;  %vm3707_vm12 = vcmp.eq.s32.totalorder %v13299_v7, %v3705_v31  ;;  %v10096_v31 = vld [vmem:[#allocation2] ss:$0 sm:$0xff] }
0x1772   :  { %v3390_v43 = vmul.f32 %v13628_v42, %v13628_v42  ;;  %v3420_v56 = vmul.f32 %v10068_v23, %v13628_v42  ;;  %v10093_v38 = vsel %vm3707_vm12, 1.0, %v12887_v9  ;;  %11531 = vmatprep.subr.bf16.mxu1 %v11530_v40 }
0x1773   :  { %v3395_v46 = vsel %vm504_vm3, %v3391_v45, 0.0  ;;  %11533 = vmatpush3.bf16.msra.mxu1 %v11530_v40  ;;  %v3699_v45 = vld [vmem:[%s14415_s2 + $0x8] sm:$0xff] }
0x1774   :  { %v3392_v44 = vsel %vm504_vm3, %v3390_v43, 0.0 }
0x1775   :  { %3393 = vadd.xlane.f32.xlu0 %v3392_v44 }
0x1779   :  { %3396 = vadd.xlane.f32.xlu0 %v3395_v46 }
0x178f   :  { %3701 = vperm.xlu0 %11918, %v3694_v47  }
0x1802   :  { %v3394_v32 = vpop.xlane.xlu0 %3393 }
0x1803   :  { %v3398_v29 = vmul.f32 0.032258064, %v3394_v32  ;;  %v3856_v32 = vld [vmem:[%s14416_s13 + $0x8] sm:$0xff] }
0x1805   :  { %12238 = vrsqrt.f32 %v3398_v29  ;;  %vm3402_vm5 = vcmp.eq.f32.partialorder %v3398_v29, inf  ;;  %v3405_v13 = vand.u32 2147483648, %v3398_v29  ;;  %vm3404_vm6 = vcmp.eq.f32.partialorder %v3398_v29, 0.0 }
0x1806   :  { %v3397_v8 = vpop.xlane.xlu0 %3396 }
0x1807   :  { %v3399_v10 = vmul.f32 0.032258064, %v3397_v8  ;;  %v11538_v8 = vpack.c.bf16 %v3856_v32, %v3855_v52 }
0x1809   :  { %12240 = vrsqrt.f32 %v3399_v10  ;;  %vm3409_vm7 = vcmp.eq.f32.partialorder %v3399_v10, inf  ;;  %v3412_v17 = vand.u32 2147483648, %v3399_v10  ;;  %vm3411_vm10 = vcmp.eq.f32.partialorder %v3399_v10, 0.0 }
0x180e   :  { %v3702_v28 = vpop.permute.xlu0 %3701 }
0x180f   :  { %v12239_v51 = vpop.eup %12238  ;;  %vm3706_vm11 = vcmp.eq.s32.totalorder %v13299_v7, %v3702_v28 }
0x1810   :  { %v3401_v11 = vmul.f32 %v12239_v51, %v3398_v29  ;;  %v10092_v37 = vsel %vm3706_vm11, 1.0, %v12887_v9 }
0x1812   :  { %v3403_v14 = vsel %vm3402_vm5, %v3398_v29, %v3401_v11  ;;  %v3857_v29 = vld [vmem:[%s14416_s13 + $0x10] sm:$0xff]  ;;  %v13685_v11 = vld [vmem:[%s14412_s0 + $0x1] ss:$0 sm:$0xff] }
0x1813   :  { %v12241_v15 = vpop.eup %12240  ;;  %v3406_v3 = vsel %vm3404_vm6, %v3405_v13, %v3403_v14 }
0x1814   :  { %v3408_v5 = vmul.f32 %v12241_v15, %v3399_v10  ;;  %v3422_v16 = vadd.f32 1e-06, %v3406_v3 }
0x1816   :  { %v3410_v18 = vsel %vm3409_vm7, %v3399_v10, %v3408_v5  ;;  %12242 = vrcp.f32 %v3422_v16  ;;  %v3858_v10 = vld [vmem:[%s14416_s13 + $0x18] sm:$0xff] }
0x1817   :  { %v3413_v21 = vsel %vm3411_vm10, %v3412_v17, %v3410_v18  ;;  %v11542_v51 = vpack.c.bf16 %v3858_v10, %v3857_v29 }
0x1818   :  { %v3423_v22 = vadd.f32 1e-06, %v3413_v21 }
0x181a   :  { %12244 = vrcp.f32 %v3423_v22 }
0x1820   :  { %v12243_v24 = vpop.eup %12242 }
0x1821   :  { %v3425_v26 = vmul.f32 %v12243_v24, %v3420_v56 }
0x1823   :  { %v3434_v6 = vadd.f32 %v10069_v25, %v3425_v26 }
0x1824   :  { %v12245_v30 = vpop.eup %12244 }
0x1825   :  { %v3427_v33 = vmul.f32 %v12245_v30, %v3421_v27  ;;  %10916 = vmatprep.mubr.msk.f32.mxu0 %vm504_vm3, %v3434_v6 }
0x1827   :  { %v3435_v36 = vadd.f32 %v10069_v25, %v3427_v33 }
0x1829   :  { %10917 = vmatmul.mubr.msk.f32.vlgmr.msra.gmra.mrb[20].mxu0 %vm504_vm3, %v3435_v36 }
0x182a   :  { %11537 = vmatpush3.bf16.msra.mxu0 %v11534_v59  ;;  %10942 = vmatprep.mubr.msk.f32.mxu0 %vm416_vm0, %v10092_v37  ;;  %v10097_v37 = vld [vmem:[#allocation5] ss:$0 sm:$0xff] }
0x182b   :  { %11539 = vmatprep.subr.bf16.mxu0 %v11538_v8 }
0x182d   :  { %10943 = vmatmul.mubr.msk.f32.vlgmr.msra.gmra.mrb[22].mxu0 %vm416_vm0, %v10093_v38 }
0x182e   :  { %11541 = vmatpush3.bf16.msra.mxu0 %v11538_v8 }
0x182f   :  { %11543 = vmatprep.subr.bf16.mxu0 %v11542_v51 }
0x1832   :  { %11545 = vmatpush3.bf16.msra.mxu0 %v11542_v51 }
0x18fc   :  { %v10918_v7 = vpop.f32.mrb[20].mxu0 }
0x18fd   :  { %v3538_v41 = vadd.f32 %v10918_v7, %v10084_v62  ;;  %v3532_v42 = vpop.f32.mrb[21].mxu0 }
0x18fe   :  { %v3533_v43 = vadd.f32 %v10084_v62, %v3532_v42 }
0x18ff   :  { %v3542_v47 = vmax.f32 %v3538_v41, 0.0  ;;  %v10098_v41 = vld [vmem:[#allocation7] ss:$0 sm:$0xff] }
0x1900   :  { %v3541_v44 = vmax.f32 %v3533_v43, 0.0  ;;  %v10944_v46 = vpop.f32.mrb[22].mxu0 }
0x1901   :  { %v3794_v9 = vmul.f32 5.656854, %v10944_v46  ;;  %v3784_v49 = vpop.f32.mrb[23].mxu0 }
0x1902   :  { %v3793_v50 = vmul.f32 5.656854, %v3784_v49  ;;  %10935 = vmatprep.mubr.msk.f32.mxu1 %vm1979_vm14, %v3541_v44 }
0x1903   :  { %v13667_v54 = vadd.f32 %v3794_v9, %v3699_v45  ;;  %10936 = vmatmul.mubr.msk.f32.vlgmr.msra.gmra.mrb[26].mxu1 %vm1979_vm14, %v3542_v47 }
0x1904   :  { %v13670_v57 = vadd.f32 %v3793_v50, %v3698_v48 }
0x1905   :  { %v3802_v20 = vsel %vm504_vm3, %v13667_v54, 0.0 }
0x1906   :  { %3803 = vadd.xlane.f32.xlu1 %v3802_v20  ;;  %v3799_v58 = vsel %vm504_vm3, %v13670_v57, 0.0 }
0x1907   :  { %3800 = vadd.xlane.f32.xlu0 %v3799_v58  ;;  %v13723_v58 = vld [vmem:[%s14417_s7] sm:$0xff] }
0x1993   :  { %v3804_v19 = vpop.xlane.xlu1 %3803 }
0x1994   :  { %v3806_v59 = vmul.f32 0.03125, %v3804_v19  ;;  %v3801_v60 = vpop.xlane.xlu0 %3800 }
0x1995   :  { %v3805_v61 = vmul.f32 0.03125, %v3801_v60  ;;  %v13726_v60 = vld [vmem:[%s14417_s7 + $0x8] sm:$0xff] }
0x1996   :  { %v3808_v55 = vsub.f32 %v13667_v54, %v3806_v59 }
0x1997   :  { %v3807_v0 = vsub.f32 %v13670_v57, %v3805_v61 }
0x1998   :  { %v3810_v2 = vmul.f32 %v3808_v55, %v3808_v55  ;;  %v3840_v39 = vmul.f32 %v10096_v31, %v3808_v55 }
0x1999   :  { %v3809_v1 = vmul.f32 %v3807_v0, %v3807_v0  ;;  %v3839_v33 = vmul.f32 %v10096_v31, %v3807_v0 }
0x199a   :  { %v3814_v4 = vsel %vm504_vm3, %v3810_v2, 0.0 }
0x199b   :  { %v3811_v53 = vsel %vm504_vm3, %v3809_v1, 0.0 }
0x199c   :  { %3812 = vadd.xlane.f32.xlu0 %v3811_v53 }
0x19a0   :  { %3815 = vadd.xlane.f32.xlu0 %v3814_v4 }
0x19d6   :  { %v10937_v13 = vpop.f32.mrb[26].mxu1 }
0x19d7   :  { %v13688_v14 = vadd.f32 %v10937_v13, %v13685_v11  ;;  %v13690_v15 = vpop.f32.mrb[27].mxu1 }
0x1a29   :  { %v3813_v3 = vpop.xlane.xlu0 %3812 }
0x1a2a   :  { %v3817_v5 = vmul.f32 0.032258064, %v3813_v3 }
0x1a2c   :  { %12246 = vrsqrt.f32 %v3817_v5  ;;  %vm3821_vm13 = vcmp.eq.f32.partialorder %v3817_v5, inf  ;;  %v3824_v22 = vand.u32 2147483648, %v3817_v5  ;;  %vm3823_vm15 = vcmp.eq.f32.partialorder %v3817_v5, 0.0 }
0x1a2d   :  { %v3816_v16 = vpop.xlane.xlu0 %3815 }
0x1a2e   :  { %v3818_v17 = vmul.f32 0.032258064, %v3816_v16 }
0x1a30   :  { %12248 = vrsqrt.f32 %v3818_v17  ;;  %vm3828_vm1 = vcmp.eq.f32.partialorder %v3818_v17, inf  ;;  %v3831_v27 = vand.u32 2147483648, %v3818_v17  ;;  %vm3830_vm2 = vcmp.eq.f32.partialorder %v3818_v17, 0.0 }
0x1a36   :  { %v12247_v18 = vpop.eup %12246 }
0x1a37   :  { %v3820_v21 = vmul.f32 %v12247_v18, %v3817_v5 }
0x1a39   :  { %v3822_v23 = vsel %vm3821_vm13, %v3817_v5, %v3820_v21 }
0x1a3a   :  { %v12249_v56 = vpop.eup %12248  ;;  %v3825_v24 = vsel %vm3823_vm15, %v3824_v22, %v3822_v23 }
0x1a3b   :  { %v3827_v25 = vmul.f32 %v12249_v56, %v3818_v17  ;;  %v3841_v26 = vadd.f32 1e-06, %v3825_v24 }
0x1a3d   :  { %v3829_v28 = vsel %vm3828_vm1, %v3818_v17, %v3827_v25  ;;  %12250 = vrcp.f32 %v3841_v26 }
0x1a3e   :  { %v3832_v6 = vsel %vm3830_vm2, %v3831_v27, %v3829_v28 }
0x1a3f   :  { %v3842_v30 = vadd.f32 1e-06, %v3832_v6 }
0x1a41   :  { %12252 = vrcp.f32 %v3842_v30 }
0x1a47   :  { %v12251_v36 = vpop.eup %12250 }
0x1a48   :  { %v3844_v38 = vmul.f32 %v12251_v36, %v3839_v33 }
0x1a4a   :  { %v3853_v63 = vadd.f32 %v10097_v37, %v3844_v38 }
0x1a4b   :  { %v12253_v40 = vpop.eup %12252 }
0x1a4c   :  { %v3846_v62 = vmul.f32 %v12253_v40, %v3840_v39  ;;  %10953 = vmatprep.mubr.msk.f32.mxu0 %vm504_vm3, %v3853_v63 }
0x1a4e   :  { %v3854_v7 = vadd.f32 %v10097_v37, %v3846_v62 }
0x1a50   :  { %10954 = vmatmul.mubr.msk.f32.vlgmr.msra.gmra.mrb[24].mxu0 %vm504_vm3, %v3854_v7 }
0x1b23   :  { %v10955_v42 = vpop.f32.mrb[24].mxu0 }
0x1b24   :  { %v13694_v43 = vadd.f32 %v10955_v42, %v10098_v41  ;;  %v3938_v44 = vpop.f32.mrb[25].mxu0 }
0x1b25   :  { %v13696_v45 = vadd.f32 %v10098_v41, %v3938_v44 }
0x1b27   :  { %10960 = vmatprep.mubr.msk.f32.mxu0 %vm665_vm8, %v13696_v45  ;;  %v13702_v46 = vpack.i.bf16 %v13694_v43, %v13696_v45 }
0x1b29   :  { %12001 = vrot.lane.b32.xlu0 %v13702_v46, %s12889_s6 }
0x1b2d   :  { %12011 = vrot.lane.b32.xlu0 %v13702_v46, %s12890_s17 }
0x1b31   :  { %4154 = vrot.lane.b32.xlu0 %v13696_v45, %s12891_s12 }
0x1b35   :  { %4156 = vrot.lane.b32.xlu0 %v13694_v43, %s12891_s12 }
0x1b39   :  { %12016 = vrot.lane.b32.xlu0 %v13702_v46, %s12888_s9 }
0x1b3d   :  { %4522 = vrot.lane.b32.xlu0 %v13694_v43, %s12892_s15 }
0x1b9b   :  { %v12002_v47 = vpop.permute.xlu0 %12001 }
0x1b9c   :  { %v12004_v9 = vunpack.i.h.bf16 %v12002_v47  ;;  %v12003_v48 = vunpack.i.l.bf16 %v12002_v47 }
0x1b9e   :  { %v11546_v49 = vpack.c.bf16 %v12004_v9, %v12003_v48 }
0x1b9f   :  { %v12012_v3 = vpop.permute.xlu0 %12011 }
0x1ba0   :  { %11548 = vmatprep.subr.msk.bf16.mxu0 %vm13356_vm9, %v11546_v49  ;;  %v12014_v21 = vunpack.i.h.bf16 %v12012_v3  ;;  %v12013_v22 = vunpack.i.l.bf16 %v12012_v3 }
0x1ba1   :  { %11551 = vmatpush3.bf16.xpose.msk.msra.mxu0 %vm13356_vm9, %v11546_v49 }
0x1ba2   :  { %v11556_v26 = vpack.c.bf16 %v12014_v21, %v12013_v22 }
0x1ba3   :  { %v4155_v16 = vpop.permute.xlu0 %4154 }
0x1ba7   :  { %v4157_v23 = vpop.permute.xlu0 %4156 }
0x1ba8   :  { %10961 = vmatmul.mubr.msk.f32.vlgmr.msra.gmra.mrb[26].mxu0 %vm665_vm8, %v13694_v43 }
0x1bab   :  { %v12017_v6 = vpop.permute.xlu0 %12016 }
0x1bac   :  { %v12019_v33 = vunpack.i.h.bf16 %v12017_v6  ;;  %v12018_v36 = vunpack.i.l.bf16 %v12017_v6 }
0x1bae   :  { %v11566_v37 = vpack.c.bf16 %v12019_v33, %v12018_v36 }
0x1baf   :  { %v4523_v39 = vpop.permute.xlu0 %4522 }
0x1c7b   :  { %v10962_v50 = vpop.f32.mrb[26].mxu0 }
0x1c7c   :  { %v4032_v20 = vpop.f32.mrb[27].mxu0  ;;  %v4042_v19 = vmul.f32 0.35355338, %v10962_v50 }
0x1c7d   :  { %v4041_v59 = vmul.f32 0.35355338, %v4032_v20 }
0x1c7e   :  { %v4044_v0 = vadd.f32 %v4042_v19, %v13726_v60 }
0x1c7f   :  { %v4043_v61 = vadd.f32 %v4041_v59, %v13723_v58 }
0x1c80   :  { %v4048_v1 = vsel %vm416_vm0, %v4044_v0, -inf }
0x1c81   :  { %v4045_v55 = vsel %vm416_vm0, %v4043_v61, -inf }
0x1c82   :  { %4046 = vmax.xlane.f32.xlu1 %v4045_v55 }
0x1c86   :  { %4049 = vmax.xlane.f32.xlu1 %v4048_v1 }
0x1d0f   :  { %v4047_v53 = vpop.xlane.xlu1 %4046 }
0x1d10   :  { %v4051_v2 = vsub.f32 %v4043_v61, %v4047_v53 }
0x1d12   :  { %v4053_v32 = vmul.f32 1.442695, %v4051_v2 }
0x1d13   :  { %v4050_v4 = vpop.xlane.xlu1 %4049 }
0x1d14   :  { %v4052_v52 = vsub.f32 %v4044_v0, %v4050_v4 }
0x1d16   :  { %v4055_v29 = vmul.f32 1.442695, %v4052_v52 }
0x1d18   :  { %12254 = vpow2.f32 %v4055_v29 }
0x1d19   :  { %12256 = vpow2.f32 %v4053_v32 }
0x1d22   :  { %v12255_v8 = vpop.eup %12254 }
0x1d23   :  { %v4060_v10 = vsel %vm416_vm0, %v12255_v8, 0.0  ;;  %v12257_v51 = vpop.eup %12256 }
0x1d24   :  { %4061 = vadd.xlane.f32.xlu1 %v4060_v10  ;;  %v4057_v13 = vsel %vm416_vm0, %v12257_v51, 0.0 }
0x1d28   :  { %4058 = vadd.xlane.f32.xlu1 %v4057_v13 }
0x1d39   :  { %12006 = vrot.lane.b32.xlu1 %v13702_v46, %s12894_s18 }
0x1d3d   :  { %4520 = vrot.lane.b32.xlu1 %v13696_v45, %s12892_s15 }
0x1db1   :  { %v4062_v5 = vpop.xlane.xlu1 %4061 }
0x1db2   :  { %12258 = vrcp.f32 %v4062_v5 }
0x1db5   :  { %v4059_v17 = vpop.xlane.xlu1 %4058 }
0x1db6   :  { %12260 = vrcp.f32 %v4059_v17 }
0x1db9   :  { %v12007_v18 = vpop.permute.xlu1 %12006 }
0x1dba   :  { %v12009_v56 = vunpack.i.h.bf16 %v12007_v18  ;;  %v12008_v24 = vunpack.i.l.bf16 %v12007_v18 }
0x1dbc   :  { %v11552_v25 = vpack.c.bf16 %v12009_v56, %v12008_v24  ;;  %v12259_v27 = vpop.eup %12258 }
0x1dbd   :  { %v4066_v31 = vmul.f32 %v12259_v27, %v12255_v8  ;;  %v4521_v38 = vpop.permute.xlu1 %4520 }
0x1dbe   :  { %11553 = vmatprep.subr.bf16.mxu1 %v11552_v25 }
0x1dbf   :  { %11555 = vmatpush3.bf16.msra.mxu1 %v11552_v25 }
0x1dc0   :  { %v12261_v28 = vpop.eup %12260  ;;  %11558 = vmatprep.subr.msk.bf16.mxu1 %vm13356_vm9, %v11556_v26 }
0x1dc1   :  { %v4064_v30 = vmul.f32 %v12261_v28, %v12257_v51 }
0x1dc3   :  { %10967 = vmatprep.mubr.msk.f32.mxu1 %vm416_vm0, %v4064_v30 }
0x1dc4   :  { %10968 = vmatmul.mubr.msk.f32.vlgmr.msra.gmra.mrb[28].mxu1 %vm416_vm0, %v4066_v31 }
0x1dc5   :  { %10974 = vmatprep.mubr.msk.f32.mxu1 %vm665_vm8, %v4155_v16 }
0x1dc8   :  { %11561 = vmatpush3.bf16.xpose.msk.msra.mxu1 %vm13356_vm9, %v11556_v26 }
0x1dc9   :  { %11568 = vmatprep.subr.msk.bf16.mxu1 %vm13356_vm9, %v11566_v37 }
0x1dcf   :  { %10975 = vmatmul.mubr.msk.f32.vlgmr.msra.gmra.mrb[30].mxu1 %vm665_vm8, %v4157_v23 }
0x1dd0   :  { %11571 = vmatpush3.bf16.xpose.msk.msra.mxu1 %vm13356_vm9, %v11566_v37  ;;  %10998 = vmatprep.mubr.msk.f32.mxu1 %vm665_vm8, %v4521_v38 }
0x1dd7   :  { %10999 = vmatmul.mubr.msk.f32.vlgmr.msra.gmra.mrb[32].mxu1 %vm665_vm8, %v4523_v39 }
0x1e97   :  { %v13752_v63 = vpop.f32.mrb[28].mxu1 }
0x1e98   :  { %v13754_v40 = vpop.f32.mrb[29].mxu1 }
0x1ea2   :  { %v10976_v62 = vpop.f32.mrb[30].mxu1 }
0x1ea3   :  { %v4246_v7 = vmul.f32 0.35355338, %v10976_v62  ;;  %v4236_v41 = vpop.f32.mrb[31].mxu1 }
0x1ea4   :  { %v4245_v42 = vmul.f32 0.35355338, %v4236_v41  ;;  %v3947_v41 = vld [vmem:[%s14418_s10] sm:$0xff] }
0x1ea5   :  { %v4248_v44 = vadd.f32 %v4246_v7, %v13726_v60  ;;  %v3948_v7 = vld [vmem:[%s14418_s10 + $0x8] sm:$0xff] }
0x1ea6   :  { %v4247_v47 = vadd.f32 %v4245_v42, %v13723_v58  ;;  %v3622_v42 = vadd.f32 %v13685_v11, %v13690_v15 }
0x1ea7   :  { %v4252_v9 = vsel %vm416_vm0, %v4248_v44, -inf }
0x1ea8   :  { %4253 = vmax.xlane.f32.xlu0 %v4252_v9  ;;  %v4249_v48 = vsel %vm416_vm0, %v4247_v47, -inf }
0x1ea9   :  { %4250 = vmax.xlane.f32.xlu1 %v4249_v48 }
0x1eaa   :  { %v11000_v49 = vpop.f32.mrb[32].mxu1 }
0x1eab   :  { %v4602_v50 = vpop.f32.mrb[33].mxu1  ;;  %v4612_v32 = vmul.f32 0.35355338, %v11000_v49 }
0x1eac   :  { %v4611_v52 = vmul.f32 0.35355338, %v4602_v50 }
0x1ead   :  { %v4614_v8 = vadd.f32 %v4612_v32, %v13726_v60 }
0x1eae   :  { %v4613_v29 = vadd.f32 %v4611_v52, %v13723_v58 }
0x1eaf   :  { %v4618_v51 = vsel %vm416_vm0, %v4614_v8, -inf }
0x1eb0   :  { %v4615_v10 = vsel %vm416_vm0, %v4613_v29, -inf }
0x1f35   :  { %v4254_v20 = vpop.xlane.xlu0 %4253 }
0x1f36   :  { %v4256_v19 = vsub.f32 %v4248_v44, %v4254_v20  ;;  %v4251_v59 = vpop.xlane.xlu1 %4250  ;;  %v13791_v44 = vadd.f32 %v3622_v42, %v13617_v35 }
0x1f37   :  { %v4255_v61 = vsub.f32 %v4247_v47, %v4251_v59 }
0x1f38   :  { %v4259_v55 = vmul.f32 1.442695, %v4256_v19  ;;  %v3634_v47 = vsel %vm504_vm3, %v13791_v44, 0.0 }
0x1f39   :  { %v4257_v0 = vmul.f32 1.442695, %v4255_v61 }
0x1f3a   :  { %12262 = vpow2.f32 %v4259_v55 }
0x1f3b   :  { %12264 = vpow2.f32 %v4257_v0 }
0x1f44   :  { %v12263_v1 = vpop.eup %12262 }
0x1f45   :  { %v12265_v53 = vpop.eup %12264  ;;  %v4264_v2 = vsel %vm416_vm0, %v12263_v1, 0.0 }
0x1f46   :  { %4265 = vadd.xlane.f32.xlu1 %v4264_v2  ;;  %v4261_v4 = vsel %vm416_vm0, %v12265_v53, 0.0 }
0x1f47   :  { %4262 = vadd.xlane.f32.xlu0 %v4261_v4 }
0x1f57   :  { %12026 = vrot.lane.b32.xlu1 %v13702_v46, %s12895_s4 }
0x1f5b   :  { %4807 = vrot.lane.b32.xlu1 %v13696_v45, %s12896_s22 }
0x1f5d   :  { %12021 = vrot.lane.b32.xlu0 %v13702_v46, %s12893_s8 }
0x1f61   :  { %4809 = vrot.lane.b32.xlu0 %v13694_v43, %s12896_s22 }
0x1f7f   :  { %4616 = vmax.xlane.f32.xlu1 %v4615_v10 }
0x1f80   :  { %4619 = vmax.xlane.f32.xlu0 %v4618_v51 }
0x1fd3   :  { %v4266_v13 = vpop.xlane.xlu1 %4265 }
0x1fd4   :  { %12266 = vrcp.f32 %v4266_v13  ;;  %v4263_v45 = vpop.xlane.xlu0 %4262 }
0x1fd5   :  { %12268 = vrcp.f32 %v4263_v45 }
0x1fd7   :  { %v12027_v3 = vpop.permute.xlu1 %12026 }
0x1fd8   :  { %v12029_v5 = vunpack.i.h.bf16 %v12027_v3  ;;  %v12028_v16 = vunpack.i.l.bf16 %v12027_v3  ;;  %v12022_v43 = vpop.permute.xlu0 %12021 }
0x1fd9   :  { %v12024_v17 = vunpack.i.h.bf16 %v12022_v43  ;;  %v12023_v18 = vunpack.i.l.bf16 %v12022_v43 }
0x1fda   :  { %v11576_v21 = vpack.c.bf16 %v12029_v5, %v12028_v16  ;;  %v3631_v16 = vadd.f32 %v13688_v14, %v13614_v34 }
0x1fdb   :  { %v4808_v22 = vpop.permute.xlu1 %4807  ;;  %v11562_v23 = vpack.c.bf16 %v12024_v17, %v12023_v18 }
0x1fdc   :  { %11578 = vmatprep.subr.msk.bf16.mxu1 %vm13356_vm9, %v11576_v21  ;;  %11017 = vmatprep.mubr.msk.f32.mxu1 %vm665_vm8, %v4808_v22  ;;  %v4810_v27 = vpop.permute.xlu0 %4809  ;;  %v3637_v18 = vsel %vm504_vm3, %v3631_v16, 0.0 }
0x1fdd   :  { %11563 = vmatprep.subr.bf16.mxu0 %v11562_v23  ;;  %11581 = vmatpush3.bf16.xpose.msk.msra.mxu1 %vm13356_vm9, %v11576_v21 }
0x1fde   :  { %v12267_v56 = vpop.eup %12266  ;;  %11565 = vmatpush3.bf16.msra.mxu0 %v11562_v23 }
0x1fdf   :  { %v12269_v24 = vpop.eup %12268  ;;  %v4270_v26 = vmul.f32 %v12267_v56, %v12263_v1  ;;  %10984 = vmatprep.subr.mxu0 %v3948_v7 }
0x1fe0   :  { %v4268_v25 = vmul.f32 %v12269_v24, %v12265_v53 }
0x1fe2   :  { %10981 = vmatprep.mubr.msk.f32.mxu0 %vm416_vm0, %v4268_v25  ;;  %v3950_v25 = vld [vmem:[%s14418_s10 + $0x18] sm:$0xff] }
0x1fe3   :  { %10982 = vmatmul.mubr.msk.f32.vlgmr.msra.gmra.mrb[28].mxu0 %vm416_vm0, %v4270_v26 }
0x1fe4   :  { %11018 = vmatmul.mubr.msk.f32.vlgmr.msra.gmra.mrb[34].mxu1 %vm665_vm8, %v4810_v27  ;;  %10985 = vmatpush3.msra.mxu0 %v3948_v7 }
0x1fe5   :  { %10989 = vmatprep.subr.mxu0 %v3947_v41 }
0x200c   :  { %v4617_v28 = vpop.xlane.xlu1 %4616 }
0x200d   :  { %v4621_v6 = vsub.f32 %v4613_v29, %v4617_v28  ;;  %v4620_v30 = vpop.xlane.xlu0 %4619 }
0x200e   :  { %v4622_v31 = vsub.f32 %v4614_v8, %v4620_v30 }
0x200f   :  { %v4623_v33 = vmul.f32 1.442695, %v4621_v6 }
0x2010   :  { %v4625_v36 = vmul.f32 1.442695, %v4622_v31  ;;  %v10133_v31 = vld [vmem:[#allocation8] ss:$0 sm:$0xff] }
0x2011   :  { %12270 = vpow2.f32 %v4623_v33 }
0x2012   :  { %12272 = vpow2.f32 %v4625_v36 }
0x201b   :  { %v12271_v37 = vpop.eup %12270 }
0x201c   :  { %v12273_v38 = vpop.eup %12272  ;;  %v4627_v39 = vsel %vm416_vm0, %v12271_v37, 0.0 }
0x201d   :  { %4628 = vadd.xlane.f32.xlu0 %v4627_v39  ;;  %v4630_v62 = vsel %vm416_vm0, %v12273_v38, 0.0 }
0x201e   :  { %4631 = vadd.xlane.f32.xlu1 %v4630_v62 }
0x2033   :  { %12031 = vrot.lane.b32.xlu0 %v13702_v46, %s12897_s23 }
0x2052   :  { %3635 = vadd.xlane.f32.xlu0 %v3634_v47 }
0x20aa   :  { %v4629_v9 = vpop.xlane.xlu0 %4628 }
0x20ab   :  { %12274 = vrcp.f32 %v4629_v9  ;;  %v4632_v49 = vpop.xlane.xlu1 %4631 }
0x20ac   :  { %12276 = vrcp.f32 %v4632_v49 }
0x20ae   :  { %v12032_v48 = vpop.permute.xlu0 %12031 }
0x20af   :  { %v12034_v50 = vunpack.i.h.bf16 %v12032_v48  ;;  %v12033_v20 = vunpack.i.l.bf16 %v12032_v48 }
0x20b1   :  { %v11572_v35 = vpack.c.bf16 %v12034_v50, %v12033_v20 }
0x20b5   :  { %v12275_v1 = vpop.eup %12274 }
0x20b6   :  { %v10983_v19 = vpop.f32.mrb[28].mxu0  ;;  %v12277_v4 = vpop.eup %12276  ;;  %v4634_v52 = vmul.f32 %v12275_v1, %v12271_v37 }
0x20b7   :  { %v4349_v59 = vpop.f32.mrb[29].mxu0  ;;  %v11019_v61 = vpop.f32.mrb[34].mxu1  ;;  %v4636_v32 = vmul.f32 %v12277_v4, %v12273_v38 }
0x20b8   :  { %10986 = vmatprep.mubr.msk.f32.mxu0 %vm665_vm8, %v4349_v59  ;;  %v4889_v11 = vpop.f32.mrb[35].mxu1  ;;  %v4899_v55 = vmul.f32 0.35355338, %v11019_v61  ;;  %v5256_v59 = vld [vmem:[%s14419_s29 + $0x10] sm:$0xff] }
0x20b9   :  { %v4898_v15 = vmul.f32 0.35355338, %v4889_v11  ;;  %10987 = vmatmul.mubr.msk.f32.vlgmr.msra.gmra.mrb[30].mxu0 %vm665_vm8, %v10983_v19  ;;  %v5255_v19 = vld [vmem:[%s14419_s29 + $0x8] sm:$0xff]  ;;  %v5257_v11 = vld [vmem:[%s14419_s29 + $0x18] sm:$0xff] }
0x20ba   :  { %10990 = vmatpush3.msra.mxu0 %v3947_v41  ;;  %10991 = vmatprep.mubr.msk.f32.mxu0 %vm665_vm8, %v13754_v40  ;;  %v4901_v2 = vadd.f32 %v4899_v55, %v13726_v60 }
0x20bb   :  { %v4900_v0 = vadd.f32 %v4898_v15, %v13723_v58  ;;  %11573 = vmatprep.subr.bf16.mxu0 %v11572_v35  ;;  %v3949_v58 = vld [vmem:[%s14418_s10 + $0x10] sm:$0xff]  ;;  %v11598_v15 = vpack.c.bf16 %v5257_v11, %v5256_v59 }
0x20bc   :  { %v4905_v40 = vsel %vm416_vm0, %v4901_v2, -inf }
0x20bd   :  { %v4902_v53 = vsel %vm416_vm0, %v4900_v0, -inf }
0x20be   :  { %4903 = vmax.xlane.f32.xlu1 %v4902_v53 }
0x20c1   :  { %10992 = vmatmul.mubr.msk.f32.vlgmr.msra.gmra.mrb[30].mxu0 %vm665_vm8, %v13752_v63 }
0x20c2   :  { %11575 = vmatpush3.bf16.msra.mxu0 %v11572_v35  ;;  %11005 = vmatprep.mubr.msk.f32.mxu0 %vm416_vm0, %v4634_v52 }
0x20c3   :  { %4906 = vmax.xlane.f32.xlu1 %v4905_v40  ;;  %11008 = vmatprep.subr.mxu0 %v3949_v58 }
0x20c5   :  { %11006 = vmatmul.mubr.msk.f32.vlgmr.msra.gmra.mrb[32].mxu0 %vm416_vm0, %v4636_v32 }
0x20c6   :  { %11009 = vmatpush3.msra.mxu0 %v3949_v58 }
0x20df   :  { %v3636_v30 = vpop.xlane.xlu0 %3635 }
0x20e0   :  { %v3640_v37 = vmul.f32 0.03125, %v3636_v30 }
0x20e2   :  { %v3642_v41 = vsub.f32 %v13791_v44, %v3640_v37 }
0x20e4   :  { %v3644_v50 = vmul.f32 %v3642_v41, %v3642_v41 }
0x214b   :  { %v4904_v29 = vpop.xlane.xlu1 %4903 }
0x214c   :  { %v4908_v60 = vsub.f32 %v4900_v0, %v4904_v29 }
0x214e   :  { %v4910_v51 = vmul.f32 1.442695, %v4908_v60 }
0x2150   :  { %v4907_v8 = vpop.xlane.xlu1 %4906 }
0x2151   :  { %v4909_v10 = vsub.f32 %v4901_v2, %v4907_v8 }
0x2153   :  { %v4912_v13 = vmul.f32 1.442695, %v4909_v10 }
0x2155   :  { %12278 = vpow2.f32 %v4912_v13 }
0x2156   :  { %12280 = vpow2.f32 %v4910_v51 }
0x215f   :  { %v12279_v63 = vpop.eup %12278 }
0x2160   :  { %v4917_v45 = vsel %vm416_vm0, %v12279_v63, 0.0  ;;  %v12281_v3 = vpop.eup %12280 }
0x2161   :  { %4918 = vadd.xlane.f32.xlu1 %v4917_v45  ;;  %v4914_v5 = vsel %vm416_vm0, %v12281_v3, 0.0 }
0x2165   :  { %4915 = vadd.xlane.f32.xlu1 %v4914_v5 }
0x2176   :  { %12036 = vrot.lane.b32.xlu1 %v13702_v46, %s12898_s20 }
0x2198   :  { %v11007_v43 = vpop.f32.mrb[32].mxu0 }
0x2199   :  { %v4715_v17 = vpop.f32.mrb[33].mxu0 }
0x219a   :  { %3638 = vadd.xlane.f32.xlu1 %v3637_v18  ;;  %11010 = vmatprep.mubr.msk.f32.mxu0 %vm665_vm8, %v4715_v17 }
0x219b   :  { %11011 = vmatmul.mubr.msk.f32.vlgmr.msra.gmra.mrb[30].mxu0 %vm665_vm8, %v11007_v43 }
0x21ee   :  { %v4919_v21 = vpop.xlane.xlu1 %4918 }
0x21ef   :  { %12282 = vrcp.f32 %v4919_v21 }
0x21f2   :  { %v4916_v22 = vpop.xlane.xlu1 %4915 }
0x21f3   :  { %12284 = vrcp.f32 %v4916_v22  ;;  %v10090_v22 = vld [vmem:[%s14420_s11] ss:$0 sm:$0xff] }
0x21f6   :  { %v12037_v23 = vpop.permute.xlu1 %12036 }
0x21f7   :  { %v12039_v56 = vunpack.i.h.bf16 %v12037_v23  ;;  %v12038_v46 = vunpack.i.l.bf16 %v12037_v23  ;;  %v3674_v23 = vmul.f32 %v10090_v22, %v3642_v41 }
0x21f9   :  { %v11582_v24 = vpack.c.bf16 %v12039_v56, %v12038_v46  ;;  %v12283_v34 = vpop.eup %12282  ;;  %v10091_v46 = vld [vmem:[%s14421_s16] ss:$0 sm:$0xff] }
0x21fa   :  { %v4923_v27 = vmul.f32 %v12283_v34, %v12279_v63 }
0x21fb   :  { %11583 = vmatprep.subr.bf16.mxu0 %v11582_v24 }
0x21fc   :  { %11585 = vmatpush3.bf16.msra.mxu0 %v11582_v24 }
0x21fd   :  { %v12285_v14 = vpop.eup %12284  ;;  %11027 = vmatprep.subr.mxu0 %v3950_v25 }
0x21fe   :  { %v4921_v26 = vmul.f32 %v12285_v14, %v12281_v3 }
0x2200   :  { %11024 = vmatprep.mubr.msk.f32.mxu0 %vm416_vm0, %v4921_v26 }
0x2201   :  { %11025 = vmatmul.mubr.msk.f32.vlgmr.msra.gmra.mrb[34].mxu0 %vm416_vm0, %v4923_v27  ;;  %v5162_v27 = vld [vmem:[%s14422_s19] sm:$0xff] }
0x2202   :  { %11028 = vmatpush3.msra.mxu0 %v3950_v25 }
0x2227   :  { %v3639_v62 = vpop.xlane.xlu1 %3638 }
0x2228   :  { %v3641_v42 = vmul.f32 0.03125, %v3639_v62 }
0x222a   :  { %v3643_v48 = vsub.f32 %v3631_v16, %v3641_v42 }
0x222c   :  { %v3645_v20 = vmul.f32 %v3643_v48, %v3643_v48  ;;  %v3675_v25 = vmul.f32 %v10090_v22, %v3643_v48 }
0x222e   :  { %v3649_v44 = vsel %vm504_vm3, %v3645_v20, 0.0 }
0x22d4   :  { %v11026_v28 = vpop.f32.mrb[34].mxu0 }
0x22d5   :  { %v5002_v6 = vpop.f32.mrb[35].mxu0 }
0x22d6   :  { %11029 = vmatprep.mubr.msk.f32.mxu0 %vm665_vm8, %v5002_v6  ;;  %v5164_v6 = vld [vmem:[%s14422_s19 + $0x10] sm:$0xff] }
0x22d7   :  { %11030 = vmatmul.mubr.msk.f32.vlgmr.msra.gmra.mrb[30].mxu0 %vm665_vm8, %v11026_v28  ;;  %v5163_v28 = vld [vmem:[%s14422_s19 + $0x8] sm:$0xff] }
0x23aa   :  { %v11031_v33 = vpop.f32.mrb[30].mxu0 }
0x23ab   :  { %v5083_v36 = vpop.f32.mrb[31].mxu0  ;;  %v5101_v38 = vadd.f32 %v11031_v33, %v10133_v31  ;;  %v5165_v33 = vld [vmem:[%s14422_s19 + $0x18] sm:$0xff] }
0x23ac   :  { %v5100_v39 = vadd.f32 %v10133_v31, %v5083_v36  ;;  %v11586_v31 = vpack.c.bf16 %v5163_v28, %v5162_v27  ;;  %v11590_v36 = vpack.c.bf16 %v5165_v33, %v5164_v6  ;;  %v13911_v27 = vld [vmem:[%s14423_s26] sm:$0xff] }
0x23ad   :  { %v13827_v47 = vadd.f32 %v5101_v38, %v13667_v54  ;;  %v5254_v54 = vld [vmem:[%s14419_s29] sm:$0xff] }
0x23ae   :  { %v13823_v7 = vadd.f32 %v5100_v39, %v13670_v57  ;;  %v3646_v57 = vsel %vm504_vm3, %v3644_v50, 0.0  ;;  %v11594_v61 = vpack.c.bf16 %v5255_v19, %v5254_v54  ;;  %11587 = vmatprep.subr.bf16.mxu1 %v11586_v31 }
0x23af   :  { %v5109_v49 = vsel %vm504_vm3, %v13827_v47, 0.0  ;;  %11589 = vmatpush3.bf16.msra.mxu1 %v11586_v31 }
0x23b0   :  { %v5106_v9 = vsel %vm504_vm3, %v13823_v7, 0.0  ;;  %11595 = vmatprep.subr.bf16.mxu0 %v11594_v61  ;;  %11591 = vmatprep.subr.bf16.mxu1 %v11590_v36 }
0x23b1   :  { %5107 = vadd.xlane.f32.xlu0 %v5106_v9  ;;  %11597 = vmatpush3.bf16.msra.mxu0 %v11594_v61  ;;  %v10134_v61 = vld [vmem:[#allocation10] ss:$0 sm:$0xff] }
0x23b2   :  { %11599 = vmatprep.subr.bf16.mxu0 %v11598_v15 }
0x23b3   :  { %11593 = vmatpush3.bf16.msra.mxu1 %v11590_v36 }
0x23b5   :  { %5110 = vadd.xlane.f32.xlu0 %v5109_v49  ;;  %11601 = vmatpush3.bf16.msra.mxu0 %v11598_v15 }
0x23b9   :  { %3647 = vadd.xlane.f32.xlu0 %v3646_v57 }
0x23bd   :  { %3650 = vadd.xlane.f32.xlu0 %v3649_v44 }
0x243e   :  { %v5108_v35 = vpop.xlane.xlu0 %5107 }
0x243f   :  { %v5112_v55 = vmul.f32 0.03125, %v5108_v35  ;;  %v10135_v35 = vld [vmem:[#allocation11] ss:$0 sm:$0xff] }
0x2441   :  { %v13840_v0 = vsub.f32 %v13823_v7, %v5112_v55 }
0x2442   :  { %v5111_v1 = vpop.xlane.xlu0 %5110 }
0x2443   :  { %v5113_v53 = vmul.f32 0.03125, %v5111_v1  ;;  %v5116_v2 = vmul.f32 %v13840_v0, %v13840_v0  ;;  %v5146_v11 = vmul.f32 %v10134_v61, %v13840_v0 }
0x2445   :  { %v13845_v4 = vsub.f32 %v13827_v47, %v5113_v53  ;;  %v5118_v52 = vsel %vm504_vm3, %v5116_v2, 0.0 }
0x2446   :  { %5119 = vadd.xlane.f32.xlu0 %v5118_v52  ;;  %v3648_v40 = vpop.xlane.xlu0 %3647 }
0x2447   :  { %v3652_v32 = vmul.f32 0.032258064, %v3648_v40  ;;  %v5117_v58 = vmul.f32 %v13845_v4, %v13845_v4  ;;  %v5147_v53 = vmul.f32 %v10134_v61, %v13845_v4 }
0x2449   :  { %12286 = vrsqrt.f32 %v3652_v32  ;;  %v5121_v29 = vsel %vm504_vm3, %v5117_v58, 0.0  ;;  %vm3656_vm4 = vcmp.eq.f32.partialorder %v3652_v32, inf  ;;  %v3659_v13 = vand.u32 2147483648, %v3652_v32 }
0x244a   :  { %v3651_v60 = vpop.xlane.xlu0 %3650  ;;  %5122 = vadd.xlane.f32.xlu1 %v5121_v29  ;;  %vm3658_vm5 = vcmp.eq.f32.partialorder %v3652_v32, 0.0 }
0x244b   :  { %v3653_v8 = vmul.f32 0.032258064, %v3651_v60 }
0x244d   :  { %12288 = vrsqrt.f32 %v3653_v8  ;;  %vm3663_vm6 = vcmp.eq.f32.partialorder %v3653_v8, inf  ;;  %v3666_v43 = vand.u32 2147483648, %v3653_v8  ;;  %vm3665_vm7 = vcmp.eq.f32.partialorder %v3653_v8, 0.0 }
0x2453   :  { %v12287_v10 = vpop.eup %12286 }
0x2454   :  { %v3655_v51 = vmul.f32 %v12287_v10, %v3652_v32 }
0x2456   :  { %v3657_v63 = vsel %vm3656_vm4, %v3652_v32, %v3655_v51  ;;  %v10139_v32 = vld [vmem:[#allocation14] ss:$0 sm:$0xff] }
0x2457   :  { %v12289_v45 = vpop.eup %12288  ;;  %v3660_v3 = vsel %vm3658_vm5, %v3659_v13, %v3657_v63 }
0x2458   :  { %v3662_v5 = vmul.f32 %v12289_v45, %v3653_v8  ;;  %v3676_v16 = vadd.f32 1e-06, %v3660_v3  ;;  %v10136_v3 = vld [vmem:[#allocation13] ss:$0 sm:$0xff] }
0x245a   :  { %v3664_v17 = vsel %vm3663_vm6, %v3653_v8, %v3662_v5  ;;  %12290 = vrcp.f32 %v3676_v16 }
0x245b   :  { %v3667_v18 = vsel %vm3665_vm7, %v3666_v43, %v3664_v17 }
0x245c   :  { %v3677_v21 = vadd.f32 1e-06, %v3667_v18 }
0x245e   :  { %12292 = vrcp.f32 %v3677_v21 }
0x2464   :  { %v12291_v56 = vpop.eup %12290 }
0x2465   :  { %v3679_v24 = vmul.f32 %v12291_v56, %v3674_v23 }
0x2467   :  { %v13853_v34 = vadd.f32 %v10091_v46, %v3679_v24 }
0x2468   :  { %v12293_v14 = vpop.eup %12292 }
0x2469   :  { %v3681_v26 = vmul.f32 %v12293_v14, %v3675_v25  ;;  %11051 = vmatprep.mubr.msk.f32.mxu0 %vm504_vm3, %v13853_v34  ;;  %v13908_v25 = vld [vmem:[%s14423_s26 + $0x8] sm:$0xff] }
0x246b   :  { %v13860_v30 = vadd.f32 %v10091_v46, %v3681_v26 }
0x246d   :  { %11052 = vmatmul.mubr.msk.f32.vlgmr.msra.gmra.mrb[36].mxu0 %vm504_vm3, %v13860_v30 }
0x24d3   :  { %v5120_v37 = vpop.xlane.xlu0 %5119 }
0x24d4   :  { %v5124_v38 = vmul.f32 0.032258064, %v5120_v37 }
0x24d6   :  { %12294 = vrsqrt.f32 %v5124_v38  ;;  %vm5128_vm10 = vcmp.eq.f32.partialorder %v5124_v38, inf  ;;  %v5131_v9 = vand.u32 2147483648, %v5124_v38  ;;  %vm5130_vm11 = vcmp.eq.f32.partialorder %v5124_v38, 0.0 }
0x24d7   :  { %v5123_v39 = vpop.xlane.xlu1 %5122 }
0x24d8   :  { %v5125_v62 = vmul.f32 0.032258064, %v5123_v39 }
0x24da   :  { %12296 = vrsqrt.f32 %v5125_v62  ;;  %vm5135_vm12 = vcmp.eq.f32.partialorder %v5125_v62, inf  ;;  %v5138_v44 = vand.u32 2147483648, %v5125_v62  ;;  %vm5137_vm13 = vcmp.eq.f32.partialorder %v5125_v62, 0.0 }
0x24e0   :  { %v12295_v41 = vpop.eup %12294 }
0x24e1   :  { %v5127_v42 = vmul.f32 %v12295_v41, %v5124_v38 }
0x24e3   :  { %v5129_v48 = vsel %vm5128_vm10, %v5124_v38, %v5127_v42 }
0x24e4   :  { %v5132_v49 = vsel %vm5130_vm11, %v5131_v9, %v5129_v48  ;;  %v12297_v50 = vpop.eup %12296 }
0x24e5   :  { %v5148_v57 = vadd.f32 1e-06, %v5132_v49  ;;  %v5134_v20 = vmul.f32 %v12297_v50, %v5125_v62 }
0x24e7   :  { %12298 = vrcp.f32 %v5148_v57  ;;  %v5136_v54 = vsel %vm5135_vm12, %v5125_v62, %v5134_v20 }
0x24e8   :  { %v5139_v19 = vsel %vm5137_vm13, %v5138_v44, %v5136_v54 }
0x24e9   :  { %v5149_v59 = vadd.f32 1e-06, %v5139_v19 }
0x24eb   :  { %12300 = vrcp.f32 %v5149_v59 }
0x24f1   :  { %v12299_v15 = vpop.eup %12298 }
0x24f2   :  { %v5151_v55 = vmul.f32 %v12299_v15, %v5146_v11 }
0x24f4   :  { %v5160_v1 = vadd.f32 %v10135_v35, %v5151_v55 }
0x24f5   :  { %v12301_v2 = vpop.eup %12300 }
0x24f6   :  { %11040 = vmatprep.mubr.msk.f32.mxu1 %vm504_vm3, %v5160_v1  ;;  %v5153_v52 = vmul.f32 %v12301_v2, %v5147_v53 }
0x24f8   :  { %v5161_v40 = vadd.f32 %v10135_v35, %v5153_v52 }
0x24fa   :  { %11041 = vmatmul.mubr.msk.f32.vlgmr.msra.gmra.mrb[36].mxu1 %vm504_vm3, %v5161_v40 }
0x2540   :  { %v11053_v58 = vpop.f32.mrb[36].mxu0 }
0x2541   :  { %v5343_v29 = vadd.f32 %v11053_v58, %v10139_v32  ;;  %v5337_v60 = vpop.f32.mrb[37].mxu0 }
0x2542   :  { %v5338_v8 = vadd.f32 %v10139_v32, %v5337_v60 }
0x2544   :  { %v13869_v10 = vpack.i.bf16 %v5343_v29, %v5338_v8  ;;  %v11602_v0 = vpack.c.bf16 %v5343_v29, %v5338_v8 }
0x2546   :  { %12041 = vrot.lane.b32.xlu0 %v13869_v10, %s12891_s12  ;;  %11604 = vmatprep.subr.msk.bf16.mxu1 %vm13356_vm9, %v11602_v0 }
0x2547   :  { %11607 = vmatpush3.bf16.xpose.msk.msra.mxu1 %vm13356_vm9, %v11602_v0 }
0x254a   :  { %12046 = vrot.lane.b32.xlu0 %v13869_v10, %s12892_s15 }
0x25b8   :  { %v12042_v4 = vpop.permute.xlu0 %12041 }
0x25b9   :  { %v12044_v51 = vunpack.i.h.bf16 %v12042_v4  ;;  %v12043_v13 = vunpack.i.l.bf16 %v12042_v4 }
0x25bb   :  { %v11612_v63 = vpack.c.bf16 %v12044_v51, %v12043_v13 }
0x25bc   :  { %v12047_v45 = vpop.permute.xlu0 %12046 }
0x25bd   :  { %11614 = vmatprep.subr.msk.bf16.mxu1 %vm13356_vm9, %v11612_v63  ;;  %v12049_v16 = vunpack.i.h.bf16 %v12047_v45  ;;  %v12048_v43 = vunpack.i.l.bf16 %v12047_v45 }
0x25bf   :  { %v11622_v22 = vpack.c.bf16 %v12049_v16, %v12048_v43 }
0x25cd   :  { %v11042_v5 = vpop.f32.mrb[36].mxu1 }
0x25ce   :  { %v13881_v17 = vadd.f32 %v11042_v5, %v10136_v3  ;;  %v5245_v18 = vpop.f32.mrb[37].mxu1 }
0x25cf   :  { %v13883_v21 = vadd.f32 %v10136_v3, %v5245_v18 }
0x25d0   :  { %5919 = vrot.lane.b32.xlu0 %v13881_v17, %s12892_s15 }
0x25d1   :  { %5551 = vrot.lane.b32.xlu1 %v13883_v21, %s12891_s12  ;;  %11058 = vmatprep.mubr.msk.f32.mxu1 %vm665_vm8, %v13883_v21 }
0x25d2   :  { %11059 = vmatmul.mubr.msk.f32.vlgmr.msra.gmra.mrb[38].mxu1 %vm665_vm8, %v13881_v17 }
0x25d3   :  { %11617 = vmatpush3.bf16.xpose.msk.msra.mxu1 %vm13356_vm9, %v11612_v63 }
0x25d4   :  { %11624 = vmatprep.subr.msk.bf16.mxu1 %vm13356_vm9, %v11622_v22 }
0x25d5   :  { %5553 = vrot.lane.b32.xlu1 %v13881_v17, %s12891_s12 }
0x25d9   :  { %5917 = vrot.lane.b32.xlu1 %v13883_v21, %s12892_s15 }
0x2642   :  { %v5920_v24 = vpop.permute.xlu0 %5919 }
0x2643   :  { %v5552_v23 = vpop.permute.xlu1 %5551 }
0x2644   :  { %11072 = vmatprep.mubr.msk.f32.mxu1 %vm665_vm8, %v5552_v23 }
0x2647   :  { %v5554_v56 = vpop.permute.xlu1 %5553 }
0x2648   :  { %11073 = vmatmul.mubr.msk.f32.vlgmr.msra.gmra.mrb[40].mxu1 %vm665_vm8, %v5554_v56 }
0x2649   :  { %11627 = vmatpush3.bf16.xpose.msk.msra.mxu1 %vm13356_vm9, %v11622_v22 }
0x264b   :  { %v5918_v46 = vpop.permute.xlu1 %5917 }
0x264c   :  { %11096 = vmatprep.mubr.msk.f32.mxu1 %vm665_vm8, %v5918_v46 }
0x2650   :  { %11097 = vmatmul.mubr.msk.f32.vlgmr.msra.gmra.mrb[42].mxu1 %vm665_vm8, %v5920_v24 }
0x26a5   :  { %v11060_v14 = vpop.f32.mrb[38].mxu1 }
0x26a6   :  { %v5439_v26 = vmul.f32 0.35355338, %v11060_v14  ;;  %v5429_v28 = vpop.f32.mrb[39].mxu1 }
0x26a7   :  { %v5438_v6 = vmul.f32 0.35355338, %v5429_v28 }
0x26a8   :  { %v5441_v31 = vadd.f32 %v5439_v26, %v13908_v25 }
0x26a9   :  { %v5440_v33 = vadd.f32 %v5438_v6, %v13911_v27 }
0x26aa   :  { %v5445_v36 = vsel %vm416_vm0, %v5441_v31, -inf }
0x26ab   :  { %5446 = vmax.xlane.f32.xlu0 %v5445_v36  ;;  %v5442_v37 = vsel %vm416_vm0, %v5440_v33, -inf }
0x26ac   :  { %5443 = vmax.xlane.f32.xlu1 %v5442_v37 }
0x271b   :  { %v11074_v38 = vpop.f32.mrb[40].mxu1 }
0x271c   :  { %v5643_v39 = vmul.f32 0.35355338, %v11074_v38  ;;  %v5633_v62 = vpop.f32.mrb[41].mxu1 }
0x271d   :  { %v5642_v41 = vmul.f32 0.35355338, %v5633_v62 }
0x271e   :  { %v5645_v42 = vadd.f32 %v5643_v39, %v13908_v25 }
0x271f   :  { %v5644_v9 = vadd.f32 %v5642_v41, %v13911_v27 }
0x2720   :  { %v5649_v48 = vsel %vm416_vm0, %v5645_v42, -inf }
0x2721   :  { %5650 = vmax.xlane.f32.xlu1 %v5649_v48  ;;  %v5646_v49 = vsel %vm416_vm0, %v5644_v9, -inf }
0x2722   :  { %5647 = vmax.xlane.f32.xlu0 %v5646_v49 }
0x2723   :  { %v11098_v50 = vpop.f32.mrb[42].mxu1 }
0x2724   :  { %v5999_v57 = vpop.f32.mrb[43].mxu1  ;;  %v6009_v63 = vmul.f32 0.35355338, %v11098_v50 }
0x2725   :  { %v6008_v13 = vmul.f32 0.35355338, %v5999_v57 }
0x2726   :  { %v6011_v3 = vadd.f32 %v6009_v63, %v13908_v25 }
0x2727   :  { %v6010_v45 = vadd.f32 %v6008_v13, %v13911_v27 }
0x2728   :  { %v6015_v16 = vsel %vm416_vm0, %v6011_v3, -inf }
0x2729   :  { %v6012_v5 = vsel %vm416_vm0, %v6010_v45, -inf }
0x2738   :  { %v5447_v20 = vpop.xlane.xlu0 %5446 }
0x2739   :  { %v5449_v44 = vsub.f32 %v5441_v31, %v5447_v20  ;;  %v5444_v54 = vpop.xlane.xlu1 %5443 }
0x273a   :  { %v5448_v19 = vsub.f32 %v5440_v33, %v5444_v54 }
0x273b   :  { %v5452_v59 = vmul.f32 1.442695, %v5449_v44 }
0x273c   :  { %v5450_v61 = vmul.f32 1.442695, %v5448_v19 }
0x273d   :  { %12302 = vpow2.f32 %v5452_v59 }
0x273e   :  { %12304 = vpow2.f32 %v5450_v61  ;;  %v5347_v61 = vld [vmem:[%s14424_s21 + $0x8] sm:$0xff] }
0x2747   :  { %v13921_v11 = vpop.eup %12302 }
0x2748   :  { %v12305_v15 = vpop.eup %12304  ;;  %v5457_v35 = vsel %vm416_vm0, %v13921_v11, 0.0 }
0x2749   :  { %5458 = vadd.xlane.f32.xlu1 %v5457_v35  ;;  %v5454_v55 = vsel %vm416_vm0, %v12305_v15, 0.0 }
0x274a   :  { %5455 = vadd.xlane.f32.xlu0 %v5454_v55 }
0x27ae   :  { %v5651_v1 = vpop.xlane.xlu1 %5650 }
0x27af   :  { %v5653_v53 = vsub.f32 %v5645_v42, %v5651_v1  ;;  %v5648_v2 = vpop.xlane.xlu0 %5647 }
0x27b0   :  { %v5652_v52 = vsub.f32 %v5644_v9, %v5648_v2 }
0x27b1   :  { %v5656_v40 = vmul.f32 1.442695, %v5653_v53 }
0x27b2   :  { %v5654_v32 = vmul.f32 1.442695, %v5652_v52 }
0x27b3   :  { %12306 = vpow2.f32 %v5656_v40 }
0x27b4   :  { %12308 = vpow2.f32 %v5654_v32 }
0x27bd   :  { %v12307_v58 = vpop.eup %12306 }
0x27be   :  { %v12309_v29 = vpop.eup %12308  ;;  %v5661_v60 = vsel %vm416_vm0, %v12307_v58, 0.0 }
0x27bf   :  { %5662 = vadd.xlane.f32.xlu1 %v5661_v60  ;;  %v5658_v8 = vsel %vm416_vm0, %v12309_v29, 0.0 }
0x27c0   :  { %5659 = vadd.xlane.f32.xlu0 %v5658_v8 }
0x27d0   :  { %12056 = vrot.lane.b32.xlu1 %v13869_v10, %s12890_s17 }
0x27d4   :  { %12061 = vrot.lane.b32.xlu1 %v13869_v10, %s12896_s22 }
0x27d6   :  { %12051 = vrot.lane.b32.xlu0 %v13869_v10, %s12889_s6  ;;  %v5459_v43 = vpop.xlane.xlu1 %5458 }
0x27d7   :  { %v5456_v0 = vpop.xlane.xlu0 %5455 }
0x27d8   :  { %12310 = vrcp.f32 %v5456_v0  ;;  %6206 = vrot.lane.b32.xlu1 %v13881_v17, %s12896_s22 }
0x27d9   :  { %12312 = vrcp.f32 %v5459_v43 }
0x27da   :  { %6204 = vrot.lane.b32.xlu0 %v13883_v21, %s12896_s22 }
0x27e2   :  { %v12311_v4 = vpop.eup %12310 }
0x27e3   :  { %v5461_v51 = vmul.f32 %v12311_v4, %v12305_v15  ;;  %v12313_v28 = vpop.eup %12312 }
0x27e4   :  { %v5463_v38 = vmul.f32 %v12313_v28, %v13921_v11  ;;  %v5346_v11 = vld [vmem:[%s14424_s21] sm:$0xff] }
0x27e5   :  { %11065 = vmatprep.mubr.msk.f32.mxu0 %vm416_vm0, %v5461_v51 }
0x27f9   :  { %6013 = vmax.xlane.f32.xlu0 %v6012_v5 }
0x27fc   :  { %6016 = vmax.xlane.f32.xlu1 %v6015_v16  ;;  %v5348_v16 = vld [vmem:[%s14424_s21 + $0x10] sm:$0xff] }
0x280d   :  { %12066 = vrot.lane.b32.xlu1 %v13869_v10, %s12888_s9 }
0x2811   :  { %12071 = vrot.lane.b32.xlu1 %v13869_v10, %s12895_s4 }
0x284c   :  { %v5663_v17 = vpop.xlane.xlu1 %5662 }
0x284d   :  { %v5660_v18 = vpop.xlane.xlu0 %5659 }
0x284e   :  { %12314 = vrcp.f32 %v5660_v18 }
0x284f   :  { %12316 = vrcp.f32 %v5663_v17 }
0x2850   :  { %v12057_v21 = vpop.permute.xlu1 %12056 }
0x2851   :  { %v12052_v22 = vpop.permute.xlu0 %12051  ;;  %v12059_v23 = vunpack.i.h.bf16 %v12057_v21  ;;  %v12058_v56 = vunpack.i.l.bf16 %v12057_v21 }
0x2852   :  { %v12054_v46 = vunpack.i.h.bf16 %v12052_v22  ;;  %v12053_v24 = vunpack.i.l.bf16 %v12052_v22 }
0x2853   :  { %v11618_v36 = vpack.c.bf16 %v12059_v23, %v12058_v56 }
0x2854   :  { %v12062_v14 = vpop.permute.xlu1 %12061  ;;  %v11608_v26 = vpack.c.bf16 %v12054_v46, %v12053_v24 }
0x2855   :  { %v12064_v6 = vunpack.i.h.bf16 %v12062_v14  ;;  %v12063_v31 = vunpack.i.l.bf16 %v12062_v14  ;;  %v6205_v33 = vpop.permute.xlu0 %6204 }
0x2856   :  { %11609 = vmatprep.subr.bf16.mxu0 %v11608_v26  ;;  %11115 = vmatprep.mubr.msk.f32.mxu1 %vm665_vm8, %v6205_v33 }
0x2857   :  { %v11632_v10 = vpack.c.bf16 %v12064_v6, %v12063_v31  ;;  %11611 = vmatpush3.bf16.msra.mxu0 %v11608_v26 }
0x2858   :  { %v12315_v37 = vpop.eup %12314  ;;  %11619 = vmatprep.subr.bf16.mxu0 %v11618_v36  ;;  %v6207_v42 = vpop.permute.xlu1 %6206 }
0x2859   :  { %v12317_v39 = vpop.eup %12316  ;;  %11634 = vmatprep.subr.msk.bf16.mxu1 %vm13356_vm9, %v11632_v10  ;;  %v5665_v62 = vmul.f32 %v12315_v37, %v12309_v29 }
0x285a   :  { %11066 = vmatmul.mubr.msk.f32.vlgmr.msra.gmra.mrb[38].mxu0 %vm416_vm0, %v5463_v38  ;;  %11637 = vmatpush3.bf16.xpose.msk.msra.mxu1 %vm13356_vm9, %v11632_v10  ;;  %v5667_v41 = vmul.f32 %v12317_v39, %v12307_v58 }
0x285b   :  { %11621 = vmatpush3.bf16.msra.mxu0 %v11618_v36  ;;  %11079 = vmatprep.mubr.msk.f32.mxu0 %vm416_vm0, %v5665_v62  ;;  %v5349_v36 = vld [vmem:[%s14424_s21 + $0x18] sm:$0xff] }
0x285c   :  { %11082 = vmatprep.subr.mxu0 %v5347_v61 }
0x285e   :  { %11080 = vmatmul.mubr.msk.f32.vlgmr.msra.gmra.mrb[40].mxu0 %vm416_vm0, %v5667_v41 }
0x285f   :  { %11083 = vmatpush3.msra.mxu0 %v5347_v61 }
0x2860   :  { %11087 = vmatprep.subr.mxu0 %v5346_v11 }
0x2861   :  { %11116 = vmatmul.mubr.msk.f32.vlgmr.msra.gmra.mrb[44].mxu1 %vm665_vm8, %v6207_v42 }
0x2886   :  { %v6014_v9 = vpop.xlane.xlu0 %6013 }
0x2887   :  { %v6018_v48 = vsub.f32 %v6010_v45, %v6014_v9 }
0x2889   :  { %v6020_v49 = vmul.f32 1.442695, %v6018_v48  ;;  %v6017_v50 = vpop.xlane.xlu1 %6016  ;;  %v10174_v48 = vld [vmem:[#allocation16] ss:$0 sm:$0xff] }
0x288a   :  { %v6019_v57 = vsub.f32 %v6011_v3, %v6017_v50 }
0x288b   :  { %12318 = vpow2.f32 %v6020_v49 }
0x288c   :  { %v6022_v20 = vmul.f32 1.442695, %v6019_v57 }
0x288d   :  { %v12067_v35 = vpop.permute.xlu1 %12066 }
0x288e   :  { %12320 = vpow2.f32 %v6022_v20  ;;  %v12069_v2 = vunpack.i.h.bf16 %v12067_v35  ;;  %v12068_v52 = vunpack.i.l.bf16 %v12067_v35 }
0x2890   :  { %v11628_v58 = vpack.c.bf16 %v12069_v2, %v12068_v52  ;;  %v6559_v52 = vld [vmem:[%s14425_s27] sm:$0xff] }
0x2891   :  { %v12072_v13 = vpop.permute.xlu1 %12071 }
0x2892   :  { %v12074_v43 = vunpack.i.h.bf16 %v12072_v13  ;;  %v12073_v17 = vunpack.i.l.bf16 %v12072_v13  ;;  %v6567_v13 = vld [vmem:[%s14426_s30 + $0x18] sm:$0xff] }
0x2894   :  { %v11638_v21 = vpack.c.bf16 %v12074_v43, %v12073_v17 }
0x2895   :  { %v12319_v44 = vpop.eup %12318 }
0x2896   :  { %v6024_v54 = vsel %vm416_vm0, %v12319_v44, 0.0 }
0x2897   :  { %6025 = vadd.xlane.f32.xlu0 %v6024_v54 }
0x2898   :  { %v12321_v19 = vpop.eup %12320 }
0x2899   :  { %v6027_v59 = vsel %vm416_vm0, %v12321_v19, 0.0 }
0x289b   :  { %6028 = vadd.xlane.f32.xlu0 %v6027_v59 }
0x2924   :  { %v6026_v15 = vpop.xlane.xlu0 %6025 }
0x2925   :  { %12322 = vrcp.f32 %v6026_v15 }
0x2928   :  { %v6029_v1 = vpop.xlane.xlu0 %6028 }
0x2929   :  { %12324 = vrcp.f32 %v6029_v1 }
0x292d   :  { %v11067_v55 = vpop.f32.mrb[38].mxu0 }
0x292e   :  { %v5542_v53 = vpop.f32.mrb[39].mxu0 }
0x292f   :  { %v12323_v4 = vpop.eup %12322 }
0x2930   :  { %v6031_v5 = vmul.f32 %v12323_v4, %v12319_v44  ;;  %v6566_v4 = vld [vmem:[%s14426_s30 + $0x10] sm:$0xff] }
0x2931   :  { %v11081_v40 = vpop.f32.mrb[40].mxu0 }
0x2932   :  { %v5746_v32 = vpop.f32.mrb[41].mxu0 }
0x2933   :  { %11084 = vmatprep.mubr.msk.f32.mxu0 %vm665_vm8, %v5746_v32  ;;  %v12325_v3 = vpop.eup %12324  ;;  %v6561_v32 = vld [vmem:[%s14425_s27 + $0x10] sm:$0xff] }
0x2934   :  { %11085 = vmatmul.mubr.msk.f32.vlgmr.msra.gmra.mrb[42].mxu0 %vm665_vm8, %v11081_v40  ;;  %v11117_v29 = vpop.f32.mrb[44].mxu1  ;;  %v6560_v40 = vld [vmem:[%s14425_s27 + $0x8] sm:$0xff] }
0x2935   :  { %11088 = vmatpush3.msra.mxu0 %v5346_v11  ;;  %11089 = vmatprep.mubr.msk.f32.mxu0 %vm665_vm8, %v5542_v53  ;;  %v6286_v60 = vpop.f32.mrb[45].mxu1  ;;  %v6296_v8 = vmul.f32 0.35355338, %v11117_v29  ;;  %v6562_v29 = vld [vmem:[%s14425_s27 + $0x18] sm:$0xff] }
0x2936   :  { %11629 = vmatprep.subr.bf16.mxu0 %v11628_v58  ;;  %v6295_v0 = vmul.f32 0.35355338, %v6286_v60  ;;  %v11646_v60 = vpack.c.bf16 %v6562_v29, %v6561_v32 }
0x2937   :  { %v6298_v63 = vadd.f32 %v6296_v8, %v13908_v25  ;;  %v6564_v8 = vld [vmem:[%s14426_s30] sm:$0xff] }
0x2938   :  { %v6297_v51 = vadd.f32 %v6295_v0, %v13911_v27  ;;  %v6033_v27 = vmul.f32 %v12325_v3, %v12321_v19  ;;  %v6565_v0 = vld [vmem:[%s14426_s30 + $0x8] sm:$0xff] }
0x2939   :  { %v6302_v18 = vsel %vm416_vm0, %v6298_v63, -inf  ;;  %v6569_v3 = vld [vmem:[%s14426_s30 + $0x28] sm:$0xff] }
0x293a   :  { %v6299_v45 = vsel %vm416_vm0, %v6297_v51, -inf }
0x293b   :  { %6300 = vmax.xlane.f32.xlu0 %v6299_v45  ;;  %v6568_v45 = vld [vmem:[%s14426_s30 + $0x20] sm:$0xff] }
0x293c   :  { %11090 = vmatmul.mubr.msk.f32.vlgmr.msra.gmra.mrb[42].mxu0 %vm665_vm8, %v11067_v55 }
0x293d   :  { %11631 = vmatpush3.bf16.msra.mxu0 %v11628_v58  ;;  %11103 = vmatprep.mubr.msk.f32.mxu0 %vm416_vm0, %v6031_v5  ;;  %v11642_v58 = vpack.c.bf16 %v6560_v40, %v6559_v52  ;;  %v11658_v5 = vpack.c.bf16 %v6569_v3, %v6568_v45  ;;  %v10188_v3 = vld [vmem:[%s14416_s13 + $0x38] sm:$0xff] }
0x293e   :  { %11106 = vmatprep.subr.mxu0 %v5348_v16 }
0x293f   :  { %6303 = vmax.xlane.f32.xlu0 %v6302_v18  ;;  %11643 = vmatprep.subr.bf16.mxu1 %v11642_v58 }
0x2940   :  { %11104 = vmatmul.mubr.msk.f32.vlgmr.msra.gmra.mrb[44].mxu0 %vm416_vm0, %v6033_v27  ;;  %11645 = vmatpush3.bf16.msra.mxu1 %v11642_v58 }
0x2941   :  { %11107 = vmatpush3.msra.mxu0 %v5348_v16  ;;  %11647 = vmatprep.subr.bf16.mxu1 %v11646_v60 }
0x2942   :  { %11639 = vmatprep.subr.bf16.mxu0 %v11638_v21 }
0x2944   :  { %11649 = vmatpush3.bf16.msra.mxu1 %v11646_v60 }
0x29c8   :  { %v6301_v25 = vpop.xlane.xlu0 %6300 }
0x29c9   :  { %v6305_v22 = vsub.f32 %v6297_v51, %v6301_v25  ;;  %v11650_v51 = vpack.c.bf16 %v6565_v0, %v6564_v8 }
0x29cb   :  { %v6307_v23 = vmul.f32 1.442695, %v6305_v22 }
0x29cc   :  { %v6304_v56 = vpop.xlane.xlu0 %6303 }
0x29cd   :  { %12326 = vpow2.f32 %v6307_v23  ;;  %v6306_v46 = vsub.f32 %v6298_v63, %v6304_v56  ;;  %v11654_v63 = vpack.c.bf16 %v6567_v13, %v6566_v4  ;;  %v10186_v13 = vld [vmem:[%s14416_s13 + $0x28] sm:$0xff] }
0x29cf   :  { %v6309_v24 = vmul.f32 1.442695, %v6306_v46 }
0x29d1   :  { %12328 = vpow2.f32 %v6309_v24 }
0x29d7   :  { %v12327_v14 = vpop.eup %12326 }
0x29d8   :  { %v6311_v26 = vsel %vm416_vm0, %v12327_v14, 0.0 }
0x29d9   :  { %6312 = vadd.xlane.f32.xlu0 %v6311_v26 }
0x29db   :  { %v12329_v28 = vpop.eup %12328 }
0x29dc   :  { %v6314_v6 = vsel %vm416_vm0, %v12329_v28, 0.0 }
0x29dd   :  { %6315 = vadd.xlane.f32.xlu0 %v6314_v6 }
0x2a13   :  { %v11105_v31 = vpop.f32.mrb[44].mxu0 }
0x2a14   :  { %v6112_v33 = vpop.f32.mrb[45].mxu0 }
0x2a15   :  { %11108 = vmatprep.mubr.msk.f32.mxu0 %vm665_vm8, %v6112_v33 }
0x2a16   :  { %11109 = vmatmul.mubr.msk.f32.vlgmr.msra.gmra.mrb[42].mxu0 %vm665_vm8, %v11105_v31  ;;  %v10175_v31 = vld [vmem:[#allocation17] ss:$0 sm:$0xff] }
0x2a17   :  { %11641 = vmatpush3.bf16.msra.mxu0 %v11638_v21 }
0x2a18   :  { %11125 = vmatprep.subr.mxu0 %v5349_v36 }
0x2a66   :  { %v6313_v10 = vpop.xlane.xlu0 %6312 }
0x2a67   :  { %12330 = vrcp.f32 %v6313_v10  ;;  %v10176_v10 = vld [vmem:[#allocation19] ss:$0 sm:$0xff] }
0x2a6a   :  { %v6316_v37 = vpop.xlane.xlu0 %6315 }
0x2a6b   :  { %12332 = vrcp.f32 %v6316_v37 }
0x2a71   :  { %v12331_v38 = vpop.eup %12330 }
0x2a72   :  { %v6318_v39 = vmul.f32 %v12331_v38, %v12327_v14 }
0x2a74   :  { %11122 = vmatprep.mubr.msk.f32.mxu0 %vm416_vm0, %v6318_v39 }
0x2a75   :  { %v12333_v62 = vpop.eup %12332 }
0x2a76   :  { %v6320_v41 = vmul.f32 %v12333_v62, %v12329_v28 }
0x2a78   :  { %11123 = vmatmul.mubr.msk.f32.vlgmr.msra.gmra.mrb[46].mxu0 %vm416_vm0, %v6320_v41 }
0x2a79   :  { %11126 = vmatpush3.msra.mxu0 %v5349_v36 }
0x2a7a   :  { %11651 = vmatprep.subr.bf16.mxu0 %v11650_v51 }
0x2b4b   :  { %v11124_v42 = vpop.f32.mrb[46].mxu0 }
0x2b4c   :  { %v6399_v9 = vpop.f32.mrb[47].mxu0 }
0x2b4d   :  { %11127 = vmatprep.mubr.msk.f32.mxu0 %vm665_vm8, %v6399_v9  ;;  %v6570_v9 = vld [vmem:[%s14426_s30 + $0x30] sm:$0xff] }
0x2b4e   :  { %11128 = vmatmul.mubr.msk.f32.vlgmr.msra.gmra.mrb[42].mxu0 %vm665_vm8, %v11124_v42 }
0x2b4f   :  { %11653 = vmatpush3.bf16.msra.mxu0 %v11650_v51  ;;  %v10185_v51 = vld [vmem:[%s14416_s13 + $0x20] sm:$0xff] }
0x2b50   :  { %11655 = vmatprep.subr.bf16.mxu0 %v11654_v63  ;;  %v11666_v45 = vpack.c.bf16 %v10186_v13, %v10185_v51  ;;  %v14078_v13 = vld [vmem:[%s14417_s7] sm:$0xff] }
0x2b52   :  { %11667 = vmatprep.subr.bf16.mxu1 %v11666_v45 }
0x2b53   :  { %11657 = vmatpush3.bf16.msra.mxu0 %v11654_v63  ;;  %v10187_v63 = vld [vmem:[%s14416_s13 + $0x30] sm:$0xff] }
0x2b54   :  { %11659 = vmatprep.subr.bf16.mxu0 %v11658_v5 }
0x2b57   :  { %11661 = vmatpush3.bf16.msra.mxu0 %v11658_v5  ;;  %v11670_v5 = vpack.c.bf16 %v10188_v3, %v10187_v63 }
0x2c21   :  { %v11129_v49 = vpop.f32.mrb[42].mxu0 }
0x2c22   :  { %v6498_v50 = vadd.f32 %v11129_v49, %v10174_v48  ;;  %v6480_v57 = vpop.f32.mrb[43].mxu0 }
0x2c23   :  { %v6497_v20 = vadd.f32 %v10174_v48, %v6480_v57  ;;  %v6571_v48 = vld [vmem:[%s14426_s30 + $0x38] sm:$0xff] }
0x2c24   :  { %v13982_v44 = vadd.f32 %v6498_v50, %v13827_v47  ;;  %v11662_v49 = vpack.c.bf16 %v6571_v48, %v6570_v9  ;;  %v10177_v50 = vld [vmem:[#allocation20] ss:$0 sm:$0xff]  ;;  %v10189_v9 = vld [vmem:[#allocation7 + $0x1] ss:$0 sm:$0xff] }
0x2c25   :  { %v13985_v54 = vadd.f32 %v6497_v20, %v13823_v7 }
0x2c26   :  { %v6506_v19 = vsel %vm504_vm3, %v13982_v44, 0.0  ;;  %11663 = vmatprep.subr.bf16.mxu0 %v11662_v49 }
0x2c27   :  { %6507 = vadd.xlane.f32.xlu1 %v6506_v19  ;;  %v6503_v59 = vsel %vm504_vm3, %v13985_v54, 0.0  ;;  %11665 = vmatpush3.bf16.msra.mxu0 %v11662_v49 }
0x2c28   :  { %6504 = vadd.xlane.f32.xlu0 %v6503_v59 }
0x2cb4   :  { %v6508_v61 = vpop.xlane.xlu1 %6507 }
0x2cb5   :  { %v6510_v11 = vmul.f32 0.03125, %v6508_v61  ;;  %v6505_v15 = vpop.xlane.xlu0 %6504 }
0x2cb6   :  { %v6509_v47 = vmul.f32 0.03125, %v6505_v15  ;;  %v10180_v15 = vld [vmem:[#allocation22] ss:$0 sm:$0xff] }
0x2cb7   :  { %v6512_v35 = vsub.f32 %v13982_v44, %v6510_v11 }
0x2cb8   :  { %v6511_v7 = vsub.f32 %v13985_v54, %v6509_v47 }
0x2cb9   :  { %v6514_v53 = vmul.f32 %v6512_v35, %v6512_v35  ;;  %v6544_v38 = vmul.f32 %v10175_v31, %v6512_v35 }
0x2cba   :  { %v6513_v55 = vmul.f32 %v6511_v7, %v6511_v7  ;;  %v6543_v33 = vmul.f32 %v10175_v31, %v6511_v7  ;;  %v10183_v31 = vld [vmem:[#allocation2 + $0x1] ss:$0 sm:$0xff] }
0x2cbb   :  { %v6518_v2 = vsel %vm504_vm3, %v6514_v53, 0.0 }
0x2cbc   :  { %v6515_v1 = vsel %vm504_vm3, %v6513_v55, 0.0 }
0x2cbd   :  { %6516 = vadd.xlane.f32.xlu0 %v6515_v1 }
0x2cc1   :  { %6519 = vadd.xlane.f32.xlu0 %v6518_v2 }
0x2d4a   :  { %v6517_v16 = vpop.xlane.xlu0 %6516 }
0x2d4b   :  { %v6521_v43 = vmul.f32 0.032258064, %v6517_v16 }
0x2d4d   :  { %12334 = vrsqrt.f32 %v6521_v43  ;;  %vm6525_vm15 = vcmp.eq.f32.partialorder %v6521_v43, inf  ;;  %v6528_v25 = vand.u32 2147483648, %v6521_v43  ;;  %vm6527_vm1 = vcmp.eq.f32.partialorder %v6521_v43, 0.0 }
0x2d4e   :  { %v6520_v17 = vpop.xlane.xlu0 %6519 }
0x2d4f   :  { %v6522_v18 = vmul.f32 0.032258064, %v6520_v17 }
0x2d51   :  { %12336 = vrsqrt.f32 %v6522_v18  ;;  %vm6532_vm2 = vcmp.eq.f32.partialorder %v6522_v18, inf  ;;  %v6535_v14 = vand.u32 2147483648, %v6522_v18  ;;  %vm6534_vm4 = vcmp.eq.f32.partialorder %v6522_v18, 0.0 }
0x2d57   :  { %v12335_v27 = vpop.eup %12334 }
0x2d58   :  { %v6524_v21 = vmul.f32 %v12335_v27, %v6521_v43 }
0x2d5a   :  { %v6526_v22 = vsel %vm6525_vm15, %v6521_v43, %v6524_v21 }
0x2d5b   :  { %v12337_v23 = vpop.eup %12336  ;;  %v6529_v56 = vsel %vm6527_vm1, %v6528_v25, %v6526_v22 }
0x2d5c   :  { %v6531_v46 = vmul.f32 %v12337_v23, %v6522_v18  ;;  %v6545_v24 = vadd.f32 1e-06, %v6529_v56 }
0x2d5e   :  { %v6533_v26 = vsel %vm6532_vm2, %v6522_v18, %v6531_v46  ;;  %12338 = vrcp.f32 %v6545_v24 }
0x2d5f   :  { %v6536_v28 = vsel %vm6534_vm4, %v6535_v14, %v6533_v26 }
0x2d60   :  { %v6546_v6 = vadd.f32 1e-06, %v6536_v28 }
0x2d62   :  { %12340 = vrcp.f32 %v6546_v6 }
0x2d68   :  { %v12339_v36 = vpop.eup %12338 }
0x2d69   :  { %v6548_v37 = vmul.f32 %v12339_v36, %v6543_v33 }
0x2d6b   :  { %v6557_v39 = vadd.f32 %v10176_v10, %v6548_v37 }
0x2d6c   :  { %v12341_v62 = vpop.eup %12340 }
0x2d6d   :  { %v6550_v41 = vmul.f32 %v12341_v62, %v6544_v38  ;;  %11138 = vmatprep.mubr.msk.f32.mxu1 %vm504_vm3, %v6557_v39 }
0x2d6f   :  { %v6558_v42 = vadd.f32 %v10176_v10, %v6550_v41  ;;  %v10184_v10 = vld [vmem:[#allocation5 + $0x1] ss:$0 sm:$0xff] }
0x2d71   :  { %11139 = vmatmul.mubr.msk.f32.vlgmr.msra.gmra.mrb[46].mxu1 %vm504_vm3, %v6558_v42 }
0x2d72   :  { %11669 = vmatpush3.bf16.msra.mxu1 %v11666_v45 }
0x2d73   :  { %11671 = vmatprep.subr.bf16.mxu1 %v11670_v5 }
0x2d76   :  { %11673 = vmatpush3.bf16.msra.mxu1 %v11670_v5 }
0x2e44   :  { %v11140_v57 = vpop.f32.mrb[46].mxu1 }
0x2e45   :  { %v6657_v20 = vadd.f32 %v11140_v57, %v10177_v50  ;;  %v6651_v19 = vpop.f32.mrb[47].mxu1 }
0x2e46   :  { %v6652_v59 = vadd.f32 %v10177_v50, %v6651_v19 }
0x2e47   :  { %v6661_v11 = vmax.f32 %v6657_v20, 0.0 }
0x2e48   :  { %v6660_v61 = vmax.f32 %v6652_v59, 0.0 }
0x2e4a   :  { %11157 = vmatprep.mubr.msk.f32.mxu0 %vm1979_vm14, %v6660_v61 }
0x2e4b   :  { %11158 = vmatmul.mubr.msk.f32.vlgmr.msra.gmra.mrb[48].mxu0 %vm1979_vm14, %v6661_v11 }
0x2f1e   :  { %v11159_v47 = vpop.f32.mrb[48].mxu0 }
0x2f1f   :  { %v6740_v35 = vpop.f32.mrb[49].mxu0  ;;  %v6746_v7 = vadd.f32 %v11159_v47, %v10180_v15 }
0x2f20   :  { %v6741_v55 = vadd.f32 %v10180_v15, %v6740_v35 }
0x2f21   :  { %v14015_v53 = vadd.f32 %v6746_v7, %v13982_v44 }
0x2f22   :  { %v14012_v1 = vadd.f32 %v6741_v55, %v13985_v54 }
0x2f23   :  { %v6758_v52 = vsel %vm504_vm3, %v14015_v53, 0.0 }
0x2f24   :  { %v6755_v2 = vsel %vm504_vm3, %v14012_v1, 0.0 }
0x2f25   :  { %6756 = vadd.xlane.f32.xlu0 %v6755_v2 }
0x2f29   :  { %6759 = vadd.xlane.f32.xlu0 %v6758_v52 }
0x2fb2   :  { %v6757_v40 = vpop.xlane.xlu0 %6756 }
0x2fb3   :  { %v6761_v32 = vmul.f32 0.03125, %v6757_v40 }
0x2fb5   :  { %v6763_v54 = vsub.f32 %v14012_v1, %v6761_v32 }
0x2fb6   :  { %v6760_v58 = vpop.xlane.xlu0 %6759 }
0x2fb7   :  { %v6762_v29 = vmul.f32 0.03125, %v6760_v58  ;;  %v6765_v44 = vmul.f32 %v6763_v54, %v6763_v54  ;;  %v6795_v33 = vmul.f32 %v10183_v31, %v6763_v54 }
0x2fb9   :  { %v6764_v60 = vsub.f32 %v14015_v53, %v6762_v29  ;;  %v6767_v8 = vsel %vm504_vm3, %v6765_v44, 0.0 }
0x2fba   :  { %6768 = vadd.xlane.f32.xlu0 %v6767_v8 }
0x2fbb   :  { %v6766_v0 = vmul.f32 %v6764_v60, %v6764_v60  ;;  %v6796_v38 = vmul.f32 %v10183_v31, %v6764_v60 }
0x2fbd   :  { %v6770_v4 = vsel %vm504_vm3, %v6766_v0, 0.0 }
0x2fbe   :  { %6771 = vadd.xlane.f32.xlu0 %v6770_v4  ;;  %v14074_v4 = vld [vmem:[%s14417_s7 + $0x8] sm:$0xff] }
0x3047   :  { %v6769_v16 = vpop.xlane.xlu0 %6768 }
0x3048   :  { %v6773_v43 = vmul.f32 0.032258064, %v6769_v16 }
0x304a   :  { %12342 = vrsqrt.f32 %v6773_v43  ;;  %vm6777_vm5 = vcmp.eq.f32.partialorder %v6773_v43, inf  ;;  %v6780_v25 = vand.u32 2147483648, %v6773_v43  ;;  %vm6779_vm6 = vcmp.eq.f32.partialorder %v6773_v43, 0.0 }
0x304b   :  { %v6772_v17 = vpop.xlane.xlu0 %6771 }
0x304c   :  { %v6774_v18 = vmul.f32 0.032258064, %v6772_v17 }
0x304e   :  { %12344 = vrsqrt.f32 %v6774_v18  ;;  %vm6784_vm7 = vcmp.eq.f32.partialorder %v6774_v18, inf  ;;  %v6787_v14 = vand.u32 2147483648, %v6774_v18  ;;  %vm6786_vm10 = vcmp.eq.f32.partialorder %v6774_v18, 0.0 }
0x3054   :  { %v12343_v27 = vpop.eup %12342 }
0x3055   :  { %v6776_v21 = vmul.f32 %v12343_v27, %v6773_v43 }
0x3057   :  { %v6778_v22 = vsel %vm6777_vm5, %v6773_v43, %v6776_v21 }
0x3058   :  { %v12345_v23 = vpop.eup %12344  ;;  %v6781_v56 = vsel %vm6779_vm6, %v6780_v25, %v6778_v22 }
0x3059   :  { %v6783_v46 = vmul.f32 %v12345_v23, %v6774_v18  ;;  %v6797_v24 = vadd.f32 1e-06, %v6781_v56 }
0x305b   :  { %v6785_v26 = vsel %vm6784_vm7, %v6774_v18, %v6783_v46  ;;  %12346 = vrcp.f32 %v6797_v24 }
0x305c   :  { %v6788_v28 = vsel %vm6786_vm10, %v6787_v14, %v6785_v26 }
0x305d   :  { %v6798_v6 = vadd.f32 1e-06, %v6788_v28 }
0x305f   :  { %12348 = vrcp.f32 %v6798_v6 }
0x3065   :  { %v12347_v36 = vpop.eup %12346 }
0x3066   :  { %v6800_v37 = vmul.f32 %v12347_v36, %v6795_v33 }
0x3068   :  { %v6809_v39 = vadd.f32 %v10184_v10, %v6800_v37 }
0x3069   :  { %v12349_v62 = vpop.eup %12348 }
0x306a   :  { %v6802_v41 = vmul.f32 %v12349_v62, %v6796_v38  ;;  %11168 = vmatprep.mubr.msk.f32.mxu1 %vm504_vm3, %v6809_v39 }
0x306c   :  { %v6810_v42 = vadd.f32 %v10184_v10, %v6802_v41 }
0x306e   :  { %11169 = vmatmul.mubr.msk.f32.vlgmr.msra.gmra.mrb[48].mxu1 %vm504_vm3, %v6810_v42 }
0x3141   :  { %v11170_v48 = vpop.f32.mrb[48].mxu1 }
0x3142   :  { %v14031_v49 = vadd.f32 %v11170_v48, %v10189_v9  ;;  %v6896_v50 = vpop.f32.mrb[49].mxu1 }
0x3143   :  { %v14033_v57 = vadd.f32 %v10189_v9, %v6896_v50 }
0x3145   :  { %11175 = vmatprep.mubr.msk.f32.mxu1 %vm665_vm8, %v14033_v57  ;;  %v14039_v20 = vpack.i.bf16 %v14031_v49, %v14033_v57 }
0x3147   :  { %12081 = vrot.lane.b32.xlu1 %v14039_v20, %s12890_s17  ;;  %12076 = vrot.lane.b32.xlu0 %v14039_v20, %s12889_s6 }
0x314b   :  { %12086 = vrot.lane.b32.xlu1 %v14039_v20, %s12888_s9  ;;  %7114 = vrot.lane.b32.xlu0 %v14033_v57, %s12891_s12 }
0x314f   :  { %7482 = vrot.lane.b32.xlu1 %v14031_v49, %s12892_s15  ;;  %7116 = vrot.lane.b32.xlu0 %v14031_v49, %s12891_s12 }
0x3153   :  { %7480 = vrot.lane.b32.xlu0 %v14033_v57, %s12892_s15 }
0x31b9   :  { %v12082_v19 = vpop.permute.xlu1 %12081  ;;  %v12077_v59 = vpop.permute.xlu0 %12076 }
0x31ba   :  { %v12084_v61 = vunpack.i.h.bf16 %v12082_v19  ;;  %v12083_v11 = vunpack.i.l.bf16 %v12082_v19  ;;  %v12079_v15 = vunpack.i.h.bf16 %v12077_v59  ;;  %v12078_v47 = vunpack.i.l.bf16 %v12077_v59 }
0x31bc   :  { %v11674_v35 = vpack.c.bf16 %v12079_v15, %v12078_v47  ;;  %v11684_v7 = vpack.c.bf16 %v12084_v61, %v12083_v11 }
0x31bd   :  { %v12087_v55 = vpop.permute.xlu1 %12086  ;;  %v7115_v40 = vpop.permute.xlu0 %7114 }
0x31be   :  { %11676 = vmatprep.subr.msk.bf16.mxu1 %vm13356_vm9, %v11674_v35  ;;  %v12089_v2 = vunpack.i.h.bf16 %v12087_v55  ;;  %v12088_v52 = vunpack.i.l.bf16 %v12087_v55 }
0x31bf   :  { %11679 = vmatpush3.bf16.xpose.msk.msra.mxu1 %vm13356_vm9, %v11674_v35 }
0x31c0   :  { %11686 = vmatprep.subr.msk.bf16.mxu1 %vm13356_vm9, %v11684_v7  ;;  %v11694_v32 = vpack.c.bf16 %v12089_v2, %v12088_v52 }
0x31c1   :  { %v7117_v54 = vpop.permute.xlu0 %7116  ;;  %v7483_v29 = vpop.permute.xlu1 %7482 }
0x31c5   :  { %v7481_v58 = vpop.permute.xlu0 %7480 }
0x31c6   :  { %11176 = vmatmul.mubr.msk.f32.vlgmr.msra.gmra.mrb[50].mxu1 %vm665_vm8, %v14031_v49 }
0x31c7   :  { %11689 = vmatpush3.bf16.xpose.msk.msra.mxu1 %vm13356_vm9, %v11684_v7  ;;  %11189 = vmatprep.mubr.msk.f32.mxu1 %vm665_vm8, %v7115_v40 }
0x31c8   :  { %11696 = vmatprep.subr.msk.bf16.mxu1 %vm13356_vm9, %v11694_v32 }
0x31ce   :  { %11190 = vmatmul.mubr.msk.f32.vlgmr.msra.gmra.mrb[52].mxu1 %vm665_vm8, %v7117_v54 }
0x31cf   :  { %11699 = vmatpush3.bf16.xpose.msk.msra.mxu1 %vm13356_vm9, %v11694_v32  ;;  %11213 = vmatprep.mubr.msk.f32.mxu1 %vm665_vm8, %v7481_v58 }
0x31d6   :  { %11214 = vmatmul.mubr.msk.f32.vlgmr.msra.gmra.mrb[54].mxu1 %vm665_vm8, %v7483_v29 }
0x3299   :  { %v11177_v44 = vpop.f32.mrb[50].mxu1 }
0x329a   :  { %v7002_v60 = vmul.f32 0.35355338, %v11177_v44  ;;  %v6992_v8 = vpop.f32.mrb[51].mxu1 }
0x329b   :  { %v7001_v0 = vmul.f32 0.35355338, %v6992_v8 }
0x329c   :  { %v7004_v51 = vadd.f32 %v14074_v4, %v7002_v60 }
0x329d   :  { %v7003_v63 = vadd.f32 %v14078_v13, %v7001_v0 }
0x329e   :  { %v7008_v45 = vsel %vm416_vm0, %v7004_v51, -inf }
0x329f   :  { %7009 = vmax.xlane.f32.xlu1 %v7008_v45  ;;  %v7005_v3 = vsel %vm416_vm0, %v7003_v63, -inf }
0x32a0   :  { %7006 = vmax.xlane.f32.xlu0 %v7005_v3 }
0x32a1   :  { %v11191_v5 = vpop.f32.mrb[52].mxu1 }
0x32a2   :  { %v7196_v16 = vpop.f32.mrb[53].mxu1  ;;  %v7206_v43 = vmul.f32 0.35355338, %v11191_v5 }
0x32a3   :  { %v7205_v17 = vmul.f32 0.35355338, %v7196_v16 }
0x32a4   :  { %v7208_v27 = vadd.f32 %v14074_v4, %v7206_v43 }
0x32a5   :  { %v7207_v18 = vadd.f32 %v14078_v13, %v7205_v17 }
0x32a6   :  { %v7212_v23 = vsel %vm416_vm0, %v7208_v27, -inf }
0x32a7   :  { %v7209_v21 = vsel %vm416_vm0, %v7207_v18, -inf }
0x32a8   :  { %7210 = vmax.xlane.f32.xlu0 %v7209_v21 }
0x32a9   :  { %v11215_v25 = vpop.f32.mrb[54].mxu1 }
0x32aa   :  { %v7562_v22 = vpop.f32.mrb[55].mxu1  ;;  %v7572_v19 = vmul.f32 0.35355338, %v11215_v25 }
0x32ab   :  { %v7571_v59 = vmul.f32 0.35355338, %v7562_v22 }
0x32ac   :  { %7213 = vmax.xlane.f32.xlu0 %v7212_v23  ;;  %v7574_v61 = vadd.f32 %v14074_v4, %v7572_v19 }
0x32ad   :  { %v7573_v11 = vadd.f32 %v14078_v13, %v7571_v59 }
0x32ae   :  { %v7578_v47 = vsel %vm416_vm0, %v7574_v61, -inf }
0x32af   :  { %v7575_v15 = vsel %vm416_vm0, %v7573_v11, -inf }
0x332c   :  { %v7010_v56 = vpop.xlane.xlu1 %7009 }
0x332d   :  { %v7012_v46 = vsub.f32 %v7004_v51, %v7010_v56  ;;  %v7007_v24 = vpop.xlane.xlu0 %7006 }
0x332e   :  { %v7011_v14 = vsub.f32 %v7003_v63, %v7007_v24 }
0x332f   :  { %v7015_v26 = vmul.f32 1.442695, %v7012_v46 }
0x3330   :  { %v7013_v28 = vmul.f32 1.442695, %v7011_v14 }
0x3331   :  { %12350 = vpow2.f32 %v7015_v26 }
0x3332   :  { %12352 = vpow2.f32 %v7013_v28 }
0x3335   :  { %v7211_v6 = vpop.xlane.xlu0 %7210 }
0x3336   :  { %v7215_v31 = vsub.f32 %v7207_v18, %v7211_v6  ;;  %v10193_v6 = vld [vmem:[%s14418_s10 + $0x28] sm:$0xff] }
0x3338   :  { %v7217_v33 = vmul.f32 1.442695, %v7215_v31  ;;  %v10192_v31 = vld [vmem:[%s14418_s10 + $0x20] sm:$0xff] }
0x3339   :  { %v7214_v36 = vpop.xlane.xlu0 %7213 }
0x333a   :  { %12354 = vpow2.f32 %v7217_v33  ;;  %v7216_v10 = vsub.f32 %v7208_v27, %v7214_v36 }
0x333b   :  { %v12351_v37 = vpop.eup %12350 }
0x333c   :  { %v12353_v38 = vpop.eup %12352  ;;  %v7219_v39 = vmul.f32 1.442695, %v7216_v10  ;;  %v7020_v62 = vsel %vm416_vm0, %v12351_v37, 0.0 }
0x333d   :  { %7021 = vadd.xlane.f32.xlu0 %v7020_v62  ;;  %v7017_v41 = vsel %vm416_vm0, %v12353_v38, 0.0 }
0x333e   :  { %12356 = vpow2.f32 %v7219_v39  ;;  %7018 = vadd.xlane.f32.xlu1 %v7017_v41 }
0x3344   :  { %v12355_v42 = vpop.eup %12354 }
0x3345   :  { %v7221_v9 = vsel %vm416_vm0, %v12355_v42, 0.0 }
0x3346   :  { %7222 = vadd.xlane.f32.xlu1 %v7221_v9 }
0x3348   :  { %v12357_v48 = vpop.eup %12356 }
0x3349   :  { %v7224_v50 = vsel %vm416_vm0, %v12357_v48, 0.0 }
0x334a   :  { %7225 = vadd.xlane.f32.xlu0 %v7224_v50 }
0x3357   :  { %12091 = vrot.lane.b32.xlu1 %v14039_v20, %s12894_s18 }
0x335b   :  { %12101 = vrot.lane.b32.xlu1 %v14039_v20, %s12895_s4 }
0x335f   :  { %7767 = vrot.lane.b32.xlu1 %v14033_v57, %s12896_s22 }
0x3360   :  { %12096 = vrot.lane.b32.xlu0 %v14039_v20, %s12893_s8 }
0x3364   :  { %7769 = vrot.lane.b32.xlu0 %v14031_v49, %s12896_s22 }
0x3383   :  { %7576 = vmax.xlane.f32.xlu1 %v7575_v15  ;;  %7579 = vmax.xlane.f32.xlu0 %v7578_v47 }
0x33ca   :  { %v7022_v57 = vpop.xlane.xlu0 %7021 }
0x33cb   :  { %v7019_v35 = vpop.xlane.xlu1 %7018 }
0x33cc   :  { %12358 = vrcp.f32 %v7019_v35 }
0x33cd   :  { %12360 = vrcp.f32 %v7022_v57 }
0x33d3   :  { %v7223_v7 = vpop.xlane.xlu1 %7222 }
0x33d4   :  { %12362 = vrcp.f32 %v7223_v7 }
0x33d6   :  { %v12359_v55 = vpop.eup %12358 }
0x33d7   :  { %v12092_v49 = vpop.permute.xlu1 %12091  ;;  %v7226_v2 = vpop.xlane.xlu0 %7225  ;;  %v7024_v52 = vmul.f32 %v12359_v55, %v12353_v38 }
0x33d8   :  { %v12094_v40 = vunpack.i.h.bf16 %v12092_v49  ;;  %v12093_v32 = vunpack.i.l.bf16 %v12092_v49  ;;  %12364 = vrcp.f32 %v7226_v2  ;;  %v12361_v58 = vpop.eup %12360  ;;  %v10194_v49 = vld [vmem:[%s14418_s10 + $0x30] sm:$0xff] }
0x33d9   :  { %11182 = vmatprep.mubr.msk.f32.mxu0 %vm416_vm0, %v7024_v52  ;;  %v7026_v45 = vmul.f32 %v12361_v58, %v12351_v37 }
0x33da   :  { %v11680_v54 = vpack.c.bf16 %v12094_v40, %v12093_v32 }
0x33db   :  { %v12102_v29 = vpop.permute.xlu1 %12101  ;;  %v12097_v44 = vpop.permute.xlu0 %12096 }
0x33dc   :  { %v12104_v60 = vunpack.i.h.bf16 %v12102_v29  ;;  %v12103_v8 = vunpack.i.l.bf16 %v12102_v29  ;;  %v12099_v0 = vunpack.i.h.bf16 %v12097_v44  ;;  %v12098_v51 = vunpack.i.l.bf16 %v12097_v44  ;;  %11681 = vmatprep.subr.bf16.mxu0 %v11680_v54 }
0x33dd   :  { %11683 = vmatpush3.bf16.msra.mxu0 %v11680_v54 }
0x33de   :  { %v12363_v63 = vpop.eup %12362  ;;  %v11704_v3 = vpack.c.bf16 %v12104_v60, %v12103_v8  ;;  %v11690_v5 = vpack.c.bf16 %v12099_v0, %v12098_v51 }
0x33df   :  { %v7768_v16 = vpop.permute.xlu1 %7767  ;;  %v7228_v43 = vmul.f32 %v12363_v63, %v12355_v42  ;;  %v7770_v27 = vpop.permute.xlu0 %7769 }
0x33e0   :  { %11183 = vmatmul.mubr.msk.f32.vlgmr.msra.gmra.mrb[50].mxu0 %vm416_vm0, %v7026_v45  ;;  %11691 = vmatprep.subr.bf16.mxu0 %v11690_v5 }
0x33e1   :  { %11706 = vmatprep.subr.msk.bf16.mxu1 %vm13356_vm9, %v11704_v3  ;;  %11232 = vmatprep.mubr.msk.f32.mxu1 %vm665_vm8, %v7768_v16  ;;  %v10195_v16 = vld [vmem:[%s14418_s10 + $0x38] sm:$0xff] }
0x33e2   :  { %v12365_v17 = vpop.eup %12364  ;;  %11693 = vmatpush3.bf16.msra.mxu0 %v11690_v5  ;;  %11196 = vmatprep.mubr.msk.f32.mxu0 %vm416_vm0, %v7228_v43 }
0x33e3   :  { %v7230_v18 = vmul.f32 %v12365_v17, %v12357_v48  ;;  %11709 = vmatpush3.bf16.xpose.msk.msra.mxu1 %vm13356_vm9, %v11704_v3  ;;  %11199 = vmatprep.subr.mxu0 %v10193_v6 }
0x33e5   :  { %11197 = vmatmul.mubr.msk.f32.vlgmr.msra.gmra.mrb[52].mxu0 %vm416_vm0, %v7230_v18 }
0x33e6   :  { %11200 = vmatpush3.msra.mxu0 %v10193_v6  ;;  %v10233_v6 = vld [vmem:[%s14422_s19 + $0x30] sm:$0xff] }
0x33e7   :  { %11204 = vmatprep.subr.mxu0 %v10192_v31 }
0x33ea   :  { %11233 = vmatmul.mubr.msk.f32.vlgmr.msra.gmra.mrb[56].mxu1 %vm665_vm8, %v7770_v27  ;;  %v10238_v27 = vld [vmem:[%s14419_s29 + $0x20] sm:$0xff] }
0x3410   :  { %v7577_v21 = vpop.xlane.xlu1 %7576  ;;  %v7580_v25 = vpop.xlane.xlu0 %7579 }
0x3411   :  { %v7581_v22 = vsub.f32 %v7573_v11, %v7577_v21  ;;  %v7582_v23 = vsub.f32 %v7574_v61, %v7580_v25  ;;  %v10239_v21 = vld [vmem:[%s14419_s29 + $0x28] sm:$0xff] }
0x3412   :  { %v11722_v25 = vpack.c.bf16 %v10239_v21, %v10238_v27 }
0x3413   :  { %v7583_v56 = vmul.f32 1.442695, %v7581_v22  ;;  %v7585_v46 = vmul.f32 1.442695, %v7582_v23  ;;  %v10240_v22 = vld [vmem:[%s14419_s29 + $0x30] sm:$0xff]  ;;  %v10241_v23 = vld [vmem:[%s14419_s29 + $0x38] sm:$0xff] }
0x3415   :  { %12366 = vpow2.f32 %v7583_v56 }
0x3416   :  { %12368 = vpow2.f32 %v7585_v46 }
0x341f   :  { %v12367_v24 = vpop.eup %12366 }
0x3420   :  { %v12369_v14 = vpop.eup %12368  ;;  %v7587_v26 = vsel %vm416_vm0, %v12367_v24, 0.0 }
0x3421   :  { %7588 = vadd.xlane.f32.xlu0 %v7587_v26  ;;  %v7590_v28 = vsel %vm416_vm0, %v12369_v14, 0.0  ;;  %v10232_v26 = vld [vmem:[%s14422_s19 + $0x28] sm:$0xff] }
0x3422   :  { %7591 = vadd.xlane.f32.xlu1 %v7590_v28 }
0x3437   :  { %12106 = vrot.lane.b32.xlu0 %v14039_v20, %s12897_s23 }
0x34ae   :  { %v7589_v33 = vpop.xlane.xlu0 %7588 }
0x34af   :  { %v7592_v38 = vpop.xlane.xlu1 %7591  ;;  %12370 = vrcp.f32 %v7589_v33 }
0x34b0   :  { %12372 = vrcp.f32 %v7592_v38 }
0x34b2   :  { %v12107_v10 = vpop.permute.xlu0 %12106 }
0x34b3   :  { %v11184_v36 = vpop.f32.mrb[50].mxu0  ;;  %v12109_v39 = vunpack.i.h.bf16 %v12107_v10  ;;  %v12108_v62 = vunpack.i.l.bf16 %v12107_v10 }
0x34b4   :  { %v7105_v37 = vpop.f32.mrb[51].mxu0 }
0x34b5   :  { %v11700_v9 = vpack.c.bf16 %v12109_v39, %v12108_v62 }
0x34b8   :  { %v11198_v41 = vpop.f32.mrb[52].mxu0 }
0x34b9   :  { %v7309_v42 = vpop.f32.mrb[53].mxu0  ;;  %v12371_v61 = vpop.eup %12370 }
0x34ba   :  { %11201 = vmatprep.mubr.msk.f32.mxu0 %vm665_vm8, %v7309_v42  ;;  %v12373_v15 = vpop.eup %12372  ;;  %v7594_v57 = vmul.f32 %v12371_v61, %v12367_v24  ;;  %v11726_v24 = vpack.c.bf16 %v10241_v23, %v10240_v22 }
0x34bb   :  { %11202 = vmatmul.mubr.msk.f32.vlgmr.msra.gmra.mrb[54].mxu0 %vm665_vm8, %v11198_v41  ;;  %v7596_v7 = vmul.f32 %v12373_v15, %v12369_v14  ;;  %v10231_v14 = vld [vmem:[%s14422_s19 + $0x20] sm:$0xff]  ;;  %v10242_v41 = vld [vmem:[#allocation14 + $0x1] ss:$0 sm:$0xff] }
0x34bc   :  { %11205 = vmatpush3.msra.mxu0 %v10192_v31  ;;  %11206 = vmatprep.mubr.msk.f32.mxu0 %vm665_vm8, %v7105_v37  ;;  %v11714_v28 = vpack.c.bf16 %v10232_v26, %v10231_v14  ;;  %v10234_v31 = vld [vmem:[%s14422_s19 + $0x38] sm:$0xff] }
0x34bd   :  { %v11234_v48 = vpop.f32.mrb[56].mxu1  ;;  %11701 = vmatprep.subr.bf16.mxu0 %v11700_v9  ;;  %v11718_v33 = vpack.c.bf16 %v10234_v31, %v10233_v6 }
0x34be   :  { %v7849_v50 = vpop.f32.mrb[57].mxu1  ;;  %v7859_v19 = vmul.f32 0.35355338, %v11234_v48  ;;  %11715 = vmatprep.subr.bf16.mxu1 %v11714_v28 }
0x34bf   :  { %v7858_v59 = vmul.f32 0.35355338, %v7849_v50  ;;  %11717 = vmatpush3.bf16.msra.mxu1 %v11714_v28 }
0x34c0   :  { %v7861_v47 = vadd.f32 %v14074_v4, %v7859_v19  ;;  %11719 = vmatprep.subr.bf16.mxu1 %v11718_v33 }
0x34c1   :  { %v7860_v11 = vadd.f32 %v14078_v13, %v7858_v59 }
0x34c2   :  { %v7865_v55 = vsel %vm416_vm0, %v7861_v47, -inf }
0x34c3   :  { %v7862_v35 = vsel %vm416_vm0, %v7860_v11, -inf  ;;  %11207 = vmatmul.mubr.msk.f32.vlgmr.msra.gmra.mrb[54].mxu0 %vm665_vm8, %v11184_v36  ;;  %11721 = vmatpush3.bf16.msra.mxu1 %v11718_v33  ;;  %v10228_v36 = vld [vmem:[#allocation8 + $0x1] ss:$0 sm:$0xff] }
0x34c4   :  { %7863 = vmax.xlane.f32.xlu1 %v7862_v35  ;;  %11703 = vmatpush3.bf16.msra.mxu0 %v11700_v9 }
0x34c5   :  { %11220 = vmatprep.mubr.msk.f32.mxu0 %vm416_vm0, %v7594_v57  ;;  %11223 = vmatprep.subr.mxu0 %v10194_v49 }
0x34c7   :  { %11221 = vmatmul.mubr.msk.f32.vlgmr.msra.gmra.mrb[56].mxu0 %vm416_vm0, %v7596_v7 }
0x34c8   :  { %7866 = vmax.xlane.f32.xlu1 %v7865_v55  ;;  %11224 = vmatpush3.msra.mxu0 %v10194_v49 }
0x3551   :  { %v7864_v13 = vpop.xlane.xlu1 %7863 }
0x3552   :  { %v7868_v4 = vsub.f32 %v7860_v11, %v7864_v13 }
0x3554   :  { %v7870_v40 = vmul.f32 1.442695, %v7868_v4 }
0x3555   :  { %v7867_v2 = vpop.xlane.xlu1 %7866 }
0x3556   :  { %v7869_v52 = vsub.f32 %v7861_v47, %v7867_v2 }
0x3558   :  { %v7872_v32 = vmul.f32 1.442695, %v7869_v52 }
0x355a   :  { %12374 = vpow2.f32 %v7872_v32 }
0x355b   :  { %12376 = vpow2.f32 %v7870_v40 }
0x3564   :  { %v12375_v54 = vpop.eup %12374 }
0x3565   :  { %v7877_v58 = vsel %vm416_vm0, %v12375_v54, 0.0  ;;  %v12377_v29 = vpop.eup %12376 }
0x3566   :  { %7878 = vadd.xlane.f32.xlu1 %v7877_v58  ;;  %v7874_v44 = vsel %vm416_vm0, %v12377_v29, 0.0 }
0x356a   :  { %7875 = vadd.xlane.f32.xlu1 %v7874_v44 }
0x357b   :  { %12111 = vrot.lane.b32.xlu1 %v14039_v20, %s12898_s20 }
0x359a   :  { %v11222_v60 = vpop.f32.mrb[56].mxu0 }
0x359b   :  { %v7675_v8 = vpop.f32.mrb[57].mxu0 }
0x359c   :  { %11225 = vmatprep.mubr.msk.f32.mxu0 %vm665_vm8, %v7675_v8 }
0x359d   :  { %11226 = vmatmul.mubr.msk.f32.vlgmr.msra.gmra.mrb[54].mxu0 %vm665_vm8, %v11222_v60 }
0x35f3   :  { %v7879_v0 = vpop.xlane.xlu1 %7878 }
0x35f4   :  { %12378 = vrcp.f32 %v7879_v0 }
0x35f7   :  { %v7876_v51 = vpop.xlane.xlu1 %7875 }
0x35f8   :  { %12380 = vrcp.f32 %v7876_v51 }
0x35fb   :  { %v12112_v63 = vpop.permute.xlu1 %12111 }
0x35fc   :  { %v12114_v45 = vunpack.i.h.bf16 %v12112_v63  ;;  %v12113_v3 = vunpack.i.l.bf16 %v12112_v63 }
0x35fe   :  { %v11710_v5 = vpack.c.bf16 %v12114_v45, %v12113_v3  ;;  %v12379_v20 = vpop.eup %12378  ;;  %v10229_v3 = vld [vmem:[#allocation10 + $0x1] ss:$0 sm:$0xff] }
0x35ff   :  { %v7883_v18 = vmul.f32 %v12379_v20, %v12375_v54  ;;  %v10230_v20 = vld [vmem:[#allocation11 + $0x1] ss:$0 sm:$0xff] }
0x3600   :  { %11711 = vmatprep.subr.bf16.mxu0 %v11710_v5 }
0x3601   :  { %11713 = vmatpush3.bf16.msra.mxu0 %v11710_v5 }
0x3602   :  { %v12381_v43 = vpop.eup %12380  ;;  %11242 = vmatprep.subr.mxu0 %v10195_v16 }
0x3603   :  { %v7881_v17 = vmul.f32 %v12381_v43, %v12377_v29 }
0x3605   :  { %11239 = vmatprep.mubr.msk.f32.mxu0 %vm416_vm0, %v7881_v17 }
0x3606   :  { %11240 = vmatmul.mubr.msk.f32.vlgmr.msra.gmra.mrb[58].mxu0 %vm416_vm0, %v7883_v18 }
0x3607   :  { %11243 = vmatpush3.msra.mxu0 %v10195_v16 }
0x3608   :  { %11723 = vmatprep.subr.bf16.mxu0 %v11722_v25 }
0x36d9   :  { %v11241_v56 = vpop.f32.mrb[58].mxu0 }
0x36da   :  { %v7962_v46 = vpop.f32.mrb[59].mxu0 }
0x36db   :  { %11244 = vmatprep.mubr.msk.f32.mxu0 %vm665_vm8, %v7962_v46 }
0x36dc   :  { %11245 = vmatmul.mubr.msk.f32.vlgmr.msra.gmra.mrb[54].mxu0 %vm665_vm8, %v11241_v56 }
0x36dd   :  { %11725 = vmatpush3.bf16.msra.mxu0 %v11722_v25  ;;  %11266 = vmatprep.mubr.msk.f32.mxu0 %vm504_vm3, %v13853_v34 }
0x36de   :  { %11727 = vmatprep.subr.bf16.mxu0 %v11726_v24 }
0x36e1   :  { %11729 = vmatpush3.bf16.msra.mxu0 %v11726_v24  ;;  %v10235_v24 = vld [vmem:[#allocation13 + $0x1] ss:$0 sm:$0xff] }
0x36e4   :  { %11267 = vmatmul.mubr.msk.f32.vlgmr.msra.gmra.mrb[60].mxu0 %vm504_vm3, %v13860_v30 }
0x37af   :  { %v11246_v10 = vpop.f32.mrb[54].mxu0 }
0x37b0   :  { %v8061_v37 = vadd.f32 %v11246_v10, %v10228_v36  ;;  %v8043_v38 = vpop.f32.mrb[55].mxu0 }
0x37b1   :  { %v8060_v34 = vadd.f32 %v10228_v36, %v8043_v38 }
0x37b2   :  { %v14156_v39 = vadd.f32 %v8061_v37, %v14015_v53 }
0x37b3   :  { %v14159_v30 = vadd.f32 %v8060_v34, %v14012_v1 }
0x37b4   :  { %v8071_v62 = vsel %vm504_vm3, %v14156_v39, 0.0 }
0x37b5   :  { %8072 = vadd.xlane.f32.xlu1 %v8071_v62  ;;  %v8068_v42 = vsel %vm504_vm3, %v14159_v30, 0.0 }
0x37b6   :  { %8069 = vadd.xlane.f32.xlu0 %v8068_v42 }
0x37b7   :  { %v11268_v9 = vpop.f32.mrb[60].mxu0 }
0x37b8   :  { %v8303_v48 = vadd.f32 %v11268_v9, %v10242_v41  ;;  %v8297_v50 = vpop.f32.mrb[61].mxu0 }
0x37b9   :  { %v8298_v19 = vadd.f32 %v10242_v41, %v8297_v50  ;;  %v14210_v50 = vld [vmem:[%s14423_s26 + $0x8] sm:$0xff] }
0x37bb   :  { %v11730_v59 = vpack.c.bf16 %v8303_v48, %v8298_v19  ;;  %v14165_v61 = vpack.i.bf16 %v8303_v48, %v8298_v19 }
0x37bd   :  { %11732 = vmatprep.subr.msk.bf16.mxu1 %vm13356_vm9, %v11730_v59 }
0x3842   :  { %v8073_v1 = vpop.xlane.xlu1 %8072 }
0x3843   :  { %v8075_v53 = vmul.f32 0.03125, %v8073_v1  ;;  %v8070_v11 = vpop.xlane.xlu0 %8069 }
0x3844   :  { %v8074_v15 = vmul.f32 0.03125, %v8070_v11 }
0x3845   :  { %v8077_v47 = vsub.f32 %v14156_v39, %v8075_v53 }
0x3846   :  { %v8076_v35 = vsub.f32 %v14159_v30, %v8074_v15 }
0x3847   :  { %v8079_v55 = vmul.f32 %v8077_v47, %v8077_v47  ;;  %v8109_v18 = vmul.f32 %v10229_v3, %v8077_v47 }
0x3848   :  { %v8078_v57 = vmul.f32 %v8076_v35, %v8076_v35  ;;  %v8108_v5 = vmul.f32 %v10229_v3, %v8076_v35 }
0x3849   :  { %v8083_v49 = vsel %vm504_vm3, %v8079_v55, 0.0 }
0x384a   :  { %v8080_v7 = vsel %vm504_vm3, %v8078_v57, 0.0 }
0x384b   :  { %8081 = vadd.xlane.f32.xlu0 %v8080_v7 }
0x384f   :  { %8084 = vadd.xlane.f32.xlu0 %v8083_v49 }
0x3865   :  { %12116 = vrot.lane.b32.xlu0 %v14165_v61, %s12891_s12 }
0x38d8   :  { %v8082_v13 = vpop.xlane.xlu0 %8081 }
0x38d9   :  { %v8086_v4 = vmul.f32 0.032258064, %v8082_v13 }
0x38db   :  { %12382 = vrsqrt.f32 %v8086_v4  ;;  %vm8090_vm11 = vcmp.eq.f32.partialorder %v8086_v4, inf  ;;  %v8093_v54 = vand.u32 2147483648, %v8086_v4  ;;  %vm8092_vm12 = vcmp.eq.f32.partialorder %v8086_v4, 0.0 }
0x38dc   :  { %v8085_v2 = vpop.xlane.xlu0 %8084 }
0x38dd   :  { %v8087_v52 = vmul.f32 0.032258064, %v8085_v2 }
0x38df   :  { %12384 = vrsqrt.f32 %v8087_v52  ;;  %vm8097_vm13 = vcmp.eq.f32.partialorder %v8087_v52, inf  ;;  %v8100_v0 = vand.u32 2147483648, %v8087_v52  ;;  %vm8099_vm15 = vcmp.eq.f32.partialorder %v8087_v52, 0.0 }
0x38e0   :  { %v12117_v17 = vpop.permute.xlu0 %12116 }
0x38e1   :  { %v12119_v25 = vunpack.i.h.bf16 %v12117_v17  ;;  %v12118_v22 = vunpack.i.l.bf16 %v12117_v17 }
0x38e3   :  { %v11740_v46 = vpack.c.bf16 %v12119_v25, %v12118_v22 }
0x38e5   :  { %v12383_v40 = vpop.eup %12382 }
0x38e6   :  { %v8089_v32 = vmul.f32 %v12383_v40, %v8086_v4 }
0x38e8   :  { %v8091_v58 = vsel %vm8090_vm11, %v8086_v4, %v8089_v32 }
0x38e9   :  { %v12385_v29 = vpop.eup %12384  ;;  %v8094_v44 = vsel %vm8092_vm12, %v8093_v54, %v8091_v58 }
0x38ea   :  { %v8096_v60 = vmul.f32 %v12385_v29, %v8087_v52  ;;  %v8110_v8 = vadd.f32 1e-06, %v8094_v44 }
0x38ec   :  { %v8098_v51 = vsel %vm8097_vm13, %v8087_v52, %v8096_v60  ;;  %12386 = vrcp.f32 %v8110_v8 }
0x38ed   :  { %v8101_v63 = vsel %vm8099_vm15, %v8100_v0, %v8098_v51 }
0x38ee   :  { %v8111_v45 = vadd.f32 1e-06, %v8101_v63 }
0x38f0   :  { %12388 = vrcp.f32 %v8111_v45 }
0x38f6   :  { %v12387_v16 = vpop.eup %12386 }
0x38f7   :  { %v8113_v43 = vmul.f32 %v12387_v16, %v8108_v5 }
0x38f9   :  { %v8122_v27 = vadd.f32 %v10230_v20, %v8113_v43 }
0x38fa   :  { %v12389_v21 = vpop.eup %12388 }
0x38fb   :  { %v8115_v23 = vmul.f32 %v12389_v21, %v8109_v18  ;;  %11255 = vmatprep.mubr.msk.f32.mxu1 %vm504_vm3, %v8122_v27 }
0x38fd   :  { %v8123_v56 = vadd.f32 %v10230_v20, %v8115_v23 }
0x38ff   :  { %11256 = vmatmul.mubr.msk.f32.vlgmr.msra.gmra.mrb[58].mxu1 %vm504_vm3, %v8123_v56 }
0x3900   :  { %11735 = vmatpush3.bf16.xpose.msk.msra.mxu1 %vm13356_vm9, %v11730_v59  ;;  %v14214_v59 = vld [vmem:[%s14423_s26] sm:$0xff] }
0x3901   :  { %11742 = vmatprep.subr.msk.bf16.mxu1 %vm13356_vm9, %v11740_v46 }
0x39d2   :  { %v11257_v14 = vpop.f32.mrb[58].mxu1 }
0x39d3   :  { %v14181_v26 = vadd.f32 %v11257_v14, %v10235_v24  ;;  %v8209_v28 = vpop.f32.mrb[59].mxu1 }
0x39d4   :  { %v14183_v6 = vadd.f32 %v10235_v24, %v8209_v28 }
0x39d5   :  { %8515 = vrot.lane.b32.xlu0 %v14181_v26, %s12891_s12 }
0x39d6   :  { %8513 = vrot.lane.b32.xlu1 %v14183_v6, %s12891_s12  ;;  %11273 = vmatprep.mubr.msk.f32.mxu1 %vm665_vm8, %v14183_v6 }
0x39d7   :  { %11274 = vmatmul.mubr.msk.f32.vlgmr.msra.gmra.mrb[60].mxu1 %vm665_vm8, %v14181_v26 }
0x39d8   :  { %11745 = vmatpush3.bf16.xpose.msk.msra.mxu1 %vm13356_vm9, %v11740_v46 }
0x39d9   :  { %12121 = vrot.lane.b32.xlu0 %v14165_v61, %s12892_s15 }
0x39da   :  { %8879 = vrot.lane.b32.xlu1 %v14183_v6, %s12892_s15 }
0x39dd   :  { %8881 = vrot.lane.b32.xlu0 %v14181_v26, %s12892_s15 }
0x3a47   :  { %v8516_v31 = vpop.permute.xlu0 %8515 }
0x3a48   :  { %v8514_v33 = vpop.permute.xlu1 %8513 }
0x3a49   :  { %11287 = vmatprep.mubr.msk.f32.mxu1 %vm665_vm8, %v8514_v33 }
0x3a4a   :  { %11288 = vmatmul.mubr.msk.f32.vlgmr.msra.gmra.mrb[62].mxu1 %vm665_vm8, %v8516_v31 }
0x3a4b   :  { %v12122_v36 = vpop.permute.xlu0 %12121 }
0x3a4c   :  { %v12124_v10 = vunpack.i.h.bf16 %v12122_v36  ;;  %v12123_v37 = vunpack.i.l.bf16 %v12122_v36  ;;  %v8880_v38 = vpop.permute.xlu1 %8879 }
0x3a4d   :  { %11311 = vmatprep.mubr.msk.f32.mxu1 %vm665_vm8, %v8880_v38 }
0x3a4e   :  { %v11750_v34 = vpack.c.bf16 %v12124_v10, %v12123_v37 }
0x3a4f   :  { %v8882_v62 = vpop.permute.xlu0 %8881 }
0x3a50   :  { %11752 = vmatprep.subr.msk.bf16.mxu1 %vm13356_vm9, %v11750_v34 }
0x3a51   :  { %11755 = vmatpush3.bf16.xpose.msk.msra.mxu1 %vm13356_vm9, %v11750_v34 }
0x3a58   :  { %11312 = vmatmul.mubr.msk.f32.vlgmr.msra.gmra.mrb[64].mxu1 %vm665_vm8, %v8882_v62 }
0x3aaa   :  { %v11275_v41 = vpop.f32.mrb[60].mxu1 }
0x3aab   :  { %v8401_v42 = vmul.f32 0.35355338, %v11275_v41  ;;  %v8391_v9 = vpop.f32.mrb[61].mxu1 }
0x3aac   :  { %v8400_v48 = vmul.f32 0.35355338, %v8391_v9 }
0x3aad   :  { %v8403_v19 = vadd.f32 %v14210_v50, %v8401_v42 }
0x3aae   :  { %v8402_v1 = vadd.f32 %v14214_v59, %v8400_v48 }
0x3aaf   :  { %v8407_v53 = vsel %vm416_vm0, %v8403_v19, -inf }
0x3ab0   :  { %8408 = vmax.xlane.f32.xlu0 %v8407_v53  ;;  %v8404_v11 = vsel %vm416_vm0, %v8402_v1, -inf }
0x3ab1   :  { %8405 = vmax.xlane.f32.xlu1 %v8404_v11 }
0x3b1d   :  { %v11289_v15 = vpop.f32.mrb[62].mxu1 }
0x3b1e   :  { %v8605_v47 = vmul.f32 0.35355338, %v11289_v15  ;;  %v8595_v35 = vpop.f32.mrb[63].mxu1 }
0x3b1f   :  { %v8604_v57 = vmul.f32 0.35355338, %v8595_v35 }
0x3b20   :  { %v8607_v7 = vadd.f32 %v14210_v50, %v8605_v47 }
0x3b21   :  { %v8606_v55 = vadd.f32 %v14214_v59, %v8604_v57 }
0x3b22   :  { %v8611_v49 = vsel %vm416_vm0, %v8607_v7, -inf }
0x3b23   :  { %8612 = vmax.xlane.f32.xlu1 %v8611_v49  ;;  %v8608_v13 = vsel %vm416_vm0, %v8606_v55, -inf }
0x3b24   :  { %8609 = vmax.xlane.f32.xlu0 %v8608_v13 }
0x3b2b   :  { %v11313_v4 = vpop.f32.mrb[64].mxu1 }
0x3b2c   :  { %v8961_v2 = vpop.f32.mrb[65].mxu1  ;;  %v8971_v23 = vmul.f32 0.35355338, %v11313_v4 }
0x3b2d   :  { %v8970_v22 = vmul.f32 0.35355338, %v8961_v2 }
0x3b2e   :  { %v8973_v46 = vadd.f32 %v14210_v50, %v8971_v23 }
0x3b2f   :  { %v8972_v56 = vadd.f32 %v14214_v59, %v8970_v22 }
0x3b30   :  { %v8977_v14 = vsel %vm416_vm0, %v8973_v46, -inf }
0x3b31   :  { %v8974_v24 = vsel %vm416_vm0, %v8972_v56, -inf }
0x3b3d   :  { %v8409_v52 = vpop.xlane.xlu0 %8408 }
0x3b3e   :  { %v8411_v40 = vsub.f32 %v8403_v19, %v8409_v52  ;;  %v8406_v32 = vpop.xlane.xlu1 %8405 }
0x3b3f   :  { %v8410_v54 = vsub.f32 %v8402_v1, %v8406_v32 }
0x3b40   :  { %v8414_v58 = vmul.f32 1.442695, %v8411_v40 }
0x3b41   :  { %v8412_v29 = vmul.f32 1.442695, %v8410_v54  ;;  %v10246_v54 = vld [vmem:[%s14424_s21 + $0x28] sm:$0xff] }
0x3b42   :  { %12390 = vpow2.f32 %v8414_v58  ;;  %v10245_v58 = vld [vmem:[%s14424_s21 + $0x20] sm:$0xff] }
0x3b43   :  { %12392 = vpow2.f32 %v8412_v29 }
0x3b4c   :  { %v14223_v44 = vpop.eup %12390 }
0x3b4d   :  { %v12393_v60 = vpop.eup %12392  ;;  %v8419_v8 = vsel %vm416_vm0, %v14223_v44, 0.0 }
0x3b4e   :  { %8420 = vadd.xlane.f32.xlu1 %v8419_v8  ;;  %v8416_v0 = vsel %vm416_vm0, %v12393_v60, 0.0 }
0x3b4f   :  { %8417 = vadd.xlane.f32.xlu0 %v8416_v0 }
0x3bb0   :  { %v8613_v51 = vpop.xlane.xlu1 %8612 }
0x3bb1   :  { %v8615_v63 = vsub.f32 %v8607_v7, %v8613_v51  ;;  %v8610_v45 = vpop.xlane.xlu0 %8609 }
0x3bb2   :  { %v8614_v3 = vsub.f32 %v8606_v55, %v8610_v45 }
0x3bb3   :  { %v8618_v5 = vmul.f32 1.442695, %v8615_v63 }
0x3bb4   :  { %v8616_v16 = vmul.f32 1.442695, %v8614_v3 }
0x3bb5   :  { %12394 = vpow2.f32 %v8618_v5 }
0x3bb6   :  { %12396 = vpow2.f32 %v8616_v16 }
0x3bbf   :  { %v12395_v20 = vpop.eup %12394 }
0x3bc0   :  { %v12397_v43 = vpop.eup %12396  ;;  %v8623_v17 = vsel %vm416_vm0, %v12395_v20, 0.0 }
0x3bc1   :  { %8624 = vadd.xlane.f32.xlu1 %v8623_v17  ;;  %v8620_v18 = vsel %vm416_vm0, %v12397_v43, 0.0 }
0x3bc2   :  { %8621 = vadd.xlane.f32.xlu0 %v8620_v18 }
0x3bd2   :  { %12131 = vrot.lane.b32.xlu1 %v14165_v61, %s12890_s17 }
0x3bd6   :  { %12136 = vrot.lane.b32.xlu1 %v14165_v61, %s12896_s22 }
0x3bd8   :  { %12126 = vrot.lane.b32.xlu0 %v14165_v61, %s12889_s6 }
0x3bda   :  { %9168 = vrot.lane.b32.xlu1 %v14181_v26, %s12896_s22 }
0x3bdb   :  { %v8421_v26 = vpop.xlane.xlu1 %8420 }
0x3bdc   :  { %9166 = vrot.lane.b32.xlu0 %v14183_v6, %s12896_s22  ;;  %v8418_v27 = vpop.xlane.xlu0 %8417 }
0x3bdd   :  { %12398 = vrcp.f32 %v8418_v27 }
0x3bde   :  { %12400 = vrcp.f32 %v8421_v26 }
0x3be7   :  { %v12399_v21 = vpop.eup %12398 }
0x3be8   :  { %v8423_v25 = vmul.f32 %v12399_v21, %v12393_v60  ;;  %v12401_v41 = vpop.eup %12400 }
0x3be9   :  { %v8425_v11 = vmul.f32 %v12401_v41, %v14223_v44 }
0x3bea   :  { %11280 = vmatprep.mubr.msk.f32.mxu0 %vm416_vm0, %v8423_v25 }
0x3bfb   :  { %8975 = vmax.xlane.f32.xlu0 %v8974_v24  ;;  %v10247_v24 = vld [vmem:[%s14424_s21 + $0x30] sm:$0xff] }
0x3bfe   :  { %8978 = vmax.xlane.f32.xlu1 %v8977_v14 }
0x3c0f   :  { %12141 = vrot.lane.b32.xlu1 %v14165_v61, %s12888_s9 }
0x3c4e   :  { %v8625_v28 = vpop.xlane.xlu1 %8624 }
0x3c4f   :  { %v8622_v6 = vpop.xlane.xlu0 %8621 }
0x3c50   :  { %12402 = vrcp.f32 %v8622_v6 }
0x3c51   :  { %12404 = vrcp.f32 %v8625_v28 }
0x3c52   :  { %v12132_v31 = vpop.permute.xlu1 %12131 }
0x3c53   :  { %v12127_v33 = vpop.permute.xlu0 %12126  ;;  %v12134_v36 = vunpack.i.h.bf16 %v12132_v31  ;;  %v12133_v10 = vunpack.i.l.bf16 %v12132_v31 }
0x3c54   :  { %v12129_v37 = vunpack.i.h.bf16 %v12127_v33  ;;  %v12128_v38 = vunpack.i.l.bf16 %v12127_v33 }
0x3c55   :  { %v11746_v19 = vpack.c.bf16 %v12134_v36, %v12133_v10 }
0x3c56   :  { %v11736_v34 = vpack.c.bf16 %v12129_v37, %v12128_v38  ;;  %v12137_v62 = vpop.permute.xlu1 %12136 }
0x3c57   :  { %v12139_v42 = vunpack.i.h.bf16 %v12137_v62  ;;  %v12138_v9 = vunpack.i.l.bf16 %v12137_v62  ;;  %v9167_v48 = vpop.permute.xlu0 %9166 }
0x3c58   :  { %11737 = vmatprep.subr.bf16.mxu0 %v11736_v34  ;;  %11330 = vmatprep.mubr.msk.f32.mxu1 %vm665_vm8, %v9167_v48 }
0x3c59   :  { %v11760_v1 = vpack.c.bf16 %v12139_v42, %v12138_v9  ;;  %11739 = vmatpush3.bf16.msra.mxu0 %v11736_v34 }
0x3c5a   :  { %v12403_v53 = vpop.eup %12402  ;;  %11747 = vmatprep.subr.bf16.mxu0 %v11746_v19  ;;  %v9169_v57 = vpop.permute.xlu1 %9168 }
0x3c5b   :  { %v12405_v15 = vpop.eup %12404  ;;  %11762 = vmatprep.subr.msk.bf16.mxu1 %vm13356_vm9, %v11760_v1  ;;  %v8627_v47 = vmul.f32 %v12403_v53, %v12397_v43 }
0x3c5c   :  { %11281 = vmatmul.mubr.msk.f32.vlgmr.msra.gmra.mrb[62].mxu0 %vm416_vm0, %v8425_v11  ;;  %11765 = vmatpush3.bf16.xpose.msk.msra.mxu1 %vm13356_vm9, %v11760_v1  ;;  %v8629_v35 = vmul.f32 %v12405_v15, %v12395_v20 }
0x3c5d   :  { %11749 = vmatpush3.bf16.msra.mxu0 %v11746_v19  ;;  %11294 = vmatprep.mubr.msk.f32.mxu0 %vm416_vm0, %v8627_v47  ;;  %v10248_v19 = vld [vmem:[%s14424_s21 + $0x38] sm:$0xff] }
0x3c5e   :  { %11297 = vmatprep.subr.mxu0 %v10246_v54 }
0x3c60   :  { %11295 = vmatmul.mubr.msk.f32.vlgmr.msra.gmra.mrb[64].mxu0 %vm416_vm0, %v8629_v35  ;;  %v10281_v35 = vld [vmem:[#allocation16 + $0x1] ss:$0 sm:$0xff] }
0x3c61   :  { %11298 = vmatpush3.msra.mxu0 %v10246_v54 }
0x3c62   :  { %11302 = vmatprep.subr.mxu0 %v10245_v58 }
0x3c63   :  { %11331 = vmatmul.mubr.msk.f32.vlgmr.msra.gmra.mrb[66].mxu1 %vm665_vm8, %v9169_v57 }
0x3c88   :  { %v8976_v7 = vpop.xlane.xlu0 %8975 }
0x3c89   :  { %v8980_v55 = vsub.f32 %v8972_v56, %v8976_v7 }
0x3c8b   :  { %v8982_v49 = vmul.f32 1.442695, %v8980_v55  ;;  %v8979_v13 = vpop.xlane.xlu1 %8978 }
0x3c8c   :  { %v8981_v4 = vsub.f32 %v8973_v46, %v8979_v13 }
0x3c8d   :  { %12406 = vpow2.f32 %v8982_v49 }
0x3c8e   :  { %v8984_v2 = vmul.f32 1.442695, %v8981_v4 }
0x3c8f   :  { %v12142_v44 = vpop.permute.xlu1 %12141 }
0x3c90   :  { %12408 = vpow2.f32 %v8984_v2  ;;  %v12144_v51 = vunpack.i.h.bf16 %v12142_v44  ;;  %v12143_v63 = vunpack.i.l.bf16 %v12142_v44 }
0x3c92   :  { %v11756_v5 = vpack.c.bf16 %v12144_v51, %v12143_v63  ;;  %v10286_v51 = vld [vmem:[%s14425_s27 + $0x30] sm:$0xff] }
0x3c97   :  { %v12407_v12 = vpop.eup %12406 }
0x3c98   :  { %v8986_v52 = vsel %vm416_vm0, %v12407_v12, 0.0 }
0x3c99   :  { %8987 = vadd.xlane.f32.xlu0 %v8986_v52 }
0x3c9a   :  { %v12409_v40 = vpop.eup %12408 }
0x3c9b   :  { %v8989_v32 = vsel %vm416_vm0, %v12409_v40, 0.0 }
0x3c9d   :  { %8990 = vadd.xlane.f32.xlu0 %v8989_v32 }
0x3d26   :  { %v8988_v29 = vpop.xlane.xlu0 %8987 }
0x3d27   :  { %12410 = vrcp.f32 %v8988_v29 }
0x3d2a   :  { %v8991_v8 = vpop.xlane.xlu0 %8990 }
0x3d2b   :  { %12412 = vrcp.f32 %v8991_v8  ;;  %v10284_v8 = vld [vmem:[%s14425_s27 + $0x20] sm:$0xff] }
0x3d2f   :  { %v11282_v60 = vpop.f32.mrb[62].mxu0 }
0x3d30   :  { %v8504_v0 = vpop.f32.mrb[63].mxu0 }
0x3d31   :  { %v12411_v18 = vpop.eup %12410 }
0x3d32   :  { %v8993_v23 = vmul.f32 %v12411_v18, %v12407_v12 }
0x3d33   :  { %v11296_v45 = vpop.f32.mrb[64].mxu0 }
0x3d34   :  { %v8708_v3 = vpop.f32.mrb[65].mxu0 }
0x3d35   :  { %11299 = vmatprep.mubr.msk.f32.mxu0 %vm665_vm8, %v8708_v3  ;;  %v12413_v22 = vpop.eup %12412 }
0x3d36   :  { %11300 = vmatmul.mubr.msk.f32.vlgmr.msra.gmra.mrb[66].mxu0 %vm665_vm8, %v11296_v45  ;;  %v11332_v16 = vpop.f32.mrb[66].mxu1  ;;  %v8995_v56 = vmul.f32 %v12413_v22, %v12409_v40  ;;  %v10287_v45 = vld [vmem:[%s14425_s27 + $0x38] sm:$0xff] }
0x3d37   :  { %11303 = vmatpush3.msra.mxu0 %v10245_v58  ;;  %11304 = vmatprep.mubr.msk.f32.mxu0 %vm665_vm8, %v8504_v0  ;;  %v9248_v20 = vpop.f32.mrb[67].mxu1  ;;  %v9258_v43 = vmul.f32 0.35355338, %v11332_v16  ;;  %v10285_v0 = vld [vmem:[%s14425_s27 + $0x28] sm:$0xff]  ;;  %v11774_v3 = vpack.c.bf16 %v10287_v45, %v10286_v51 }
0x3d38   :  { %11757 = vmatprep.subr.bf16.mxu0 %v11756_v5  ;;  %v9257_v17 = vmul.f32 0.35355338, %v9248_v20  ;;  %v11770_v63 = vpack.c.bf16 %v10285_v0, %v10284_v8  ;;  %v10289_v16 = vld [vmem:[%s14426_s30 + $0x48] sm:$0xff]  ;;  %v10290_v20 = vld [vmem:[%s14426_s30 + $0x50] sm:$0xff] }
0x3d39   :  { %v9260_v21 = vadd.f32 %v14210_v50, %v9258_v43 }
0x3d3a   :  { %v9259_v27 = vadd.f32 %v14214_v59, %v9257_v17  ;;  %11771 = vmatprep.subr.bf16.mxu1 %v11770_v63  ;;  %v10291_v17 = vld [vmem:[%s14426_s30 + $0x58] sm:$0xff] }
0x3d3b   :  { %v9264_v46 = vsel %vm416_vm0, %v9260_v21, -inf  ;;  %11773 = vmatpush3.bf16.msra.mxu1 %v11770_v63  ;;  %v11782_v18 = vpack.c.bf16 %v10291_v17, %v10290_v20  ;;  %v9779_v20 = vld [vmem:[%s13135_s14 + $0x10] sm:$0xff]  ;;  %v9780_v17 = vld [vmem:[%s13135_s14 + $0x18] sm:$0xff] }
0x3d3c   :  { %v9261_v25 = vsel %vm416_vm0, %v9259_v27, -inf  ;;  %11775 = vmatprep.subr.bf16.mxu1 %v11774_v3 }
0x3d3d   :  { %9262 = vmax.xlane.f32.xlu0 %v9261_v25 }
0x3d3e   :  { %11305 = vmatmul.mubr.msk.f32.vlgmr.msra.gmra.mrb[66].mxu0 %vm665_vm8, %v11282_v60 }
0x3d3f   :  { %11759 = vmatpush3.bf16.msra.mxu0 %v11756_v5  ;;  %11318 = vmatprep.mubr.msk.f32.mxu0 %vm416_vm0, %v8993_v23  ;;  %v10288_v5 = vld [vmem:[%s14426_s30 + $0x40] sm:$0xff] }
0x3d40   :  { %11321 = vmatprep.subr.mxu0 %v10247_v24  ;;  %11777 = vmatpush3.bf16.msra.mxu1 %v11774_v3  ;;  %v11778_v43 = vpack.c.bf16 %v10289_v16, %v10288_v5  ;;  %v9777_v5 = vld [vmem:[%s13135_s14] sm:$0xff]  ;;  %v9778_v16 = vld [vmem:[%s13135_s14 + $0x8] sm:$0xff] }
0x3d41   :  { %9265 = vmax.xlane.f32.xlu0 %v9264_v46 }
0x3d42   :  { %11319 = vmatmul.mubr.msk.f32.vlgmr.msra.gmra.mrb[68].mxu0 %vm416_vm0, %v8995_v56 }
0x3d43   :  { %11322 = vmatpush3.msra.mxu0 %v10247_v24 }
0x3dca   :  { %v9263_v50 = vpop.xlane.xlu0 %9262 }
0x3dcb   :  { %v9267_v59 = vsub.f32 %v9259_v27, %v9263_v50  ;;  %v10292_v27 = vld [vmem:[%s14426_s30 + $0x60] sm:$0xff] }
0x3dcd   :  { %v9269_v28 = vmul.f32 1.442695, %v9267_v59 }
0x3dce   :  { %v9266_v14 = vpop.xlane.xlu0 %9265 }
0x3dcf   :  { %v9268_v26 = vsub.f32 %v9260_v21, %v9266_v14  ;;  %v10293_v21 = vld [vmem:[%s14426_s30 + $0x68] sm:$0xff] }
0x3dd0   :  { %v11786_v25 = vpack.c.bf16 %v10293_v21, %v10292_v27 }
0x3dd1   :  { %v9271_v6 = vmul.f32 1.442695, %v9268_v26 }
0x3dd3   :  { %12414 = vpow2.f32 %v9271_v6 }
0x3dd4   :  { %12416 = vpow2.f32 %v9269_v28 }
0x3ddd   :  { %v12415_v31 = vpop.eup %12414 }
0x3dde   :  { %v9276_v33 = vsel %vm416_vm0, %v12415_v31, 0.0  ;;  %v12417_v36 = vpop.eup %12416 }
0x3ddf   :  { %9277 = vadd.xlane.f32.xlu0 %v9276_v33  ;;  %v9273_v10 = vsel %vm416_vm0, %v12417_v36, 0.0 }
0x3de3   :  { %9274 = vadd.xlane.f32.xlu0 %v9273_v10 }
0x3df9   :  { %12146 = vrot.lane.b32.xlu0 %v14165_v61, %s12895_s4 }
0x3e15   :  { %v11320_v37 = vpop.f32.mrb[68].mxu0 }
0x3e16   :  { %v9074_v38 = vpop.f32.mrb[69].mxu0 }
0x3e17   :  { %11323 = vmatprep.mubr.msk.f32.mxu0 %vm665_vm8, %v9074_v38  ;;  %v10282_v38 = vld [vmem:[#allocation17 + $0x1] ss:$0 sm:$0xff] }
0x3e18   :  { %11324 = vmatmul.mubr.msk.f32.vlgmr.msra.gmra.mrb[66].mxu0 %vm665_vm8, %v11320_v37 }
0x3e6c   :  { %v9278_v34 = vpop.xlane.xlu0 %9277 }
0x3e6d   :  { %12418 = vrcp.f32 %v9278_v34 }
0x3e70   :  { %v9275_v62 = vpop.xlane.xlu0 %9274 }
0x3e71   :  { %12420 = vrcp.f32 %v9275_v62 }
0x3e74   :  { %v12147_v41 = vpop.permute.xlu0 %12146 }
0x3e75   :  { %v12149_v42 = vunpack.i.h.bf16 %v12147_v41  ;;  %v12148_v9 = vunpack.i.l.bf16 %v12147_v41  ;;  %v10283_v41 = vld [vmem:[#allocation19 + $0x1] ss:$0 sm:$0xff] }
0x3e77   :  { %v11766_v48 = vpack.c.bf16 %v12149_v42, %v12148_v9  ;;  %v12419_v1 = vpop.eup %12418 }
0x3e78   :  { %v9282_v11 = vmul.f32 %v12419_v1, %v12415_v31 }
0x3e79   :  { %11767 = vmatprep.subr.bf16.mxu0 %v11766_v48 }
0x3e7a   :  { %11769 = vmatpush3.bf16.msra.mxu0 %v11766_v48 }
0x3e7b   :  { %v12421_v53 = vpop.eup %12420  ;;  %11340 = vmatprep.subr.mxu0 %v10248_v19 }
0x3e7c   :  { %v9280_v61 = vmul.f32 %v12421_v53, %v12417_v36 }
0x3e7e   :  { %11337 = vmatprep.mubr.msk.f32.mxu0 %vm416_vm0, %v9280_v61  ;;  %v10294_v61 = vld [vmem:[%s14426_s30 + $0x70] sm:$0xff] }
0x3e7f   :  { %11338 = vmatmul.mubr.msk.f32.vlgmr.msra.gmra.mrb[70].mxu0 %vm416_vm0, %v9282_v11  ;;  %v10295_v11 = vld [vmem:[%s14426_s30 + $0x78] sm:$0xff] }
0x3e80   :  { %11341 = vmatpush3.msra.mxu0 %v10248_v19 }
0x3e81   :  { %11779 = vmatprep.subr.bf16.mxu0 %v11778_v43 }
0x3f52   :  { %v11339_v15 = vpop.f32.mrb[70].mxu0 }
0x3f53   :  { %v9361_v47 = vpop.f32.mrb[71].mxu0 }
0x3f54   :  { %11342 = vmatprep.mubr.msk.f32.mxu0 %vm665_vm8, %v9361_v47  ;;  %v10296_v47 = vld [vmem:[#allocation20 + $0x1] ss:$0 sm:$0xff] }
0x3f55   :  { %11343 = vmatmul.mubr.msk.f32.vlgmr.msra.gmra.mrb[66].mxu0 %vm665_vm8, %v11339_v15  ;;  %v11790_v15 = vpack.c.bf16 %v10295_v11, %v10294_v61 }
0x3f56   :  { %11781 = vmatpush3.bf16.msra.mxu0 %v11778_v43  ;;  %v11794_v43 = vpack.c.bf16 %v9778_v16, %v9777_v5 }
0x3f57   :  { %11783 = vmatprep.subr.bf16.mxu0 %v11782_v18 }
0x3f58   :  { %11795 = vmatprep.subr.bf16.mxu1 %v11794_v43 }
0x3f5a   :  { %11785 = vmatpush3.bf16.msra.mxu0 %v11782_v18  ;;  %v11798_v18 = vpack.c.bf16 %v9780_v17, %v9779_v20 }
0x3f5b   :  { %11787 = vmatprep.subr.bf16.mxu0 %v11786_v25 }
0x3f5e   :  { %11789 = vmatpush3.bf16.msra.mxu0 %v11786_v25 }
0x3f5f   :  { %11791 = vmatprep.subr.bf16.mxu0 %v11790_v15 }
0x3f62   :  { %11793 = vmatpush3.bf16.msra.mxu0 %v11790_v15 }
0x4028   :  { %v11344_v57 = vpop.f32.mrb[66].mxu0 }
0x4029   :  { %v9460_v7 = vadd.f32 %v11344_v57, %v10281_v35  ;;  %v9442_v55 = vpop.f32.mrb[67].mxu0 }
0x402a   :  { %v9459_v49 = vadd.f32 %v10281_v35, %v9442_v55 }
0x402b   :  { %v14284_v13 = vadd.f32 %v9460_v7, %v14156_v39 }
0x402c   :  { %v14287_v4 = vadd.f32 %v9459_v49, %v14159_v30 }
0x402d   :  { %v9470_v2 = vsel %vm504_vm3, %v14284_v13, 0.0 }
0x402e   :  { %9471 = vadd.xlane.f32.xlu0 %v9470_v2  ;;  %v9467_v12 = vsel %vm504_vm3, %v14287_v4, 0.0 }
0x402f   :  { %9468 = vadd.xlane.f32.xlu1 %v9467_v12  ;;  %v10299_v12 = vld [vmem:[#allocation22 + $0x1] ss:$0 sm:$0xff] }
0x40bb   :  { %v9472_v52 = vpop.xlane.xlu0 %9471 }
0x40bc   :  { %v9474_v40 = vmul.f32 0.03125, %v9472_v52  ;;  %v9469_v32 = vpop.xlane.xlu1 %9468 }
0x40bd   :  { %v9473_v39 = vmul.f32 0.03125, %v9469_v32 }
0x40be   :  { %v9476_v54 = vsub.f32 %v14284_v13, %v9474_v40 }
0x40bf   :  { %v9475_v30 = vsub.f32 %v14287_v4, %v9473_v39 }
0x40c0   :  { %v9478_v44 = vmul.f32 %v9476_v54, %v9476_v54  ;;  %v9508_v9 = vmul.f32 %v10282_v38, %v9476_v54 }
0x40c1   :  { %v9477_v58 = vmul.f32 %v9475_v30, %v9475_v30  ;;  %v9507_v34 = vmul.f32 %v10282_v38, %v9475_v30  ;;  %v10303_v38 = vld [vmem:[#allocation25] ss:$0 sm:$0xff] }
0x40c2   :  { %v9482_v60 = vsel %vm504_vm3, %v9478_v44, 0.0 }
0x40c3   :  { %v9479_v29 = vsel %vm504_vm3, %v9477_v58, 0.0 }
0x40c4   :  { %9480 = vadd.xlane.f32.xlu1 %v9479_v29 }
0x40c8   :  { %9483 = vadd.xlane.f32.xlu1 %v9482_v60 }
0x4151   :  { %v9481_v22 = vpop.xlane.xlu1 %9480 }
0x4152   :  { %v9485_v23 = vmul.f32 0.032258064, %v9481_v22 }
0x4154   :  { %12422 = vrsqrt.f32 %v9485_v23  ;;  %vm9489_vm8 = vcmp.eq.f32.partialorder %v9485_v23, inf  ;;  %v9492_v59 = vand.u32 2147483648, %v9485_v23  ;;  %vm9491_vm9 = vcmp.eq.f32.partialorder %v9485_v23, 0.0 }
0x4155   :  { %v9484_v56 = vpop.xlane.xlu1 %9483 }
0x4156   :  { %v9486_v46 = vmul.f32 0.032258064, %v9484_v56 }
0x4158   :  { %12424 = vrsqrt.f32 %v9486_v46  ;;  %vm9496_vm1 = vcmp.eq.f32.partialorder %v9486_v46, inf  ;;  %v9499_v33 = vand.u32 2147483648, %v9486_v46  ;;  %vm9498_vm2 = vcmp.eq.f32.partialorder %v9486_v46, 0.0 }
0x415e   :  { %v12423_v24 = vpop.eup %12422 }
0x415f   :  { %v9488_v50 = vmul.f32 %v12423_v24, %v9485_v23 }
0x4161   :  { %v9490_v14 = vsel %vm9489_vm8, %v9485_v23, %v9488_v50 }
0x4162   :  { %v12425_v26 = vpop.eup %12424  ;;  %v9493_v28 = vsel %vm9491_vm9, %v9492_v59, %v9490_v14 }
0x4163   :  { %v9495_v6 = vmul.f32 %v12425_v26, %v9486_v46  ;;  %v9509_v31 = vadd.f32 1e-06, %v9493_v28 }
0x4165   :  { %v9497_v36 = vsel %vm9496_vm1, %v9486_v46, %v9495_v6  ;;  %12426 = vrcp.f32 %v9509_v31 }
0x4166   :  { %v9500_v10 = vsel %vm9498_vm2, %v9499_v33, %v9497_v36  ;;  %v10302_v36 = vld [vmem:[#allocation23] ss:$0 sm:$0xff] }
0x4167   :  { %v9510_v37 = vadd.f32 1e-06, %v9500_v10 }
0x4169   :  { %12428 = vrcp.f32 %v9510_v37 }
0x416f   :  { %v12427_v62 = vpop.eup %12426 }
0x4170   :  { %v9512_v42 = vmul.f32 %v12427_v62, %v9507_v34 }
0x4172   :  { %v9521_v48 = vadd.f32 %v10283_v41, %v9512_v42 }
0x4173   :  { %v12429_v19 = vpop.eup %12428 }
0x4174   :  { %v9514_v1 = vmul.f32 %v12429_v19, %v9508_v9  ;;  %11353 = vmatprep.mubr.msk.f32.mxu1 %vm504_vm3, %v9521_v48  ;;  %v10304_v19 = vld [vmem:[%s13140_s3] ss:$0 sm:$0xff]  ;;  %s12899_s3 = smov [#allocation26]  }
0x4175   :  { %s9900_s14 = sshll.u32 %s12899_s3, 4  ;;  %s9901_s14 = int_to_ptr.vmem [resolvable:$true] %s9900_s14 }
0x4176   :  { %v9522_v53 = vadd.f32 %v10283_v41, %v9514_v1  ;;  %s12782_s9 = scalar_lea.vmem %s9901_s14, 256  ;;  %p12787_p9 = scmp.lt.s32.totalorder %s9901_s14, %s9901_s14 }
0x4177   :  { %p12783_p8 = scmp.ne.s32.totalorder %s9901_s14, %s12782_s9  ;;  %p12788_p10 = scmp.lt.s32.totalorder %s12782_s9, %s12782_s9 }
0x4178   :  { %11354 = vmatmul.mubr.msk.f32.vlgmr.msra.gmra.mrb[68].mxu1 %vm504_vm3, %v9522_v53 }
0x4179   :  { %11797 = vmatpush3.bf16.msra.mxu1 %v11794_v43  ;;  %p12789_p11 = por %p12788_p10, %p12787_p9 }
0x417a   :  { %11799 = vmatprep.subr.bf16.mxu1 %v11798_v18 }
0x417b   :  { %p12790_p12 = pnand %p12789_p11, %p12783_p8 }
0x417d   :  { %11801 = vmatpush3.bf16.msra.mxu1 %v11798_v18 }
0x424b   :  { %v11355_v35 = vpop.f32.mrb[68].mxu1 }
0x424c   :  { %v9625_v57 = vadd.f32 %v11355_v35, %v10296_v47  ;;  %v9619_v7 = vpop.f32.mrb[69].mxu1 }
0x424d   :  { %v9620_v55 = vadd.f32 %v10296_v47, %v9619_v7 }
0x424e   :  { %v9629_v2 = vmax.f32 %v9625_v57, 0.0 }
0x424f   :  { %v9628_v49 = vmax.f32 %v9620_v55, 0.0 }
0x4251   :  { %11372 = vmatprep.mubr.msk.f32.mxu0 %vm1979_vm14, %v9628_v49 }
0x4252   :  { %11373 = vmatmul.mubr.msk.f32.vlgmr.msra.gmra.mrb[72].mxu0 %vm1979_vm14, %v9629_v2 }
0x4325   :  { %v11374_v52 = vpop.f32.mrb[72].mxu0 }
0x4326   :  { %v9708_v40 = vpop.f32.mrb[73].mxu0  ;;  %v9714_v32 = vadd.f32 %v11374_v52, %v10299_v12 }
0x4327   :  { %v9709_v39 = vadd.f32 %v10299_v12, %v9708_v40 }
0x4328   :  { %v9718_v30 = vadd.f32 %v9714_v32, %v14284_v13 }
0x4329   :  { %v9717_v54 = vadd.f32 %v9709_v39, %v14287_v4 }
0x432a   :  { %v9724_v29 = vsel %vm504_vm3, %v9718_v30, 0.0 }
0x432b   :  { %v9721_v58 = vsel %vm504_vm3, %v9717_v54, 0.0 }
0x432c   :  { %9722 = vadd.xlane.f32.xlu1 %v9721_v58 }
0x4330   :  { %9725 = vadd.xlane.f32.xlu1 %v9724_v29 }
0x43b9   :  { %v9723_v44 = vpop.xlane.xlu1 %9722 }
0x43ba   :  { %v9727_v60 = vmul.f32 0.03125, %v9723_v44 }
0x43bc   :  { %v9729_v8 = vsub.f32 %v9717_v54, %v9727_v60 }
0x43bd   :  { %v9726_v0 = vpop.xlane.xlu1 %9725 }
0x43be   :  { %v9728_v51 = vmul.f32 0.03125, %v9726_v0  ;;  %v9731_v63 = vmul.f32 %v9729_v8, %v9729_v8  ;;  %v9761_v10 = vmul.f32 %v10302_v36, %v9729_v8 }
0x43c0   :  { %v9730_v45 = vsub.f32 %v9718_v30, %v9728_v51  ;;  %v9733_v4 = vsel %vm504_vm3, %v9731_v63, 0.0 }
0x43c1   :  { %9734 = vadd.xlane.f32.xlu1 %v9733_v4 }
0x43c2   :  { %v9732_v13 = vmul.f32 %v9730_v45, %v9730_v45  ;;  %v9762_v62 = vmul.f32 %v10302_v36, %v9730_v45 }
0x43c4   :  { %v9736_v3 = vsel %vm504_vm3, %v9732_v13, 0.0 }
0x43c5   :  { %9737 = vadd.xlane.f32.xlu0 %v9736_v3 }
0x444e   :  { %v9735_v27 = vpop.xlane.xlu1 %9734 }
0x444f   :  { %v9739_v21 = vmul.f32 0.032258064, %v9735_v27 }
0x4451   :  { %12430 = vrsqrt.f32 %v9739_v21  ;;  %vm9743_vm14 = vcmp.eq.f32.partialorder %v9739_v21, inf  ;;  %v9746_v46 = vand.u32 2147483648, %v9739_v21  ;;  %vm9745_vm4 = vcmp.eq.f32.partialorder %v9739_v21, 0.0 }
0x4452   :  { %v9738_v25 = vpop.xlane.xlu0 %9737 }
0x4453   :  { %v9740_v22 = vmul.f32 0.032258064, %v9738_v25 }
0x4455   :  { %12432 = vrsqrt.f32 %v9740_v22  ;;  %vm9750_vm5 = vcmp.eq.f32.partialorder %v9740_v22, inf  ;;  %v9753_v28 = vand.u32 2147483648, %v9740_v22  ;;  %vm9752_vm6 = vcmp.eq.f32.partialorder %v9740_v22, 0.0 }
0x445b   :  { %v12431_v23 = vpop.eup %12430 }
0x445c   :  { %v9742_v56 = vmul.f32 %v12431_v23, %v9739_v21 }
0x445e   :  { %v9744_v24 = vsel %vm9743_vm14, %v9739_v21, %v9742_v56 }
0x445f   :  { %v12433_v50 = vpop.eup %12432  ;;  %v9747_v59 = vsel %vm9745_vm4, %v9746_v46, %v9744_v24 }
0x4460   :  { %v9749_v14 = vmul.f32 %v12433_v50, %v9740_v22  ;;  %v9763_v26 = vadd.f32 1e-06, %v9747_v59 }
0x4462   :  { %v9751_v6 = vsel %vm9750_vm5, %v9740_v22, %v9749_v14  ;;  %12434 = vrcp.f32 %v9763_v26 }
0x4463   :  { %v9754_v31 = vsel %vm9752_vm6, %v9753_v28, %v9751_v6 }
0x4464   :  { %v9764_v33 = vadd.f32 1e-06, %v9754_v31 }
0x4466   :  { %12436 = vrcp.f32 %v9764_v33 }
0x446c   :  { %v12435_v37 = vpop.eup %12434 }
0x446d   :  { %v9766_v34 = vmul.f32 %v12435_v37, %v9761_v10 }
0x446f   :  { %v9775_v41 = vadd.f32 %v10303_v38, %v9766_v34 }
0x4470   :  { %v12437_v42 = vpop.eup %12436 }
0x4471   :  { %v9768_v9 = vmul.f32 %v12437_v42, %v9762_v62  ;;  %11383 = vmatprep.mubr.msk.f32.mxu1 %vm504_vm3, %v9775_v41 }
0x4473   :  { %v9776_v48 = vadd.f32 %v10303_v38, %v9768_v9 }
0x4475   :  { %11384 = vmatmul.mubr.msk.f32.vlgmr.msra.gmra.mrb[70].mxu1 %vm504_vm3, %v9776_v48 }
0x4548   :  { %v11385_v1 = vpop.f32.mrb[70].mxu1 }
0x4549   :  { %v9866_v53 = vadd.f32 %v11385_v1, %v10304_v19  ;;  %v9860_v61 = vpop.f32.mrb[71].mxu1 }
0x454a   :  { %v9861_v11 = vadd.f32 %v10304_v19, %v9860_v61 }
0x454b   :  { %v9872_v15 = vsel %vm416_vm0, %v9866_v53, -inf }
0x454c   :  { %9873 = vmax.xlane.f32.xlu0 %v9872_v15  ;;  %v9869_v47 = vsel %vm416_vm0, %v9861_v11, -inf }
0x454d   :  { %9870 = vmax.xlane.f32.xlu1 %v9869_v47 }
0x45d9   :  { %v9874_v35 = vpop.xlane.xlu0 %9873 }
0x45da   :  { %v9876_v57 = vsub.f32 %v9866_v53, %v9874_v35  ;;  %v9871_v7 = vpop.xlane.xlu1 %9870 }
0x45db   :  { %v9875_v55 = vsub.f32 %v9861_v11, %v9871_v7 }
0x45dc   :  { %v9879_v49 = vmul.f32 1.442695, %v9876_v57 }
0x45dd   :  { %v9877_v2 = vmul.f32 1.442695, %v9875_v55 }
0x45de   :  { %12438 = vpow2.f32 %v9879_v49 }
0x45df   :  { %12440 = vpow2.f32 %v9877_v2 }
0x45e8   :  { %v12439_v12 = vpop.eup %12438 }
0x45e9   :  { %v12441_v52 = vpop.eup %12440  ;;  %v9884_v40 = vsel %vm416_vm0, %v12439_v12, 0.0 }
0x45ea   :  { %9885 = vadd.xlane.f32.xlu0 %v9884_v40  ;;  %v9881_v32 = vsel %vm416_vm0, %v12441_v52, 0.0 }
0x45eb   :  { %9882 = vadd.xlane.f32.xlu1 %v9881_v32 }
0x4677   :  { %v9886_v39 = vpop.xlane.xlu0 %9885 }
0x4678   :  { %12442 = vlog2.f32 %v9886_v39  ;;  %v9883_v54 = vpop.xlane.xlu1 %9882 }
0x4679   :  { %12444 = vlog2.f32 %v9883_v54 }
0x4682   :  { %v12443_v30 = vpop.eup %12442 }
0x4683   :  { %v12445_v58 = vpop.eup %12444  ;;  %v9890_v29 = vmul.f32 0.6931472, %v12443_v30 }
0x4684   :  { %v9888_v44 = vmul.f32 0.6931472, %v12445_v58 }
0x4685   :  { %v9892_v60 = vsub.f32 %v9876_v57, %v9890_v29 }
0x4686   :  { %v9891_v8 = vsub.f32 %v9875_v55, %v9888_v44 }
0x4687   :  { %9894 = vst.msk [vmem:[#allocation26 + $0x8] sm:$0xff] %vm416_vm0, %v9892_v60 }
0x4688   :  { %9893 = vst.msk [vmem:[#allocation26] sm:$0xff] %vm416_vm0, %v9891_v8 }
0x4689   :  { %12793 = shalt.err (!%p12790_p12)
}
0x468a   :  { %s12794_s6 = scalar_lea.hbm %s13145_s5, 256 }
0x468b   :  { %p12795_p13 = scmp.ne.s32.totalorder %s13145_s5, %s12794_s6  ;;  %p12798_p0 = scmp.lt.u32.totalorder %s12794_s6, %s13145_s5 }
0x468d   :  { %p12800_p1 = pnand %p12798_p0, %p12795_p13 }
0x468f   :  { %12803 = shalt.err (!%p12800_p1)
}
0x4690   :  { %s12900_s17 = smov 128   ;;  %s12901_s12 = smov 8  }
0x4691   :  { %9906 = dma.vmem_to_hbm [thread:$0]  %s9901_s14, 256, %s13145_s5, [#allocation4], %s12900_s17, %s12900_s17, %s12901_s12  }
0x4692   :  { %12820 = dma.done.wait [#allocation4], 256  }
0x4693   :  { %12821 = vsyncadd [#allocation4], 4294967040 }
0x4694   :  { %9910 = vsyncpa [#allocation3], 1 }
0x4695   :  { %9911 = vsyncpa [#allocation6], 1 }
0x4696   :  { %9912 = vsyncpa [#allocation9], 1 }
0x4697   :  { %9913 = vsyncpa [#allocation12], 1 }
0x4698   :  { %9914 = vsyncpa [#allocation15], 1 }
0x4699   :  { %9915 = vsyncpa [#allocation18], 1 }
0x469a   :  { %9916 = vsyncpa [#allocation21], 1 }
0x469b   :  { %9917 = vsyncpa [#allocation24], 1 }
0x469c   :  { %9918 = vsyncpa [#allocation4], 1 }

</bundles_post_ra>
